<compile_context>
chip_gen: v7x
topology: tpu7x:2x2x1
jax: 0.10.0
libtpu: 0.0.40
codegen_flags: <defaults>
</compile_context>

<pallas_src>
import jax
import jax.numpy as jnp
from jax.experimental import pallas as pl
from jax.experimental.pallas import tpu as pltpu


# ---------------------------------------------------------------------------
# Fused Pallas kernel: conv3x3+ReLU -> conv3x3+ReLU -> GAP -> 2-col head
# ---------------------------------------------------------------------------

def _fused_forward_kernel(x_ref, w1_ref, b1_ref, w2_ref, b2_ref,
                          wh_ref, bh_ref, out_ref,
                          xp_s, h1p_s, slab1_s, slab2_s):
    """All activations stay in VMEM; each conv is one im2col slab + one matmul."""
    B, Hp, Wp, cin = xp_s.shape
    H, W = Hp - 2, Wp - 2
    c1 = h1p_s.shape[-1]
    c2 = w2_ref.shape[-1]
    M = B * H * W

    # ---- zero ONLY the 1-pixel border ring of the padded scratches ----------
    for buf, c in ((xp_s, cin), (h1p_s, c1)):
        buf[:, 0:1, :, :] = jnp.zeros((B, 1, Wp, c), buf.dtype)
        buf[:, Hp - 1:Hp, :, :] = jnp.zeros((B, 1, Wp, c), buf.dtype)
        buf[:, :, 0:1, :] = jnp.zeros((B, Hp, 1, c), buf.dtype)
        buf[:, :, Wp - 1:Wp, :] = jnp.zeros((B, Hp, 1, c), buf.dtype)

    # interior stored exactly once
    xp_s[:, 1:1 + H, 1:1 + W, :] = x_ref[...]

    # ---- conv1: build im2col slab (M, 9*cin) in bf16, ONE MXU matmul --------
    for k in range(9):
        di, dj = k // 3, k % 3
        patch = xp_s[:, di:di + H, dj:dj + W, :].reshape(M, cin)
        slab1_s[:, k * cin:(k + 1) * cin] = patch.astype(jnp.bfloat16)
    h1 = jnp.maximum(
        jnp.dot(slab1_s[...], w1_ref[...],
                preferred_element_type=jnp.float32) + b1_ref[...], 0.0)   # (M,c1) f32
    h1p_s[:, 1:1 + H, 1:1 + W, :] = h1.reshape(B, H, W, c1)

    # ---- conv2: slab (M, 9*c1) = (M, 288) in bf16, ONE MXU matmul -----------
    for k in range(9):
        di, dj = k // 3, k % 3
        patch = h1p_s[:, di:di + H, dj:dj + W, :].reshape(M, c1)
        slab2_s[:, k * c1:(k + 1) * c1] = patch.astype(jnp.bfloat16)
    h2 = jnp.maximum(
        jnp.dot(slab2_s[...], w2_ref[...],
                preferred_element_type=jnp.float32) + b2_ref[...], 0.0)   # (M,c2) f32

    # ---- global average pool + two-column linear head (+ sigmoid on col 1) --
    feat = jnp.mean(h2.reshape(B, H * W, c2), axis=1)                      # (B,c2)
    raw = jnp.dot(feat, wh_ref[...],
                  preferred_element_type=jnp.float32) + bh_ref[...]        # (B,2)
    sig = pl.reciprocal(1.0 + jnp.exp(-raw), approx=True)                  # EUP slot
    col = jax.lax.broadcasted_iota(jnp.int32, raw.shape, 1)
    out_ref[...] = jnp.where(col == 0, raw, sig)                # [wc, sigmoid(sel)]


# ---------------------------------------------------------------------------
# Wrappers
# ---------------------------------------------------------------------------

def _fused_forward(params, x_nhwc):
    B, H, W, cin = x_nhwc.shape
    c1 = params["b1"].shape[-1]
    M = B * H * W
    return pl.pallas_call(
        _fused_forward_kernel,
        out_shape=jax.ShapeDtypeStruct((B, 2), jnp.float32),
        in_specs=[pl.BlockSpec(memory_space=pltpu.MemorySpace.VMEM)] * 7,
        out_specs=pl.BlockSpec(memory_space=pltpu.MemorySpace.VMEM),
        scratch_shapes=[
            pltpu.VMEM((B, H + 2, W + 2, cin), jnp.float32),   # padded input
            pltpu.VMEM((B, H + 2, W + 2, c1), jnp.float32),    # padded conv1 act
            pltpu.VMEM((M, 9 * cin), jnp.bfloat16),            # conv1 im2col slab
            pltpu.VMEM((M, 9 * c1), jnp.bfloat16),             # conv2 im2col slab
        ],
    )(x_nhwc, params["w1"], params["b1"], params["w2"], params["b2"],
      params["wh"], params["bh"])


def init_params(key, in_channels=4, hidden=32):
    k1, k2, k3 = jax.random.split(key, 3)
    scale = 0.1
    # conv weights folded to (9*Cin, Cout); row index = k*Cin + c, k = 3*di + dj
    w1 = (jax.random.normal(k1, (9, in_channels, hidden)) * scale
          ).reshape(9 * in_channels, hidden)
    w2 = (jax.random.normal(k2, (9, hidden, hidden)) * scale
          ).reshape(9 * hidden, hidden)
    return {
        "w1": w1.astype(jnp.bfloat16),
        "b1": jnp.zeros((1, hidden), jnp.float32),
        "w2": w2.astype(jnp.bfloat16),
        "b2": jnp.zeros((1, hidden), jnp.float32),
        "wh": (jax.random.normal(k3, (hidden, 2)) * scale).astype(jnp.float32),
        "bh": jnp.zeros((1, 2), jnp.float32),
    }


@jax.jit
def model_forward(params, x_nchw):
    """Equivalent of Model.forward: returns (wc, sel), each of shape (B,)."""
    x = jnp.transpose(x_nchw, (0, 2, 3, 1)).astype(jnp.float32)   # NCHW -> NHWC
    out = _fused_forward(params, x)                               # (B, 2)
    return out[:, 0], out[:, 1]                                   # sel already sigmoided


# Pure-JAX reference (same math + same bf16 quantization, no Pallas).
def reference_forward(params, x_nchw):
    x = jnp.transpose(x_nchw, (0, 2, 3, 1)).astype(jnp.float32)

    def conv3x3_relu(h, w_folded, b):
        B, H, W, C = h.shape
        hp = jnp.pad(h, ((0, 0), (1, 1), (1, 1), (0, 0)))
        cols = [hp[:, k // 3:k // 3 + H, k % 3:k % 3 + W, :].reshape(B * H * W, C)
                for k in range(9)]
        slab = jnp.concatenate(cols, axis=-1).astype(jnp.bfloat16)
        acc = jnp.dot(slab, w_folded, preferred_element_type=jnp.float32) + b
        return jnp.maximum(acc, 0.0).reshape(B, H, W, -1)

    h = conv3x3_relu(x, params["w1"], params["b1"])
    h = conv3x3_relu(h, params["w2"], params["b2"])
    feat = h.mean(axis=(1, 2))
    raw = jnp.dot(feat, params["wh"],
                  preferred_element_type=jnp.float32) + params["bh"]
    return raw[:, 0], jax.nn.sigmoid(raw[:, 1])


if __name__ == "__main__":
    key = jax.random.PRNGKey(0)
    kx, kp = jax.random.split(key)
    # Small shapes consistent with the module: batch=2, channels=4, 16x16 images.
    x = jax.random.normal(kx, (2, 4, 16, 16), dtype=jnp.float32)   # NCHW
    params = init_params(kp, in_channels=4, hidden=32)

    wc, sel = model_forward(params, x)
    jax.block_until_ready((wc, sel))

    wc_ref, sel_ref = reference_forward(params, x)

    assert wc.shape == (2,) and sel.shape == (2,)
    assert bool(jnp.all(jnp.isfinite(wc))) and bool(jnp.all(jnp.isfinite(sel)))
    assert bool(jnp.allclose(wc, wc_ref, atol=5e-3, rtol=5e-3))
    assert bool(jnp.allclose(sel, sel_ref, atol=5e-3, rtol=5e-3))
    print("KERNEL_OK")
</pallas_src>

<mosaic_0001>
module attributes {stable_mosaic.version = 11 : i64} {
  func.func @_fused_forward_kernel(%arg0: memref<2x16x16x4xf32, #tpu.memory_space<vmem>>, %arg1: memref<36x32xbf16, #tpu.memory_space<vmem>>, %arg2: memref<1x32xf32, #tpu.memory_space<vmem>>, %arg3: memref<288x32xbf16, #tpu.memory_space<vmem>>, %arg4: memref<1x32xf32, #tpu.memory_space<vmem>>, %arg5: memref<32x2xf32, #tpu.memory_space<vmem>>, %arg6: memref<1x2xf32, #tpu.memory_space<vmem>>, %arg7: memref<2x2xf32, #tpu.memory_space<vmem>>, %arg8: memref<2x18x18x4xf32, #tpu.memory_space<vmem>>, %arg9: memref<2x18x18x32xf32, #tpu.memory_space<vmem>>, %arg10: memref<512x36xbf16, #tpu.memory_space<vmem>>, %arg11: memref<512x288xbf16, #tpu.memory_space<vmem>>) attributes {dimension_semantics = [], scalar_prefetch = 0 : i64, scratch_operands = 4 : i64, tpu.core_type = #tpu.core_type<tc>} {
    %cst = arith.constant 0.000000e+00 : f32
    %0 = vector.broadcast %cst : f32 to vector<2x1x18x4xf32>
    %c0 = arith.constant 0 : index
    %c0_0 = arith.constant 0 : index
    %c0_1 = arith.constant 0 : index
    %c0_2 = arith.constant 0 : index
    %1 = vector.load %arg8[%c0, %c0_0, %c0_1, %c0_2] : memref<2x18x18x4xf32, #tpu.memory_space<vmem>>, vector<2x1x18x4xf32>
    tpu.vector_store %arg8[%c0, %c0_0, %c0_1, %c0_2], %0 {strides = array<i32>} : memref<2x18x18x4xf32, #tpu.memory_space<vmem>>, vector<2x1x18x4xf32>,
    %cst_3 = arith.constant 0.000000e+00 : f32
    %2 = vector.broadcast %cst_3 : f32 to vector<2x1x18x4xf32>
    %c0_4 = arith.constant 0 : index
    %c17 = arith.constant 17 : index
    %c0_5 = arith.constant 0 : index
    %c0_6 = arith.constant 0 : index
    %3 = vector.load %arg8[%c0_4, %c17, %c0_5, %c0_6] : memref<2x18x18x4xf32, #tpu.memory_space<vmem>>, vector<2x1x18x4xf32>
    tpu.vector_store %arg8[%c0_4, %c17, %c0_5, %c0_6], %2 {strides = array<i32>} : memref<2x18x18x4xf32, #tpu.memory_space<vmem>>, vector<2x1x18x4xf32>,
    %cst_7 = arith.constant 0.000000e+00 : f32
    %4 = vector.broadcast %cst_7 : f32 to vector<2x18x1x4xf32>
    %c0_8 = arith.constant 0 : index
    %c0_9 = arith.constant 0 : index
    %c0_10 = arith.constant 0 : index
    %c0_11 = arith.constant 0 : index
    %5 = vector.load %arg8[%c0_8, %c0_9, %c0_10, %c0_11] : memref<2x18x18x4xf32, #tpu.memory_space<vmem>>, vector<2x18x1x4xf32>
    tpu.vector_store %arg8[%c0_8, %c0_9, %c0_10, %c0_11], %4 {strides = array<i32>} : memref<2x18x18x4xf32, #tpu.memory_space<vmem>>, vector<2x18x1x4xf32>,
    %cst_12 = arith.constant 0.000000e+00 : f32
    %6 = vector.broadcast %cst_12 : f32 to vector<2x18x1x4xf32>
    %c0_13 = arith.constant 0 : index
    %c0_14 = arith.constant 0 : index
    %c17_15 = arith.constant 17 : index
    %c0_16 = arith.constant 0 : index
    %7 = vector.load %arg8[%c0_13, %c0_14, %c17_15, %c0_16] : memref<2x18x18x4xf32, #tpu.memory_space<vmem>>, vector<2x18x1x4xf32>
    tpu.vector_store %arg8[%c0_13, %c0_14, %c17_15, %c0_16], %6 {strides = array<i32>} : memref<2x18x18x4xf32, #tpu.memory_space<vmem>>, vector<2x18x1x4xf32>,
    %cst_17 = arith.constant 0.000000e+00 : f32
    %8 = vector.broadcast %cst_17 : f32 to vector<2x1x18x32xf32>
    %c0_18 = arith.constant 0 : index
    %c0_19 = arith.constant 0 : index
    %c0_20 = arith.constant 0 : index
    %c0_21 = arith.constant 0 : index
    %9 = vector.load %arg9[%c0_18, %c0_19, %c0_20, %c0_21] : memref<2x18x18x32xf32, #tpu.memory_space<vmem>>, vector<2x1x18x32xf32>
    tpu.vector_store %arg9[%c0_18, %c0_19, %c0_20, %c0_21], %8 {strides = array<i32>} : memref<2x18x18x32xf32, #tpu.memory_space<vmem>>, vector<2x1x18x32xf32>,
    %cst_22 = arith.constant 0.000000e+00 : f32
    %10 = vector.broadcast %cst_22 : f32 to vector<2x1x18x32xf32>
    %c0_23 = arith.constant 0 : index
    %c17_24 = arith.constant 17 : index
    %c0_25 = arith.constant 0 : index
    %c0_26 = arith.constant 0 : index
    %11 = vector.load %arg9[%c0_23, %c17_24, %c0_25, %c0_26] : memref<2x18x18x32xf32, #tpu.memory_space<vmem>>, vector<2x1x18x32xf32>
    tpu.vector_store %arg9[%c0_23, %c17_24, %c0_25, %c0_26], %10 {strides = array<i32>} : memref<2x18x18x32xf32, #tpu.memory_space<vmem>>, vector<2x1x18x32xf32>,
    %cst_27 = arith.constant 0.000000e+00 : f32
    %12 = vector.broadcast %cst_27 : f32 to vector<2x18x1x32xf32>
    %c0_28 = arith.constant 0 : index
    %c0_29 = arith.constant 0 : index
    %c0_30 = arith.constant 0 : index
    %c0_31 = arith.constant 0 : index
    %13 = vector.load %arg9[%c0_28, %c0_29, %c0_30, %c0_31] : memref<2x18x18x32xf32, #tpu.memory_space<vmem>>, vector<2x18x1x32xf32>
    tpu.vector_store %arg9[%c0_28, %c0_29, %c0_30, %c0_31], %12 {strides = array<i32>} : memref<2x18x18x32xf32, #tpu.memory_space<vmem>>, vector<2x18x1x32xf32>,
    %cst_32 = arith.constant 0.000000e+00 : f32
    %14 = vector.broadcast %cst_32 : f32 to vector<2x18x1x32xf32>
    %c0_33 = arith.constant 0 : index
    %c0_34 = arith.constant 0 : index
    %c17_35 = arith.constant 17 : index
    %c0_36 = arith.constant 0 : index
    %15 = vector.load %arg9[%c0_33, %c0_34, %c17_35, %c0_36] : memref<2x18x18x32xf32, #tpu.memory_space<vmem>>, vector<2x18x1x32xf32>
    tpu.vector_store %arg9[%c0_33, %c0_34, %c17_35, %c0_36], %14 {strides = array<i32>} : memref<2x18x18x32xf32, #tpu.memory_space<vmem>>, vector<2x18x1x32xf32>,
    %c0_37 = arith.constant 0 : index
    %c0_38 = arith.constant 0 : index
    %c0_39 = arith.constant 0 : index
    %c0_40 = arith.constant 0 : index
    %16 = vector.load %arg0[%c0_37, %c0_38, %c0_39, %c0_40] : memref<2x16x16x4xf32, #tpu.memory_space<vmem>>, vector<2x16x16x4xf32>
    %c0_41 = arith.constant 0 : index
    %c1 = arith.constant 1 : index
    %c1_42 = arith.constant 1 : index
    %c0_43 = arith.constant 0 : index
    %17 = vector.load %arg8[%c0_41, %c1, %c1_42, %c0_43] : memref<2x18x18x4xf32, #tpu.memory_space<vmem>>, vector<2x16x16x4xf32>
    tpu.vector_store %arg8[%c0_41, %c1, %c1_42, %c0_43], %16 {strides = array<i32>} : memref<2x18x18x4xf32, #tpu.memory_space<vmem>>, vector<2x16x16x4xf32>,
    %c0_44 = arith.constant 0 : index
    %c0_45 = arith.constant 0 : index
    %c0_46 = arith.constant 0 : index
    %c0_47 = arith.constant 0 : index
    %18 = vector.load %arg8[%c0_44, %c0_45, %c0_46, %c0_47] : memref<2x18x18x4xf32, #tpu.memory_space<vmem>>, vector<2x16x16x4xf32>
    %19 = vector.shape_cast %18 : vector<2x16x16x4xf32> to vector<512x4xf32>
    %20 = arith.truncf %19 : vector<512x4xf32> to vector<512x4xbf16>
    %c0_48 = arith.constant 0 : index
    %c0_49 = arith.constant 0 : index
    %21 = vector.load %arg10[%c0_48, %c0_49] : memref<512x36xbf16, #tpu.memory_space<vmem>>, vector<512x4xbf16>
    tpu.vector_store %arg10[%c0_48, %c0_49], %20 {strides = array<i32>} : memref<512x36xbf16, #tpu.memory_space<vmem>>, vector<512x4xbf16>,
    %c0_50 = arith.constant 0 : index
    %c0_51 = arith.constant 0 : index
    %c1_52 = arith.constant 1 : index
    %c0_53 = arith.constant 0 : index
    %22 = vector.load %arg8[%c0_50, %c0_51, %c1_52, %c0_53] : memref<2x18x18x4xf32, #tpu.memory_space<vmem>>, vector<2x16x16x4xf32>
    %23 = vector.shape_cast %22 : vector<2x16x16x4xf32> to vector<512x4xf32>
    %24 = arith.truncf %23 : vector<512x4xf32> to vector<512x4xbf16>
    %c0_54 = arith.constant 0 : index
    %c4 = arith.constant 4 : index
    %25 = vector.load %arg10[%c0_54, %c4] : memref<512x36xbf16, #tpu.memory_space<vmem>>, vector<512x4xbf16>
    tpu.vector_store %arg10[%c0_54, %c4], %24 {strides = array<i32>} : memref<512x36xbf16, #tpu.memory_space<vmem>>, vector<512x4xbf16>,
    %c0_55 = arith.constant 0 : index
    %c0_56 = arith.constant 0 : index
    %c2 = arith.constant 2 : index
    %c0_57 = arith.constant 0 : index
    %26 = vector.load %arg8[%c0_55, %c0_56, %c2, %c0_57] : memref<2x18x18x4xf32, #tpu.memory_space<vmem>>, vector<2x16x16x4xf32>
    %27 = vector.shape_cast %26 : vector<2x16x16x4xf32> to vector<512x4xf32>
    %28 = arith.truncf %27 : vector<512x4xf32> to vector<512x4xbf16>
    %c0_58 = arith.constant 0 : index
    %c8 = arith.constant 8 : index
    %29 = vector.load %arg10[%c0_58, %c8] : memref<512x36xbf16, #tpu.memory_space<vmem>>, vector<512x4xbf16>
    tpu.vector_store %arg10[%c0_58, %c8], %28 {strides = array<i32>} : memref<512x36xbf16, #tpu.memory_space<vmem>>, vector<512x4xbf16>,
    %c0_59 = arith.constant 0 : index
    %c1_60 = arith.constant 1 : index
    %c0_61 = arith.constant 0 : index
    %c0_62 = arith.constant 0 : index
    %30 = vector.load %arg8[%c0_59, %c1_60, %c0_61, %c0_62] : memref<2x18x18x4xf32, #tpu.memory_space<vmem>>, vector<2x16x16x4xf32>
    %31 = vector.shape_cast %30 : vector<2x16x16x4xf32> to vector<512x4xf32>
    %32 = arith.truncf %31 : vector<512x4xf32> to vector<512x4xbf16>
    %c0_63 = arith.constant 0 : index
    %c12 = arith.constant 12 : index
    %33 = vector.load %arg10[%c0_63, %c12] : memref<512x36xbf16, #tpu.memory_space<vmem>>, vector<512x4xbf16>
    tpu.vector_store %arg10[%c0_63, %c12], %32 {strides = array<i32>} : memref<512x36xbf16, #tpu.memory_space<vmem>>, vector<512x4xbf16>,
    %c0_64 = arith.constant 0 : index
    %c1_65 = arith.constant 1 : index
    %c1_66 = arith.constant 1 : index
    %c0_67 = arith.constant 0 : index
    %34 = vector.load %arg8[%c0_64, %c1_65, %c1_66, %c0_67] : memref<2x18x18x4xf32, #tpu.memory_space<vmem>>, vector<2x16x16x4xf32>
    %35 = vector.shape_cast %34 : vector<2x16x16x4xf32> to vector<512x4xf32>
    %36 = arith.truncf %35 : vector<512x4xf32> to vector<512x4xbf16>
    %c0_68 = arith.constant 0 : index
    %c16 = arith.constant 16 : index
    %37 = vector.load %arg10[%c0_68, %c16] : memref<512x36xbf16, #tpu.memory_space<vmem>>, vector<512x4xbf16>
    tpu.vector_store %arg10[%c0_68, %c16], %36 {strides = array<i32>} : memref<512x36xbf16, #tpu.memory_space<vmem>>, vector<512x4xbf16>,
    %c0_69 = arith.constant 0 : index
    %c1_70 = arith.constant 1 : index
    %c2_71 = arith.constant 2 : index
    %c0_72 = arith.constant 0 : index
    %38 = vector.load %arg8[%c0_69, %c1_70, %c2_71, %c0_72] : memref<2x18x18x4xf32, #tpu.memory_space<vmem>>, vector<2x16x16x4xf32>
    %39 = vector.shape_cast %38 : vector<2x16x16x4xf32> to vector<512x4xf32>
    %40 = arith.truncf %39 : vector<512x4xf32> to vector<512x4xbf16>
    %c0_73 = arith.constant 0 : index
    %c20 = arith.constant 20 : index
    %41 = vector.load %arg10[%c0_73, %c20] : memref<512x36xbf16, #tpu.memory_space<vmem>>, vector<512x4xbf16>
    tpu.vector_store %arg10[%c0_73, %c20], %40 {strides = array<i32>} : memref<512x36xbf16, #tpu.memory_space<vmem>>, vector<512x4xbf16>,
    %c0_74 = arith.constant 0 : index
    %c2_75 = arith.constant 2 : index
    %c0_76 = arith.constant 0 : index
    %c0_77 = arith.constant 0 : index
    %42 = vector.load %arg8[%c0_74, %c2_75, %c0_76, %c0_77] : memref<2x18x18x4xf32, #tpu.memory_space<vmem>>, vector<2x16x16x4xf32>
    %43 = vector.shape_cast %42 : vector<2x16x16x4xf32> to vector<512x4xf32>
    %44 = arith.truncf %43 : vector<512x4xf32> to vector<512x4xbf16>
    %c0_78 = arith.constant 0 : index
    %c24 = arith.constant 24 : index
    %45 = vector.load %arg10[%c0_78, %c24] : memref<512x36xbf16, #tpu.memory_space<vmem>>, vector<512x4xbf16>
    tpu.vector_store %arg10[%c0_78, %c24], %44 {strides = array<i32>} : memref<512x36xbf16, #tpu.memory_space<vmem>>, vector<512x4xbf16>,
    %c0_79 = arith.constant 0 : index
    %c2_80 = arith.constant 2 : index
    %c1_81 = arith.constant 1 : index
    %c0_82 = arith.constant 0 : index
    %46 = vector.load %arg8[%c0_79, %c2_80, %c1_81, %c0_82] : memref<2x18x18x4xf32, #tpu.memory_space<vmem>>, vector<2x16x16x4xf32>
    %47 = vector.shape_cast %46 : vector<2x16x16x4xf32> to vector<512x4xf32>
    %48 = arith.truncf %47 : vector<512x4xf32> to vector<512x4xbf16>
    %c0_83 = arith.constant 0 : index
    %c28 = arith.constant 28 : index
    %49 = vector.load %arg10[%c0_83, %c28] : memref<512x36xbf16, #tpu.memory_space<vmem>>, vector<512x4xbf16>
    tpu.vector_store %arg10[%c0_83, %c28], %48 {strides = array<i32>} : memref<512x36xbf16, #tpu.memory_space<vmem>>, vector<512x4xbf16>,
    %c0_84 = arith.constant 0 : index
    %c2_85 = arith.constant 2 : index
    %c2_86 = arith.constant 2 : index
    %c0_87 = arith.constant 0 : index
    %50 = vector.load %arg8[%c0_84, %c2_85, %c2_86, %c0_87] : memref<2x18x18x4xf32, #tpu.memory_space<vmem>>, vector<2x16x16x4xf32>
    %51 = vector.shape_cast %50 : vector<2x16x16x4xf32> to vector<512x4xf32>
    %52 = arith.truncf %51 : vector<512x4xf32> to vector<512x4xbf16>
    %c0_88 = arith.constant 0 : index
    %c32 = arith.constant 32 : index
    %53 = vector.load %arg10[%c0_88, %c32] : memref<512x36xbf16, #tpu.memory_space<vmem>>, vector<512x4xbf16>
    tpu.vector_store %arg10[%c0_88, %c32], %52 {strides = array<i32>} : memref<512x36xbf16, #tpu.memory_space<vmem>>, vector<512x4xbf16>,
    %c0_89 = arith.constant 0 : index
    %c0_90 = arith.constant 0 : index
    %54 = vector.load %arg10[%c0_89, %c0_90] : memref<512x36xbf16, #tpu.memory_space<vmem>>, vector<512x36xbf16>
    %c0_91 = arith.constant 0 : index
    %c0_92 = arith.constant 0 : index
    %55 = vector.load %arg1[%c0_91, %c0_92] : memref<36x32xbf16, #tpu.memory_space<vmem>>, vector<36x32xbf16>
    %cst_93 = arith.constant dense<0.000000e+00> : vector<512x32xf32>
    %56 = tpu.matmul %54, %55, %cst_93 {dimension_numbers = #tpu.dot_dimension_numbers<[1], [0], [0], [1], [0, 0, 1, 1], [], []>} : vector<512x36xbf16>, vector<36x32xbf16>, vector<512x32xf32> -> vector<512x32xf32>
    %c0_94 = arith.constant 0 : index
    %c0_95 = arith.constant 0 : index
    %57 = vector.load %arg2[%c0_94, %c0_95] : memref<1x32xf32, #tpu.memory_space<vmem>>, vector<1x32xf32>
    %58 = vector.broadcast %57 : vector<1x32xf32> to vector<512x32xf32>
    %59 = arith.addf %56, %58 : vector<512x32xf32>
    %cst_96 = arith.constant 0.000000e+00 : f32
    %60 = vector.broadcast %cst_96 : f32 to vector<512x32xf32>
    %61 = arith.maximumf %59, %60 : vector<512x32xf32>
    %62 = vector.shape_cast %61 : vector<512x32xf32> to vector<2x16x16x32xf32>
    %c0_97 = arith.constant 0 : index
    %c1_98 = arith.constant 1 : index
    %c1_99 = arith.constant 1 : index
    %c0_100 = arith.constant 0 : index
    %63 = vector.load %arg9[%c0_97, %c1_98, %c1_99, %c0_100] : memref<2x18x18x32xf32, #tpu.memory_space<vmem>>, vector<2x16x16x32xf32>
    tpu.vector_store %arg9[%c0_97, %c1_98, %c1_99, %c0_100], %62 {strides = array<i32>} : memref<2x18x18x32xf32, #tpu.memory_space<vmem>>, vector<2x16x16x32xf32>,
    %c0_101 = arith.constant 0 : index
    %c0_102 = arith.constant 0 : index
    %c0_103 = arith.constant 0 : index
    %c0_104 = arith.constant 0 : index
    %64 = vector.load %arg9[%c0_101, %c0_102, %c0_103, %c0_104] : memref<2x18x18x32xf32, #tpu.memory_space<vmem>>, vector<2x16x16x32xf32>
    %65 = vector.shape_cast %64 : vector<2x16x16x32xf32> to vector<512x32xf32>
    %66 = arith.truncf %65 : vector<512x32xf32> to vector<512x32xbf16>
    %c0_105 = arith.constant 0 : index
    %c0_106 = arith.constant 0 : index
    %67 = vector.load %arg11[%c0_105, %c0_106] : memref<512x288xbf16, #tpu.memory_space<vmem>>, vector<512x32xbf16>
    tpu.vector_store %arg11[%c0_105, %c0_106], %66 {strides = array<i32>} : memref<512x288xbf16, #tpu.memory_space<vmem>>, vector<512x32xbf16>,
    %c0_107 = arith.constant 0 : index
    %c0_108 = arith.constant 0 : index
    %c1_109 = arith.constant 1 : index
    %c0_110 = arith.constant 0 : index
    %68 = vector.load %arg9[%c0_107, %c0_108, %c1_109, %c0_110] : memref<2x18x18x32xf32, #tpu.memory_space<vmem>>, vector<2x16x16x32xf32>
    %69 = vector.shape_cast %68 : vector<2x16x16x32xf32> to vector<512x32xf32>
    %70 = arith.truncf %69 : vector<512x32xf32> to vector<512x32xbf16>
    %c0_111 = arith.constant 0 : index
    %c32_112 = arith.constant 32 : index
    %71 = vector.load %arg11[%c0_111, %c32_112] : memref<512x288xbf16, #tpu.memory_space<vmem>>, vector<512x32xbf16>
    tpu.vector_store %arg11[%c0_111, %c32_112], %70 {strides = array<i32>} : memref<512x288xbf16, #tpu.memory_space<vmem>>, vector<512x32xbf16>,
    %c0_113 = arith.constant 0 : index
    %c0_114 = arith.constant 0 : index
    %c2_115 = arith.constant 2 : index
    %c0_116 = arith.constant 0 : index
    %72 = vector.load %arg9[%c0_113, %c0_114, %c2_115, %c0_116] : memref<2x18x18x32xf32, #tpu.memory_space<vmem>>, vector<2x16x16x32xf32>
    %73 = vector.shape_cast %72 : vector<2x16x16x32xf32> to vector<512x32xf32>
    %74 = arith.truncf %73 : vector<512x32xf32> to vector<512x32xbf16>
    %c0_117 = arith.constant 0 : index
    %c64 = arith.constant 64 : index
    %75 = vector.load %arg11[%c0_117, %c64] : memref<512x288xbf16, #tpu.memory_space<vmem>>, vector<512x32xbf16>
    tpu.vector_store %arg11[%c0_117, %c64], %74 {strides = array<i32>} : memref<512x288xbf16, #tpu.memory_space<vmem>>, vector<512x32xbf16>,
    %c0_118 = arith.constant 0 : index
    %c1_119 = arith.constant 1 : index
    %c0_120 = arith.constant 0 : index
    %c0_121 = arith.constant 0 : index
    %76 = vector.load %arg9[%c0_118, %c1_119, %c0_120, %c0_121] : memref<2x18x18x32xf32, #tpu.memory_space<vmem>>, vector<2x16x16x32xf32>
    %77 = vector.shape_cast %76 : vector<2x16x16x32xf32> to vector<512x32xf32>
    %78 = arith.truncf %77 : vector<512x32xf32> to vector<512x32xbf16>
    %c0_122 = arith.constant 0 : index
    %c96 = arith.constant 96 : index
    %79 = vector.load %arg11[%c0_122, %c96] : memref<512x288xbf16, #tpu.memory_space<vmem>>, vector<512x32xbf16>
    tpu.vector_store %arg11[%c0_122, %c96], %78 {strides = array<i32>} : memref<512x288xbf16, #tpu.memory_space<vmem>>, vector<512x32xbf16>,
    %c0_123 = arith.constant 0 : index
    %c1_124 = arith.constant 1 : index
    %c1_125 = arith.constant 1 : index
    %c0_126 = arith.constant 0 : index
    %80 = vector.load %arg9[%c0_123, %c1_124, %c1_125, %c0_126] : memref<2x18x18x32xf32, #tpu.memory_space<vmem>>, vector<2x16x16x32xf32>
    %81 = vector.shape_cast %80 : vector<2x16x16x32xf32> to vector<512x32xf32>
    %82 = arith.truncf %81 : vector<512x32xf32> to vector<512x32xbf16>
    %c0_127 = arith.constant 0 : index
    %c128 = arith.constant 128 : index
    %83 = vector.load %arg11[%c0_127, %c128] : memref<512x288xbf16, #tpu.memory_space<vmem>>, vector<512x32xbf16>
    tpu.vector_store %arg11[%c0_127, %c128], %82 {strides = array<i32>} : memref<512x288xbf16, #tpu.memory_space<vmem>>, vector<512x32xbf16>,
    %c0_128 = arith.constant 0 : index
    %c1_129 = arith.constant 1 : index
    %c2_130 = arith.constant 2 : index
    %c0_131 = arith.constant 0 : index
    %84 = vector.load %arg9[%c0_128, %c1_129, %c2_130, %c0_131] : memref<2x18x18x32xf32, #tpu.memory_space<vmem>>, vector<2x16x16x32xf32>
    %85 = vector.shape_cast %84 : vector<2x16x16x32xf32> to vector<512x32xf32>
    %86 = arith.truncf %85 : vector<512x32xf32> to vector<512x32xbf16>
    %c0_132 = arith.constant 0 : index
    %c160 = arith.constant 160 : index
    %87 = vector.load %arg11[%c0_132, %c160] : memref<512x288xbf16, #tpu.memory_space<vmem>>, vector<512x32xbf16>
    tpu.vector_store %arg11[%c0_132, %c160], %86 {strides = array<i32>} : memref<512x288xbf16, #tpu.memory_space<vmem>>, vector<512x32xbf16>,
    %c0_133 = arith.constant 0 : index
    %c2_134 = arith.constant 2 : index
    %c0_135 = arith.constant 0 : index
    %c0_136 = arith.constant 0 : index
    %88 = vector.load %arg9[%c0_133, %c2_134, %c0_135, %c0_136] : memref<2x18x18x32xf32, #tpu.memory_space<vmem>>, vector<2x16x16x32xf32>
    %89 = vector.shape_cast %88 : vector<2x16x16x32xf32> to vector<512x32xf32>
    %90 = arith.truncf %89 : vector<512x32xf32> to vector<512x32xbf16>
    %c0_137 = arith.constant 0 : index
    %c192 = arith.constant 192 : index
    %91 = vector.load %arg11[%c0_137, %c192] : memref<512x288xbf16, #tpu.memory_space<vmem>>, vector<512x32xbf16>
    tpu.vector_store %arg11[%c0_137, %c192], %90 {strides = array<i32>} : memref<512x288xbf16, #tpu.memory_space<vmem>>, vector<512x32xbf16>,
    %c0_138 = arith.constant 0 : index
    %c2_139 = arith.constant 2 : index
    %c1_140 = arith.constant 1 : index
    %c0_141 = arith.constant 0 : index
    %92 = vector.load %arg9[%c0_138, %c2_139, %c1_140, %c0_141] : memref<2x18x18x32xf32, #tpu.memory_space<vmem>>, vector<2x16x16x32xf32>
    %93 = vector.shape_cast %92 : vector<2x16x16x32xf32> to vector<512x32xf32>
    %94 = arith.truncf %93 : vector<512x32xf32> to vector<512x32xbf16>
    %c0_142 = arith.constant 0 : index
    %c224 = arith.constant 224 : index
    %95 = vector.load %arg11[%c0_142, %c224] : memref<512x288xbf16, #tpu.memory_space<vmem>>, vector<512x32xbf16>
    tpu.vector_store %arg11[%c0_142, %c224], %94 {strides = array<i32>} : memref<512x288xbf16, #tpu.memory_space<vmem>>, vector<512x32xbf16>,
    %c0_143 = arith.constant 0 : index
    %c2_144 = arith.constant 2 : index
    %c2_145 = arith.constant 2 : index
    %c0_146 = arith.constant 0 : index
    %96 = vector.load %arg9[%c0_143, %c2_144, %c2_145, %c0_146] : memref<2x18x18x32xf32, #tpu.memory_space<vmem>>, vector<2x16x16x32xf32>
    %97 = vector.shape_cast %96 : vector<2x16x16x32xf32> to vector<512x32xf32>
    %98 = arith.truncf %97 : vector<512x32xf32> to vector<512x32xbf16>
    %c0_147 = arith.constant 0 : index
    %c256 = arith.constant 256 : index
    %99 = vector.load %arg11[%c0_147, %c256] : memref<512x288xbf16, #tpu.memory_space<vmem>>, vector<512x32xbf16>
    tpu.vector_store %arg11[%c0_147, %c256], %98 {strides = array<i32>} : memref<512x288xbf16, #tpu.memory_space<vmem>>, vector<512x32xbf16>,
    %c0_148 = arith.constant 0 : index
    %c0_149 = arith.constant 0 : index
    %100 = vector.load %arg11[%c0_148, %c0_149] : memref<512x288xbf16, #tpu.memory_space<vmem>>, vector<512x288xbf16>
    %c0_150 = arith.constant 0 : index
    %c0_151 = arith.constant 0 : index
    %101 = vector.load %arg3[%c0_150, %c0_151] : memref<288x32xbf16, #tpu.memory_space<vmem>>, vector<288x32xbf16>
    %cst_152 = arith.constant dense<0.000000e+00> : vector<512x32xf32>
    %102 = tpu.matmul %100, %101, %cst_152 {dimension_numbers = #tpu.dot_dimension_numbers<[1], [0], [0], [1], [0, 0, 1, 1], [], []>} : vector<512x288xbf16>, vector<288x32xbf16>, vector<512x32xf32> -> vector<512x32xf32>
    %c0_153 = arith.constant 0 : index
    %c0_154 = arith.constant 0 : index
    %103 = vector.load %arg4[%c0_153, %c0_154] : memref<1x32xf32, #tpu.memory_space<vmem>>, vector<1x32xf32>
    %104 = vector.broadcast %103 : vector<1x32xf32> to vector<512x32xf32>
    %105 = arith.addf %102, %104 : vector<512x32xf32>
    %cst_155 = arith.constant 0.000000e+00 : f32
    %106 = vector.broadcast %cst_155 : f32 to vector<512x32xf32>
    %107 = arith.maximumf %105, %106 : vector<512x32xf32>
    %108 = vector.shape_cast %107 : vector<512x32xf32> to vector<2x256x32xf32>
    %cst_156 = arith.constant dense<0.000000e+00> : vector<2x32xf32>
    %109 = vector.multi_reduction <add>, %108, %cst_156 [1] : vector<2x256x32xf32> to vector<2x32xf32>
    %cst_157 = arith.constant 2.560000e+02 : f32
    %110 = vector.broadcast %cst_157 : f32 to vector<2x32xf32>
    %111 = arith.divf %109, %110 : vector<2x32xf32>
    %c0_158 = arith.constant 0 : index
    %c0_159 = arith.constant 0 : index
    %112 = vector.load %arg5[%c0_158, %c0_159] : memref<32x2xf32, #tpu.memory_space<vmem>>, vector<32x2xf32>
    %cst_160 = arith.constant dense<0.000000e+00> : vector<2x2xf32>
    %113 = tpu.matmul %111, %112, %cst_160 {dimension_numbers = #tpu.dot_dimension_numbers<[1], [0], [0], [1], [0, 0, 1, 1], [], []>} : vector<2x32xf32>, vector<32x2xf32>, vector<2x2xf32> -> vector<2x2xf32>
    %c0_161 = arith.constant 0 : index
    %c0_162 = arith.constant 0 : index
    %114 = vector.load %arg6[%c0_161, %c0_162] : memref<1x2xf32, #tpu.memory_space<vmem>>, vector<1x2xf32>
    %115 = vector.broadcast %114 : vector<1x2xf32> to vector<2x2xf32>
    %116 = arith.addf %113, %115 : vector<2x2xf32>
    %cst_163 = arith.constant 0.000000e+00 : f32
    %117 = vector.broadcast %cst_163 : f32 to vector<2x2xf32>
    %118 = arith.subf %117, %116 : vector<2x2xf32>
    %119 = math.exp %118 : vector<2x2xf32>
    %cst_164 = arith.constant 1.000000e+00 : f32
    %120 = vector.broadcast %cst_164 : f32 to vector<2x2xf32>
    %121 = arith.addf %120, %119 : vector<2x2xf32>
    %122 = tpu.reciprocal %121 {approx = true} : vector<2x2xf32> -> vector<2x2xf32>
    %123 = tpu.iota {dimensions = array<i32: 1>} : vector<2x2xi32>
    %c0_i32 = arith.constant 0 : i32
    %124 = vector.broadcast %c0_i32 : i32 to vector<2x2xi32>
    %125 = arith.cmpi eq, %123, %124 : vector<2x2xi32>
    %126 = arith.select %125, %116, %122 : vector<2x2xi1>, vector<2x2xf32>
    %c0_165 = arith.constant 0 : index
    %c0_166 = arith.constant 0 : index
    %127 = vector.load %arg7[%c0_165, %c0_166] : memref<2x2xf32, #tpu.memory_space<vmem>>, vector<2x2xf32>
    tpu.vector_store %arg7[%c0_165, %c0_166], %126 {strides = array<i32>} : memref<2x2xf32, #tpu.memory_space<vmem>>, vector<2x2xf32>,
    return
  }
}

</mosaic_0001>

<bundles_post_ra>
// kernel: model_forward.1
= control target key start
LH: loop header
LB: loop body
LE: loop exit
PB: predicated region body
PF: predicated region fallthrough
CT: control target
= control target key end

     0   :  { %vm27_vm0 = vcmask 31744   ;;  %vm30_vm1 = vcmask 25600   ;;  %vm42_vm2 = vcmask 24576   ;;  %v6640_v0 = vmov 0.0   ;;  %s6641_s14 = smov 4   ;;  %s6642_s15 = smov 8   ;;  %s9484_s0 = inlined_call_operand.vmem [shape: f32[2,16,16,4], index: 0, kind: input, shape index: {}]   ;;  %s9485_s1 = inlined_call_operand.vmem [shape: bf16[36,32], index: 1, kind: input, shape index: {}]   ;;  %s9486_s2 = inlined_call_operand.vmem [shape: f32[1,32], index: 2, kind: input, shape index: {}]   ;;  %s9487_s3 = inlined_call_operand.vmem [shape: bf16[288,32], index: 3, kind: input, shape index: {}]   ;;  %s9488_s5 = inlined_call_operand.vmem [shape: f32[32,2], index: 5, kind: input, shape index: {}]   ;;  %s9489_s4 = inlined_call_operand.vmem [shape: f32[1,32], index: 4, kind: input, shape index: {}]   ;;  %s9490_s6 = inlined_call_operand.vmem [shape: f32[1,2], index: 6, kind: input, shape index: {}]   ;;  %s9491_s7 = inlined_call_operand.vmem [shape: f32[2,2], index: 7, kind: output, shape index: {}]  }
   0x1   :  { %28 = vst.msk [vmem:[#allocation2] sm:$0xff] %vm27_vm0, %v6640_v0  ;;  %29 = vst.msk [vmem:[#allocation2 + $0x8] sm:$0xff] %vm27_vm0, %v6640_v0  ;;  %v203_v1 = vld [vmem:[%s9484_s0] sm:$0xff]  ;;  %v204_v2 = vld [vmem:[%s9484_s0 + $0x8] sm:$0xff]  ;;  %s6643_s16 = smov 12   ;;  %s6644_s17 = smov 16  }
   0x2   :  { %31 = vst.msk [vmem:[#allocation2 + $0x10] sm:$0x3] %vm30_vm1, %v6640_v0  ;;  %34 = vst.msk [vmem:[#allocation2 + $0x1c0] sm:$0x3] %vm30_vm1, %v6640_v0  ;;  %v205_v3 = vld [vmem:[%s9484_s0 + $0x10] sm:$0xff]  ;;  %v206_v4 = vld [vmem:[%s9484_s0 + $0x18] sm:$0xff] }
   0x3   :  { %32 = vst.msk [vmem:[#allocation2 + $0x1b0] sm:$0xff] %vm27_vm0, %v6640_v0  ;;  %33 = vst.msk [vmem:[#allocation2 + $0x1b8] sm:$0xff] %vm27_vm0, %v6640_v0  ;;  %v207_v5 = vld [vmem:[%s9484_s0 + $0x20] sm:$0xff]  ;;  %v208_v6 = vld [vmem:[%s9484_s0 + $0x28] sm:$0xff]  ;;  %s6645_s18 = smov 20   ;;  %s6646_s29 = smov 24  }
   0x4   :  { %36 = vst.msk [vmem:[#allocation2 + $0x198] sm:$0xff] %vm27_vm0, %v6640_v0  ;;  %37 = vst.msk [vmem:[#allocation2 + $0x1a0] sm:$0xff] %vm27_vm0, %v6640_v0  ;;  %v209_v7 = vld [vmem:[%s9484_s0 + $0x30] sm:$0xff]  ;;  %v210_v8 = vld [vmem:[%s9484_s0 + $0x38] sm:$0xff]  ;;  %vm2673_vm3 = vcmask 1041408   ;;  %s6647_s11 = smov 28  }
   0x5   :  { %38 = vst.msk [vmem:[#allocation2 + $0x1a8] sm:$0x3] %vm30_vm1, %v6640_v0  ;;  %41 = vst.msk [vmem:[#allocation2 + $0x358] sm:$0x3] %vm30_vm1, %v6640_v0  ;;  %v211_v9 = vld [vmem:[%s9484_s0 + $0x40] sm:$0xff]  ;;  %v212_v10 = vld [vmem:[%s9484_s0 + $0x48] sm:$0xff] }
   0x6   :  { %39 = vst.msk [vmem:[#allocation2 + $0x348] sm:$0xff] %vm27_vm0, %v6640_v0  ;;  %40 = vst.msk [vmem:[#allocation2 + $0x350] sm:$0xff] %vm27_vm0, %v6640_v0  ;;  %v213_v11 = vld [vmem:[%s9484_s0 + $0x50] sm:$0xff]  ;;  %v214_v12 = vld [vmem:[%s9484_s0 + $0x58] sm:$0xff]  ;;  %s6648_s12 = smov 32   ;;  %vm684_vm4 = vcmask 64544  }
   0x7   :  { %44 = vst.msk [vmem:[#allocation2 + $0x18] sm:$0x1] %vm42_vm2, %v6640_v0  ;;  %45 = vst.msk [vmem:[#allocation2 + $0x30] sm:$0x1] %vm42_vm2, %v6640_v0  ;;  %v215_v13 = vld [vmem:[%s9484_s0 + $0x60] sm:$0xff]  ;;  %v216_v14 = vld [vmem:[%s9484_s0 + $0x68] sm:$0xff] }
   0x8   :  { %46 = vst.msk [vmem:[#allocation2 + $0x48] sm:$0x1] %vm42_vm2, %v6640_v0  ;;  %47 = vst.msk [vmem:[#allocation2 + $0x60] sm:$0x1] %vm42_vm2, %v6640_v0  ;;  %v217_v15 = vld [vmem:[%s9484_s0 + $0x70] sm:$0xff]  ;;  %v218_v16 = vld [vmem:[%s9484_s0 + $0x78] sm:$0xff] }
   0x9   :  { %48 = vst.msk [vmem:[#allocation2 + $0x78] sm:$0x1] %vm42_vm2, %v6640_v0  ;;  %49 = vst.msk [vmem:[#allocation2 + $0x90] sm:$0x1] %vm42_vm2, %v6640_v0  ;;  %v219_v17 = vld [vmem:[%s9484_s0 + $0x80] sm:$0xff]  ;;  %v220_v18 = vld [vmem:[%s9484_s0 + $0x88] sm:$0xff] }
   0xa   :  { %50 = vst.msk [vmem:[#allocation2 + $0xa8] sm:$0x1] %vm42_vm2, %v6640_v0  ;;  %51 = vst.msk [vmem:[#allocation2 + $0xc0] sm:$0x1] %vm42_vm2, %v6640_v0  ;;  %v460_v19 = vld [vmem:[#allocation2 + $0x1] sm:$0xff]  ;;  %v461_v20 = vld [vmem:[#allocation2 + $0x9] sm:$0xff] }
   0xb   :  { %52 = vst.msk [vmem:[#allocation2 + $0xd8] sm:$0x1] %vm42_vm2, %v6640_v0  ;;  %53 = vst.msk [vmem:[#allocation2 + $0xf0] sm:$0x1] %vm42_vm2, %v6640_v0  ;;  %v717_v21 = vld [vmem:[#allocation2 + $0x2] sm:$0xff]  ;;  %v524_v22 = vpack.c.bf16 %v461_v20, %v460_v19  ;;  %vm941_vm5 = vcmask 97344  }
   0xc   :  { %54 = vst.msk [vmem:[#allocation2 + $0x108] sm:$0x1] %vm42_vm2, %v6640_v0  ;;  %55 = vst.msk [vmem:[#allocation2 + $0x120] sm:$0x1] %vm42_vm2, %v6640_v0  ;;  %v333_v61 = vld [vmem:[#allocation2 + $0x8] sm:$0xff]  ;;  %vm1198_vm6 = vcmask 130144  }
   0xd   :  { %56 = vst.msk [vmem:[#allocation2 + $0x138] sm:$0x1] %vm42_vm2, %v6640_v0  ;;  %57 = vst.msk [vmem:[#allocation2 + $0x150] sm:$0x1] %vm42_vm2, %v6640_v0  ;;  %588 = vrot.lane.b32.xlu0 %v524_v22, %s6641_s14  ;;  %vm1455_vm7 = vcmask 162944   ;;  %vm1712_vm8 = vcmask 195744  }
   0xe   :  { %58 = vst.msk [vmem:[#allocation2 + $0x168] sm:$0x1] %vm42_vm2, %v6640_v0  ;;  %59 = vst.msk [vmem:[#allocation2 + $0x180] sm:$0x1] %vm42_vm2, %v6640_v0  ;;  %vm1970_vm9 = vcmask 228544   ;;  %vm2227_vm10 = vcmask 261344  }
   0xf   :  { %62 = vst.msk [vmem:[#allocation2 + $0x1c8] sm:$0x1] %vm42_vm2, %v6640_v0  ;;  %63 = vst.msk [vmem:[#allocation2 + $0x1e0] sm:$0x1] %vm42_vm2, %v6640_v0  ;;  %vm2484_vm11 = vcmask 294144   ;;  %vm2576_vm12 = vcmask 293888  }
  0x10   :  { %64 = vst.msk [vmem:[#allocation2 + $0x1f8] sm:$0x1] %vm42_vm2, %v6640_v0  ;;  %65 = vst.msk [vmem:[#allocation2 + $0x210] sm:$0x1] %vm42_vm2, %v6640_v0  ;;  %vm115_vm13 = vcmask 261120   ;;  %vm130_vm14 = vcmask 253952  }
  0x11   :  { %66 = vst.msk [vmem:[#allocation2 + $0x228] sm:$0x1] %vm42_vm2, %v6640_v0  ;;  %67 = vst.msk [vmem:[#allocation2 + $0x240] sm:$0x1] %vm42_vm2, %v6640_v0  ;;  %vm118_vm15 = vcmask 254976   ;;  %s6650_s10 = smov 64  }
  0x12   :  { %68 = vst.msk [vmem:[#allocation2 + $0x258] sm:$0x1] %vm42_vm2, %v6640_v0  ;;  %69 = vst.msk [vmem:[#allocation2 + $0x270] sm:$0x1] %vm42_vm2, %v6640_v0  ;;  %vm3704_vm1 = vcmask 785920  }
  0x13   :  { %70 = vst.msk [vmem:[#allocation2 + $0x288] sm:$0x1] %vm42_vm2, %v6640_v0  ;;  %71 = vst.msk [vmem:[#allocation2 + $0x2a0] sm:$0x1] %vm42_vm2, %v6640_v0 }
  0x14   :  { %72 = vst.msk [vmem:[#allocation2 + $0x2b8] sm:$0x1] %vm42_vm2, %v6640_v0  ;;  %73 = vst.msk [vmem:[#allocation2 + $0x2d0] sm:$0x1] %vm42_vm2, %v6640_v0 }
  0x15   :  { %74 = vst.msk [vmem:[#allocation2 + $0x2e8] sm:$0x1] %vm42_vm2, %v6640_v0  ;;  %75 = vst.msk [vmem:[#allocation2 + $0x300] sm:$0x1] %vm42_vm2, %v6640_v0 }
  0x16   :  { %76 = vst.msk [vmem:[#allocation2 + $0x318] sm:$0x1] %vm42_vm2, %v6640_v0  ;;  %77 = vst.msk [vmem:[#allocation2 + $0x330] sm:$0x1] %vm42_vm2, %v6640_v0 }
  0x17   :  { %80 = vst.msk [vmem:[#allocation2 + $0x29] sm:$0x1] %vm42_vm2, %v6640_v0  ;;  %81 = vst.msk [vmem:[#allocation2 + $0x41] sm:$0x1] %vm42_vm2, %v6640_v0 }
  0x18   :  { %82 = vst.msk [vmem:[#allocation2 + $0x59] sm:$0x1] %vm42_vm2, %v6640_v0  ;;  %83 = vst.msk [vmem:[#allocation2 + $0x71] sm:$0x1] %vm42_vm2, %v6640_v0 }
  0x19   :  { %84 = vst.msk [vmem:[#allocation2 + $0x89] sm:$0x1] %vm42_vm2, %v6640_v0  ;;  %85 = vst.msk [vmem:[#allocation2 + $0xa1] sm:$0x1] %vm42_vm2, %v6640_v0 }
  0x1a   :  { %86 = vst.msk [vmem:[#allocation2 + $0xb9] sm:$0x1] %vm42_vm2, %v6640_v0  ;;  %87 = vst.msk [vmem:[#allocation2 + $0xd1] sm:$0x1] %vm42_vm2, %v6640_v0 }
  0x1b   :  { %88 = vst.msk [vmem:[#allocation2 + $0xe9] sm:$0x1] %vm42_vm2, %v6640_v0  ;;  %89 = vst.msk [vmem:[#allocation2 + $0x101] sm:$0x1] %vm42_vm2, %v6640_v0 }
  0x1c   :  { %90 = vst.msk [vmem:[#allocation2 + $0x119] sm:$0x1] %vm42_vm2, %v6640_v0  ;;  %91 = vst.msk [vmem:[#allocation2 + $0x131] sm:$0x1] %vm42_vm2, %v6640_v0 }
  0x1d   :  { %92 = vst.msk [vmem:[#allocation2 + $0x149] sm:$0x1] %vm42_vm2, %v6640_v0  ;;  %93 = vst.msk [vmem:[#allocation2 + $0x161] sm:$0x1] %vm42_vm2, %v6640_v0 }
  0x1e   :  { %94 = vst.msk [vmem:[#allocation2 + $0x179] sm:$0x1] %vm42_vm2, %v6640_v0  ;;  %95 = vst.msk [vmem:[#allocation2 + $0x191] sm:$0x1] %vm42_vm2, %v6640_v0 }
  0x1f   :  { %98 = vst.msk [vmem:[#allocation2 + $0x1d9] sm:$0x1] %vm42_vm2, %v6640_v0  ;;  %99 = vst.msk [vmem:[#allocation2 + $0x1f1] sm:$0x1] %vm42_vm2, %v6640_v0 }
  0x20   :  { %100 = vst.msk [vmem:[#allocation2 + $0x209] sm:$0x1] %vm42_vm2, %v6640_v0  ;;  %101 = vst.msk [vmem:[#allocation2 + $0x221] sm:$0x1] %vm42_vm2, %v6640_v0 }
  0x21   :  { %102 = vst.msk [vmem:[#allocation2 + $0x239] sm:$0x1] %vm42_vm2, %v6640_v0  ;;  %103 = vst.msk [vmem:[#allocation2 + $0x251] sm:$0x1] %vm42_vm2, %v6640_v0 }
  0x22   :  { %104 = vst.msk [vmem:[#allocation2 + $0x269] sm:$0x1] %vm42_vm2, %v6640_v0  ;;  %105 = vst.msk [vmem:[#allocation2 + $0x281] sm:$0x1] %vm42_vm2, %v6640_v0 }
  0x23   :  { %106 = vst.msk [vmem:[#allocation2 + $0x299] sm:$0x1] %vm42_vm2, %v6640_v0  ;;  %107 = vst.msk [vmem:[#allocation2 + $0x2b1] sm:$0x1] %vm42_vm2, %v6640_v0 }
  0x24   :  { %108 = vst.msk [vmem:[#allocation2 + $0x2c9] sm:$0x1] %vm42_vm2, %v6640_v0  ;;  %109 = vst.msk [vmem:[#allocation2 + $0x2e1] sm:$0x1] %vm42_vm2, %v6640_v0 }
  0x25   :  { %110 = vst.msk [vmem:[#allocation2 + $0x2f9] sm:$0x1] %vm42_vm2, %v6640_v0  ;;  %111 = vst.msk [vmem:[#allocation2 + $0x311] sm:$0x1] %vm42_vm2, %v6640_v0 }
  0x26   :  { %112 = vst.msk [vmem:[#allocation2 + $0x329] sm:$0x1] %vm42_vm2, %v6640_v0  ;;  %113 = vst.msk [vmem:[#allocation2 + $0x341] sm:$0x1] %vm42_vm2, %v6640_v0 }
  0x27   :  { %43 = vst.msk [vmem:[#allocation2] sm:$0x1] %vm42_vm2, %v6640_v0  ;;  %79 = vst.msk [vmem:[#allocation2 + $0x11] sm:$0x1] %vm42_vm2, %v6640_v0 }
  0x28   :  { %60 = vst.msk [vmem:[#allocation2 + $0x198] sm:$0x1] %vm42_vm2, %v6640_v0  ;;  %61 = vst.msk [vmem:[#allocation2 + $0x1b0] sm:$0x1] %vm42_vm2, %v6640_v0 }
  0x29   :  { %78 = vst.msk [vmem:[#allocation2 + $0x348] sm:$0x1] %vm42_vm2, %v6640_v0  ;;  %96 = vst.msk [vmem:[#allocation2 + $0x1a9] sm:$0x1] %vm42_vm2, %v6640_v0 }
  0x2a   :  { %97 = vst.msk [vmem:[#allocation2 + $0x1c1] sm:$0x1] %vm42_vm2, %v6640_v0  ;;  %114 = vst.msk [vmem:[#allocation2 + $0x359] sm:$0x1] %vm42_vm2, %v6640_v0  ;;  %vm3961_vm2 = vcmask 1048320  }
  0x2b   :  { %268 = vst.msk [vmem:[#allocation2 + $0x19] sm:$0xff] %vm27_vm0, %v203_v1  ;;  %269 = vst.msk [vmem:[#allocation2 + $0x21] sm:$0xff] %vm27_vm0, %v204_v2 }
  0x2c   :  { %270 = vst.msk [vmem:[#allocation2 + $0x31] sm:$0xff] %vm27_vm0, %v205_v3  ;;  %271 = vst.msk [vmem:[#allocation2 + $0x39] sm:$0xff] %vm27_vm0, %v206_v4 }
  0x2d   :  { %272 = vst.msk [vmem:[#allocation2 + $0x49] sm:$0xff] %vm27_vm0, %v207_v5  ;;  %273 = vst.msk [vmem:[#allocation2 + $0x51] sm:$0xff] %vm27_vm0, %v208_v6  ;;  %v221_v6 = vld [vmem:[%s9484_s0 + $0x90] sm:$0xff] }
  0x2e   :  { %274 = vst.msk [vmem:[#allocation2 + $0x61] sm:$0xff] %vm27_vm0, %v209_v7  ;;  %275 = vst.msk [vmem:[#allocation2 + $0x69] sm:$0xff] %vm27_vm0, %v210_v8  ;;  %v718_v23 = vld [vmem:[#allocation2 + $0xa] sm:$0xff]  ;;  %v332_v62 = vld [vmem:[#allocation2] sm:$0xff] }
  0x2f   :  { %276 = vst.msk [vmem:[#allocation2 + $0x79] sm:$0xff] %vm27_vm0, %v211_v9  ;;  %277 = vst.msk [vmem:[#allocation2 + $0x81] sm:$0xff] %vm27_vm0, %v212_v10  ;;  %v781_v26 = vpack.c.bf16 %v718_v23, %v717_v21  ;;  %v396_v63 = vpack.c.bf16 %v333_v61, %v332_v62  ;;  %v222_v7 = vld [vmem:[%s9484_s0 + $0x98] sm:$0xff]  ;;  %v6612_v8 = vld [vmem:[%s9485_s1] sm:$0xff]  }
  0x30   :  { %278 = vst.msk [vmem:[#allocation2 + $0x91] sm:$0xff] %vm27_vm0, %v213_v11  ;;  %279 = vst.msk [vmem:[#allocation2 + $0x99] sm:$0xff] %vm27_vm0, %v214_v12  ;;  %v6613_v9 = vld [vmem:[%s9485_s1 + $0x8] sm:$0xff]   ;;  %v223_v10 = vld [vmem:[%s9484_s0 + $0xa0] sm:$0xff]  ;;  %6410 = vmatprep.subr.bf16.mxu0 %v6612_v8 }
  0x31   :  { %280 = vst.msk [vmem:[#allocation2 + $0xa9] sm:$0xff] %vm27_vm0, %v215_v13  ;;  %281 = vst.msk [vmem:[#allocation2 + $0xb1] sm:$0xff] %vm27_vm0, %v216_v14  ;;  %845 = vrot.lane.b32.xlu1 %v781_v26, %s6642_s15  ;;  %v224_v11 = vld [vmem:[%s9484_s0 + $0xa8] sm:$0xff]  ;;  %6411 = vmatpush3.bf16.msra.mxu0 %v6612_v8  ;;  %v6614_v13 = vld [vmem:[%s9485_s1 + $0x10] ss:$0 sps:$4 sm:$0x33]  }
  0x32   :  { %282 = vst.msk [vmem:[#allocation2 + $0xc1] sm:$0xff] %vm27_vm0, %v217_v15  ;;  %283 = vst.msk [vmem:[#allocation2 + $0xc9] sm:$0xff] %vm27_vm0, %v218_v16  ;;  %v462_v24 = vld [vmem:[#allocation2 + $0x19] sm:$0xff]  ;;  %v463_v25 = vld [vmem:[#allocation2 + $0x21] sm:$0xff]  ;;  %6412 = vmatprep.subr.bf16.mxu0 %v6613_v9  ;;  %v2675_v19 = vsel %vm2673_vm3, %v6614_v13, 0  ;;  %s6651_s1 = smov 96  }
  0x33   :  { %284 = vst.msk [vmem:[#allocation2 + $0xd9] sm:$0xff] %vm27_vm0, %v219_v17  ;;  %285 = vst.msk [vmem:[#allocation2 + $0xe1] sm:$0xff] %vm27_vm0, %v220_v18  ;;  %v719_v27 = vld [vmem:[#allocation2 + $0x1a] sm:$0xff]  ;;  %v720_v28 = vld [vmem:[#allocation2 + $0x22] sm:$0xff]  ;;  %v525_v30 = vpack.c.bf16 %v463_v25, %v462_v24 }
  0x34   :  { %v974_v29 = vld [vmem:[#allocation2 + $0x18] sm:$0xff]  ;;  %v975_v31 = vld [vmem:[#allocation2 + $0x20] sm:$0xff]  ;;  %v976_v32 = vld [vmem:[#allocation2 + $0x30] sm:$0xff]  ;;  %v782_v34 = vpack.c.bf16 %v720_v28, %v719_v27  ;;  %428 = vst.msk [vmem:[#allocation4] sm:$0xff] %vm27_vm0, %v396_v63 }
  0x35   :  { %v977_v33 = vld [vmem:[#allocation2 + $0x38] sm:$0xff]  ;;  %v1038_v35 = vpack.c.bf16 %v975_v31, %v974_v29  ;;  %v1748_v37 = vld [vmem:[#allocation2 + $0x48] sm:$0xff]  ;;  %v1749_v38 = vld [vmem:[#allocation2 + $0x50] sm:$0xff]  ;;  %590 = vrot.lane.b32.xlu0 %v525_v30, %s6641_s14  ;;  %286 = vst.msk [vmem:[#allocation2 + $0xf1] sm:$0xff] %vm27_vm0, %v221_v6  ;;  %6413 = vmatpush3.bf16.msra.mxu0 %v6613_v9 }
  0x36   :  { %v1039_v36 = vpack.c.bf16 %v977_v33, %v976_v32  ;;  %v6932_v39 = vpack.c.bf16 %v1749_v38, %v1748_v37  ;;  %v980_v40 = vld [vmem:[#allocation2 + $0x60] sm:$0xff]  ;;  %v981_v41 = vld [vmem:[#allocation2 + $0x68] sm:$0xff]  ;;  %847 = vrot.lane.b32.xlu1 %v782_v34, %s6642_s15  ;;  %v1233_v42 = vld [vmem:[#allocation2 + $0x31] sm:$0xff]  ;;  %287 = vst.msk [vmem:[#allocation2 + $0xf9] sm:$0xff] %vm27_vm0, %v222_v7  ;;  %6597 = vmatprep.subr.msk.bf16.mxu0 %vm2673_vm3, %v6614_v13  ;;  %vm6653_vm3 = vmmov 0  }
  0x37   :  { %429 = vst.msk [vmem:[#allocation4 + $0x8] sm:$0xff] %vm27_vm0, %v1038_v35  ;;  %v6938_v43 = vpack.c.bf16 %v981_v41, %v980_v40  ;;  %v1234_v44 = vld [vmem:[#allocation2 + $0x39] sm:$0xff]  ;;  %v984_v48 = vld [vmem:[#allocation2 + $0x90] sm:$0xff]  ;;  %288 = vst.msk [vmem:[#allocation2 + $0x109] sm:$0xff] %vm27_vm0, %v223_v10 }
  0x38   :  { %430 = vst.msk [vmem:[#allocation4 + $0x10] sm:$0xff] %vm27_vm0, %v1039_v36  ;;  %431 = vst.msk [vmem:[#allocation4 + $0x18] sm:$0xff] %vm27_vm0, %v6932_v39  ;;  %v1752_v45 = vld [vmem:[#allocation2 + $0x78] sm:$0xff]  ;;  %v1753_v46 = vld [vmem:[#allocation2 + $0x80] sm:$0xff]  ;;  %v6948_v50 = vpack.c.bf16 %v1234_v44, %v1233_v42 }
  0x39   :  { %v6942_v47 = vpack.c.bf16 %v1753_v46, %v1752_v45  ;;  %432 = vst.msk [vmem:[#allocation4 + $0x20] sm:$0xff] %vm27_vm0, %v6938_v43  ;;  %1102 = vrot.lane.b32.xlu0 %v1038_v35, %s6643_s16  ;;  %v985_v49 = vld [vmem:[#allocation2 + $0x98] sm:$0xff]  ;;  %v1756_v54 = vld [vmem:[#allocation2 + $0xa8] sm:$0xff]  ;;  %v1757_v55 = vld [vmem:[#allocation2 + $0xb0] sm:$0xff]  ;;  %6415 = vmatpush3.bf16.msra.mxu0 %v2675_v19 }
  0x3a   :  { %1104 = vrot.lane.b32.xlu1 %v1039_v36, %s6643_s16  ;;  %v1490_v51 = vld [vmem:[#allocation2 + $0x32] sm:$0xff]  ;;  %v6950_v52 = vpack.c.bf16 %v985_v49, %v984_v48  ;;  %v1491_v53 = vld [vmem:[#allocation2 + $0x3a] sm:$0xff]  ;;  %v6954_v56 = vpack.c.bf16 %v1757_v55, %v1756_v54  ;;  %v989_v58 = vld [vmem:[#allocation2 + $0xc8] sm:$0xff]  ;;  %289 = vst.msk [vmem:[#allocation2 + $0x111] sm:$0xff] %vm27_vm0, %v224_v11 }
  0x3b   :  { %433 = vst.msk [vmem:[#allocation4 + $0x28] sm:$0xff] %vm27_vm0, %v6942_v47  ;;  %v988_v57 = vld [vmem:[#allocation2 + $0xc0] sm:$0xff]  ;;  %v6961_v59 = vpack.c.bf16 %v1491_v53, %v1490_v51  ;;  %v1760_v1 = vld [vmem:[#allocation2 + $0xd8] sm:$0xff]  ;;  %v2005_v3 = vld [vmem:[#allocation2 + $0x49] sm:$0xff] }
  0x3c   :  { %434 = vst.msk [vmem:[#allocation4 + $0x30] sm:$0xff] %vm27_vm0, %v6950_v52  ;;  %v6963_v60 = vpack.c.bf16 %v989_v58, %v988_v57  ;;  %435 = vst.msk [vmem:[#allocation4 + $0x38] sm:$0xff] %vm27_vm0, %v6954_v56  ;;  %v1761_v2 = vld [vmem:[#allocation2 + $0xe0] sm:$0xff]  ;;  %v2006_v4 = vld [vmem:[#allocation2 + $0x51] sm:$0xff] }
  0x3d   :  { %1359 = vrot.lane.b32.xlu0 %v525_v30, %s6644_s17  ;;  %v6970_v5 = vpack.c.bf16 %v1761_v2, %v1760_v1  ;;  %v2068_v12 = vpack.c.bf16 %v2006_v4, %v2005_v3  ;;  %v2262_v14 = vld [vmem:[#allocation2 + $0x4a] sm:$0xff]  ;;  %v2263_v15 = vld [vmem:[#allocation2 + $0x52] sm:$0xff]  ;;  %v1237_v26 = vld [vmem:[#allocation2 + $0x61] sm:$0xff]  ;;  %116 = vst.msk [vmem:[#allocation3] sm:$0xff] %vm115_vm13, %v6640_v0 }
  0x3e   :  { %1361 = vrot.lane.b32.xlu1 %v6948_v50, %s6644_s17  ;;  %436 = vst.msk [vmem:[#allocation4 + $0x40] sm:$0xff] %vm27_vm0, %v6963_v60  ;;  %v992_v16 = vld [vmem:[#allocation2 + $0xf0] sm:$0xff]  ;;  %v993_v17 = vld [vmem:[#allocation2 + $0xf8] sm:$0xff]  ;;  %v1764_v20 = vld [vmem:[#allocation2 + $0x108] sm:$0xff]  ;;  %v2325_v21 = vpack.c.bf16 %v2263_v15, %v2262_v14 }
  0x3f   :  { %437 = vst.msk [vmem:[#allocation4 + $0x48] sm:$0xff] %vm27_vm0, %v6970_v5  ;;  %v7008_v18 = vpack.c.bf16 %v993_v17, %v992_v16  ;;  %v225_v24 = vld [vmem:[%s9484_s0 + $0xb0] sm:$0xff]  ;;  %v226_v25 = vld [vmem:[%s9484_s0 + $0xb8] sm:$0xff]  ;;  %v1494_v32 = vld [vmem:[#allocation2 + $0x62] sm:$0xff] }
  0x40   :  { %290 = vst.msk [vmem:[#allocation2 + $0x121] sm:$0xff] %vm27_vm0, %v225_v24  ;;  %291 = vst.msk [vmem:[#allocation2 + $0x129] sm:$0xff] %vm27_vm0, %v226_v25  ;;  %v1238_v27 = vld [vmem:[#allocation2 + $0x69] sm:$0xff]  ;;  %v2009_v37 = vld [vmem:[#allocation2 + $0x79] sm:$0xff] }
  0x41   :  { %1616 = vrot.lane.b32.xlu0 %v782_v34, %s6645_s18  ;;  %v1765_v22 = vld [vmem:[#allocation2 + $0x110] sm:$0xff]  ;;  %438 = vst.msk [vmem:[#allocation4 + $0x50] sm:$0xff] %vm27_vm0, %v7008_v18  ;;  %v1298_v31 = vpack.c.bf16 %v1238_v27, %v1237_v26  ;;  %v227_v34 = vld [vmem:[%s9484_s0 + $0xc0] sm:$0xff]  ;;  %v228_v35 = vld [vmem:[%s9484_s0 + $0xc8] sm:$0xff] }
  0x42   :  { %1618 = vrot.lane.b32.xlu1 %v6961_v59, %s6645_s18  ;;  %v7016_v23 = vpack.c.bf16 %v1765_v22, %v1764_v20  ;;  %v1495_v33 = vld [vmem:[#allocation2 + $0x6a] sm:$0xff]  ;;  %292 = vst.msk [vmem:[#allocation2 + $0x139] sm:$0xff] %vm27_vm0, %v227_v34  ;;  %293 = vst.msk [vmem:[#allocation2 + $0x141] sm:$0xff] %vm27_vm0, %v228_v35  ;;  %v2010_v38 = vld [vmem:[#allocation2 + $0x81] sm:$0xff] }
  0x43   :  { %v2070_v42 = vpack.c.bf16 %v2010_v38, %v2009_v37  ;;  %v2266_v44 = vld [vmem:[#allocation2 + $0x7a] sm:$0xff]  ;;  %v2267_v45 = vld [vmem:[#allocation2 + $0x82] sm:$0xff]  ;;  %v1241_v49 = vld [vmem:[#allocation2 + $0x91] sm:$0xff]  ;;  %117 = vst.msk [vmem:[#allocation3 + $0x8] sm:$0xff] %vm115_vm13, %v6640_v0 }
  0x44   :  { %439 = vst.msk [vmem:[#allocation4 + $0x58] sm:$0xff] %vm27_vm0, %v7016_v23  ;;  %v2327_v46 = vpack.c.bf16 %v2267_v45, %v2266_v44  ;;  %v230_v48 = vld [vmem:[%s9484_s0 + $0xd8] sm:$0xff]  ;;  %v232_v61 = vld [vmem:[%s9484_s0 + $0xe8] sm:$0xff]  ;;  %v235_v25 = vld [vmem:[%s9484_s0 + $0x100] sm:$0xff] }
  0x45   :  { %1874 = vrot.lane.b32.xlu0 %v1039_v36, %s6646_s29  ;;  %v1555_v36 = vpack.c.bf16 %v1495_v33, %v1494_v32  ;;  %295 = vst.msk [vmem:[#allocation2 + $0x159] sm:$0xff] %vm27_vm0, %v230_v48  ;;  %v1498_v57 = vld [vmem:[#allocation2 + $0x92] sm:$0xff]  ;;  %v1499_v58 = vld [vmem:[#allocation2 + $0x9a] sm:$0xff]  ;;  %297 = vst.msk [vmem:[#allocation2 + $0x171] sm:$0xff] %vm27_vm0, %v232_v61 }
  0x46   :  { %1876 = vrot.lane.b32.xlu1 %v6932_v39, %s6646_s29  ;;  %v2013_v62 = vld [vmem:[#allocation2 + $0xa9] sm:$0xff]  ;;  %v2014_v63 = vld [vmem:[#allocation2 + $0xb1] sm:$0xff]  ;;  %v1245_v10 = vld [vmem:[#allocation2 + $0xc1] sm:$0xff]  ;;  %300 = vst.msk [vmem:[#allocation2 + $0x1c9] sm:$0xff] %vm27_vm0, %v235_v25 }
  0x47   :  { %v996_v28 = vld [vmem:[#allocation2 + $0x120] sm:$0xff]  ;;  %v997_v29 = vld [vmem:[#allocation2 + $0x128] sm:$0xff]  ;;  %v2072_v4 = vpack.c.bf16 %v2014_v63, %v2013_v62  ;;  %v2271_v7 = vld [vmem:[#allocation2 + $0xb2] sm:$0xff]  ;;  %120 = vst.msk [vmem:[#allocation3 + $0x1b0] sm:$0xff] %vm115_vm13, %v6640_v0 }
  0x48   :  { %v7033_v30 = vpack.c.bf16 %v997_v29, %v996_v28  ;;  %v2270_v6 = vld [vmem:[#allocation2 + $0xaa] sm:$0xff]  ;;  %v234_v9 = vld [vmem:[%s9484_s0 + $0xf8] sm:$0xff]  ;;  %v1502_v13 = vld [vmem:[#allocation2 + $0xc2] sm:$0xff]  ;;  %121 = vst.msk [vmem:[#allocation3 + $0x1b8] sm:$0xff] %vm115_vm13, %v6640_v0 }
  0x49   :  { %2131 = vrot.lane.b32.xlu0 %v6948_v50, %s6647_s11  ;;  %v1769_v40 = vld [vmem:[#allocation2 + $0x140] sm:$0xff]  ;;  %v2329_v8 = vpack.c.bf16 %v2271_v7, %v2270_v6  ;;  %299 = vst.msk [vmem:[#allocation2 + $0x189] sm:$0xff] %vm27_vm0, %v234_v9  ;;  %v1246_v11 = vld [vmem:[#allocation2 + $0xc9] sm:$0xff]  ;;  %v238_v33 = vld [vmem:[%s9484_s0 + $0x118] sm:$0xff] }
  0x4a   :  { %2133 = vrot.lane.b32.xlu1 %v2068_v12, %s6647_s11  ;;  %440 = vst.msk [vmem:[#allocation4 + $0x60] sm:$0xff] %vm27_vm0, %v7033_v30  ;;  %v1503_v14 = vld [vmem:[#allocation2 + $0xca] sm:$0xff]  ;;  %v2017_v17 = vld [vmem:[#allocation2 + $0xd9] sm:$0xff]  ;;  %v2275_v24 = vld [vmem:[#allocation2 + $0xe2] sm:$0xff] }
  0x4b   :  { %v1559_v15 = vpack.c.bf16 %v1503_v14, %v1502_v13  ;;  %v2274_v22 = vld [vmem:[#allocation2 + $0xda] sm:$0xff]  ;;  %v236_v27 = vld [vmem:[%s9484_s0 + $0x108] sm:$0xff]  ;;  %v237_v32 = vld [vmem:[%s9484_s0 + $0x110] sm:$0xff]  ;;  %303 = vst.msk [vmem:[#allocation2 + $0x1e9] sm:$0xff] %vm27_vm0, %v238_v33 }
  0x4c   :  { %301 = vst.msk [vmem:[#allocation2 + $0x1d1] sm:$0xff] %vm27_vm0, %v236_v27  ;;  %302 = vst.msk [vmem:[#allocation2 + $0x1e1] sm:$0xff] %vm27_vm0, %v237_v32  ;;  %v1506_v48 = vld [vmem:[#allocation2 + $0xf2] sm:$0xff] }
  0x4d   :  { %2388 = vrot.lane.b32.xlu0 %v6961_v59, %s6648_s12  ;;  %v1006_v37 = vld [vmem:[#allocation2 + $0x1c8] sm:$0xff]  ;;  %v2022_v61 = vld [vmem:[#allocation2 + $0x111] sm:$0xff]  ;;  %124 = vst.msk [vmem:[#allocation3 + $0x198] sm:$0xff] %vm115_vm13, %v6640_v0  ;;  %125 = vst.msk [vmem:[#allocation3 + $0x1a0] sm:$0xff] %vm115_vm13, %v6640_v0 }
  0x4e   :  { %592 = vrot.lane.b32.xlu1 %v6948_v50, %s6641_s14  ;;  %v1242_v50 = vld [vmem:[#allocation2 + $0x99] sm:$0xff]  ;;  %127 = vst.msk [vmem:[#allocation3 + $0x348] sm:$0xff] %vm115_vm13, %v6640_v0  ;;  %128 = vst.msk [vmem:[#allocation3 + $0x350] sm:$0xff] %vm115_vm13, %v6640_v0 }
  0x4f   :  { %v1300_v55 = vpack.c.bf16 %v1242_v50, %v1241_v49  ;;  %v1507_v49 = vld [vmem:[#allocation2 + $0xfa] sm:$0xff]  ;;  %169 = vst.msk [vmem:[#allocation3 + $0x41] sm:$0x1] %vm130_vm14, %v6640_v0  ;;  %131 = vst.msk [vmem:[#allocation3] sm:$0x1] %vm130_vm14, %v6640_v0 }
  0x50   :  { %v239_v50 = vld [vmem:[%s9484_s0 + $0x120] sm:$0xff]  ;;  %132 = vst.msk [vmem:[#allocation3 + $0x18] sm:$0x1] %vm130_vm14, %v6640_v0  ;;  %133 = vst.msk [vmem:[#allocation3 + $0x30] sm:$0x1] %vm130_vm14, %v6640_v0 }
  0x51   :  { %2390 = vrot.lane.b32.xlu0 %v2325_v21, %s6648_s12  ;;  %304 = vst.msk [vmem:[#allocation2 + $0x1f9] sm:$0xff] %vm27_vm0, %v239_v50 }
  0x52   :  { %594 = vrot.lane.b32.xlu1 %v2068_v12, %s6641_s14  ;;  %134 = vst.msk [vmem:[#allocation3 + $0x48] sm:$0x1] %vm130_vm14, %v6640_v0  ;;  %135 = vst.msk [vmem:[#allocation3 + $0x60] sm:$0x1] %vm130_vm14, %v6640_v0 }
  0x53   :  { %v1007_v38 = vld [vmem:[#allocation2 + $0x1d0] sm:$0xff]  ;;  %136 = vst.msk [vmem:[#allocation3 + $0x78] sm:$0x1] %vm130_vm14, %v6640_v0  ;;  %137 = vst.msk [vmem:[#allocation3 + $0x90] sm:$0x1] %vm130_vm14, %v6640_v0 }
  0x54   :  { %v7171_v44 = vpack.c.bf16 %v1007_v38, %v1006_v37  ;;  %v2283_v37 = vld [vmem:[#allocation2 + $0x142] sm:$0xff]  ;;  %138 = vst.msk [vmem:[#allocation3 + $0xa8] sm:$0x1] %vm130_vm14, %v6640_v0  ;;  %139 = vst.msk [vmem:[#allocation3 + $0xc0] sm:$0x1] %vm130_vm14, %v6640_v0 }
  0x55   :  { %849 = vrot.lane.b32.xlu0 %v6961_v59, %s6642_s15  ;;  %v231_v59 = vld [vmem:[%s9484_s0 + $0xe0] sm:$0xff]  ;;  %140 = vst.msk [vmem:[#allocation3 + $0xd8] sm:$0x1] %vm130_vm14, %v6640_v0  ;;  %141 = vst.msk [vmem:[#allocation3 + $0xf0] sm:$0x1] %vm130_vm14, %v6640_v0 }
  0x56   :  { %851 = vrot.lane.b32.xlu1 %v2325_v21, %s6642_s15  ;;  %296 = vst.msk [vmem:[#allocation2 + $0x169] sm:$0xff] %vm27_vm0, %v231_v59  ;;  %445 = vst.msk [vmem:[#allocation4 + $0x88] sm:$0xff] %vm27_vm0, %v7171_v44  ;;  %v2021_v59 = vld [vmem:[#allocation2 + $0x109] sm:$0xff] }
  0x57   :  { %v2076_v62 = vpack.c.bf16 %v2022_v61, %v2021_v59  ;;  %v1515_v61 = vld [vmem:[#allocation2 + $0x15a] sm:$0xff]  ;;  %142 = vst.msk [vmem:[#allocation3 + $0x108] sm:$0x1] %vm130_vm14, %v6640_v0  ;;  %143 = vst.msk [vmem:[#allocation3 + $0x120] sm:$0x1] %vm130_vm14, %v6640_v0 }
  0x58   :  { %144 = vst.msk [vmem:[#allocation3 + $0x138] sm:$0x1] %vm130_vm14, %v6640_v0  ;;  %145 = vst.msk [vmem:[#allocation3 + $0x150] sm:$0x1] %vm130_vm14, %v6640_v0 }
  0x59   :  { %1106 = vrot.lane.b32.xlu0 %v6932_v39, %s6643_s16  ;;  %v1768_v39 = vld [vmem:[#allocation2 + $0x138] sm:$0xff]  ;;  %146 = vst.msk [vmem:[#allocation3 + $0x168] sm:$0x1] %vm130_vm14, %v6640_v0  ;;  %147 = vst.msk [vmem:[#allocation3 + $0x180] sm:$0x1] %vm130_vm14, %v6640_v0 }
  0x5a   :  { %1108 = vrot.lane.b32.xlu1 %v6938_v43, %s6643_s16  ;;  %v7055_v41 = vpack.c.bf16 %v1769_v40, %v1768_v39  ;;  %v1249_v40 = vld [vmem:[#allocation2 + $0xf1] sm:$0xff]  ;;  %148 = vst.msk [vmem:[#allocation3 + $0x198] sm:$0x1] %vm130_vm14, %v6640_v0  ;;  %149 = vst.msk [vmem:[#allocation3 + $0x1b0] sm:$0x1] %vm130_vm14, %v6640_v0 }
  0x5b   :  { %150 = vst.msk [vmem:[#allocation3 + $0x1c8] sm:$0x1] %vm130_vm14, %v6640_v0  ;;  %151 = vst.msk [vmem:[#allocation3 + $0x1e0] sm:$0x1] %vm130_vm14, %v6640_v0 }
  0x5c   :  { %441 = vst.msk [vmem:[#allocation4 + $0x68] sm:$0xff] %vm27_vm0, %v7055_v41 }
  0x5d   :  { %1363 = vrot.lane.b32.xlu0 %v2068_v12, %s6644_s17  ;;  %v1772_v1 = vld [vmem:[#allocation2 + $0x168] sm:$0xff]  ;;  %v1773_v2 = vld [vmem:[#allocation2 + $0x170] sm:$0xff]  ;;  %v1302_v12 = vpack.c.bf16 %v1246_v11, %v1245_v10  ;;  %v242_v11 = vld [vmem:[%s9484_s0 + $0x138] sm:$0xff]  ;;  %152 = vst.msk [vmem:[#allocation3 + $0x1f8] sm:$0x1] %vm130_vm14, %v6640_v0 }
  0x5e   :  { %1365 = vrot.lane.b32.xlu1 %v1298_v31, %s6644_s17  ;;  %v7099_v3 = vpack.c.bf16 %v1773_v2, %v1772_v1  ;;  %v2278_v2 = vld [vmem:[#allocation2 + $0x10a] sm:$0xff]  ;;  %307 = vst.msk [vmem:[#allocation2 + $0x219] sm:$0xff] %vm27_vm0, %v242_v11  ;;  %v2287_v11 = vld [vmem:[#allocation2 + $0x172] sm:$0xff] }
  0x5f   :  { %v241_v10 = vld [vmem:[%s9484_s0 + $0x130] sm:$0xff]  ;;  %153 = vst.msk [vmem:[#allocation3 + $0x210] sm:$0x1] %vm130_vm14, %v6640_v0  ;;  %154 = vst.msk [vmem:[#allocation3 + $0x228] sm:$0x1] %vm130_vm14, %v6640_v0 }
  0x60   :  { %443 = vst.msk [vmem:[#allocation4 + $0x78] sm:$0xff] %vm27_vm0, %v7099_v3  ;;  %306 = vst.msk [vmem:[#allocation2 + $0x211] sm:$0xff] %vm27_vm0, %v241_v10  ;;  %v2286_v10 = vld [vmem:[#allocation2 + $0x16a] sm:$0xff] }
  0x61   :  { %1620 = vrot.lane.b32.xlu0 %v2325_v21, %s6645_s18  ;;  %155 = vst.msk [vmem:[#allocation3 + $0x240] sm:$0x1] %vm130_vm14, %v6640_v0  ;;  %156 = vst.msk [vmem:[#allocation3 + $0x258] sm:$0x1] %vm130_vm14, %v6640_v0 }
  0x62   :  { %1622 = vrot.lane.b32.xlu1 %v1555_v36, %s6645_s18  ;;  %157 = vst.msk [vmem:[#allocation3 + $0x270] sm:$0x1] %vm130_vm14, %v6640_v0  ;;  %158 = vst.msk [vmem:[#allocation3 + $0x288] sm:$0x1] %vm130_vm14, %v6640_v0 }
  0x63   :  { %159 = vst.msk [vmem:[#allocation3 + $0x2a0] sm:$0x1] %vm130_vm14, %v6640_v0  ;;  %160 = vst.msk [vmem:[#allocation3 + $0x2b8] sm:$0x1] %vm130_vm14, %v6640_v0 }
  0x64   :  { %161 = vst.msk [vmem:[#allocation3 + $0x2d0] sm:$0x1] %vm130_vm14, %v6640_v0  ;;  %162 = vst.msk [vmem:[#allocation3 + $0x2e8] sm:$0x1] %vm130_vm14, %v6640_v0 }
  0x65   :  { %1878 = vrot.lane.b32.xlu0 %v6938_v43, %s6646_s29  ;;  %v229_v43 = vld [vmem:[%s9484_s0 + $0xd0] sm:$0xff]  ;;  %163 = vst.msk [vmem:[#allocation3 + $0x300] sm:$0x1] %vm130_vm14, %v6640_v0  ;;  %164 = vst.msk [vmem:[#allocation3 + $0x318] sm:$0x1] %vm130_vm14, %v6640_v0 }
  0x66   :  { %1880 = vrot.lane.b32.xlu1 %v6942_v47, %s6646_s29  ;;  %294 = vst.msk [vmem:[#allocation2 + $0x151] sm:$0xff] %vm27_vm0, %v229_v43 }
  0x67   :  { %165 = vst.msk [vmem:[#allocation3 + $0x330] sm:$0x1] %vm130_vm14, %v6640_v0  ;;  %166 = vst.msk [vmem:[#allocation3 + $0x348] sm:$0x1] %vm130_vm14, %v6640_v0 }
  0x68   :  { %168 = vst.msk [vmem:[#allocation3 + $0x29] sm:$0x1] %vm130_vm14, %v6640_v0  ;;  %170 = vst.msk [vmem:[#allocation3 + $0x59] sm:$0x1] %vm130_vm14, %v6640_v0 }
  0x69   :  { %2135 = vrot.lane.b32.xlu0 %v1298_v31, %s6647_s11  ;;  %171 = vst.msk [vmem:[#allocation3 + $0x71] sm:$0x1] %vm130_vm14, %v6640_v0  ;;  %172 = vst.msk [vmem:[#allocation3 + $0x89] sm:$0x1] %vm130_vm14, %v6640_v0 }
  0x6a   :  { %2137 = vrot.lane.b32.xlu1 %v2070_v42, %s6647_s11  ;;  %173 = vst.msk [vmem:[#allocation3 + $0xa1] sm:$0x1] %vm130_vm14, %v6640_v0  ;;  %174 = vst.msk [vmem:[#allocation3 + $0xb9] sm:$0x1] %vm130_vm14, %v6640_v0 }
  0x6b   :  { %175 = vst.msk [vmem:[#allocation3 + $0xd1] sm:$0x1] %vm130_vm14, %v6640_v0  ;;  %176 = vst.msk [vmem:[#allocation3 + $0xe9] sm:$0x1] %vm130_vm14, %v6640_v0 }
  0x6c   :  { %177 = vst.msk [vmem:[#allocation3 + $0x101] sm:$0x1] %vm130_vm14, %v6640_v0  ;;  %178 = vst.msk [vmem:[#allocation3 + $0x119] sm:$0x1] %vm130_vm14, %v6640_v0 }
  0x6d   :  { %2392 = vrot.lane.b32.xlu0 %v1555_v36, %s6648_s12  ;;  %v1000_v51 = vld [vmem:[#allocation2 + $0x150] sm:$0xff]  ;;  %v1001_v53 = vld [vmem:[#allocation2 + $0x158] sm:$0xff]  ;;  %179 = vst.msk [vmem:[#allocation3 + $0x131] sm:$0x1] %vm130_vm14, %v6640_v0  ;;  %180 = vst.msk [vmem:[#allocation3 + $0x149] sm:$0x1] %vm130_vm14, %v6640_v0 }
  0x6e   :  { %596 = vrot.lane.b32.xlu1 %v1298_v31, %s6641_s14  ;;  %v7077_v54 = vpack.c.bf16 %v1001_v53, %v1000_v51  ;;  %v1561_v53 = vpack.c.bf16 %v1507_v49, %v1506_v48  ;;  %v1514_v59 = vld [vmem:[#allocation2 + $0x152] sm:$0xff]  ;;  %181 = vst.msk [vmem:[#allocation3 + $0x161] sm:$0x1] %vm130_vm14, %v6640_v0  ;;  %182 = vst.msk [vmem:[#allocation3 + $0x179] sm:$0x1] %vm130_vm14, %v6640_v0 }
  0x6f   :  { %183 = vst.msk [vmem:[#allocation3 + $0x191] sm:$0x1] %vm130_vm14, %v6640_v0  ;;  %186 = vst.msk [vmem:[#allocation3 + $0x1d9] sm:$0x1] %vm130_vm14, %v6640_v0 }
  0x70   :  { %442 = vst.msk [vmem:[#allocation4 + $0x70] sm:$0xff] %vm27_vm0, %v7077_v54 }
  0x71   :  { %2394 = vrot.lane.b32.xlu0 %v2327_v46, %s6648_s12  ;;  %187 = vst.msk [vmem:[#allocation3 + $0x1f1] sm:$0x1] %vm130_vm14, %v6640_v0  ;;  %188 = vst.msk [vmem:[#allocation3 + $0x209] sm:$0x1] %vm130_vm14, %v6640_v0 }
  0x72   :  { %598 = vrot.lane.b32.xlu1 %v2070_v42, %s6641_s14  ;;  %189 = vst.msk [vmem:[#allocation3 + $0x221] sm:$0x1] %vm130_vm14, %v6640_v0  ;;  %190 = vst.msk [vmem:[#allocation3 + $0x239] sm:$0x1] %vm130_vm14, %v6640_v0 }
  0x73   :  { %191 = vst.msk [vmem:[#allocation3 + $0x251] sm:$0x1] %vm130_vm14, %v6640_v0  ;;  %192 = vst.msk [vmem:[#allocation3 + $0x269] sm:$0x1] %vm130_vm14, %v6640_v0 }
  0x74   :  { %193 = vst.msk [vmem:[#allocation3 + $0x281] sm:$0x1] %vm130_vm14, %v6640_v0  ;;  %194 = vst.msk [vmem:[#allocation3 + $0x299] sm:$0x1] %vm130_vm14, %v6640_v0 }
  0x75   :  { %853 = vrot.lane.b32.xlu0 %v1555_v36, %s6642_s15  ;;  %195 = vst.msk [vmem:[#allocation3 + $0x2b1] sm:$0x1] %vm130_vm14, %v6640_v0  ;;  %196 = vst.msk [vmem:[#allocation3 + $0x2c9] sm:$0x1] %vm130_vm14, %v6640_v0 }
  0x76   :  { %855 = vrot.lane.b32.xlu1 %v2327_v46, %s6642_s15  ;;  %197 = vst.msk [vmem:[#allocation3 + $0x2e1] sm:$0x1] %vm130_vm14, %v6640_v0  ;;  %198 = vst.msk [vmem:[#allocation3 + $0x2f9] sm:$0x1] %vm130_vm14, %v6640_v0 }
  0x77   :  { %199 = vst.msk [vmem:[#allocation3 + $0x311] sm:$0x1] %vm130_vm14, %v6640_v0  ;;  %200 = vst.msk [vmem:[#allocation3 + $0x329] sm:$0x1] %vm130_vm14, %v6640_v0 }
  0x78   :  { %201 = vst.msk [vmem:[#allocation3 + $0x341] sm:$0x1] %vm130_vm14, %v6640_v0 }
  0x79   :  { %1110 = vrot.lane.b32.xlu0 %v6942_v47, %s6643_s16  ;;  %v1557_v47 = vpack.c.bf16 %v1499_v58, %v1498_v57  ;;  %119 = vst.msk [vmem:[#allocation3 + $0x10] sm:$0x3] %vm118_vm15, %v6640_v0  ;;  %122 = vst.msk [vmem:[#allocation3 + $0x1c0] sm:$0x3] %vm118_vm15, %v6640_v0 }
  0x7a   :  { %1112 = vrot.lane.b32.xlu1 %v6950_v52, %s6643_s16  ;;  %126 = vst.msk [vmem:[#allocation3 + $0x1a8] sm:$0x3] %vm118_vm15, %v6640_v0  ;;  %129 = vst.msk [vmem:[#allocation3 + $0x358] sm:$0x3] %vm118_vm15, %v6640_v0 }
  0x7b   :  { %167 = vst.msk [vmem:[#allocation3 + $0x11] sm:$0x1] %vm130_vm14, %v6640_v0  ;;  %184 = vst.msk [vmem:[#allocation3 + $0x1a9] sm:$0x1] %vm130_vm14, %v6640_v0 }
  0x7c   :  { %185 = vst.msk [vmem:[#allocation3 + $0x1c1] sm:$0x1] %vm130_vm14, %v6640_v0  ;;  %202 = vst.msk [vmem:[#allocation3 + $0x359] sm:$0x1] %vm130_vm14, %v6640_v0 }
  0x7d   :  { %1367 = vrot.lane.b32.xlu0 %v2070_v42, %s6644_s17  ;;  %v1250_v42 = vld [vmem:[#allocation2 + $0xf9] sm:$0xff] }
  0x7e   :  { %1369 = vrot.lane.b32.xlu1 %v1300_v55, %s6644_s17 }
  0x7f   :  { %v589_v16 = vpop.permute.xlu0 %588 }
  0x80   :  { %685 = vst.msk [vmem:[#allocation4] sm:$0xff] %vm684_vm4, %v589_v16  ;;  %v1253_v16 = vld [vmem:[#allocation2 + $0x121] sm:$0xff] }
  0x81   :  { %1624 = vrot.lane.b32.xlu0 %v2327_v46, %s6645_s18  ;;  %v1304_v46 = vpack.c.bf16 %v1250_v42, %v1249_v40 }
  0x82   :  { %1626 = vrot.lane.b32.xlu1 %v1557_v47, %s6645_s18 }
  0x85   :  { %1882 = vrot.lane.b32.xlu0 %v6950_v52, %s6646_s29  ;;  %v233_v52 = vld [vmem:[%s9484_s0 + $0xf0] sm:$0xff] }
  0x86   :  { %1884 = vrot.lane.b32.xlu1 %v6954_v56, %s6646_s29  ;;  %298 = vst.msk [vmem:[#allocation2 + $0x181] sm:$0xff] %vm27_vm0, %v233_v52 }
  0x89   :  { %2139 = vrot.lane.b32.xlu0 %v1300_v55, %s6647_s11 }
  0x8a   :  { %2141 = vrot.lane.b32.xlu1 %v2072_v4, %s6647_s11 }
  0x8d   :  { %2396 = vrot.lane.b32.xlu0 %v1557_v47, %s6648_s12 }
  0x8e   :  { %2398 = vrot.lane.b32.xlu1 %v2329_v8, %s6648_s12 }
  0x91   :  { %600 = vrot.lane.b32.xlu0 %v1300_v55, %s6641_s14 }
  0x92   :  { %602 = vrot.lane.b32.xlu1 %v2072_v4, %s6641_s14 }
  0x95   :  { %857 = vrot.lane.b32.xlu0 %v1557_v47, %s6642_s15 }
  0x96   :  { %859 = vrot.lane.b32.xlu1 %v2329_v8, %s6642_s15 }
  0x99   :  { %1114 = vrot.lane.b32.xlu0 %v6954_v56, %s6643_s16  ;;  %v2018_v56 = vld [vmem:[#allocation2 + $0xe1] sm:$0xff] }
  0x9a   :  { %1116 = vrot.lane.b32.xlu1 %v6963_v60, %s6643_s16  ;;  %v7135_v20 = vpack.c.bf16 %v2018_v56, %v2017_v17  ;;  %v1254_v17 = vld [vmem:[#allocation2 + $0x129] sm:$0xff] }
  0x9d   :  { %1371 = vrot.lane.b32.xlu0 %v2072_v4, %s6644_s17  ;;  %v2279_v4 = vld [vmem:[#allocation2 + $0x112] sm:$0xff] }
  0x9e   :  { %1373 = vrot.lane.b32.xlu1 %v1302_v12, %s6644_s17 }
  0xa1   :  { %1628 = vrot.lane.b32.xlu0 %v2329_v8, %s6645_s18 }
  0xa2   :  { %1630 = vrot.lane.b32.xlu1 %v1559_v15, %s6645_s18 }
  0xa3   :  { %v846_v19 = vpop.permute.xlu1 %845 }
  0xa4   :  { %942 = vst.msk [vmem:[#allocation4] sm:$0xff] %vm941_vm5, %v846_v19  ;;  %v1306_v19 = vpack.c.bf16 %v1254_v17, %v1253_v16  ;;  %v249_v17 = vld [vmem:[%s9484_s0 + $0x170] sm:$0xff] }
  0xa5   :  { %1886 = vrot.lane.b32.xlu0 %v6963_v60, %s6646_s29  ;;  %v2331_v60 = vpack.c.bf16 %v2275_v24, %v2274_v22  ;;  %v1511_v22 = vld [vmem:[#allocation2 + $0x12a] sm:$0xff]  ;;  %v243_v24 = vld [vmem:[%s9484_s0 + $0x140] sm:$0xff]  ;;  %314 = vst.msk [vmem:[#allocation2 + $0x271] sm:$0xff] %vm27_vm0, %v249_v17 }
  0xa6   :  { %1888 = vrot.lane.b32.xlu1 %v6970_v5, %s6646_s29  ;;  %308 = vst.msk [vmem:[#allocation2 + $0x229] sm:$0xff] %vm27_vm0, %v243_v24 }
  0xa7   :  { %v591_v21 = vpop.permute.xlu0 %590 }
  0xa8   :  { %686 = vst.msk [vmem:[#allocation4 + $0x8] sm:$0xff] %vm684_vm4, %v591_v21  ;;  %v848_v26 = vpop.permute.xlu1 %847  ;;  %v1510_v21 = vld [vmem:[#allocation2 + $0x122] sm:$0xff] }
  0xa9   :  { %943 = vst.msk [vmem:[#allocation4 + $0x8] sm:$0xff] %vm941_vm5, %v848_v26  ;;  %2143 = vrot.lane.b32.xlu0 %v1302_v12, %s6647_s11  ;;  %v244_v26 = vld [vmem:[%s9484_s0 + $0x148] sm:$0xff] }
  0xaa   :  { %2145 = vrot.lane.b32.xlu1 %v7135_v20, %s6647_s11  ;;  %309 = vst.msk [vmem:[#allocation2 + $0x231] sm:$0xff] %vm27_vm0, %v244_v26 }
  0xab   :  { %v1103_v28 = vpop.permute.xlu0 %1102 }
  0xac   :  { %1199 = vst.msk [vmem:[#allocation4] sm:$0xff] %vm1198_vm6, %v1103_v28  ;;  %v1105_v29 = vpop.permute.xlu1 %1104 }
  0xad   :  { %1200 = vst.msk [vmem:[#allocation4 + $0x8] sm:$0xff] %vm1198_vm6, %v1105_v29  ;;  %2400 = vrot.lane.b32.xlu0 %v1559_v15, %s6648_s12  ;;  %v2025_v29 = vld [vmem:[#allocation2 + $0x139] sm:$0xff] }
  0xae   :  { %2402 = vrot.lane.b32.xlu1 %v2331_v60, %s6648_s12 }
  0xaf   :  { %v1360_v31 = vpop.permute.xlu0 %1359 }
  0xb0   :  { %1456 = vst.msk [vmem:[#allocation4] sm:$0xff] %vm1455_vm7, %v1360_v31  ;;  %v1362_v34 = vpop.permute.xlu1 %1361  ;;  %v2026_v31 = vld [vmem:[#allocation2 + $0x141] sm:$0xff] }
  0xb1   :  { %1457 = vst.msk [vmem:[#allocation4 + $0x8] sm:$0xff] %vm1455_vm7, %v1362_v34  ;;  %604 = vrot.lane.b32.xlu0 %v1302_v12, %s6641_s14  ;;  %v2078_v33 = vpack.c.bf16 %v2026_v31, %v2025_v29  ;;  %v1518_v31 = vld [vmem:[#allocation2 + $0x182] sm:$0xff] }
  0xb2   :  { %606 = vrot.lane.b32.xlu1 %v7135_v20, %s6641_s14 }
  0xb3   :  { %v1617_v35 = vpop.permute.xlu0 %1616 }
  0xb4   :  { %1713 = vst.msk [vmem:[#allocation4] sm:$0xff] %vm1712_vm8, %v1617_v35  ;;  %v1619_v36 = vpop.permute.xlu1 %1618 }
  0xb5   :  { %1714 = vst.msk [vmem:[#allocation4 + $0x8] sm:$0xff] %vm1712_vm8, %v1619_v36  ;;  %861 = vrot.lane.b32.xlu0 %v1559_v15, %s6642_s15  ;;  %v2282_v36 = vld [vmem:[#allocation2 + $0x13a] sm:$0xff] }
  0xb6   :  { %863 = vrot.lane.b32.xlu1 %v2331_v60, %s6642_s15 }
  0xb7   :  { %v1875_v39 = vpop.permute.xlu0 %1874 }
  0xb8   :  { %1971 = vst.msk [vmem:[#allocation4] sm:$0xff] %vm1970_vm9, %v1875_v39  ;;  %v1877_v45 = vpop.permute.xlu1 %1876 }
  0xb9   :  { %1972 = vst.msk [vmem:[#allocation4 + $0x8] sm:$0xff] %vm1970_vm9, %v1877_v45  ;;  %1118 = vrot.lane.b32.xlu0 %v6970_v5, %s6643_s16  ;;  %v240_v5 = vld [vmem:[%s9484_s0 + $0x128] sm:$0xff] }
  0xba   :  { %1120 = vrot.lane.b32.xlu1 %v7008_v18, %s6643_s16  ;;  %305 = vst.msk [vmem:[#allocation2 + $0x201] sm:$0xff] %vm27_vm0, %v240_v5  ;;  %v1257_v5 = vld [vmem:[#allocation2 + $0x151] sm:$0xff] }
  0xbb   :  { %v2132_v43 = vpop.permute.xlu0 %2131 }
  0xbc   :  { %2228 = vst.msk [vmem:[#allocation4] sm:$0xff] %vm2227_vm10, %v2132_v43  ;;  %v2134_v51 = vpop.permute.xlu1 %2133  ;;  %v246_v43 = vld [vmem:[%s9484_s0 + $0x158] sm:$0xff] }
  0xbd   :  { %2229 = vst.msk [vmem:[#allocation4 + $0x8] sm:$0xff] %vm2227_vm10, %v2134_v51  ;;  %1375 = vrot.lane.b32.xlu0 %v7135_v20, %s6644_s17 }
  0xbe   :  { %1377 = vrot.lane.b32.xlu1 %v1304_v46, %s6644_s17  ;;  %311 = vst.msk [vmem:[#allocation2 + $0x249] sm:$0xff] %vm27_vm0, %v246_v43  ;;  %v7390_v43 = vld [vmem:[#allocation2 + $0x199] sm:$0xff] }
  0xbf   :  { %v2389_v55 = vpop.permute.xlu0 %2388 }
  0xc0   :  { %2485 = vst.msk [vmem:[#allocation4] sm:$0xff] %vm2484_vm11, %v2389_v55  ;;  %v593_v57 = vpop.permute.xlu1 %592 }
  0xc1   :  { %687 = vst.msk [vmem:[#allocation4 + $0x10] sm:$0xff] %vm684_vm4, %v593_v57  ;;  %1632 = vrot.lane.b32.xlu0 %v2331_v60, %s6645_s18 }
  0xc2   :  { %1634 = vrot.lane.b32.xlu1 %v1561_v53, %s6645_s18 }
  0xc3   :  { %v2391_v58 = vpop.permute.xlu0 %2390 }
  0xc4   :  { %2486 = vst.msk [vmem:[#allocation4 + $0x8] sm:$0xff] %vm2484_vm11, %v2391_v58  ;;  %v595_v47 = vpop.permute.xlu1 %594 }
  0xc5   :  { %688 = vst.msk [vmem:[#allocation4 + $0x18] sm:$0xff] %vm684_vm4, %v595_v47  ;;  %1890 = vrot.lane.b32.xlu0 %v7008_v18, %s6646_s29  ;;  %v2333_v18 = vpack.c.bf16 %v2279_v4, %v2278_v2  ;;  %v247_v47 = vld [vmem:[%s9484_s0 + $0x160] sm:$0xff] }
  0xc6   :  { %1892 = vrot.lane.b32.xlu1 %v7016_v23, %s6646_s29  ;;  %312 = vst.msk [vmem:[#allocation2 + $0x259] sm:$0xff] %vm27_vm0, %v247_v47  ;;  %v493_v47 = vld [vmem:[#allocation2 + $0x1b9] sm:$0xff] }
  0xc7   :  { %v850_v63 = vpop.permute.xlu0 %849  ;;  %v2517_v1 = vld [vmem:[#allocation4] sm:$0xff] }
  0xc8   :  { %944 = vst.msk [vmem:[#allocation4 + $0x10] sm:$0xff] %vm941_vm5, %v850_v63  ;;  %v852_v6 = vpop.permute.xlu1 %851  ;;  %6416 = vmatprep.mubr.msk.bf16.mxu0 %vm2576_vm12, %v2517_v1  ;;  %v248_v63 = vld [vmem:[%s9484_s0 + $0x168] sm:$0xff] }
  0xc9   :  { %945 = vst.msk [vmem:[#allocation4 + $0x18] sm:$0xff] %vm941_vm5, %v852_v6  ;;  %2147 = vrot.lane.b32.xlu0 %v1304_v46, %s6647_s11  ;;  %v2029_v6 = vld [vmem:[#allocation2 + $0x169] sm:$0xff] }
  0xca   :  { %2149 = vrot.lane.b32.xlu1 %v2076_v62, %s6647_s11  ;;  %313 = vst.msk [vmem:[#allocation2 + $0x261] sm:$0xff] %vm27_vm0, %v248_v63  ;;  %v494_v63 = vld [vmem:[#allocation2 + $0x1c9] sm:$0xff] }
  0xcb   :  { %v1107_v7 = vpop.permute.xlu0 %1106  ;;  %v2518_v8 = vld [vmem:[#allocation4 + $0x8] sm:$0xff] }
  0xcc   :  { %1201 = vst.msk [vmem:[#allocation4 + $0x10] sm:$0xff] %vm1198_vm6, %v1107_v7  ;;  %v1109_v52 = vpop.permute.xlu1 %1108  ;;  %6417 = vmatmul.mubr.msk.bf16.vlgmr.msra.gmra.mrb[0].mxu0 %vm2576_vm12, %v2518_v8 }
  0xcd   :  { %1202 = vst.msk [vmem:[#allocation4 + $0x18] sm:$0xff] %vm1198_vm6, %v1109_v52  ;;  %2404 = vrot.lane.b32.xlu0 %v1561_v53, %s6648_s12 }
  0xce   :  { %2406 = vrot.lane.b32.xlu1 %v2333_v18, %s6648_s12 }
  0xcf   :  { %v1364_v9 = vpop.permute.xlu0 %1363 }
  0xd0   :  { %1458 = vst.msk [vmem:[#allocation4 + $0x10] sm:$0xff] %vm1455_vm7, %v1364_v9  ;;  %v1366_v12 = vpop.permute.xlu1 %1365 }
  0xd1   :  { %1459 = vst.msk [vmem:[#allocation4 + $0x18] sm:$0xff] %vm1455_vm7, %v1366_v12  ;;  %608 = vrot.lane.b32.xlu0 %v1304_v46, %s6641_s14  ;;  %v245_v46 = vld [vmem:[%s9484_s0 + $0x150] sm:$0xff] }
  0xd2   :  { %610 = vrot.lane.b32.xlu1 %v2076_v62, %s6641_s14  ;;  %310 = vst.msk [vmem:[#allocation2 + $0x241] sm:$0xff] %vm27_vm0, %v245_v46 }
  0xd3   :  { %v1621_v13 = vpop.permute.xlu0 %1620 }
  0xd4   :  { %1715 = vst.msk [vmem:[#allocation4 + $0x10] sm:$0xff] %vm1712_vm8, %v1621_v13  ;;  %v1623_v14 = vpop.permute.xlu1 %1622 }
  0xd5   :  { %1716 = vst.msk [vmem:[#allocation4 + $0x18] sm:$0xff] %vm1712_vm8, %v1623_v14  ;;  %865 = vrot.lane.b32.xlu0 %v1561_v53, %s6642_s15  ;;  %v1258_v53 = vld [vmem:[#allocation2 + $0x159] sm:$0xff] }
  0xd6   :  { %867 = vrot.lane.b32.xlu1 %v2333_v18, %s6642_s15  ;;  %v1308_v57 = vpack.c.bf16 %v1258_v53, %v1257_v5  ;;  %v2290_v53 = vld [vmem:[#allocation2 + $0x19a] sm:$0xff] }
  0xd7   :  { %v1879_v15 = vpop.permute.xlu0 %1878 }
  0xd8   :  { %1973 = vst.msk [vmem:[#allocation4 + $0x10] sm:$0xff] %vm1970_vm9, %v1879_v15  ;;  %v1881_v56 = vpop.permute.xlu1 %1880 }
  0xd9   :  { %1974 = vst.msk [vmem:[#allocation4 + $0x18] sm:$0xff] %vm1970_vm9, %v1881_v56  ;;  %1122 = vrot.lane.b32.xlu0 %v7016_v23, %s6643_s16  ;;  %v1563_v23 = vpack.c.bf16 %v1511_v22, %v1510_v21  ;;  %v250_v56 = vld [vmem:[%s9484_s0 + $0x178] sm:$0xff]  ;;  %v1004_v21 = vld [vmem:[#allocation2 + $0x180] sm:$0xff]  ;;  %v1005_v22 = vld [vmem:[#allocation2 + $0x188] sm:$0xff] }
  0xda   :  { %1124 = vrot.lane.b32.xlu1 %v7033_v30, %s6643_s16  ;;  %315 = vst.msk [vmem:[#allocation2 + $0x279] sm:$0xff] %vm27_vm0, %v250_v56 }
  0xdb   :  { %v2136_v20 = vpop.permute.xlu0 %2135 }
  0xdc   :  { %2230 = vst.msk [vmem:[#allocation4 + $0x10] sm:$0xff] %vm2227_vm10, %v2136_v20  ;;  %v2138_v25 = vpop.permute.xlu1 %2137 }
  0xdd   :  { %2231 = vst.msk [vmem:[#allocation4 + $0x18] sm:$0xff] %vm2227_vm10, %v2138_v25  ;;  %1379 = vrot.lane.b32.xlu0 %v2076_v62, %s6644_s17  ;;  %v7338_v25 = vpack.c.bf16 %v1005_v22, %v1004_v21 }
  0xde   :  { %1381 = vrot.lane.b32.xlu1 %v1306_v19, %s6644_s17 }
  0xdf   :  { %v2393_v27 = vpop.permute.xlu0 %2392 }
  0xe0   :  { %2487 = vst.msk [vmem:[#allocation4 + $0x10] sm:$0xff] %vm2484_vm11, %v2393_v27  ;;  %v597_v60 = vpop.permute.xlu1 %596  ;;  %v1262_v27 = vld [vmem:[#allocation2 + $0x189] sm:$0xff] }
  0xe1   :  { %689 = vst.msk [vmem:[#allocation4 + $0x20] sm:$0xff] %vm684_vm4, %v597_v60  ;;  %1636 = vrot.lane.b32.xlu0 %v2333_v18, %s6645_s18  ;;  %v2030_v18 = vld [vmem:[#allocation2 + $0x171] sm:$0xff] }
  0xe2   :  { %1638 = vrot.lane.b32.xlu1 %v1563_v23, %s6645_s18  ;;  %v2080_v8 = vpack.c.bf16 %v2030_v18, %v2029_v6  ;;  %v749_v6 = vld [vmem:[#allocation2 + $0x1b2] sm:$0xff]  ;;  %v750_v18 = vld [vmem:[#allocation2 + $0x1ba] sm:$0xff] }
  0xe3   :  { %v2395_v28 = vpop.permute.xlu0 %2394 }
  0xe4   :  { %2488 = vst.msk [vmem:[#allocation4 + $0x18] sm:$0xff] %vm2484_vm11, %v2395_v28  ;;  %v599_v32 = vpop.permute.xlu1 %598 }
  0xe5   :  { %690 = vst.msk [vmem:[#allocation4 + $0x28] sm:$0xff] %vm684_vm4, %v599_v32  ;;  %1894 = vrot.lane.b32.xlu0 %v7033_v30, %s6646_s29  ;;  %v2335_v30 = vpack.c.bf16 %v2283_v37, %v2282_v36  ;;  %v1519_v32 = vld [vmem:[#allocation2 + $0x18a] sm:$0xff]  ;;  %v7363_v37 = vld [vmem:[#allocation2 + $0x198] sm:$0xff] }
  0xe6   :  { %1896 = vrot.lane.b32.xlu1 %v7055_v41, %s6646_s29 }
  0xe7   :  { %v854_v34 = vpop.permute.xlu0 %853  ;;  %v2519_v35 = vld [vmem:[#allocation4 + $0x10] sm:$0xff] }
  0xe8   :  { %946 = vst.msk [vmem:[#allocation4 + $0x20] sm:$0xff] %vm941_vm5, %v854_v34  ;;  %v856_v38 = vpop.permute.xlu1 %855  ;;  %6420 = vmatprep.mubr.msk.bf16.mxu0 %vm2576_vm12, %v2519_v35  ;;  %v252_v35 = vld [vmem:[%s9484_s0 + $0x188] sm:$0xff] }
  0xe9   :  { %947 = vst.msk [vmem:[#allocation4 + $0x28] sm:$0xff] %vm941_vm5, %v856_v38  ;;  %2151 = vrot.lane.b32.xlu0 %v1306_v19, %s6647_s11  ;;  %v7365_v38 = vld [vmem:[#allocation2 + $0x1a0] sm:$0xff] }
  0xea   :  { %2153 = vrot.lane.b32.xlu1 %v2078_v33, %s6647_s11  ;;  %317 = vst.msk [vmem:[#allocation2 + $0x291] sm:$0xff] %vm27_vm0, %v252_v35 }
  0xeb   :  { %v1111_v39 = vpop.permute.xlu0 %1110  ;;  %v2520_v40 = vld [vmem:[#allocation4 + $0x18] sm:$0xff] }
  0xec   :  { %1203 = vst.msk [vmem:[#allocation4 + $0x20] sm:$0xff] %vm1198_vm6, %v1111_v39  ;;  %v1113_v42 = vpop.permute.xlu1 %1112  ;;  %6421 = vmatmul.mubr.msk.bf16.gmra.mrb[4].mxu0 %vm2576_vm12, %v2520_v40  ;;  %v364_v39 = vld [vmem:[#allocation2 + $0x1b0] sm:$0xff]  ;;  %v365_v40 = vld [vmem:[#allocation2 + $0x1b8] sm:$0xff] }
  0xed   :  { %1204 = vst.msk [vmem:[#allocation4 + $0x28] sm:$0xff] %vm1198_vm6, %v1113_v42  ;;  %2408 = vrot.lane.b32.xlu0 %v1563_v23, %s6648_s12  ;;  %v412_v42 = vpack.c.bf16 %v365_v40, %v364_v39  ;;  %v2037_v39 = vld [vmem:[#allocation2 + $0x1f9] sm:$0xff]  ;;  %v2038_v40 = vld [vmem:[#allocation2 + $0x201] sm:$0xff] }
  0xee   :  { %2410 = vrot.lane.b32.xlu1 %v2335_v30, %s6648_s12 }
  0xef   :  { %v1368_v45 = vpop.permute.xlu0 %1367  ;;  %444 = vst.msk [vmem:[#allocation4 + $0x80] sm:$0xff] %vm27_vm0, %v412_v42 }
  0xf0   :  { %1460 = vst.msk [vmem:[#allocation4 + $0x20] sm:$0xff] %vm1455_vm7, %v1368_v45  ;;  %v1370_v48 = vpop.permute.xlu1 %1369  ;;  %v1825_v45 = vpack.c.bf16 %v7365_v38, %v7363_v37 }
  0xf1   :  { %1461 = vst.msk [vmem:[#allocation4 + $0x28] sm:$0xff] %vm1455_vm7, %v1370_v48  ;;  %612 = vrot.lane.b32.xlu0 %v1306_v19, %s6641_s14  ;;  %v7392_v48 = vld [vmem:[#allocation2 + $0x1a1] sm:$0xff] }
  0xf2   :  { %614 = vrot.lane.b32.xlu1 %v2078_v33, %s6641_s14 }
  0xf3   :  { %v1625_v49 = vpop.permute.xlu0 %1624 }
  0xf4   :  { %1717 = vst.msk [vmem:[#allocation4 + $0x20] sm:$0xff] %vm1712_vm8, %v1625_v49  ;;  %v1627_v50 = vpop.permute.xlu1 %1626 }
  0xf5   :  { %1718 = vst.msk [vmem:[#allocation4 + $0x28] sm:$0xff] %vm1712_vm8, %v1627_v50  ;;  %869 = vrot.lane.b32.xlu0 %v1563_v23, %s6642_s15  ;;  %v1261_v23 = vld [vmem:[#allocation2 + $0x181] sm:$0xff]  ;;  %v2082_v50 = vpack.c.bf16 %v7392_v48, %v7390_v43 }
  0xf6   :  { %871 = vrot.lane.b32.xlu1 %v2335_v30, %s6642_s15  ;;  %v7346_v28 = vpack.c.bf16 %v1262_v27, %v1261_v23  ;;  %v255_v23 = vld [vmem:[%s9484_s0 + $0x1a0] sm:$0xff] }
  0xf7   :  { %v1883_v51 = vpop.permute.xlu0 %1882  ;;  %320 = vst.msk [vmem:[#allocation2 + $0x2b9] sm:$0xff] %vm27_vm0, %v255_v23  ;;  %v2294_v48 = vld [vmem:[#allocation2 + $0x1fa] sm:$0xff]  ;;  %v2042_v23 = vld [vmem:[#allocation2 + $0x231] sm:$0xff] }
  0xf8   :  { %1975 = vst.msk [vmem:[#allocation4 + $0x20] sm:$0xff] %vm1970_vm9, %v1883_v51  ;;  %v1885_v55 = vpop.permute.xlu1 %1884 }
  0xf9   :  { %1976 = vst.msk [vmem:[#allocation4 + $0x28] sm:$0xff] %vm1970_vm9, %v1885_v55  ;;  %1126 = vrot.lane.b32.xlu0 %v7055_v41, %s6643_s16  ;;  %v1565_v41 = vpack.c.bf16 %v1515_v61, %v1514_v59  ;;  %v2291_v55 = vld [vmem:[#allocation2 + $0x1a2] sm:$0xff]  ;;  %v492_v61 = vld [vmem:[#allocation2 + $0x1b1] sm:$0xff] }
  0xfa   :  { %1128 = vrot.lane.b32.xlu1 %v7077_v54, %s6643_s16  ;;  %v2339_v59 = vpack.c.bf16 %v2291_v55, %v2290_v53 }
  0xfb   :  { %v2140_v58 = vpop.permute.xlu0 %2139 }
  0xfc   :  { %2232 = vst.msk [vmem:[#allocation4 + $0x20] sm:$0xff] %vm2227_vm10, %v2140_v58  ;;  %v2142_v62 = vpop.permute.xlu1 %2141 }
  0xfd   :  { %2233 = vst.msk [vmem:[#allocation4 + $0x28] sm:$0xff] %vm2227_vm10, %v2142_v62  ;;  %1383 = vrot.lane.b32.xlu0 %v2078_v33, %s6644_s17  ;;  %v251_v33 = vld [vmem:[%s9484_s0 + $0x180] sm:$0xff] }
  0xfe   :  { %1385 = vrot.lane.b32.xlu1 %v1308_v57, %s6644_s17  ;;  %316 = vst.msk [vmem:[#allocation2 + $0x289] sm:$0xff] %vm27_vm0, %v251_v33  ;;  %v368_v33 = vld [vmem:[#allocation2 + $0x1e0] sm:$0xff] }
  0xff   :  { %v2397_v1 = vpop.permute.xlu0 %2396 }
 0x100   :  { %2489 = vst.msk [vmem:[#allocation4 + $0x20] sm:$0xff] %vm2484_vm11, %v2397_v1  ;;  %v2399_v2 = vpop.permute.xlu1 %2398 }
 0x101   :  { %2490 = vst.msk [vmem:[#allocation4 + $0x28] sm:$0xff] %vm2484_vm11, %v2399_v2  ;;  %1640 = vrot.lane.b32.xlu0 %v2335_v30, %s6645_s18  ;;  %v540_v2 = vpack.c.bf16 %v493_v47, %v492_v61 }
 0x102   :  { %1642 = vrot.lane.b32.xlu1 %v1565_v41, %s6645_s18 }
 0x103   :  { %v601_v4 = vpop.permute.xlu0 %600 }
 0x104   :  { %691 = vst.msk [vmem:[#allocation4 + $0x30] sm:$0xff] %vm684_vm4, %v601_v4  ;;  %v603_v7 = vpop.permute.xlu1 %602 }
 0x105   :  { %692 = vst.msk [vmem:[#allocation4 + $0x38] sm:$0xff] %vm684_vm4, %v603_v7  ;;  %1898 = vrot.lane.b32.xlu0 %v7077_v54, %s6646_s29  ;;  %v2337_v54 = vpack.c.bf16 %v2287_v11, %v2286_v10  ;;  %v751_v7 = vld [vmem:[#allocation2 + $0x1ca] sm:$0xff]  ;;  %v254_v10 = vld [vmem:[%s9484_s0 + $0x198] sm:$0xff] }
 0x106   :  { %1900 = vrot.lane.b32.xlu1 %v7099_v3, %s6646_s29  ;;  %319 = vst.msk [vmem:[#allocation2 + $0x2a9] sm:$0xff] %vm27_vm0, %v254_v10  ;;  %v259_v10 = vld [vmem:[%s9484_s0 + $0x1c0] sm:$0xff] }
 0x107   :  { %v858_v52 = vpop.permute.xlu0 %857  ;;  %v2521_v9 = vld [vmem:[#allocation4 + $0x20] sm:$0xff]  ;;  %324 = vst.msk [vmem:[#allocation2 + $0x2e9] sm:$0xff] %vm27_vm0, %v259_v10 }
 0x108   :  { %948 = vst.msk [vmem:[#allocation4 + $0x30] sm:$0xff] %vm941_vm5, %v858_v52  ;;  %v860_v12 = vpop.permute.xlu1 %859  ;;  %6424 = vmatprep.mubr.msk.bf16.mxu0 %vm2576_vm12, %v2521_v9  ;;  %v2522_v13 = vld [vmem:[#allocation4 + $0x28] sm:$0xff]  ;;  %v752_v52 = vld [vmem:[#allocation2 + $0x1d2] sm:$0xff] }
 0x109   :  { %949 = vst.msk [vmem:[#allocation4 + $0x38] sm:$0xff] %vm941_vm5, %v860_v12  ;;  %2155 = vrot.lane.b32.xlu0 %v1308_v57, %s6647_s11  ;;  %6425 = vmatmul.mubr.msk.bf16.gmra.mrb[8].mxu0 %vm2576_vm12, %v2522_v13  ;;  %v253_v9 = vld [vmem:[%s9484_s0 + $0x190] sm:$0xff]  ;;  %v797_v12 = vpack.c.bf16 %v750_v18, %v749_v6  ;;  %v798_v13 = vpack.c.bf16 %v752_v52, %v751_v7  ;;  %v1270_v6 = vld [vmem:[#allocation2 + $0x219] sm:$0xff]  ;;  %v2046_v10 = vld [vmem:[#allocation2 + $0x261] sm:$0xff] }
 0x10a   :  { %2157 = vrot.lane.b32.xlu1 %v2080_v8, %s6647_s11  ;;  %318 = vst.msk [vmem:[#allocation2 + $0x2a1] sm:$0xff] %vm27_vm0, %v253_v9  ;;  %v1526_v52 = vld [vmem:[#allocation2 + $0x212] sm:$0xff]  ;;  %v1527_v9 = vld [vmem:[#allocation2 + $0x21a] sm:$0xff] }
 0x10b   :  { %v1115_v14 = vpop.permute.xlu0 %1114 }
 0x10c   :  { %1205 = vst.msk [vmem:[#allocation4 + $0x30] sm:$0xff] %vm1198_vm6, %v1115_v14  ;;  %v1117_v15 = vpop.permute.xlu1 %1116  ;;  %v1008_v14 = vld [vmem:[#allocation2 + $0x1e0] sm:$0xff] }
 0x10d   :  { %1206 = vst.msk [vmem:[#allocation4 + $0x38] sm:$0xff] %vm1198_vm6, %v1117_v15  ;;  %2412 = vrot.lane.b32.xlu0 %v1565_v41, %s6648_s12  ;;  %v1009_v15 = vld [vmem:[#allocation2 + $0x1e8] sm:$0xff] }
 0x10e   :  { %2414 = vrot.lane.b32.xlu1 %v2337_v54, %s6648_s12  ;;  %v1055_v17 = vpack.c.bf16 %v1009_v15, %v1008_v14  ;;  %v1784_v14 = vld [vmem:[#allocation2 + $0x228] sm:$0xff]  ;;  %v1785_v15 = vld [vmem:[#allocation2 + $0x230] sm:$0xff] }
 0x10f   :  { %v1372_v16 = vpop.permute.xlu0 %1371 }
 0x110   :  { %1462 = vst.msk [vmem:[#allocation4 + $0x30] sm:$0xff] %vm1455_vm7, %v1372_v16  ;;  %v1374_v19 = vpop.permute.xlu1 %1373 }
 0x111   :  { %1463 = vst.msk [vmem:[#allocation4 + $0x38] sm:$0xff] %vm1455_vm7, %v1374_v19  ;;  %616 = vrot.lane.b32.xlu0 %v1308_v57, %s6641_s14  ;;  %v1265_v19 = vld [vmem:[#allocation2 + $0x1e1] sm:$0xff] }
 0x112   :  { %618 = vrot.lane.b32.xlu1 %v2080_v8, %s6641_s14 }
 0x113   :  { %v1629_v20 = vpop.permute.xlu0 %1628 }
 0x114   :  { %1719 = vst.msk [vmem:[#allocation4 + $0x30] sm:$0xff] %vm1712_vm8, %v1629_v20  ;;  %v1631_v24 = vpop.permute.xlu1 %1630  ;;  %v1266_v20 = vld [vmem:[#allocation2 + $0x1e9] sm:$0xff] }
 0x115   :  { %1720 = vst.msk [vmem:[#allocation4 + $0x38] sm:$0xff] %vm1712_vm8, %v1631_v24  ;;  %873 = vrot.lane.b32.xlu0 %v1565_v41, %s6642_s15  ;;  %v495_v41 = vld [vmem:[#allocation2 + $0x1d1] sm:$0xff]  ;;  %v7577_v22 = vpack.c.bf16 %v1266_v20, %v1265_v19  ;;  %v374_v20 = vld [vmem:[#allocation2 + $0x228] sm:$0xff] }
 0x116   :  { %875 = vrot.lane.b32.xlu1 %v2337_v54, %s6642_s15  ;;  %v541_v4 = vpack.c.bf16 %v495_v41, %v494_v63  ;;  %v1013_v63 = vld [vmem:[#allocation2 + $0x218] sm:$0xff] }
 0x117   :  { %v1887_v26 = vpop.permute.xlu0 %1886 }
 0x118   :  { %1977 = vst.msk [vmem:[#allocation4 + $0x30] sm:$0xff] %vm1970_vm9, %v1887_v26  ;;  %v1889_v60 = vpop.permute.xlu1 %1888  ;;  %v1523_v26 = vld [vmem:[#allocation2 + $0x1ea] sm:$0xff] }
 0x119   :  { %1978 = vst.msk [vmem:[#allocation4 + $0x38] sm:$0xff] %vm1970_vm9, %v1889_v60  ;;  %1130 = vrot.lane.b32.xlu0 %v7099_v3, %s6643_s16  ;;  %v7361_v3 = vpack.c.bf16 %v1519_v32, %v1518_v31  ;;  %v256_v60 = vld [vmem:[%s9484_s0 + $0x1a8] sm:$0xff]  ;;  %v1781_v31 = vld [vmem:[#allocation2 + $0x200] sm:$0xff] }
 0x11a   :  { %1132 = vrot.lane.b32.xlu1 %v7338_v25, %s6643_s16  ;;  %321 = vst.msk [vmem:[#allocation2 + $0x2c1] sm:$0xff] %vm27_vm0, %v256_v60 }
 0x11b   :  { %v2144_v29 = vpop.permute.xlu0 %2143 }
 0x11c   :  { %2234 = vst.msk [vmem:[#allocation4 + $0x30] sm:$0xff] %vm2227_vm10, %v2144_v29  ;;  %v2146_v34 = vpop.permute.xlu1 %2145  ;;  %v1780_v29 = vld [vmem:[#allocation2 + $0x1f8] sm:$0xff] }
 0x11d   :  { %2235 = vst.msk [vmem:[#allocation4 + $0x38] sm:$0xff] %vm2227_vm10, %v2146_v34  ;;  %1387 = vrot.lane.b32.xlu0 %v2080_v8, %s6644_s17  ;;  %v369_v34 = vld [vmem:[#allocation2 + $0x1e8] sm:$0xff]  ;;  %v1827_v37 = vpack.c.bf16 %v1781_v31, %v1780_v29  ;;  %v2299_v31 = vld [vmem:[#allocation2 + $0x232] sm:$0xff] }
 0x11e   :  { %1389 = vrot.lane.b32.xlu1 %v7346_v28, %s6644_s17  ;;  %v414_v35 = vpack.c.bf16 %v369_v34, %v368_v33  ;;  %v2298_v29 = vld [vmem:[#allocation2 + $0x22a] sm:$0xff] }
 0x11f   :  { %v2401_v36 = vpop.permute.xlu0 %2400  ;;  %v2343_v34 = vpack.c.bf16 %v2299_v31, %v2298_v29  ;;  %v1277_v29 = vld [vmem:[#allocation2 + $0x271] sm:$0xff]  ;;  %v1278_v31 = vld [vmem:[#allocation2 + $0x279] sm:$0xff] }
 0x120   :  { %2491 = vst.msk [vmem:[#allocation4 + $0x30] sm:$0xff] %vm2484_vm11, %v2401_v36  ;;  %v2403_v30 = vpop.permute.xlu1 %2402  ;;  %v371_v36 = vld [vmem:[#allocation2 + $0x200] sm:$0xff] }
 0x121   :  { %2492 = vst.msk [vmem:[#allocation4 + $0x38] sm:$0xff] %vm2484_vm11, %v2403_v30  ;;  %1644 = vrot.lane.b32.xlu0 %v2337_v54, %s6645_s18 }
 0x122   :  { %1646 = vrot.lane.b32.xlu1 %v7361_v3, %s6645_s18  ;;  %446 = vst.msk [vmem:[#allocation4 + $0x90] sm:$0xff] %vm27_vm0, %v414_v35 }
 0x123   :  { %v605_v46 = vpop.permute.xlu0 %604 }
 0x124   :  { %693 = vst.msk [vmem:[#allocation4 + $0x40] sm:$0xff] %vm684_vm4, %v605_v46  ;;  %v7396_v49 = vpop.permute.xlu1 %606 }
 0x125   :  { %694 = vst.msk [vmem:[#allocation4 + $0x48] sm:$0xff] %vm684_vm4, %v7396_v49  ;;  %1902 = vrot.lane.b32.xlu0 %v7338_v25, %s6646_s29  ;;  %v1522_v25 = vld [vmem:[#allocation2 + $0x1e2] sm:$0xff] }
 0x126   :  { %1904 = vrot.lane.b32.xlu1 %v1825_v45, %s6646_s29  ;;  %v2084_v45 = vpack.c.bf16 %v2038_v40, %v2037_v39  ;;  %v2295_v49 = vld [vmem:[#allocation2 + $0x202] sm:$0xff] }
 0x127   :  { %v862_v51 = vpop.permute.xlu0 %861  ;;  %v2523_v5 = vld [vmem:[#allocation4 + $0x30] sm:$0xff]  ;;  %v1016_v40 = vld [vmem:[#allocation2 + $0x240] sm:$0xff] }
 0x128   :  { %950 = vst.msk [vmem:[#allocation4 + $0x40] sm:$0xff] %vm941_vm5, %v862_v51  ;;  %v864_v57 = vpop.permute.xlu1 %863  ;;  %6428 = vmatprep.mubr.msk.bf16.mxu0 %vm2576_vm12, %v2523_v5  ;;  %v2524_v58 = vld [vmem:[#allocation4 + $0x38] sm:$0xff]  ;;  %v2341_v5 = vpack.c.bf16 %v2295_v49, %v2294_v48  ;;  %v1273_v48 = vld [vmem:[#allocation2 + $0x241] sm:$0xff]  ;;  %v1274_v49 = vld [vmem:[#allocation2 + $0x249] sm:$0xff] }
 0x129   :  { %951 = vst.msk [vmem:[#allocation4 + $0x48] sm:$0xff] %vm941_vm5, %v864_v57  ;;  %2159 = vrot.lane.b32.xlu0 %v7346_v28, %s6647_s11  ;;  %6429 = vmatmul.mubr.msk.bf16.gmra.mrb[12].mxu0 %vm2576_vm12, %v2524_v58  ;;  %v257_v58 = vld [vmem:[%s9484_s0 + $0x1b0] sm:$0xff] }
 0x12a   :  { %2161 = vrot.lane.b32.xlu1 %v2082_v50, %s6647_s11  ;;  %322 = vst.msk [vmem:[#allocation2 + $0x2d1] sm:$0xff] %vm27_vm0, %v257_v58 }
 0x12b   :  { %v1119_v62 = vpop.permute.xlu0 %1118 }
 0x12c   :  { %1207 = vst.msk [vmem:[#allocation4 + $0x40] sm:$0xff] %vm1198_vm6, %v1119_v62  ;;  %v1121_v1 = vpop.permute.xlu1 %1120  ;;  %v1012_v62 = vld [vmem:[#allocation2 + $0x210] sm:$0xff] }
 0x12d   :  { %1208 = vst.msk [vmem:[#allocation4 + $0x48] sm:$0xff] %vm1198_vm6, %v1121_v1  ;;  %2416 = vrot.lane.b32.xlu0 %v7361_v3, %s6648_s12  ;;  %v370_v3 = vld [vmem:[#allocation2 + $0x1f8] sm:$0xff]  ;;  %v1057_v1 = vpack.c.bf16 %v1013_v63, %v1012_v62  ;;  %v1789_v63 = vld [vmem:[#allocation2 + $0x260] sm:$0xff] }
 0x12e   :  { %2418 = vrot.lane.b32.xlu1 %v2339_v59, %s6648_s12  ;;  %v415_v38 = vpack.c.bf16 %v371_v36, %v370_v3  ;;  %v258_v59 = vld [vmem:[%s9484_s0 + $0x1b8] sm:$0xff] }
 0x12f   :  { %v1376_v8 = vpop.permute.xlu0 %1375  ;;  %323 = vst.msk [vmem:[#allocation2 + $0x2d9] sm:$0xff] %vm27_vm0, %v258_v59  ;;  %v264_v59 = vld [vmem:[%s9484_s0 + $0x1e8] sm:$0xff]  ;;  %v1788_v62 = vld [vmem:[#allocation2 + $0x258] sm:$0xff] }
 0x130   :  { %1464 = vst.msk [vmem:[#allocation4 + $0x40] sm:$0xff] %vm1455_vm7, %v1376_v8  ;;  %v1378_v11 = vpop.permute.xlu1 %1377 }
 0x131   :  { %1465 = vst.msk [vmem:[#allocation4 + $0x48] sm:$0xff] %vm1455_vm7, %v1378_v11  ;;  %620 = vrot.lane.b32.xlu0 %v540_v2, %s6641_s14 }
 0x132   :  { %622 = vrot.lane.b32.xlu1 %v541_v4, %s6641_s14  ;;  %447 = vst.msk [vmem:[#allocation4 + $0x98] sm:$0xff] %vm27_vm0, %v415_v38  ;;  %v262_v38 = vld [vmem:[%s9484_s0 + $0x1d8] sm:$0xff]  ;;  %329 = vst.msk [vmem:[#allocation2 + $0x321] sm:$0xff] %vm27_vm0, %v264_v59 }
 0x133   :  { %v1633_v54 = vpop.permute.xlu0 %1632  ;;  %327 = vst.msk [vmem:[#allocation2 + $0x309] sm:$0xff] %vm27_vm0, %v262_v38 }
 0x134   :  { %1721 = vst.msk [vmem:[#allocation4 + $0x40] sm:$0xff] %vm1712_vm8, %v1633_v54  ;;  %v1635_v16 = vpop.permute.xlu1 %1634 }
 0x135   :  { %1722 = vst.msk [vmem:[#allocation4 + $0x48] sm:$0xff] %vm1712_vm8, %v1635_v16  ;;  %877 = vrot.lane.b32.xlu0 %v797_v12, %s6642_s15  ;;  %v260_v12 = vld [vmem:[%s9484_s0 + $0x1c8] sm:$0xff] }
 0x136   :  { %879 = vrot.lane.b32.xlu1 %v798_v13, %s6642_s15  ;;  %325 = vst.msk [vmem:[#allocation2 + $0x2f1] sm:$0xff] %vm27_vm0, %v260_v12 }
 0x137   :  { %v1891_v56 = vpop.permute.xlu0 %1890 }
 0x138   :  { %1979 = vst.msk [vmem:[#allocation4 + $0x40] sm:$0xff] %vm1970_vm9, %v1891_v56  ;;  %v1893_v21 = vpop.permute.xlu1 %1892  ;;  %v373_v56 = vld [vmem:[#allocation2 + $0x218] sm:$0xff] }
 0x139   :  { %1980 = vst.msk [vmem:[#allocation4 + $0x48] sm:$0xff] %vm1970_vm9, %v1893_v21  ;;  %1134 = vrot.lane.b32.xlu0 %v7171_v44, %s6643_s16  ;;  %v1569_v44 = vpack.c.bf16 %v1523_v26, %v1522_v25  ;;  %v375_v21 = vld [vmem:[#allocation2 + $0x230] sm:$0xff] }
 0x13a   :  { %1136 = vrot.lane.b32.xlu1 %v1055_v17, %s6643_s16  ;;  %v2041_v26 = vld [vmem:[#allocation2 + $0x229] sm:$0xff] }
 0x13b   :  { %v2148_v24 = vpop.permute.xlu0 %2147  ;;  %v2086_v60 = vpack.c.bf16 %v2042_v23, %v2041_v26  ;;  %v1020_v23 = vld [vmem:[#allocation2 + $0x270] sm:$0xff] }
 0x13c   :  { %2236 = vst.msk [vmem:[#allocation4 + $0x40] sm:$0xff] %vm2227_vm10, %v2148_v24  ;;  %v2150_v27 = vpop.permute.xlu1 %2149  ;;  %v417_v24 = vpack.c.bf16 %v375_v21, %v374_v20 }
 0x13d   :  { %2237 = vst.msk [vmem:[#allocation4 + $0x48] sm:$0xff] %vm2227_vm10, %v2150_v27  ;;  %1391 = vrot.lane.b32.xlu0 %v541_v4, %s6644_s17  ;;  %v1269_v4 = vld [vmem:[#allocation2 + $0x211] sm:$0xff] }
 0x13e   :  { %1393 = vrot.lane.b32.xlu1 %v7577_v22, %s6644_s17  ;;  %v7634_v7 = vpack.c.bf16 %v1270_v6, %v1269_v4  ;;  %449 = vst.msk [vmem:[#allocation4 + $0xa8] sm:$0xff] %vm27_vm0, %v417_v24  ;;  %v378_v6 = vld [vmem:[#allocation2 + $0x258] sm:$0xff] }
 0x13f   :  { %v2405_v28 = vpop.permute.xlu0 %2404  ;;  %v266_v24 = vld [vmem:[%s9484_s0 + $0x1f8] sm:$0xff] }
 0x140   :  { %2493 = vst.msk [vmem:[#allocation4 + $0x40] sm:$0xff] %vm2484_vm11, %v2405_v28  ;;  %v2407_v32 = vpop.permute.xlu1 %2406 }
 0x141   :  { %2494 = vst.msk [vmem:[#allocation4 + $0x48] sm:$0xff] %vm2484_vm11, %v2407_v32  ;;  %1648 = vrot.lane.b32.xlu0 %v798_v13, %s6645_s18  ;;  %v1571_v13 = vpack.c.bf16 %v1527_v9, %v1526_v52  ;;  %v2045_v9 = vld [vmem:[#allocation2 + $0x259] sm:$0xff] }
 0x142   :  { %1650 = vrot.lane.b32.xlu1 %v1569_v44, %s6645_s18  ;;  %v2088_v12 = vpack.c.bf16 %v2046_v10, %v2045_v9  ;;  %331 = vst.msk [vmem:[#allocation2 + $0x339] sm:$0xff] %vm27_vm0, %v266_v24  ;;  %v2306_v9 = vld [vmem:[#allocation2 + $0x28a] sm:$0xff]  ;;  %v2307_v10 = vld [vmem:[#allocation2 + $0x292] sm:$0xff] }
 0x143   :  { %v609_v30 = vpop.permute.xlu0 %608 }
 0x144   :  { %695 = vst.msk [vmem:[#allocation4 + $0x50] sm:$0xff] %vm684_vm4, %v609_v30  ;;  %v611_v42 = vpop.permute.xlu1 %610 }
 0x145   :  { %696 = vst.msk [vmem:[#allocation4 + $0x58] sm:$0xff] %vm684_vm4, %v611_v42  ;;  %1906 = vrot.lane.b32.xlu0 %v1055_v17, %s6646_s29  ;;  %v372_v17 = vld [vmem:[#allocation2 + $0x210] sm:$0xff]  ;;  %v1017_v42 = vld [vmem:[#allocation2 + $0x248] sm:$0xff] }
 0x146   :  { %1908 = vrot.lane.b32.xlu1 %v1827_v37, %s6646_s29  ;;  %v416_v19 = vpack.c.bf16 %v373_v56, %v372_v17 }
 0x147   :  { %v866_v46 = vpop.permute.xlu0 %865  ;;  %v2525_v43 = vld [vmem:[#allocation4 + $0x40] sm:$0xff] }
 0x148   :  { %952 = vst.msk [vmem:[#allocation4 + $0x50] sm:$0xff] %vm941_vm5, %v866_v46  ;;  %v868_v50 = vpop.permute.xlu1 %867  ;;  %6432 = vmatprep.mubr.msk.bf16.mxu0 %vm2576_vm12, %v2525_v43  ;;  %v2526_v51 = vld [vmem:[#allocation4 + $0x48] sm:$0xff]  ;;  %v1059_v46 = vpack.c.bf16 %v1017_v42, %v1016_v40  ;;  %v1793_v42 = vld [vmem:[#allocation2 + $0x290] sm:$0xff] }
 0x149   :  { %953 = vst.msk [vmem:[#allocation4 + $0x58] sm:$0xff] %vm941_vm5, %v868_v50  ;;  %2163 = vrot.lane.b32.xlu0 %v7577_v22, %s6647_s11  ;;  %6433 = vmatmul.mubr.msk.bf16.gmra.mrb[16].mxu0 %vm2576_vm12, %v2526_v51  ;;  %v7691_v51 = vpack.c.bf16 %v1274_v49, %v1273_v48  ;;  %v1792_v40 = vld [vmem:[#allocation2 + $0x288] sm:$0xff]  ;;  %v380_v48 = vld [vmem:[#allocation2 + $0x270] sm:$0xff]  ;;  %v381_v49 = vld [vmem:[#allocation2 + $0x278] sm:$0xff] }
 0x14a   :  { %2165 = vrot.lane.b32.xlu1 %v2084_v45, %s6647_s11  ;;  %448 = vst.msk [vmem:[#allocation4 + $0xa0] sm:$0xff] %vm27_vm0, %v416_v19 }
 0x14b   :  { %v1123_v53 = vpop.permute.xlu0 %1122 }
 0x14c   :  { %1209 = vst.msk [vmem:[#allocation4 + $0x50] sm:$0xff] %vm1198_vm6, %v1123_v53  ;;  %v1125_v55 = vpop.permute.xlu1 %1124  ;;  %v1530_v53 = vld [vmem:[#allocation2 + $0x242] sm:$0xff] }
 0x14d   :  { %1210 = vst.msk [vmem:[#allocation4 + $0x58] sm:$0xff] %vm1198_vm6, %v1125_v55  ;;  %2420 = vrot.lane.b32.xlu0 %v1569_v44, %s6648_s12  ;;  %v1531_v55 = vld [vmem:[#allocation2 + $0x24a] sm:$0xff] }
 0x14e   :  { %2422 = vrot.lane.b32.xlu1 %v2341_v5, %s6648_s12 }
 0x14f   :  { %v1380_v57 = vpop.permute.xlu0 %1379 }
 0x150   :  { %1466 = vst.msk [vmem:[#allocation4 + $0x50] sm:$0xff] %vm1455_vm7, %v1380_v57  ;;  %v1382_v61 = vpop.permute.xlu1 %1381  ;;  %v263_v57 = vld [vmem:[%s9484_s0 + $0x1e0] sm:$0xff] }
 0x151   :  { %1467 = vst.msk [vmem:[#allocation4 + $0x58] sm:$0xff] %vm1455_vm7, %v1382_v61  ;;  %624 = vrot.lane.b32.xlu0 %v7577_v22, %s6641_s14  ;;  %v1829_v22 = vpack.c.bf16 %v1785_v15, %v1784_v14  ;;  %v1573_v61 = vpack.c.bf16 %v1531_v55, %v1530_v53  ;;  %v2302_v14 = vld [vmem:[#allocation2 + $0x25a] sm:$0xff]  ;;  %v2303_v15 = vld [vmem:[#allocation2 + $0x262] sm:$0xff]  ;;  %v383_v55 = vld [vmem:[#allocation2 + $0x290] sm:$0xff] }
 0x152   :  { %626 = vrot.lane.b32.xlu1 %v2084_v45, %s6641_s14  ;;  %328 = vst.msk [vmem:[#allocation2 + $0x319] sm:$0xff] %vm27_vm0, %v263_v57  ;;  %v2345_v56 = vpack.c.bf16 %v2303_v15, %v2302_v14  ;;  %v382_v53 = vld [vmem:[#allocation2 + $0x288] sm:$0xff] }
 0x153   :  { %v1637_v47 = vpop.permute.xlu0 %1636 }
 0x154   :  { %1723 = vst.msk [vmem:[#allocation4 + $0x50] sm:$0xff] %vm1712_vm8, %v1637_v47  ;;  %v1639_v41 = vpop.permute.xlu1 %1638 }
 0x155   :  { %1724 = vst.msk [vmem:[#allocation4 + $0x58] sm:$0xff] %vm1712_vm8, %v1639_v41  ;;  %881 = vrot.lane.b32.xlu0 %v1569_v44, %s6642_s15 }
 0x156   :  { %883 = vrot.lane.b32.xlu1 %v2341_v5, %s6642_s15 }
 0x157   :  { %v1895_v2 = vpop.permute.xlu0 %1894 }
 0x158   :  { %1981 = vst.msk [vmem:[#allocation4 + $0x50] sm:$0xff] %vm1970_vm9, %v1895_v2  ;;  %v1897_v18 = vpop.permute.xlu1 %1896  ;;  %v377_v2 = vld [vmem:[#allocation2 + $0x248] sm:$0xff] }
 0x159   :  { %1982 = vst.msk [vmem:[#allocation4 + $0x58] sm:$0xff] %vm1970_vm9, %v1897_v18  ;;  %1138 = vrot.lane.b32.xlu0 %v1827_v37, %s6643_s16  ;;  %v261_v37 = vld [vmem:[%s9484_s0 + $0x1d0] sm:$0xff]  ;;  %v379_v18 = vld [vmem:[#allocation2 + $0x260] sm:$0xff] }
 0x15a   :  { %1140 = vrot.lane.b32.xlu1 %v1057_v1, %s6643_s16  ;;  %326 = vst.msk [vmem:[#allocation2 + $0x301] sm:$0xff] %vm27_vm0, %v261_v37  ;;  %v7756_v37 = vld [vmem:[%s9486_s2] ss:$0 sm:$0xff] }
 0x15b   :  { %v2152_v8 = vpop.permute.xlu0 %2151 }
 0x15c   :  { %2238 = vst.msk [vmem:[#allocation4 + $0x50] sm:$0xff] %vm2227_vm10, %v2152_v8  ;;  %v2154_v11 = vpop.permute.xlu1 %2153  ;;  %v419_v8 = vpack.c.bf16 %v379_v18, %v378_v6 }
 0x15d   :  { %2239 = vst.msk [vmem:[#allocation4 + $0x58] sm:$0xff] %vm2227_vm10, %v2154_v11  ;;  %1395 = vrot.lane.b32.xlu0 %v2084_v45, %s6644_s17 }
 0x15e   :  { %1397 = vrot.lane.b32.xlu1 %v7634_v7, %s6644_s17  ;;  %451 = vst.msk [vmem:[#allocation4 + $0xb8] sm:$0xff] %vm27_vm0, %v419_v8 }
 0x15f   :  { %v2409_v54 = vpop.permute.xlu0 %2408 }
 0x160   :  { %2495 = vst.msk [vmem:[#allocation4 + $0x50] sm:$0xff] %vm2484_vm11, %v2409_v54  ;;  %v2411_v16 = vpop.permute.xlu1 %2410 }
 0x161   :  { %2496 = vst.msk [vmem:[#allocation4 + $0x58] sm:$0xff] %vm2484_vm11, %v2411_v16  ;;  %1652 = vrot.lane.b32.xlu0 %v2341_v5, %s6645_s18 }
 0x162   :  { %1654 = vrot.lane.b32.xlu1 %v1571_v13, %s6645_s18 }
 0x163   :  { %v613_v25 = vpop.permute.xlu0 %612 }
 0x164   :  { %697 = vst.msk [vmem:[#allocation4 + $0x60] sm:$0xff] %vm684_vm4, %v613_v25  ;;  %v615_v27 = vpop.permute.xlu1 %614 }
 0x165   :  { %698 = vst.msk [vmem:[#allocation4 + $0x68] sm:$0xff] %vm684_vm4, %v615_v27  ;;  %1910 = vrot.lane.b32.xlu0 %v1057_v1, %s6646_s29  ;;  %v376_v1 = vld [vmem:[#allocation2 + $0x240] sm:$0xff]  ;;  %v1021_v27 = vld [vmem:[#allocation2 + $0x278] sm:$0xff] }
 0x166   :  { %1912 = vrot.lane.b32.xlu1 %v1829_v22, %s6646_s29  ;;  %v418_v4 = vpack.c.bf16 %v377_v2, %v376_v1  ;;  %v2049_v1 = vld [vmem:[#allocation2 + $0x289] sm:$0xff]  ;;  %v2050_v2 = vld [vmem:[#allocation2 + $0x291] sm:$0xff] }
 0x167   :  { %v870_v44 = vpop.permute.xlu0 %869  ;;  %v2527_v28 = vld [vmem:[#allocation4 + $0x50] sm:$0xff] }
 0x168   :  { %954 = vst.msk [vmem:[#allocation4 + $0x60] sm:$0xff] %vm941_vm5, %v870_v44  ;;  %v872_v32 = vpop.permute.xlu1 %871  ;;  %6436 = vmatprep.mubr.msk.bf16.mxu0 %vm2576_vm12, %v2527_v28  ;;  %v2528_v33 = vld [vmem:[#allocation4 + $0x58] sm:$0xff]  ;;  %v1061_v44 = vpack.c.bf16 %v1021_v27, %v1020_v23 }
 0x169   :  { %955 = vst.msk [vmem:[#allocation4 + $0x68] sm:$0xff] %vm941_vm5, %v872_v32  ;;  %2167 = vrot.lane.b32.xlu0 %v7634_v7, %s6647_s11  ;;  %6437 = vmatmul.mubr.msk.bf16.gmra.mrb[20].mxu0 %vm2576_vm12, %v2528_v33  ;;  %v7748_v33 = vpack.c.bf16 %v1278_v31, %v1277_v29  ;;  %v1024_v31 = vld [vmem:[#allocation2 + $0x2a0] sm:$0xff] }
 0x16a   :  { %2169 = vrot.lane.b32.xlu1 %v2086_v60, %s6647_s11  ;;  %450 = vst.msk [vmem:[#allocation4 + $0xb0] sm:$0xff] %vm27_vm0, %v418_v4 }
 0x16b   :  { %v1127_v35 = vpop.permute.xlu0 %1126 }
 0x16c   :  { %1211 = vst.msk [vmem:[#allocation4 + $0x60] sm:$0xff] %vm1198_vm6, %v1127_v35  ;;  %v1129_v3 = vpop.permute.xlu1 %1128  ;;  %v1534_v35 = vld [vmem:[#allocation2 + $0x272] sm:$0xff] }
 0x16d   :  { %1212 = vst.msk [vmem:[#allocation4 + $0x68] sm:$0xff] %vm1198_vm6, %v1129_v3  ;;  %2424 = vrot.lane.b32.xlu0 %v1571_v13, %s6648_s12  ;;  %v1535_v3 = vld [vmem:[#allocation2 + $0x27a] sm:$0xff] }
 0x16e   :  { %2426 = vrot.lane.b32.xlu1 %v2343_v34, %s6648_s12  ;;  %v7760_v38 = vpack.c.bf16 %v1535_v3, %v1534_v35 }
 0x16f   :  { %v1384_v36 = vpop.permute.xlu0 %1383 }
 0x170   :  { %1468 = vst.msk [vmem:[#allocation4 + $0x60] sm:$0xff] %vm1455_vm7, %v1384_v36  ;;  %v1386_v30 = vpop.permute.xlu1 %1385 }
 0x171   :  { %1469 = vst.msk [vmem:[#allocation4 + $0x68] sm:$0xff] %vm1455_vm7, %v1386_v30  ;;  %628 = vrot.lane.b32.xlu0 %v7634_v7, %s6641_s14  ;;  %v1831_v7 = vpack.c.bf16 %v1789_v63, %v1788_v62 }
 0x172   :  { %630 = vrot.lane.b32.xlu1 %v2086_v60, %s6641_s14 }
 0x173   :  { %v1641_v39 = vpop.permute.xlu0 %1640 }
 0x174   :  { %1725 = vst.msk [vmem:[#allocation4 + $0x60] sm:$0xff] %vm1712_vm8, %v1641_v39  ;;  %v1643_v45 = vpop.permute.xlu1 %1642 }
 0x175   :  { %1726 = vst.msk [vmem:[#allocation4 + $0x68] sm:$0xff] %vm1712_vm8, %v1643_v45  ;;  %885 = vrot.lane.b32.xlu0 %v1571_v13, %s6642_s15 }
 0x176   :  { %887 = vrot.lane.b32.xlu1 %v2343_v34, %s6642_s15 }
 0x177   :  { %v1899_v43 = vpop.permute.xlu0 %1898 }
 0x178   :  { %1983 = vst.msk [vmem:[#allocation4 + $0x60] sm:$0xff] %vm1970_vm9, %v1899_v43  ;;  %v1901_v50 = vpop.permute.xlu1 %1900 }
 0x179   :  { %1984 = vst.msk [vmem:[#allocation4 + $0x68] sm:$0xff] %vm1970_vm9, %v1901_v50  ;;  %1142 = vrot.lane.b32.xlu0 %v1829_v22, %s6643_s16  ;;  %v265_v22 = vld [vmem:[%s9484_s0 + $0x1f0] sm:$0xff] }
 0x17a   :  { %1144 = vrot.lane.b32.xlu1 %v1059_v46, %s6643_s16  ;;  %330 = vst.msk [vmem:[#allocation2 + $0x331] sm:$0xff] %vm27_vm0, %v265_v22 }
 0x17b   :  { %v2156_v5 = vpop.permute.xlu0 %2155 }
 0x17c   :  { %2240 = vst.msk [vmem:[#allocation4 + $0x60] sm:$0xff] %vm2227_vm10, %v2156_v5  ;;  %v2158_v58 = vpop.permute.xlu1 %2157  ;;  %v420_v5 = vpack.c.bf16 %v381_v49, %v380_v48 }
 0x17d   :  { %2241 = vst.msk [vmem:[#allocation4 + $0x68] sm:$0xff] %vm2227_vm10, %v2158_v58  ;;  %1399 = vrot.lane.b32.xlu0 %v2086_v60, %s6644_s17 }
 0x17e   :  { %1401 = vrot.lane.b32.xlu1 %v7691_v51, %s6644_s17  ;;  %452 = vst.msk [vmem:[#allocation4 + $0xc0] sm:$0xff] %vm27_vm0, %v420_v5 }
 0x17f   :  { %v2413_v47 = vpop.permute.xlu0 %2412 }
 0x180   :  { %2497 = vst.msk [vmem:[#allocation4 + $0x60] sm:$0xff] %vm2484_vm11, %v2413_v47  ;;  %v2415_v41 = vpop.permute.xlu1 %2414  ;;  %v421_v47 = vpack.c.bf16 %v383_v55, %v382_v53 }
 0x181   :  { %2498 = vst.msk [vmem:[#allocation4 + $0x68] sm:$0xff] %vm2484_vm11, %v2415_v41  ;;  %1656 = vrot.lane.b32.xlu0 %v2343_v34, %s6645_s18 }
 0x182   :  { %1658 = vrot.lane.b32.xlu1 %v1573_v61, %s6645_s18  ;;  %453 = vst.msk [vmem:[#allocation4 + $0xc8] sm:$0xff] %vm27_vm0, %v421_v47 }
 0x183   :  { %v617_v52 = vpop.permute.xlu0 %616 }
 0x184   :  { %699 = vst.msk [vmem:[#allocation4 + $0x70] sm:$0xff] %vm684_vm4, %v617_v52  ;;  %v619_v11 = vpop.permute.xlu1 %618 }
 0x185   :  { %700 = vst.msk [vmem:[#allocation4 + $0x78] sm:$0xff] %vm684_vm4, %v619_v11  ;;  %1914 = vrot.lane.b32.xlu0 %v1059_v46, %s6646_s29 }
 0x186   :  { %1916 = vrot.lane.b32.xlu1 %v1831_v7, %s6646_s29 }
 0x187   :  { %v874_v13 = vpop.permute.xlu0 %873  ;;  %v2529_v54 = vld [vmem:[#allocation4 + $0x60] sm:$0xff] }
 0x188   :  { %956 = vst.msk [vmem:[#allocation4 + $0x70] sm:$0xff] %vm941_vm5, %v874_v13  ;;  %v876_v16 = vpop.permute.xlu1 %875  ;;  %6440 = vmatprep.mubr.msk.bf16.mxu0 %vm2576_vm12, %v2529_v54  ;;  %v2530_v17 = vld [vmem:[#allocation4 + $0x68] sm:$0xff]  ;;  %v7794_v13 = vpack.c.bf16 %v2307_v10, %v2306_v9 }
 0x189   :  { %957 = vst.msk [vmem:[#allocation4 + $0x78] sm:$0xff] %vm941_vm5, %v876_v16  ;;  %2171 = vrot.lane.b32.xlu0 %v7691_v51, %s6647_s11  ;;  %6441 = vmatmul.mubr.msk.bf16.gmra.mrb[24].mxu0 %vm2576_vm12, %v2530_v17 }
 0x18a   :  { %2173 = vrot.lane.b32.xlu1 %v2088_v12, %s6647_s11 }
 0x18b   :  { %v1131_v19 = vpop.permute.xlu0 %1130 }
 0x18c   :  { %1213 = vst.msk [vmem:[#allocation4 + $0x70] sm:$0xff] %vm1198_vm6, %v1131_v19  ;;  %v1133_v20 = vpop.permute.xlu1 %1132 }
 0x18d   :  { %1214 = vst.msk [vmem:[#allocation4 + $0x78] sm:$0xff] %vm1198_vm6, %v1133_v20  ;;  %2428 = vrot.lane.b32.xlu0 %v1573_v61, %s6648_s12 }
 0x18e   :  { %2430 = vrot.lane.b32.xlu1 %v2345_v56, %s6648_s12 }
 0x18f   :  { %v1388_v21 = vpop.permute.xlu0 %1387 }
 0x190   :  { %1470 = vst.msk [vmem:[#allocation4 + $0x70] sm:$0xff] %vm1455_vm7, %v1388_v21  ;;  %v1390_v25 = vpop.permute.xlu1 %1389 }
 0x191   :  { %1471 = vst.msk [vmem:[#allocation4 + $0x78] sm:$0xff] %vm1455_vm7, %v1390_v25  ;;  %632 = vrot.lane.b32.xlu0 %v7691_v51, %s6641_s14 }
 0x192   :  { %634 = vrot.lane.b32.xlu1 %v2088_v12, %s6641_s14 }
 0x193   :  { %v1645_v26 = vpop.permute.xlu0 %1644 }
 0x194   :  { %1727 = vst.msk [vmem:[#allocation4 + $0x70] sm:$0xff] %vm1712_vm8, %v1645_v26  ;;  %v1647_v60 = vpop.permute.xlu1 %1646 }
 0x195   :  { %1728 = vst.msk [vmem:[#allocation4 + $0x78] sm:$0xff] %vm1712_vm8, %v1647_v60  ;;  %889 = vrot.lane.b32.xlu0 %v1573_v61, %s6642_s15  ;;  %v7770_v61 = vpack.c.bf16 %v1793_v42, %v1792_v40  ;;  %v1538_v42 = vld [vmem:[#allocation2 + $0x2a2] sm:$0xff] }
 0x196   :  { %891 = vrot.lane.b32.xlu1 %v2345_v56, %s6642_s15 }
 0x197   :  { %v1903_v28 = vpop.permute.xlu0 %1902 }
 0x198   :  { %1985 = vst.msk [vmem:[#allocation4 + $0x70] sm:$0xff] %vm1970_vm9, %v1903_v28  ;;  %v1905_v32 = vpop.permute.xlu1 %1904 }
 0x199   :  { %1986 = vst.msk [vmem:[#allocation4 + $0x78] sm:$0xff] %vm1970_vm9, %v1905_v32  ;;  %1146 = vrot.lane.b32.xlu0 %v1831_v7, %s6643_s16  ;;  %v7783_v7 = vpack.c.bf16 %v2050_v2, %v2049_v1  ;;  %v1025_v32 = vld [vmem:[#allocation2 + $0x2a8] sm:$0xff] }
 0x19a   :  { %1148 = vrot.lane.b32.xlu1 %v1061_v44, %s6643_s16  ;;  %v1063_v35 = vpack.c.bf16 %v1025_v32, %v1024_v31  ;;  %v385_v1 = vld [vmem:[#allocation2 + $0x2a8] sm:$0xff] }
 0x19b   :  { %v2160_v34 = vpop.permute.xlu0 %2159 }
 0x19c   :  { %2242 = vst.msk [vmem:[#allocation4 + $0x70] sm:$0xff] %vm2227_vm10, %v2160_v34  ;;  %v2162_v36 = vpop.permute.xlu1 %2161 }
 0x19d   :  { %2243 = vst.msk [vmem:[#allocation4 + $0x78] sm:$0xff] %vm2227_vm10, %v2162_v36  ;;  %1403 = vrot.lane.b32.xlu0 %v2088_v12, %s6644_s17  ;;  %v1281_v36 = vld [vmem:[#allocation2 + $0x2a1] sm:$0xff] }
 0x19e   :  { %1405 = vrot.lane.b32.xlu1 %v7748_v33, %s6644_s17 }
 0x19f   :  { %v2417_v30 = vpop.permute.xlu0 %2416  ;;  %v6418_v39 = vpop.f32.mrb[0].mxu0 }
 0x1a0   :  { %2499 = vst.msk [vmem:[#allocation4 + $0x70] sm:$0xff] %vm2484_vm11, %v2417_v30  ;;  %v2720_v45 = vadd.f32 %v6418_v39, %v7756_v37  ;;  %v2419_v46 = vpop.permute.xlu1 %2418  ;;  %v2711_v43 = vpop.f32.mrb[1].mxu0  ;;  %v1282_v30 = vld [vmem:[#allocation2 + $0x2a9] sm:$0xff] }
 0x1a1   :  { %2500 = vst.msk [vmem:[#allocation4 + $0x78] sm:$0xff] %vm2484_vm11, %v2419_v46  ;;  %v2712_v50 = vadd.f32 %v7756_v37, %v2711_v43  ;;  %1660 = vrot.lane.b32.xlu0 %v2345_v56, %s6645_s18  ;;  %v6419_v51 = vpop.f32.mrb[2].mxu0 }
 0x1a2   :  { %v2968_v57 = vmax.f32 %v2720_v45, 0.0  ;;  %v2723_v58 = vadd.f32 %v6419_v51, %v7756_v37  ;;  %1662 = vrot.lane.b32.xlu1 %v7760_v38, %s6645_s18  ;;  %v2714_v59 = vpop.f32.mrb[3].mxu0  ;;  %v1539_v45 = vld [vmem:[#allocation2 + $0x2aa] sm:$0xff]  ;;  %v1797_v51 = vld [vmem:[#allocation2 + $0x2c0] sm:$0xff] }
 0x1a3   :  { %v2966_v62 = vmax.f32 %v2712_v50, 0.0  ;;  %v2715_v63 = vadd.f32 %v7756_v37, %v2714_v59  ;;  %v621_v41 = vpop.permute.xlu0 %620  ;;  %v7835_v43 = vpack.c.bf16 %v1539_v45, %v1538_v42  ;;  %v1796_v50 = vld [vmem:[#allocation2 + $0x2b8] sm:$0xff]  ;;  %v1028_v45 = vld [vmem:[#allocation2 + $0x2d0] sm:$0xff] }
 0x1a4   :  { %3033 = vst.msk [vmem:[#allocation3 + $0x31] sm:$0xff] %vm115_vm13, %v2968_v57  ;;  %v2969_v4 = vmax.f32 %v2723_v58, 0.0  ;;  %v623_v6 = vpop.permute.xlu1 %622 }
 0x1a5   :  { %701 = vst.msk [vmem:[#allocation4 + $0x80] sm:$0xff] %vm684_vm4, %v621_v41  ;;  %v2967_v18 = vmax.f32 %v2715_v63, 0.0  ;;  %702 = vst.msk [vmem:[#allocation4 + $0x88] sm:$0xff] %vm684_vm4, %v623_v6  ;;  %1918 = vrot.lane.b32.xlu0 %v1061_v44, %s6646_s29  ;;  %v2053_v63 = vld [vmem:[#allocation2 + $0x2b9] sm:$0xff] }
 0x1a6   :  { %3031 = vst.msk [vmem:[#allocation3 + $0x19] sm:$0xff] %vm115_vm13, %v2966_v62  ;;  %3034 = vst.msk [vmem:[#allocation3 + $0x39] sm:$0xff] %vm115_vm13, %v2969_v4  ;;  %1920 = vrot.lane.b32.xlu1 %v7770_v61, %s6646_s29  ;;  %v7846_v62 = vpack.c.bf16 %v1797_v51, %v1796_v50  ;;  %v384_v41 = vld [vmem:[#allocation2 + $0x2a0] sm:$0xff]  ;;  %v1285_v51 = vld [vmem:[#allocation2 + $0x2d1] sm:$0xff] }
 0x1a7   :  { %3032 = vst.msk [vmem:[#allocation3 + $0x21] sm:$0xff] %vm115_vm13, %v2967_v18  ;;  %v878_v8 = vpop.permute.xlu0 %877  ;;  %v2531_v52 = vld [vmem:[#allocation4 + $0x70] sm:$0xff]  ;;  %v2054_v18 = vld [vmem:[#allocation2 + $0x2c1] sm:$0xff] }
 0x1a8   :  { %958 = vst.msk [vmem:[#allocation4 + $0x80] sm:$0xff] %vm941_vm5, %v878_v8  ;;  %v880_v11 = vpop.permute.xlu1 %879  ;;  %6444 = vmatprep.mubr.msk.bf16.mxu0 %vm2576_vm12, %v2531_v52  ;;  %v2532_v12 = vld [vmem:[#allocation4 + $0x78] sm:$0xff]  ;;  %v387_v52 = vld [vmem:[#allocation2 + $0x2c0] sm:$0xff] }
 0x1a9   :  { %959 = vst.msk [vmem:[#allocation4 + $0x88] sm:$0xff] %vm941_vm5, %v880_v11  ;;  %2175 = vrot.lane.b32.xlu0 %v7748_v33, %s6647_s11  ;;  %6445 = vmatmul.mubr.msk.bf16.gmra.mrb[28].mxu0 %vm2576_vm12, %v2532_v12  ;;  %v386_v8 = vld [vmem:[#allocation2 + $0x2b8] sm:$0xff] }
 0x1aa   :  { %2177 = vrot.lane.b32.xlu1 %v7783_v7, %s6647_s11  ;;  %v423_v11 = vpack.c.bf16 %v387_v52, %v386_v8  ;;  %v1801_v8 = vld [vmem:[#allocation2 + $0x2f0] sm:$0xff] }
 0x1ab   :  { %v1135_v54 = vpop.permute.xlu0 %1134  ;;  %v3996_v22 = vld [vmem:[#allocation3 + $0x31] sm:$0xff] }
 0x1ac   :  { %1215 = vst.msk [vmem:[#allocation4 + $0x80] sm:$0xff] %vm1198_vm6, %v1135_v54  ;;  %v1137_v14 = vpop.permute.xlu1 %1136  ;;  %v3099_v44 = vld [vmem:[#allocation3 + $0x30] sm:$0xff] }
 0x1ad   :  { %v4891_v15 = vld [vmem:[#allocation3 + $0x32] sm:$0xff]  ;;  %v4892_v16 = vld [vmem:[#allocation3 + $0x3a] sm:$0xff]  ;;  %1216 = vst.msk [vmem:[#allocation4 + $0x88] sm:$0xff] %vm1198_vm6, %v1137_v14  ;;  %2432 = vrot.lane.b32.xlu0 %v7760_v38, %s6648_s12 }
 0x1ae   :  { %v4955_v17 = vpack.c.bf16 %v4892_v16, %v4891_v15  ;;  %2434 = vrot.lane.b32.xlu1 %v7794_v13, %s6648_s12  ;;  %v3225_v19 = vld [vmem:[#allocation3 + $0x19] sm:$0xff]  ;;  %v3226_v21 = vld [vmem:[#allocation3 + $0x21] sm:$0xff]  ;;  %455 = vst.msk [vmem:[#allocation4 + $0xd8] sm:$0xff] %vm27_vm0, %v423_v11 }
 0x1af   :  { %v1392_v56 = vpop.permute.xlu0 %1391  ;;  %v3997_v24 = vld [vmem:[#allocation3 + $0x39] sm:$0xff]  ;;  %v7807_v25 = vpack.c.bf16 %v3226_v21, %v3225_v19  ;;  %v2311_v16 = vld [vmem:[#allocation2 + $0x2c2] sm:$0xff] }
 0x1b0   :  { %4987 = vst.msk [vmem:[#allocation5 + $0x10] sm:$0xff] %vm115_vm13, %v4955_v17  ;;  %v1394_v20 = vpop.permute.xlu1 %1393  ;;  %v4059_v26 = vpack.c.bf16 %v3997_v24, %v3996_v22  ;;  %v3097_v23 = vld [vmem:[#allocation3 + $0x18] sm:$0xff]  ;;  %v3098_v27 = vld [vmem:[#allocation3 + $0x20] sm:$0xff] }
 0x1b1   :  { %1472 = vst.msk [vmem:[#allocation4 + $0x80] sm:$0xff] %vm1455_vm7, %v1392_v56  ;;  %1473 = vst.msk [vmem:[#allocation4 + $0x88] sm:$0xff] %vm1455_vm7, %v1394_v20  ;;  %636 = vrot.lane.b32.xlu0 %v7748_v33, %s6641_s14  ;;  %v3160_v60 = vpack.c.bf16 %v3098_v27, %v3097_v23  ;;  %v3100_v28 = vld [vmem:[#allocation3 + $0x38] sm:$0xff] }
 0x1b2   :  { %638 = vrot.lane.b32.xlu1 %v7783_v7, %s6641_s14  ;;  %4090 = vst.msk [vmem:[#allocation5 + $0x8] sm:$0xff] %vm115_vm13, %v7807_v25  ;;  %4091 = vst.msk [vmem:[#allocation5 + $0x20] sm:$0xff] %vm115_vm13, %v4059_v26  ;;  %v3161_v33 = vpack.c.bf16 %v3100_v28, %v3099_v44  ;;  %v2310_v15 = vld [vmem:[#allocation2 + $0x2ba] sm:$0xff] }
 0x1b3   :  { %v1649_v29 = vpop.permute.xlu0 %1648  ;;  %3192 = vst.msk [vmem:[#allocation5 + $0x18] sm:$0xff] %vm115_vm13, %v3160_v60  ;;  %v7870_v19 = vpack.c.bf16 %v2311_v16, %v2310_v15  ;;  %v2058_v15 = vld [vmem:[#allocation2 + $0x2f1] sm:$0xff] }
 0x1b4   :  { %1729 = vst.msk [vmem:[#allocation4 + $0x80] sm:$0xff] %vm1712_vm8, %v1649_v29  ;;  %v1651_v34 = vpop.permute.xlu1 %1650  ;;  %v388_v16 = vld [vmem:[#allocation2 + $0x2d0] sm:$0xff] }
 0x1b5   :  { %1730 = vst.msk [vmem:[#allocation4 + $0x88] sm:$0xff] %vm1712_vm8, %v1651_v34  ;;  %893 = vrot.lane.b32.xlu0 %v7760_v38, %s6642_s15  ;;  %v7827_v38 = vpack.c.bf16 %v1282_v30, %v1281_v36 }
 0x1b6   :  { %3193 = vst.msk [vmem:[#allocation5 + $0x30] sm:$0xff] %vm115_vm13, %v3161_v33  ;;  %895 = vrot.lane.b32.xlu1 %v7794_v13, %s6642_s15 }
 0x1b7   :  { %v1907_v3 = vpop.permute.xlu0 %1906 }
 0x1b8   :  { %1987 = vst.msk [vmem:[#allocation4 + $0x80] sm:$0xff] %vm1970_vm9, %v1907_v3  ;;  %v1909_v39 = vpop.permute.xlu1 %1908 }
 0x1b9   :  { %1988 = vst.msk [vmem:[#allocation4 + $0x88] sm:$0xff] %vm1970_vm9, %v1909_v39  ;;  %1150 = vrot.lane.b32.xlu0 %v7770_v61, %s6643_s16 }
 0x1ba   :  { %1152 = vrot.lane.b32.xlu1 %v1063_v35, %s6643_s16 }
 0x1bb   :  { %v2164_v40 = vpop.permute.xlu0 %2163 }
 0x1bc   :  { %2244 = vst.msk [vmem:[#allocation4 + $0x80] sm:$0xff] %vm2227_vm10, %v2164_v40  ;;  %v2166_v46 = vpop.permute.xlu1 %2165 }
 0x1bd   :  { %2245 = vst.msk [vmem:[#allocation4 + $0x88] sm:$0xff] %vm2227_vm10, %v2166_v46  ;;  %1407 = vrot.lane.b32.xlu0 %v7783_v7, %s6644_s17  ;;  %v422_v7 = vpack.c.bf16 %v385_v1, %v384_v41  ;;  %v1029_v46 = vld [vmem:[#allocation2 + $0x2d8] sm:$0xff] }
 0x1be   :  { %1409 = vrot.lane.b32.xlu1 %v7827_v38, %s6644_s17 }
 0x1bf   :  { %v2421_v48 = vpop.permute.xlu0 %2420  ;;  %v6422_v49 = vpop.f32.mrb[4].mxu0  ;;  %454 = vst.msk [vmem:[#allocation4 + $0xd0] sm:$0xff] %vm27_vm0, %v422_v7  ;;  %v1800_v7 = vld [vmem:[#allocation2 + $0x2e8] sm:$0xff] }
 0x1c0   :  { %2501 = vst.msk [vmem:[#allocation4 + $0x80] sm:$0xff] %vm2484_vm11, %v2421_v48  ;;  %v2736_v5 = vadd.f32 %v6422_v49, %v7756_v37  ;;  %v2423_v53 = vpop.permute.xlu1 %2422  ;;  %v2727_v55 = vpop.f32.mrb[5].mxu0  ;;  %v1065_v49 = vpack.c.bf16 %v1029_v46, %v1028_v45 }
 0x1c1   :  { %2502 = vst.msk [vmem:[#allocation4 + $0x88] sm:$0xff] %vm2484_vm11, %v2423_v53  ;;  %v2728_v57 = vadd.f32 %v7756_v37, %v2727_v55  ;;  %1664 = vrot.lane.b32.xlu0 %v7794_v13, %s6645_s18  ;;  %v6423_v58 = vpop.f32.mrb[6].mxu0  ;;  %v7858_v13 = vpack.c.bf16 %v2054_v18, %v2053_v63 }
 0x1c2   :  { %v2972_v59 = vmax.f32 %v2736_v5, 0.0  ;;  %v2739_v61 = vadd.f32 %v6423_v58, %v7756_v37  ;;  %1666 = vrot.lane.b32.xlu1 %v7835_v43, %s6645_s18  ;;  %v2730_v47 = vpop.f32.mrb[7].mxu0  ;;  %v1286_v5 = vld [vmem:[#allocation2 + $0x2d9] sm:$0xff] }
 0x1c3   :  { %v2970_v2 = vmax.f32 %v2728_v57, 0.0  ;;  %v2731_v4 = vadd.f32 %v7756_v37, %v2730_v47  ;;  %v625_v6 = vpop.permute.xlu0 %624  ;;  %v1542_v57 = vld [vmem:[#allocation2 + $0x2d2] sm:$0xff]  ;;  %v1543_v58 = vld [vmem:[#allocation2 + $0x2da] sm:$0xff] }
 0x1c4   :  { %3037 = vst.msk [vmem:[#allocation3 + $0x61] sm:$0xff] %vm115_vm13, %v2972_v59  ;;  %v2973_v9 = vmax.f32 %v2739_v61, 0.0  ;;  %v627_v10 = vpop.permute.xlu1 %626  ;;  %v7926_v1 = vpack.c.bf16 %v1543_v58, %v1542_v57 }
 0x1c5   :  { %703 = vst.msk [vmem:[#allocation4 + $0x90] sm:$0xff] %vm684_vm4, %v625_v6  ;;  %v2971_v12 = vmax.f32 %v2731_v4, 0.0  ;;  %704 = vst.msk [vmem:[#allocation4 + $0x98] sm:$0xff] %vm684_vm4, %v627_v10  ;;  %1922 = vrot.lane.b32.xlu0 %v1063_v35, %s6646_s29 }
 0x1c6   :  { %3035 = vst.msk [vmem:[#allocation3 + $0x49] sm:$0xff] %vm115_vm13, %v2970_v2  ;;  %3038 = vst.msk [vmem:[#allocation3 + $0x69] sm:$0xff] %vm115_vm13, %v2973_v9  ;;  %1924 = vrot.lane.b32.xlu1 %v7846_v62, %s6646_s29 }
 0x1c7   :  { %3036 = vst.msk [vmem:[#allocation3 + $0x51] sm:$0xff] %vm115_vm13, %v2971_v12  ;;  %v882_v54 = vpop.permute.xlu0 %881  ;;  %v2533_v14 = vld [vmem:[#allocation4 + $0x80] sm:$0xff] }
 0x1c8   :  { %960 = vst.msk [vmem:[#allocation4 + $0x90] sm:$0xff] %vm941_vm5, %v882_v54  ;;  %v884_v17 = vpop.permute.xlu1 %883  ;;  %6448 = vmatprep.mubr.msk.bf16.mxu0 %vm2576_vm12, %v2533_v14  ;;  %v2534_v56 = vld [vmem:[#allocation4 + $0x88] sm:$0xff] }
 0x1c9   :  { %961 = vst.msk [vmem:[#allocation4 + $0x98] sm:$0xff] %vm941_vm5, %v884_v17  ;;  %2179 = vrot.lane.b32.xlu0 %v7827_v38, %s6647_s11  ;;  %6449 = vmatmul.mubr.msk.bf16.gmra.mrb[32].mxu0 %vm2576_vm12, %v2534_v56  ;;  %v2057_v54 = vld [vmem:[#allocation2 + $0x2e9] sm:$0xff]  ;;  %v389_v17 = vld [vmem:[#allocation2 + $0x2d8] sm:$0xff] }
 0x1ca   :  { %2181 = vrot.lane.b32.xlu1 %v7858_v13, %s6647_s11 }
 0x1cb   :  { %v1139_v20 = vpop.permute.xlu0 %1138  ;;  %v3231_v28 = vld [vmem:[#allocation3 + $0x61] sm:$0xff] }
 0x1cc   :  { %1217 = vst.msk [vmem:[#allocation4 + $0x90] sm:$0xff] %vm1198_vm6, %v1139_v20  ;;  %v1141_v21 = vpop.permute.xlu1 %1140  ;;  %v3103_v31 = vld [vmem:[#allocation3 + $0x60] sm:$0xff]  ;;  %v390_v20 = vld [vmem:[#allocation2 + $0x2e8] sm:$0xff] }
 0x1cd   :  { %v4895_v22 = vld [vmem:[#allocation3 + $0x62] sm:$0xff]  ;;  %v4896_v24 = vld [vmem:[#allocation3 + $0x6a] sm:$0xff]  ;;  %1218 = vst.msk [vmem:[#allocation4 + $0x98] sm:$0xff] %vm1198_vm6, %v1141_v21  ;;  %2436 = vrot.lane.b32.xlu0 %v7835_v43, %s6648_s12 }
 0x1ce   :  { %v7876_v26 = vpack.c.bf16 %v4896_v24, %v4895_v22  ;;  %v4893_v23 = vld [vmem:[#allocation3 + $0x4a] sm:$0xff]  ;;  %v4894_v27 = vld [vmem:[#allocation3 + $0x52] sm:$0xff]  ;;  %2438 = vrot.lane.b32.xlu1 %v7870_v19, %s6648_s12  ;;  %v7947_v24 = vpack.c.bf16 %v2058_v15, %v2057_v54 }
 0x1cf   :  { %v7880_v60 = vpack.c.bf16 %v4894_v27, %v4893_v23  ;;  %v1396_v44 = vpop.permute.xlu0 %1395  ;;  %v3232_v29 = vld [vmem:[#allocation3 + $0x69] sm:$0xff]  ;;  %v3999_v40 = vld [vmem:[#allocation3 + $0x51] sm:$0xff] }
 0x1d0   :  { %4989 = vst.msk [vmem:[#allocation5 + $0x40] sm:$0xff] %vm115_vm13, %v7876_v26  ;;  %v1398_v32 = vpop.permute.xlu1 %1397  ;;  %v7885_v33 = vpack.c.bf16 %v3232_v29, %v3231_v28  ;;  %v3101_v34 = vld [vmem:[#allocation3 + $0x48] sm:$0xff]  ;;  %v3102_v35 = vld [vmem:[#allocation3 + $0x50] sm:$0xff] }
 0x1d1   :  { %1474 = vst.msk [vmem:[#allocation4 + $0x90] sm:$0xff] %vm1455_vm7, %v1396_v44  ;;  %v3104_v3 = vld [vmem:[#allocation3 + $0x68] sm:$0xff]  ;;  %1475 = vst.msk [vmem:[#allocation4 + $0x98] sm:$0xff] %vm1455_vm7, %v1398_v32  ;;  %640 = vrot.lane.b32.xlu0 %v7827_v38, %s6641_s14  ;;  %v7892_v36 = vpack.c.bf16 %v3102_v35, %v3101_v34  ;;  %v391_v21 = vld [vmem:[#allocation2 + $0x2f0] sm:$0xff] }
 0x1d2   :  { %4988 = vst.msk [vmem:[#allocation5 + $0x28] sm:$0xff] %vm115_vm13, %v7880_v60  ;;  %v7894_v30 = vpack.c.bf16 %v3104_v3, %v3103_v31  ;;  %642 = vrot.lane.b32.xlu1 %v7858_v13, %s6641_s14  ;;  %4093 = vst.msk [vmem:[#allocation5 + $0x50] sm:$0xff] %vm115_vm13, %v7885_v33  ;;  %v3998_v39 = vld [vmem:[#allocation3 + $0x49] sm:$0xff]  ;;  %v425_v22 = vpack.c.bf16 %v391_v21, %v390_v20  ;;  %v2315_v28 = vld [vmem:[#allocation2 + $0x2f2] sm:$0xff] }
 0x1d3   :  { %v1653_v42 = vpop.permute.xlu0 %1652  ;;  %3194 = vst.msk [vmem:[#allocation5 + $0x48] sm:$0xff] %vm115_vm13, %v7892_v36  ;;  %v4060_v38 = vpack.c.bf16 %v3999_v40, %v3998_v39  ;;  %v2314_v44 = vld [vmem:[#allocation2 + $0x2ea] sm:$0xff]  ;;  %v1804_v20 = vld [vmem:[#allocation2 + $0x318] sm:$0xff] }
 0x1d4   :  { %3195 = vst.msk [vmem:[#allocation5 + $0x60] sm:$0xff] %vm115_vm13, %v7894_v30  ;;  %v1655_v48 = vpop.permute.xlu1 %1654  ;;  %v7959_v35 = vpack.c.bf16 %v2315_v28, %v2314_v44  ;;  %v6617_v44 = vld [vmem:[%s9487_s3 + $0x10] sm:$0xff]  }
 0x1d5   :  { %1731 = vst.msk [vmem:[#allocation4 + $0x90] sm:$0xff] %vm1712_vm8, %v1653_v42  ;;  %1732 = vst.msk [vmem:[#allocation4 + $0x98] sm:$0xff] %vm1712_vm8, %v1655_v48  ;;  %897 = vrot.lane.b32.xlu0 %v7835_v43, %s6642_s15  ;;  %v7916_v43 = vpack.c.bf16 %v1286_v5, %v1285_v51 }
 0x1d6   :  { %4092 = vst.msk [vmem:[#allocation5 + $0x38] sm:$0xff] %vm115_vm13, %v4060_v38  ;;  %899 = vrot.lane.b32.xlu1 %v7870_v19, %s6642_s15 }
 0x1d7   :  { %v1911_v50 = vpop.permute.xlu0 %1910  ;;  %457 = vst.msk [vmem:[#allocation4 + $0xe8] sm:$0xff] %vm27_vm0, %v425_v22 }
 0x1d8   :  { %1989 = vst.msk [vmem:[#allocation4 + $0x90] sm:$0xff] %vm1970_vm9, %v1911_v50  ;;  %v1913_v53 = vpop.permute.xlu1 %1912 }
 0x1d9   :  { %1990 = vst.msk [vmem:[#allocation4 + $0x98] sm:$0xff] %vm1970_vm9, %v1913_v53  ;;  %1154 = vrot.lane.b32.xlu0 %v7846_v62, %s6643_s16 }
 0x1da   :  { %1156 = vrot.lane.b32.xlu1 %v1065_v49, %s6643_s16 }
 0x1db   :  { %v2168_v55 = vpop.permute.xlu0 %2167 }
 0x1dc   :  { %2246 = vst.msk [vmem:[#allocation4 + $0x90] sm:$0xff] %vm2227_vm10, %v2168_v55  ;;  %v2170_v59 = vpop.permute.xlu1 %2169  ;;  %v6426_v61 = vpop.f32.mrb[8].mxu0 }
 0x1dd   :  { %2247 = vst.msk [vmem:[#allocation4 + $0x98] sm:$0xff] %vm2227_vm10, %v2170_v59  ;;  %v2752_v47 = vadd.f32 %v6426_v61, %v7756_v37  ;;  %1411 = vrot.lane.b32.xlu0 %v7858_v13, %s6644_s17  ;;  %v2743_v63 = vpop.f32.mrb[9].mxu0  ;;  %v7938_v13 = vpack.c.bf16 %v1801_v8, %v1800_v7  ;;  %v6649_v7 = vmov 0   ;;  %v6615_v8 = vld [vmem:[%s9487_s3] sm:$0xff]  }
 0x1de   :  { %v2744_v62 = vadd.f32 %v7756_v37, %v2743_v63  ;;  %1413 = vrot.lane.b32.xlu1 %v7916_v43, %s6644_s17  ;;  %v6427_v41 = vpop.f32.mrb[10].mxu0  ;;  %6565 = vmatprep.subr.bf16.mxu1 %v6649_v7 }
 0x1df   :  { %v2976_v2 = vmax.f32 %v2752_v47, 0.0  ;;  %v2755_v4 = vadd.f32 %v6427_v41, %v7756_v37  ;;  %v2425_v6 = vpop.permute.xlu0 %2424  ;;  %v2746_v18 = vpop.f32.mrb[11].mxu0  ;;  %v1032_v41 = vld [vmem:[#allocation2 + $0x300] sm:$0xff]  ;;  %5362 = vmatprep.subr.bf16.mxu0 %v6649_v7  ;;  %6581 = vmatpush1.bf16.msra.mxu1 %v6615_v8 }
 0x1e0   :  { %v2974_v52 = vmax.f32 %v2744_v62, 0.0  ;;  %2503 = vst.msk [vmem:[#allocation4 + $0x90] sm:$0xff] %vm2484_vm11, %v2425_v6  ;;  %v2747_v9 = vadd.f32 %v7756_v37, %v2746_v18  ;;  %v2427_v10 = vpop.permute.xlu1 %2426  ;;  %v1290_v6 = vld [vmem:[#allocation2 + $0x309] sm:$0xff]  ;;  %5363 = vmatpush1.bf16.msra.mxu0 %v6615_v8  ;;  %6566 = vmatprep.subr.bf16.mxu1 %v6649_v7 }
 0x1e1   :  { %3041 = vst.msk [vmem:[#allocation3 + $0x91] sm:$0xff] %vm115_vm13, %v2976_v2  ;;  %v2977_v11 = vmax.f32 %v2755_v4, 0.0  ;;  %1668 = vrot.lane.b32.xlu0 %v7870_v19, %s6645_s18  ;;  %v424_v19 = vpack.c.bf16 %v389_v17, %v388_v16  ;;  %v1033_v2 = vld [vmem:[#allocation2 + $0x308] sm:$0xff]  ;;  %5364 = vmatprep.subr.bf16.mxu0 %v6649_v7 }
 0x1e2   :  { %2504 = vst.msk [vmem:[#allocation4 + $0x98] sm:$0xff] %vm2484_vm11, %v2427_v10  ;;  %v2975_v12 = vmax.f32 %v2747_v9, 0.0  ;;  %1670 = vrot.lane.b32.xlu1 %v7926_v1, %s6645_s18  ;;  %v7991_v18 = vpack.c.bf16 %v1033_v2, %v1032_v41  ;;  %v1546_v9 = vld [vmem:[#allocation2 + $0x302] sm:$0xff]  ;;  %v1547_v10 = vld [vmem:[#allocation2 + $0x30a] sm:$0xff] }
 0x1e3   :  { %3039 = vst.msk [vmem:[#allocation3 + $0x79] sm:$0xff] %vm115_vm13, %v2974_v52  ;;  %3042 = vst.msk [vmem:[#allocation3 + $0x99] sm:$0xff] %vm115_vm13, %v2977_v11  ;;  %v629_v14 = vpop.permute.xlu0 %628  ;;  %v6616_v11 = vld [vmem:[%s9487_s3 + $0x8] sm:$0xff]  }
 0x1e4   :  { %3040 = vst.msk [vmem:[#allocation3 + $0x81] sm:$0xff] %vm115_vm13, %v2975_v12  ;;  %v631_v56 = vpop.permute.xlu1 %630  ;;  %6582 = vmatpush1.bf16.msra.mxu1 %v6616_v11  ;;  %5365 = vmatpush1.bf16.msra.mxu0 %v6616_v11 }
 0x1e5   :  { %705 = vst.msk [vmem:[#allocation4 + $0xa0] sm:$0xff] %vm684_vm4, %v629_v14  ;;  %706 = vst.msk [vmem:[#allocation4 + $0xa8] sm:$0xff] %vm684_vm4, %v631_v56  ;;  %1926 = vrot.lane.b32.xlu0 %v1065_v49, %s6646_s29  ;;  %6567 = vmatprep.subr.bf16.mxu1 %v6649_v7 }
 0x1e6   :  { %1928 = vrot.lane.b32.xlu1 %v7938_v13, %s6646_s29  ;;  %456 = vst.msk [vmem:[#allocation4 + $0xe0] sm:$0xff] %vm27_vm0, %v424_v19  ;;  %v8020_v19 = vpack.c.bf16 %v1547_v10, %v1546_v9  ;;  %5366 = vmatprep.subr.bf16.mxu0 %v6649_v7 }
 0x1e7   :  { %v886_v23 = vpop.permute.xlu0 %885  ;;  %v2535_v27 = vld [vmem:[#allocation4 + $0x90] sm:$0xff] }
 0x1e8   :  { %962 = vst.msk [vmem:[#allocation4 + $0xa0] sm:$0xff] %vm941_vm5, %v886_v23  ;;  %v888_v29 = vpop.permute.xlu1 %887  ;;  %6452 = vmatprep.mubr.msk.bf16.mxu0 %vm2576_vm12, %v2535_v27  ;;  %v4004_v49 = vld [vmem:[#allocation3 + $0x91] sm:$0xff]  ;;  %6583 = vmatpush1.bf16.msra.mxu1 %v6617_v44 }
 0x1e9   :  { %v2536_v31 = vld [vmem:[#allocation4 + $0x98] sm:$0xff]  ;;  %963 = vst.msk [vmem:[#allocation4 + $0xa8] sm:$0xff] %vm941_vm5, %v888_v29  ;;  %2183 = vrot.lane.b32.xlu0 %v7916_v43, %s6647_s11  ;;  %v3107_v59 = vld [vmem:[#allocation3 + $0x90] sm:$0xff]  ;;  %6568 = vmatprep.subr.bf16.mxu1 %v6649_v7 }
 0x1ea   :  { %6453 = vmatmul.mubr.msk.bf16.gmra.mrb[36].mxu0 %vm2576_vm12, %v2536_v31  ;;  %v4899_v32 = vld [vmem:[#allocation3 + $0x92] sm:$0xff]  ;;  %v4900_v34 = vld [vmem:[#allocation3 + $0x9a] sm:$0xff]  ;;  %2185 = vrot.lane.b32.xlu1 %v7947_v24, %s6647_s11 }
 0x1eb   :  { %v7961_v3 = vpack.c.bf16 %v4900_v34, %v4899_v32  ;;  %v4897_v39 = vld [vmem:[#allocation3 + $0x7a] sm:$0xff]  ;;  %v4898_v40 = vld [vmem:[#allocation3 + $0x82] sm:$0xff]  ;;  %v1143_v42 = vpop.permute.xlu0 %1142  ;;  %5367 = vmatpush1.bf16.msra.mxu0 %v6617_v44 }
 0x1ec   :  { %v7963_v45 = vpack.c.bf16 %v4898_v40, %v4897_v39  ;;  %1219 = vst.msk [vmem:[#allocation4 + $0xa0] sm:$0xff] %vm1198_vm6, %v1143_v42  ;;  %v1145_v46 = vpop.permute.xlu1 %1144  ;;  %v4003_v38 = vld [vmem:[#allocation3 + $0x81] sm:$0xff]  ;;  %v4002_v48 = vld [vmem:[#allocation3 + $0x79] sm:$0xff]  ;;  %5368 = vmatprep.subr.bf16.mxu0 %v6649_v7 }
 0x1ed   :  { %4991 = vst.msk [vmem:[#allocation5 + $0x70] sm:$0xff] %vm115_vm13, %v7961_v3  ;;  %2440 = vrot.lane.b32.xlu0 %v7926_v1, %s6648_s12  ;;  %v4062_v50 = vpack.c.bf16 %v4003_v38, %v4002_v48  ;;  %v4005_v51 = vld [vmem:[#allocation3 + $0x99] sm:$0xff]  ;;  %v393_v38 = vld [vmem:[#allocation2 + $0x308] sm:$0xff] }
 0x1ee   :  { %1220 = vst.msk [vmem:[#allocation4 + $0xa8] sm:$0xff] %vm1198_vm6, %v1145_v46  ;;  %2442 = vrot.lane.b32.xlu1 %v7959_v35, %s6648_s12  ;;  %v3105_v5 = vld [vmem:[#allocation3 + $0x78] sm:$0xff]  ;;  %v3106_v53 = vld [vmem:[#allocation3 + $0x80] sm:$0xff]  ;;  %v4063_v57 = vpack.c.bf16 %v4005_v51, %v4004_v49 }
 0x1ef   :  { %4990 = vst.msk [vmem:[#allocation5 + $0x58] sm:$0xff] %vm115_vm13, %v7963_v45  ;;  %v1400_v55 = vpop.permute.xlu0 %1399  ;;  %v3164_v58 = vpack.c.bf16 %v3106_v53, %v3105_v5  ;;  %v3108_v61 = vld [vmem:[#allocation3 + $0x98] sm:$0xff]  ;;  %4094 = vst.msk [vmem:[#allocation5 + $0x68] sm:$0xff] %vm115_vm13, %v4062_v50  ;;  %v392_v46 = vld [vmem:[#allocation2 + $0x300] sm:$0xff] }
 0x1f0   :  { %1476 = vst.msk [vmem:[#allocation4 + $0xa0] sm:$0xff] %vm1455_vm7, %v1400_v55  ;;  %v1402_v47 = vpop.permute.xlu1 %1401  ;;  %v3165_v63 = vpack.c.bf16 %v3108_v61, %v3107_v59  ;;  %v2061_v34 = vld [vmem:[#allocation2 + $0x319] sm:$0xff]  ;;  %v426_v49 = vpack.c.bf16 %v393_v38, %v392_v46  ;;  %v2319_v59 = vld [vmem:[#allocation2 + $0x322] sm:$0xff] }
 0x1f1   :  { %1477 = vst.msk [vmem:[#allocation4 + $0xa8] sm:$0xff] %vm1455_vm7, %v1402_v47  ;;  %644 = vrot.lane.b32.xlu0 %v7916_v43, %s6641_s14  ;;  %v1289_v43 = vld [vmem:[#allocation2 + $0x301] sm:$0xff]  ;;  %v394_v50 = vld [vmem:[#allocation2 + $0x318] sm:$0xff] }
 0x1f2   :  { %4095 = vst.msk [vmem:[#allocation5 + $0x80] sm:$0xff] %vm115_vm13, %v4063_v57  ;;  %3196 = vst.msk [vmem:[#allocation5 + $0x78] sm:$0xff] %vm115_vm13, %v3164_v58  ;;  %646 = vrot.lane.b32.xlu1 %v7947_v24, %s6641_s14  ;;  %v8008_v12 = vpack.c.bf16 %v1290_v6, %v1289_v43  ;;  %v395_v51 = vld [vmem:[#allocation2 + $0x320] sm:$0xff]  ;;  %v1550_v38 = vld [vmem:[#allocation2 + $0x332] sm:$0xff] }
 0x1f3   :  { %3197 = vst.msk [vmem:[#allocation5 + $0x90] sm:$0xff] %vm115_vm13, %v3165_v63  ;;  %v1657_v62 = vpop.permute.xlu0 %1656  ;;  %v2318_v5 = vld [vmem:[#allocation2 + $0x31a] sm:$0xff]  ;;  %v427_v53 = vpack.c.bf16 %v395_v51, %v394_v50 }
 0x1f4   :  { %1733 = vst.msk [vmem:[#allocation4 + $0xa0] sm:$0xff] %vm1712_vm8, %v1657_v62  ;;  %v1659_v4 = vpop.permute.xlu1 %1658  ;;  %v6619_v61 = vld [vmem:[%s9487_s3 + $0x20] sm:$0xff]   ;;  %v8068_v2 = vpack.c.bf16 %v2319_v59, %v2318_v5 }
 0x1f5   :  { %1734 = vst.msk [vmem:[#allocation4 + $0xa8] sm:$0xff] %vm1712_vm8, %v1659_v4  ;;  %901 = vrot.lane.b32.xlu0 %v7926_v1, %s6642_s15  ;;  %v8140_v50 = vld [vmem:[%s9486_s2] ss:$0 sm:$0xff] }
 0x1f6   :  { %903 = vrot.lane.b32.xlu1 %v7959_v35, %s6642_s15  ;;  %458 = vst.msk [vmem:[#allocation4 + $0xf0] sm:$0xff] %vm27_vm0, %v426_v49  ;;  %459 = vst.msk [vmem:[#allocation4 + $0xf8] sm:$0xff] %vm27_vm0, %v427_v53  ;;  %vm3447_vm0 = vcmask 523520  }
 0x1f7   :  { %v1915_v52 = vpop.permute.xlu0 %1914 }
 0x1f8   :  { %1991 = vst.msk [vmem:[#allocation4 + $0xa0] sm:$0xff] %vm1970_vm9, %v1915_v52  ;;  %v1917_v1 = vpop.permute.xlu1 %1916 }
 0x1f9   :  { %1992 = vst.msk [vmem:[#allocation4 + $0xa8] sm:$0xff] %vm1970_vm9, %v1917_v1  ;;  %1158 = vrot.lane.b32.xlu0 %v7938_v13, %s6643_s16  ;;  %v6620_v1 = vld [vmem:[%s9487_s3 + $0x28] sm:$0xff]  }
 0x1fa   :  { %1160 = vrot.lane.b32.xlu1 %v7991_v18, %s6643_s16 }
 0x1fb   :  { %v2172_v54 = vpop.permute.xlu0 %2171 }
 0x1fc   :  { %2248 = vst.msk [vmem:[#allocation4 + $0xa0] sm:$0xff] %vm2227_vm10, %v2172_v54  ;;  %v2174_v14 = vpop.permute.xlu1 %2173  ;;  %v6430_v13 = vpop.f32.mrb[12].mxu0 }
 0x1fd   :  { %2249 = vst.msk [vmem:[#allocation4 + $0xa8] sm:$0xff] %vm2227_vm10, %v2174_v14  ;;  %v2768_v15 = vadd.f32 %v6430_v13, %v7756_v37  ;;  %1415 = vrot.lane.b32.xlu0 %v7947_v24, %s6644_s17  ;;  %v2759_v16 = vpop.f32.mrb[13].mxu0  ;;  %v1805_v24 = vld [vmem:[#allocation2 + $0x320] sm:$0xff]  ;;  %v6621_v14 = vld [vmem:[%s9487_s3 + $0x30] sm:$0xff]  }
 0x1fe   :  { %v2760_v17 = vadd.f32 %v7756_v37, %v2759_v16  ;;  %1417 = vrot.lane.b32.xlu1 %v8008_v12, %s6644_s17  ;;  %v6431_v56 = vpop.f32.mrb[14].mxu0  ;;  %v8036_v40 = vpack.c.bf16 %v1805_v24, %v1804_v20  ;;  %v6622_v24 = vld [vmem:[%s9487_s3 + $0x38] sm:$0xff]  }
 0x1ff   :  { %v2980_v21 = vmax.f32 %v2768_v15, 0.0  ;;  %v2771_v22 = vadd.f32 %v6431_v56, %v7756_v37  ;;  %v2429_v23 = vpop.permute.xlu0 %2428  ;;  %v2762_v27 = vpop.f32.mrb[15].mxu0 }
 0x200   :  { %v2978_v28 = vmax.f32 %v2760_v17, 0.0  ;;  %2505 = vst.msk [vmem:[#allocation4 + $0xa0] sm:$0xff] %vm2484_vm11, %v2429_v23  ;;  %v2763_v29 = vadd.f32 %v7756_v37, %v2762_v27  ;;  %v2431_v31 = vpop.permute.xlu1 %2430  ;;  %v2062_v37 = vld [vmem:[#allocation2 + $0x321] sm:$0xff] }
 0x201   :  { %3045 = vst.msk [vmem:[#allocation3 + $0xc1] sm:$0xff] %vm115_vm13, %v2980_v21  ;;  %v2981_v32 = vmax.f32 %v2771_v22, 0.0  ;;  %1672 = vrot.lane.b32.xlu0 %v7959_v35, %s6645_s18  ;;  %v6618_v35 = vld [vmem:[%s9487_s3 + $0x18] sm:$0xff]   ;;  %v8051_v55 = vpack.c.bf16 %v2062_v37, %v2061_v34 }
 0x202   :  { %2506 = vst.msk [vmem:[#allocation4 + $0xa8] sm:$0xff] %vm2484_vm11, %v2431_v31  ;;  %v2979_v39 = vmax.f32 %v2763_v29, 0.0  ;;  %1674 = vrot.lane.b32.xlu1 %v8020_v19, %s6645_s18  ;;  %6584 = vmatpush1.bf16.msra.mxu1 %v6618_v35  ;;  %v1037_v29 = vld [vmem:[#allocation2 + $0x338] sm:$0xff] }
 0x203   :  { %3043 = vst.msk [vmem:[#allocation3 + $0xa9] sm:$0xff] %vm115_vm13, %v2978_v28  ;;  %3046 = vst.msk [vmem:[#allocation3 + $0xc9] sm:$0xff] %vm115_vm13, %v2981_v32  ;;  %v633_v42 = vpop.permute.xlu0 %632  ;;  %6569 = vmatprep.subr.bf16.mxu1 %v6649_v7  ;;  %5369 = vmatpush1.bf16.msra.mxu0 %v6618_v35  ;;  %v1036_v28 = vld [vmem:[#allocation2 + $0x330] sm:$0xff]  ;;  %v6623_v32 = vld [vmem:[%s9487_s3 + $0x40] sm:$0xff]  }
 0x204   :  { %3044 = vst.msk [vmem:[#allocation3 + $0xb1] sm:$0xff] %vm115_vm13, %v2979_v39  ;;  %v635_v48 = vpop.permute.xlu1 %634  ;;  %5370 = vmatprep.subr.bf16.mxu0 %v6649_v7  ;;  %v8115_v31 = vpack.c.bf16 %v1037_v29, %v1036_v28  ;;  %v1293_v39 = vld [vmem:[#allocation2 + $0x331] sm:$0xff]  ;;  %v1294_v37 = vld [vmem:[#allocation2 + $0x339] sm:$0xff]  ;;  %v6624_v35 = vld [vmem:[%s9487_s3 + $0x48] sm:$0xff]  }
 0x205   :  { %707 = vst.msk [vmem:[#allocation4 + $0xb0] sm:$0xff] %vm684_vm4, %v633_v42  ;;  %708 = vst.msk [vmem:[#allocation4 + $0xb8] sm:$0xff] %vm684_vm4, %v635_v48  ;;  %1930 = vrot.lane.b32.xlu0 %v7991_v18, %s6646_s29  ;;  %v1551_v48 = vld [vmem:[#allocation2 + $0x33a] sm:$0xff] }
 0x206   :  { %1932 = vrot.lane.b32.xlu1 %v8036_v40, %s6646_s29  ;;  %6585 = vmatpush1.bf16.msra.mxu1 %v6619_v61 }
 0x207   :  { %v890_v57 = vpop.permute.xlu0 %889  ;;  %v2537_v58 = vld [vmem:[#allocation4 + $0xa0] sm:$0xff]  ;;  %6570 = vmatprep.subr.bf16.mxu1 %v6649_v7  ;;  %5371 = vmatpush1.bf16.msra.mxu0 %v6619_v61 }
 0x208   :  { %964 = vst.msk [vmem:[#allocation4 + $0xb0] sm:$0xff] %vm941_vm5, %v890_v57  ;;  %v892_v47 = vpop.permute.xlu1 %891  ;;  %6456 = vmatprep.mubr.msk.bf16.mxu0 %vm2576_vm12, %v2537_v58  ;;  %5372 = vmatprep.subr.bf16.mxu0 %v6649_v7  ;;  %v4008_v11 = vld [vmem:[#allocation3 + $0xc1] sm:$0xff]  ;;  %v8148_v58 = vpack.c.bf16 %v1551_v48, %v1550_v38 }
 0x209   :  { %v2538_v63 = vld [vmem:[#allocation4 + $0xa8] sm:$0xff]  ;;  %965 = vst.msk [vmem:[#allocation4 + $0xb8] sm:$0xff] %vm941_vm5, %v892_v47  ;;  %2187 = vrot.lane.b32.xlu0 %v8008_v12, %s6647_s11  ;;  %v3111_v21 = vld [vmem:[#allocation3 + $0xc0] sm:$0xff] }
 0x20a   :  { %6457 = vmatmul.mubr.msk.bf16.gmra.mrb[40].mxu0 %vm2576_vm12, %v2538_v63  ;;  %v4903_v62 = vld [vmem:[#allocation3 + $0xc2] sm:$0xff]  ;;  %v4904_v41 = vld [vmem:[#allocation3 + $0xca] sm:$0xff]  ;;  %2189 = vrot.lane.b32.xlu1 %v8051_v55, %s6647_s11 }
 0x20b   :  { %v8070_v4 = vpack.c.bf16 %v4904_v41, %v4903_v62  ;;  %v4901_v43 = vld [vmem:[#allocation3 + $0xaa] sm:$0xff]  ;;  %v4902_v6 = vld [vmem:[#allocation3 + $0xb2] sm:$0xff]  ;;  %v1147_v18 = vpop.permute.xlu0 %1146  ;;  %6586 = vmatpush1.bf16.msra.mxu1 %v6620_v1  ;;  %5373 = vmatpush1.bf16.msra.mxu0 %v6620_v1 }
 0x20c   :  { %v8073_v8 = vpack.c.bf16 %v4902_v6, %v4901_v43  ;;  %1221 = vst.msk [vmem:[#allocation4 + $0xb0] sm:$0xff] %vm1198_vm6, %v1147_v18  ;;  %v1149_v52 = vpop.permute.xlu1 %1148  ;;  %v4006_v9 = vld [vmem:[#allocation3 + $0xa9] sm:$0xff]  ;;  %v4007_v10 = vld [vmem:[#allocation3 + $0xb1] sm:$0xff]  ;;  %6571 = vmatprep.subr.bf16.mxu1 %v6649_v7  ;;  %5374 = vmatprep.subr.bf16.mxu0 %v6649_v7 }
 0x20d   :  { %4993 = vst.msk [vmem:[#allocation5 + $0xa0] sm:$0xff] %vm115_vm13, %v8070_v4  ;;  %2444 = vrot.lane.b32.xlu0 %v8020_v19, %s6648_s12  ;;  %v4009_v54 = vld [vmem:[#allocation3 + $0xc9] sm:$0xff]  ;;  %v4064_v13 = vpack.c.bf16 %v4007_v10, %v4006_v9 }
 0x20e   :  { %1222 = vst.msk [vmem:[#allocation4 + $0xb8] sm:$0xff] %vm1198_vm6, %v1149_v52  ;;  %2446 = vrot.lane.b32.xlu1 %v8068_v2, %s6648_s12  ;;  %v4065_v15 = vpack.c.bf16 %v4009_v54, %v4008_v11  ;;  %v3109_v16 = vld [vmem:[#allocation3 + $0xa8] sm:$0xff]  ;;  %v3110_v17 = vld [vmem:[#allocation3 + $0xb0] sm:$0xff] }
 0x20f   :  { %4992 = vst.msk [vmem:[#allocation5 + $0x88] sm:$0xff] %vm115_vm13, %v8073_v8  ;;  %v1404_v56 = vpop.permute.xlu0 %1403  ;;  %v3166_v20 = vpack.c.bf16 %v3110_v17, %v3109_v16  ;;  %v3112_v22 = vld [vmem:[#allocation3 + $0xc8] sm:$0xff]  ;;  %4096 = vst.msk [vmem:[#allocation5 + $0x98] sm:$0xff] %vm115_vm13, %v4064_v13  ;;  %6587 = vmatpush1.bf16.msra.mxu1 %v6621_v14  ;;  %5375 = vmatpush1.bf16.msra.mxu0 %v6621_v14  ;;  %v1809_v41 = vld [vmem:[#allocation2 + $0x350] sm:$0xff] }
 0x210   :  { %1478 = vst.msk [vmem:[#allocation4 + $0xb0] sm:$0xff] %vm1455_vm7, %v1404_v56  ;;  %v1406_v23 = vpop.permute.xlu1 %1405  ;;  %v3167_v27 = vpack.c.bf16 %v3112_v22, %v3111_v21  ;;  %6572 = vmatprep.subr.bf16.mxu1 %v6649_v7  ;;  %5376 = vmatprep.subr.bf16.mxu0 %v6649_v7  ;;  %v1808_v62 = vld [vmem:[#allocation2 + $0x348] sm:$0xff]  ;;  %v2066_v54 = vld [vmem:[#allocation2 + $0x351] sm:$0xff] }
 0x211   :  { %4097 = vst.msk [vmem:[#allocation5 + $0xb0] sm:$0xff] %vm115_vm13, %v4065_v15  ;;  %648 = vrot.lane.b32.xlu0 %v8008_v12, %s6641_s14  ;;  %3198 = vst.msk [vmem:[#allocation5 + $0xa8] sm:$0xff] %vm115_vm13, %v3166_v20  ;;  %v1841_v9 = vpack.c.bf16 %v1809_v41, %v1808_v62  ;;  %v2065_v11 = vld [vmem:[#allocation2 + $0x349] sm:$0xff]  ;;  %v2323_v56 = vld [vmem:[#allocation2 + $0x352] sm:$0xff] }
 0x212   :  { %1479 = vst.msk [vmem:[#allocation4 + $0xb8] sm:$0xff] %vm1455_vm7, %v1406_v23  ;;  %650 = vrot.lane.b32.xlu1 %v8051_v55, %s6641_s14  ;;  %v2098_v13 = vpack.c.bf16 %v2066_v54, %v2065_v11  ;;  %v2322_v15 = vld [vmem:[#allocation2 + $0x34a] sm:$0xff]  ;;  %v6627_v20 = vld [vmem:[%s9487_s3 + $0x60] sm:$0xff]   ;;  %v4385_v62 = vld [vmem:[#allocation3 + $0x78] sm:$0xff] }
 0x213   :  { %3199 = vst.msk [vmem:[#allocation5 + $0xc0] sm:$0xff] %vm115_vm13, %v3167_v27  ;;  %v1661_v44 = vpop.permute.xlu0 %1660  ;;  %6588 = vmatpush1.bf16.msra.mxu1 %v6622_v24  ;;  %5377 = vmatpush1.bf16.msra.mxu0 %v6622_v24  ;;  %v2355_v24 = vpack.c.bf16 %v2323_v56, %v2322_v15  ;;  %v6630_v41 = vld [vmem:[%s9487_s3 + $0x78] sm:$0xff]  }
 0x214   :  { %1735 = vst.msk [vmem:[#allocation4 + $0xb0] sm:$0xff] %vm1712_vm8, %v1661_v44  ;;  %v1663_v12 = vpop.permute.xlu1 %1662  ;;  %6573 = vmatprep.subr.bf16.mxu1 %v6649_v7  ;;  %5378 = vmatprep.subr.bf16.mxu0 %v6649_v7 }
 0x215   :  { %1736 = vst.msk [vmem:[#allocation4 + $0xb8] sm:$0xff] %vm1712_vm8, %v1663_v12  ;;  %905 = vrot.lane.b32.xlu0 %v8020_v19, %s6642_s15  ;;  %v8128_v19 = vpack.c.bf16 %v1294_v37, %v1293_v39  ;;  %v3229_v39 = vld [vmem:[#allocation3 + $0x49] sm:$0xff]  ;;  %v3230_v37 = vld [vmem:[#allocation3 + $0x51] sm:$0xff] }
 0x216   :  { %907 = vrot.lane.b32.xlu1 %v8068_v2, %s6642_s15 }
 0x217   :  { %v1919_v34 = vpop.permute.xlu0 %1918  ;;  %6589 = vmatpush1.bf16.msra.mxu1 %v6623_v32  ;;  %5379 = vmatpush1.bf16.msra.mxu0 %v6623_v32 }
 0x218   :  { %1993 = vst.msk [vmem:[#allocation4 + $0xb0] sm:$0xff] %vm1970_vm9, %v1919_v34  ;;  %v1921_v42 = vpop.permute.xlu1 %1920  ;;  %6574 = vmatprep.subr.bf16.mxu1 %v6649_v7  ;;  %5380 = vmatprep.subr.bf16.mxu0 %v6649_v7  ;;  %v6628_v34 = vld [vmem:[%s9487_s3 + $0x68] sm:$0xff]  }
 0x219   :  { %1994 = vst.msk [vmem:[#allocation4 + $0xb8] sm:$0xff] %vm1970_vm9, %v1921_v42  ;;  %1162 = vrot.lane.b32.xlu0 %v8036_v40, %s6643_s16  ;;  %v4386_v42 = vld [vmem:[#allocation3 + $0x80] sm:$0xff] }
 0x21a   :  { %1164 = vrot.lane.b32.xlu1 %v8115_v31, %s6643_s16 }
 0x21b   :  { %v2176_v46 = vpop.permute.xlu0 %2175  ;;  %6590 = vmatpush1.bf16.msra.mxu1 %v6624_v35  ;;  %5381 = vmatpush1.bf16.msra.mxu0 %v6624_v35 }
 0x21c   :  { %2250 = vst.msk [vmem:[#allocation4 + $0xb0] sm:$0xff] %vm2227_vm10, %v2176_v46  ;;  %v2178_v49 = vpop.permute.xlu1 %2177  ;;  %v6434_v40 = vpop.f32.mrb[16].mxu0  ;;  %6575 = vmatprep.subr.bf16.mxu1 %v6649_v7  ;;  %5382 = vmatprep.subr.bf16.mxu0 %v6649_v7 }
 0x21d   :  { %2251 = vst.msk [vmem:[#allocation4 + $0xb8] sm:$0xff] %vm2227_vm10, %v2178_v49  ;;  %v2784_v51 = vadd.f32 %v8140_v50, %v6434_v40  ;;  %1419 = vrot.lane.b32.xlu0 %v8051_v55, %s6644_s17  ;;  %v2775_v5 = vpop.f32.mrb[17].mxu0  ;;  %v6625_v55 = vld [vmem:[%s9487_s3 + $0x50] sm:$0xff]  }
 0x21e   :  { %v2776_v53 = vadd.f32 %v8140_v50, %v2775_v5  ;;  %1421 = vrot.lane.b32.xlu1 %v8128_v19, %s6644_s17  ;;  %v6435_v57 = vpop.f32.mrb[18].mxu0 }
 0x21f   :  { %v2984_v59 = vmax.f32 %v2784_v51, 0.0  ;;  %v2787_v61 = vadd.f32 %v8140_v50, %v6435_v57  ;;  %v2433_v47 = vpop.permute.xlu0 %2432  ;;  %v2778_v63 = vpop.f32.mrb[19].mxu0  ;;  %6591 = vmatpush1.bf16.msra.mxu1 %v6625_v55  ;;  %5383 = vmatpush1.bf16.msra.mxu0 %v6625_v55 }
 0x220   :  { %v2982_v43 = vmax.f32 %v2776_v53, 0.0  ;;  %2507 = vst.msk [vmem:[#allocation4 + $0xb0] sm:$0xff] %vm2484_vm11, %v2433_v47  ;;  %v2779_v6 = vadd.f32 %v8140_v50, %v2778_v63  ;;  %v2435_v18 = vpop.permute.xlu1 %2434  ;;  %6576 = vmatprep.subr.bf16.mxu1 %v6649_v7  ;;  %5384 = vmatprep.subr.bf16.mxu0 %v6649_v7  ;;  %v3290_v53 = vpack.c.bf16 %v3230_v37, %v3229_v39  ;;  %v4644_v39 = vld [vmem:[#allocation3 + $0x99] sm:$0xff] }
 0x221   :  { %3049 = vst.msk [vmem:[#allocation3 + $0xf1] sm:$0xff] %vm115_vm13, %v2984_v59  ;;  %v2985_v52 = vmax.f32 %v2787_v61, 0.0  ;;  %1676 = vrot.lane.b32.xlu0 %v8068_v2, %s6645_s18  ;;  %v6626_v2 = vld [vmem:[%s9487_s3 + $0x58] sm:$0xff]  }
 0x222   :  { %2508 = vst.msk [vmem:[#allocation4 + $0xb8] sm:$0xff] %vm2484_vm11, %v2435_v18  ;;  %v2983_v1 = vmax.f32 %v2779_v6, 0.0  ;;  %1678 = vrot.lane.b32.xlu1 %v8148_v58, %s6645_s18  ;;  %v4642_v6 = vld [vmem:[#allocation3 + $0x81] sm:$0xff] }
 0x223   :  { %3047 = vst.msk [vmem:[#allocation3 + $0xd9] sm:$0xff] %vm115_vm13, %v2982_v43  ;;  %3050 = vst.msk [vmem:[#allocation3 + $0xf9] sm:$0xff] %vm115_vm13, %v2985_v52  ;;  %v637_v10 = vpop.permute.xlu0 %636  ;;  %6592 = vmatpush1.bf16.msra.mxu1 %v6626_v2  ;;  %5385 = vmatpush1.bf16.msra.mxu0 %v6626_v2  ;;  %v8234_v43 = vpack.c.bf16 %v4386_v42, %v4385_v62  ;;  %v3744_v18 = vld [vmem:[#allocation3 + $0x68] sm:$0xff]  ;;  %v4641_v52 = vld [vmem:[#allocation3 + $0x79] sm:$0xff] }
 0x224   :  { %3048 = vst.msk [vmem:[#allocation3 + $0xe1] sm:$0xff] %vm115_vm13, %v2983_v1  ;;  %v639_v14 = vpop.permute.xlu1 %638  ;;  %6577 = vmatprep.subr.bf16.mxu1 %v6649_v7  ;;  %5386 = vmatprep.subr.bf16.mxu0 %v6649_v7  ;;  %v4643_v42 = vld [vmem:[#allocation3 + $0x91] sm:$0xff] }
 0x225   :  { %709 = vst.msk [vmem:[#allocation4 + $0xc0] sm:$0xff] %vm684_vm4, %v637_v10  ;;  %710 = vst.msk [vmem:[#allocation4 + $0xc8] sm:$0xff] %vm684_vm4, %v639_v14  ;;  %1934 = vrot.lane.b32.xlu0 %v8115_v31, %s6646_s29  ;;  %v3743_v10 = vld [vmem:[#allocation3 + $0x60] sm:$0xff]  ;;  %v4388_v14 = vld [vmem:[#allocation3 + $0x98] sm:$0xff] }
 0x226   :  { %1936 = vrot.lane.b32.xlu1 %v1841_v9, %s6646_s29  ;;  %v8246_v9 = vpack.c.bf16 %v4642_v6, %v4641_v52  ;;  %v3804_v11 = vpack.c.bf16 %v3744_v18, %v3743_v10 }
 0x227   :  { %v894_v16 = vpop.permute.xlu0 %893  ;;  %v2539_v17 = vld [vmem:[#allocation4 + $0xb0] sm:$0xff]  ;;  %6593 = vmatpush1.bf16.msra.mxu1 %v6627_v20  ;;  %5387 = vmatpush1.bf16.msra.mxu0 %v6627_v20 }
 0x228   :  { %966 = vst.msk [vmem:[#allocation4 + $0xc0] sm:$0xff] %vm941_vm5, %v894_v16  ;;  %v896_v21 = vpop.permute.xlu1 %895  ;;  %6460 = vmatprep.mubr.msk.bf16.mxu0 %vm2576_vm12, %v2539_v17  ;;  %6578 = vmatprep.subr.bf16.mxu1 %v6649_v7  ;;  %v4012_v49 = vld [vmem:[#allocation3 + $0xf1] sm:$0xff]  ;;  %v3488_v16 = vld [vmem:[#allocation3 + $0x62] sm:$0xff] }
 0x229   :  { %v2540_v22 = vld [vmem:[#allocation4 + $0xb8] sm:$0xff]  ;;  %967 = vst.msk [vmem:[#allocation4 + $0xc8] sm:$0xff] %vm941_vm5, %v896_v21  ;;  %2191 = vrot.lane.b32.xlu0 %v8128_v19, %s6647_s11  ;;  %5388 = vmatprep.subr.bf16.mxu0 %v6649_v7  ;;  %v6629_v19 = vld [vmem:[%s9487_s3 + $0x70] sm:$0xff]  }
 0x22a   :  { %6461 = vmatmul.mubr.msk.bf16.gmra.mrb[44].mxu0 %vm2576_vm12, %v2540_v22  ;;  %v4907_v23 = vld [vmem:[#allocation3 + $0xf2] sm:$0xff]  ;;  %v4908_v27 = vld [vmem:[#allocation3 + $0xfa] sm:$0xff]  ;;  %2193 = vrot.lane.b32.xlu1 %v2098_v13, %s6647_s11  ;;  %v3489_v17 = vld [vmem:[#allocation3 + $0x6a] sm:$0xff] }
 0x22b   :  { %v8201_v44 = vpack.c.bf16 %v4908_v27, %v4907_v23  ;;  %v4905_v28 = vld [vmem:[#allocation3 + $0xda] sm:$0xff]  ;;  %v4906_v29 = vld [vmem:[#allocation3 + $0xe2] sm:$0xff]  ;;  %v1151_v12 = vpop.permute.xlu0 %1150  ;;  %6594 = vmatpush1.bf16.msra.mxu1 %v6628_v34  ;;  %5389 = vmatpush1.bf16.msra.mxu0 %v6628_v34  ;;  %v3115_v59 = vld [vmem:[#allocation3 + $0xf0] sm:$0xff]  ;;  %v3548_v34 = vpack.c.bf16 %v3489_v17, %v3488_v16 }
 0x22c   :  { %v8204_v31 = vpack.c.bf16 %v4906_v29, %v4905_v28  ;;  %1223 = vst.msk [vmem:[#allocation4 + $0xc0] sm:$0xff] %vm1198_vm6, %v1151_v12  ;;  %v1153_v32 = vpop.permute.xlu1 %1152  ;;  %v4010_v35 = vld [vmem:[#allocation3 + $0xd9] sm:$0xff]  ;;  %v4011_v46 = vld [vmem:[#allocation3 + $0xe1] sm:$0xff]  ;;  %6579 = vmatprep.subr.bf16.mxu1 %v6649_v7  ;;  %5390 = vmatprep.subr.bf16.mxu0 %v6649_v7  ;;  %v4387_v21 = vld [vmem:[#allocation3 + $0x90] sm:$0xff] }
 0x22d   :  { %4995 = vst.msk [vmem:[#allocation5 + $0xd0] sm:$0xff] %vm115_vm13, %v8201_v44  ;;  %2448 = vrot.lane.b32.xlu0 %v8148_v58, %s6648_s12  ;;  %v4066_v48 = vpack.c.bf16 %v4011_v46, %v4010_v35  ;;  %v4013_v40 = vld [vmem:[#allocation3 + $0xf9] sm:$0xff]  ;;  %v8262_v28 = vpack.c.bf16 %v4388_v14, %v4387_v21  ;;  %v8273_v35 = vpack.c.bf16 %v4644_v39, %v4643_v42  ;;  %v4392_v16 = vld [vmem:[#allocation3 + $0xc8] sm:$0xff] }
 0x22e   :  { %1224 = vst.msk [vmem:[#allocation4 + $0xc8] sm:$0xff] %vm1198_vm6, %v1153_v32  ;;  %2450 = vrot.lane.b32.xlu1 %v2355_v24, %s6648_s12  ;;  %v3113_v51 = vld [vmem:[#allocation3 + $0xd8] sm:$0xff]  ;;  %v4067_v57 = vpack.c.bf16 %v4013_v40, %v4012_v49  ;;  %v3114_v58 = vld [vmem:[#allocation3 + $0xe0] sm:$0xff] }
 0x22f   :  { %4994 = vst.msk [vmem:[#allocation5 + $0xb8] sm:$0xff] %vm115_vm13, %v8204_v31  ;;  %v1408_v38 = vpop.permute.xlu0 %1407  ;;  %v3116_v61 = vld [vmem:[#allocation3 + $0xf8] sm:$0xff]  ;;  %4098 = vst.msk [vmem:[#allocation5 + $0xc8] sm:$0xff] %vm115_vm13, %v4066_v48  ;;  %v3168_v47 = vpack.c.bf16 %v3114_v58, %v3113_v51  ;;  %6595 = vmatpush1.bf16.msra.mxu1 %v6629_v19  ;;  %5391 = vmatpush1.bf16.msra.mxu0 %v6629_v19  ;;  %v4390_v51 = vld [vmem:[#allocation3 + $0xb0] sm:$0xff] }
 0x230   :  { %1480 = vst.msk [vmem:[#allocation4 + $0xc0] sm:$0xff] %vm1455_vm7, %v1408_v38  ;;  %v1410_v5 = vpop.permute.xlu1 %1409  ;;  %v3169_v63 = vpack.c.bf16 %v3116_v61, %v3115_v59  ;;  %6580 = vmatprep.subr.bf16.mxu1 %v6649_v7  ;;  %5392 = vmatprep.subr.bf16.mxu0 %v6649_v7  ;;  %v3492_v17 = vld [vmem:[#allocation3 + $0x92] sm:$0xff] }
 0x231   :  { %1481 = vst.msk [vmem:[#allocation4 + $0xc8] sm:$0xff] %vm1455_vm7, %v1410_v5  ;;  %4256 = vrot.lane.b32.xlu0 %v7876_v26, %s6648_s12 }
 0x232   :  { %3357 = vrot.lane.b32.xlu1 %v3290_v53, %s6648_s12  ;;  %4099 = vst.msk [vmem:[#allocation5 + $0xe0] sm:$0xff] %vm115_vm13, %v4067_v57  ;;  %3200 = vst.msk [vmem:[#allocation5 + $0xd8] sm:$0xff] %vm115_vm13, %v3168_v47  ;;  %v4389_v57 = vld [vmem:[#allocation3 + $0xa8] sm:$0xff] }
 0x233   :  { %v1665_v55 = vpop.permute.xlu0 %1664  ;;  %3201 = vst.msk [vmem:[#allocation5 + $0xf0] sm:$0xff] %vm115_vm13, %v3169_v63  ;;  %6596 = vmatpush1.bf16.msra.mxu1 %v6630_v41  ;;  %5393 = vmatpush1.bf16.msra.mxu0 %v6630_v41  ;;  %v8292_v63 = vpack.c.bf16 %v4390_v51, %v4389_v57  ;;  %v4394_v51 = vld [vmem:[#allocation3 + $0xe0] sm:$0xff]  ;;  %v4393_v57 = vld [vmem:[#allocation3 + $0xd8] sm:$0xff] }
 0x234   :  { %1737 = vst.msk [vmem:[#allocation4 + $0xc0] sm:$0xff] %vm1712_vm8, %v1665_v55  ;;  %v1667_v26 = vpop.permute.xlu1 %1666  ;;  %v4645_v55 = vld [vmem:[#allocation3 + $0xa9] sm:$0xff] }
 0x235   :  { %1738 = vst.msk [vmem:[#allocation4 + $0xc8] sm:$0xff] %vm1712_vm8, %v1667_v26  ;;  %4513 = vrot.lane.b32.xlu0 %v8234_v43, %s6650_s10 }
 0x236   :  { %3614 = vrot.lane.b32.xlu1 %v7880_v60, %s6650_s10 }
 0x237   :  { %v1923_v1 = vpop.permute.xlu0 %1922 }
 0x238   :  { %1995 = vst.msk [vmem:[#allocation4 + $0xc0] sm:$0xff] %vm1970_vm9, %v1923_v1  ;;  %v1925_v7 = vpop.permute.xlu1 %1924 }
 0x239   :  { %1996 = vst.msk [vmem:[#allocation4 + $0xc8] sm:$0xff] %vm1970_vm9, %v1925_v7  ;;  %4769 = vrot.lane.b32.xlu0 %v8246_v9, %s6651_s1 }
 0x23a   :  { %3871 = vrot.lane.b32.xlu1 %v3804_v11, %s6651_s1 }
 0x23b   :  { %v2180_v60 = vpop.permute.xlu0 %2179 }
 0x23c   :  { %2252 = vst.msk [vmem:[#allocation4 + $0xc0] sm:$0xff] %vm2227_vm10, %v2180_v60  ;;  %v2182_v54 = vpop.permute.xlu1 %2181  ;;  %v6438_v2 = vpop.f32.mrb[20].mxu0 }
 0x23d   :  { %2253 = vst.msk [vmem:[#allocation4 + $0xc8] sm:$0xff] %vm2227_vm10, %v2182_v54  ;;  %v2800_v13 = vadd.f32 %v8140_v50, %v6438_v2  ;;  %v2791_v15 = vpop.f32.mrb[21].mxu0  ;;  %4258 = vrot.lane.b32.xlu0 %v7963_v45, %s6648_s12 }
 0x23e   :  { %v2792_v56 = vadd.f32 %v8140_v50, %v2791_v15  ;;  %v6439_v20 = vpop.f32.mrb[22].mxu0  ;;  %3359 = vrot.lane.b32.xlu1 %v7885_v33, %s6648_s12 }
 0x23f   :  { %v2988_v22 = vmax.f32 %v2800_v13, 0.0  ;;  %v2803_v23 = vadd.f32 %v8140_v50, %v6439_v20  ;;  %v2437_v27 = vpop.permute.xlu0 %2436  ;;  %v2794_v24 = vpop.f32.mrb[23].mxu0  ;;  %v4391_v20 = vld [vmem:[#allocation3 + $0xc0] sm:$0xff] }
 0x240   :  { %v2986_v29 = vmax.f32 %v2792_v56, 0.0  ;;  %2509 = vst.msk [vmem:[#allocation4 + $0xc0] sm:$0xff] %vm2484_vm11, %v2437_v27  ;;  %v2795_v12 = vadd.f32 %v8140_v50, %v2794_v24  ;;  %v2439_v32 = vpop.permute.xlu1 %2438  ;;  %v3493_v56 = vld [vmem:[#allocation3 + $0x9a] sm:$0xff]  ;;  %v4648_v24 = vld [vmem:[#allocation3 + $0xc9] sm:$0xff] }
 0x241   :  { %3053 = vst.msk [vmem:[#allocation3 + $0x121] sm:$0xff] %vm115_vm13, %v2988_v22  ;;  %v2989_v37 = vmax.f32 %v2803_v23, 0.0  ;;  %4515 = vrot.lane.b32.xlu0 %v8262_v28, %s6650_s10  ;;  %v4449_v22 = vpack.c.bf16 %v4392_v16, %v4391_v20  ;;  %v3550_v27 = vpack.c.bf16 %v3493_v56, %v3492_v17 }
 0x242   :  { %2510 = vst.msk [vmem:[#allocation4 + $0xc8] sm:$0xff] %vm2484_vm11, %v2439_v32  ;;  %v2987_v33 = vmax.f32 %v2795_v12, 0.0  ;;  %3616 = vrot.lane.b32.xlu1 %v3548_v34, %s6650_s10 }
 0x243   :  { %3051 = vst.msk [vmem:[#allocation3 + $0x109] sm:$0xff] %vm115_vm13, %v2986_v29  ;;  %3054 = vst.msk [vmem:[#allocation3 + $0x129] sm:$0xff] %vm115_vm13, %v2989_v37  ;;  %v641_v19 = vpop.permute.xlu0 %640 }
 0x244   :  { %3052 = vst.msk [vmem:[#allocation3 + $0x111] sm:$0xff] %vm115_vm13, %v2987_v33  ;;  %v643_v46 = vpop.permute.xlu1 %642 }
 0x245   :  { %711 = vst.msk [vmem:[#allocation4 + $0xd0] sm:$0xff] %vm684_vm4, %v641_v19  ;;  %712 = vst.msk [vmem:[#allocation4 + $0xd8] sm:$0xff] %vm684_vm4, %v643_v46  ;;  %4771 = vrot.lane.b32.xlu0 %v8273_v35, %s6651_s1 }
 0x246   :  { %3873 = vrot.lane.b32.xlu1 %v8234_v43, %s6651_s1 }
 0x247   :  { %v898_v38 = vpop.permute.xlu0 %897  ;;  %v2541_v48 = vld [vmem:[#allocation4 + $0xc0] sm:$0xff] }
 0x248   :  { %968 = vst.msk [vmem:[#allocation4 + $0xd0] sm:$0xff] %vm941_vm5, %v898_v38  ;;  %v900_v49 = vpop.permute.xlu1 %899  ;;  %6464 = vmatprep.mubr.msk.bf16.mxu0 %vm2576_vm12, %v2541_v48  ;;  %v4016_v18 = vld [vmem:[#allocation3 + $0x121] sm:$0xff] }
 0x249   :  { %v2542_v40 = vld [vmem:[#allocation4 + $0xc8] sm:$0xff]  ;;  %969 = vst.msk [vmem:[#allocation4 + $0xd8] sm:$0xff] %vm941_vm5, %v900_v49  ;;  %4260 = vrot.lane.b32.xlu0 %v7961_v3, %s6648_s12  ;;  %v4646_v3 = vld [vmem:[#allocation3 + $0xb1] sm:$0xff]  ;;  %v3119_v7 = vld [vmem:[#allocation3 + $0x120] sm:$0xff] }
 0x24a   :  { %6465 = vmatmul.mubr.msk.bf16.gmra.mrb[48].mxu0 %vm2576_vm12, %v2542_v40  ;;  %v4911_v5 = vld [vmem:[#allocation3 + $0x122] sm:$0xff]  ;;  %v4912_v53 = vld [vmem:[#allocation3 + $0x12a] sm:$0xff]  ;;  %3361 = vrot.lane.b32.xlu1 %v8246_v9, %s6648_s12  ;;  %v4704_v54 = vpack.c.bf16 %v4646_v3, %v4645_v55 }
 0x24b   :  { %v8290_v58 = vpack.c.bf16 %v4912_v53, %v4911_v5  ;;  %v4909_v59 = vld [vmem:[#allocation3 + $0x10a] sm:$0xff]  ;;  %v4910_v61 = vld [vmem:[#allocation3 + $0x112] sm:$0xff]  ;;  %v1155_v47 = vpop.permute.xlu0 %1154 }
 0x24c   :  { %v8294_v62 = vpack.c.bf16 %v4910_v61, %v4909_v59  ;;  %1225 = vst.msk [vmem:[#allocation4 + $0xd0] sm:$0xff] %vm1198_vm6, %v1155_v47  ;;  %v1157_v41 = vpop.permute.xlu1 %1156  ;;  %v4014_v43 = vld [vmem:[#allocation3 + $0x109] sm:$0xff]  ;;  %v4015_v26 = vld [vmem:[#allocation3 + $0x111] sm:$0xff]  ;;  %v8345_v61 = vpack.c.bf16 %v4394_v51, %v4393_v57 }
 0x24d   :  { %4997 = vst.msk [vmem:[#allocation5 + $0x100] sm:$0xff] %vm115_vm13, %v8290_v58  ;;  %4517 = vrot.lane.b32.xlu0 %v8292_v63, %s6650_s10  ;;  %v4068_v6 = vpack.c.bf16 %v4015_v26, %v4014_v43  ;;  %v4017_v52 = vld [vmem:[#allocation3 + $0x129] sm:$0xff] }
 0x24e   :  { %1226 = vst.msk [vmem:[#allocation4 + $0xd8] sm:$0xff] %vm1198_vm6, %v1157_v41  ;;  %v3117_v1 = vld [vmem:[#allocation3 + $0x108] sm:$0xff]  ;;  %3618 = vrot.lane.b32.xlu1 %v7963_v45, %s6650_s10  ;;  %v4069_v9 = vpack.c.bf16 %v4017_v52, %v4016_v18  ;;  %v3118_v10 = vld [vmem:[#allocation3 + $0x110] sm:$0xff]  ;;  %v4649_v41 = vld [vmem:[#allocation3 + $0xd9] sm:$0xff] }
 0x24f   :  { %4996 = vst.msk [vmem:[#allocation5 + $0xe8] sm:$0xff] %vm115_vm13, %v8294_v62  ;;  %v3120_v11 = vld [vmem:[#allocation3 + $0x128] sm:$0xff]  ;;  %v1412_v60 = vpop.permute.xlu0 %1411  ;;  %4100 = vst.msk [vmem:[#allocation5 + $0xf8] sm:$0xff] %vm115_vm13, %v4068_v6  ;;  %v3170_v2 = vpack.c.bf16 %v3118_v10, %v3117_v1 }
 0x250   :  { %v3171_v14 = vpack.c.bf16 %v3120_v11, %v3119_v7  ;;  %1482 = vst.msk [vmem:[#allocation4 + $0xd0] sm:$0xff] %vm1455_vm7, %v1412_v60  ;;  %v1414_v13 = vpop.permute.xlu1 %1413  ;;  %v4396_v60 = vld [vmem:[#allocation3 + $0xf8] sm:$0xff] }
 0x251   :  { %4101 = vst.msk [vmem:[#allocation5 + $0x110] sm:$0xff] %vm115_vm13, %v4069_v9  ;;  %4773 = vrot.lane.b32.xlu0 %v4704_v54, %s6651_s1  ;;  %3202 = vst.msk [vmem:[#allocation5 + $0x108] sm:$0xff] %vm115_vm13, %v3170_v2  ;;  %v4652_v2 = vld [vmem:[#allocation3 + $0xf9] sm:$0xff] }
 0x252   :  { %1483 = vst.msk [vmem:[#allocation4 + $0xd8] sm:$0xff] %vm1455_vm7, %v1414_v13  ;;  %3875 = vrot.lane.b32.xlu1 %v8262_v28, %s6651_s1  ;;  %v4647_v28 = vld [vmem:[#allocation3 + $0xc1] sm:$0xff] }
 0x253   :  { %3203 = vst.msk [vmem:[#allocation5 + $0x120] sm:$0xff] %vm115_vm13, %v3171_v14  ;;  %v1669_v45 = vpop.permute.xlu0 %1668  ;;  %v8325_v12 = vpack.c.bf16 %v4648_v24, %v4647_v28 }
 0x254   :  { %1739 = vst.msk [vmem:[#allocation4 + $0xd0] sm:$0xff] %vm1712_vm8, %v1669_v45  ;;  %v1671_v15 = vpop.permute.xlu1 %1670 }
 0x255   :  { %1740 = vst.msk [vmem:[#allocation4 + $0xd8] sm:$0xff] %vm1712_vm8, %v1671_v15  ;;  %4262 = vrot.lane.b32.xlu0 %v8073_v8, %s6648_s12 }
 0x256   :  { %3363 = vrot.lane.b32.xlu1 %v8273_v35, %s6648_s12 }
 0x257   :  { %v1927_v21 = vpop.permute.xlu0 %1926 }
 0x258   :  { %1997 = vst.msk [vmem:[#allocation4 + $0xd0] sm:$0xff] %vm1970_vm9, %v1927_v21  ;;  %v1929_v23 = vpop.permute.xlu1 %1928 }
 0x259   :  { %1998 = vst.msk [vmem:[#allocation4 + $0xd8] sm:$0xff] %vm1970_vm9, %v1929_v23  ;;  %4519 = vrot.lane.b32.xlu0 %v4449_v22, %s6650_s10 }
 0x25a   :  { %3620 = vrot.lane.b32.xlu1 %v3550_v27, %s6650_s10 }
 0x25b   :  { %v2184_v29 = vpop.permute.xlu0 %2183 }
 0x25c   :  { %2254 = vst.msk [vmem:[#allocation4 + $0xd0] sm:$0xff] %vm2227_vm10, %v2184_v29  ;;  %v2186_v32 = vpop.permute.xlu1 %2185  ;;  %v6442_v34 = vpop.f32.mrb[24].mxu0 }
 0x25d   :  { %2255 = vst.msk [vmem:[#allocation4 + $0xd8] sm:$0xff] %vm2227_vm10, %v2186_v32  ;;  %v2816_v39 = vadd.f32 %v8140_v50, %v6442_v34  ;;  %v2807_v37 = vpop.f32.mrb[25].mxu0  ;;  %4775 = vrot.lane.b32.xlu0 %v8325_v12, %s6651_s1 }
 0x25e   :  { %v2808_v33 = vadd.f32 %v8140_v50, %v2807_v37  ;;  %v6443_v42 = vpop.f32.mrb[26].mxu0  ;;  %3877 = vrot.lane.b32.xlu1 %v8292_v63, %s6651_s1  ;;  %v4650_v63 = vld [vmem:[#allocation3 + $0xe1] sm:$0xff] }
 0x25f   :  { %v2992_v19 = vmax.f32 %v2816_v39, 0.0  ;;  %v2819_v35 = vadd.f32 %v8140_v50, %v6443_v42  ;;  %v2441_v46 = vpop.permute.xlu0 %2440  ;;  %v2810_v38 = vpop.f32.mrb[27].mxu0  ;;  %v4706_v43 = vpack.c.bf16 %v4650_v63, %v4649_v41  ;;  %v4397_v42 = vld [vmem:[#allocation3 + $0x108] sm:$0xff] }
 0x260   :  { %v2990_v48 = vmax.f32 %v2808_v33, 0.0  ;;  %2511 = vst.msk [vmem:[#allocation4 + $0xd0] sm:$0xff] %vm2484_vm11, %v2441_v46  ;;  %v2811_v49 = vadd.f32 %v8140_v50, %v2810_v38  ;;  %v2443_v40 = vpop.permute.xlu1 %2442  ;;  %v4398_v33 = vld [vmem:[#allocation3 + $0x110] sm:$0xff] }
 0x261   :  { %3057 = vst.msk [vmem:[#allocation3 + $0x151] sm:$0xff] %vm115_vm13, %v2992_v19  ;;  %v2993_v5 = vmax.f32 %v2819_v35, 0.0  ;;  %4264 = vrot.lane.b32.xlu0 %v8070_v4, %s6648_s12  ;;  %v8396_v35 = vpack.c.bf16 %v4398_v33, %v4397_v42 }
 0x262   :  { %2512 = vst.msk [vmem:[#allocation4 + $0xd8] sm:$0xff] %vm2484_vm11, %v2443_v40  ;;  %v2991_v53 = vmax.f32 %v2811_v49, 0.0  ;;  %3365 = vrot.lane.b32.xlu1 %v4704_v54, %s6648_s12  ;;  %v4395_v54 = vld [vmem:[#allocation3 + $0xf0] sm:$0xff] }
 0x263   :  { %3055 = vst.msk [vmem:[#allocation3 + $0x139] sm:$0xff] %vm115_vm13, %v2990_v48  ;;  %3058 = vst.msk [vmem:[#allocation3 + $0x159] sm:$0xff] %vm115_vm13, %v2993_v5  ;;  %v645_v59 = vpop.permute.xlu0 %644  ;;  %v8374_v15 = vpack.c.bf16 %v4396_v60, %v4395_v54  ;;  %v4654_v48 = vld [vmem:[#allocation3 + $0x111] sm:$0xff]  ;;  %v4656_v54 = vld [vmem:[#allocation3 + $0x129] sm:$0xff] }
 0x264   :  { %3056 = vst.msk [vmem:[#allocation3 + $0x141] sm:$0xff] %vm115_vm13, %v2991_v53  ;;  %v647_v47 = vpop.permute.xlu1 %646  ;;  %v4653_v53 = vld [vmem:[#allocation3 + $0x109] sm:$0xff] }
 0x265   :  { %713 = vst.msk [vmem:[#allocation4 + $0xe0] sm:$0xff] %vm684_vm4, %v645_v59  ;;  %714 = vst.msk [vmem:[#allocation4 + $0xe8] sm:$0xff] %vm684_vm4, %v647_v47  ;;  %4521 = vrot.lane.b32.xlu0 %v8345_v61, %s6650_s10  ;;  %v8407_v63 = vpack.c.bf16 %v4654_v48, %v4653_v53 }
 0x266   :  { %3622 = vrot.lane.b32.xlu1 %v8073_v8, %s6650_s10 }
 0x267   :  { %v902_v55 = vpop.permute.xlu0 %901  ;;  %v2543_v3 = vld [vmem:[#allocation4 + $0xd0] sm:$0xff] }
 0x268   :  { %970 = vst.msk [vmem:[#allocation4 + $0xe0] sm:$0xff] %vm941_vm5, %v902_v55  ;;  %v904_v26 = vpop.permute.xlu1 %903  ;;  %6468 = vmatprep.mubr.msk.bf16.mxu0 %vm2576_vm12, %v2543_v3  ;;  %v4020_v17 = vld [vmem:[#allocation3 + $0x151] sm:$0xff] }
 0x269   :  { %v2544_v6 = vld [vmem:[#allocation4 + $0xd8] sm:$0xff]  ;;  %971 = vst.msk [vmem:[#allocation4 + $0xe8] sm:$0xff] %vm941_vm5, %v904_v26  ;;  %4777 = vrot.lane.b32.xlu0 %v4706_v43, %s6651_s1  ;;  %v3123_v27 = vld [vmem:[#allocation3 + $0x150] sm:$0xff] }
 0x26a   :  { %6469 = vmatmul.mubr.msk.bf16.gmra.mrb[52].mxu0 %vm2576_vm12, %v2544_v6  ;;  %v4915_v18 = vld [vmem:[#allocation3 + $0x152] sm:$0xff]  ;;  %v4916_v52 = vld [vmem:[#allocation3 + $0x15a] sm:$0xff]  ;;  %3879 = vrot.lane.b32.xlu1 %v4449_v22, %s6651_s1 }
 0x26b   :  { %v8360_v8 = vpack.c.bf16 %v4916_v52, %v4915_v18  ;;  %v4913_v1 = vld [vmem:[#allocation3 + $0x13a] sm:$0xff]  ;;  %v4914_v9 = vld [vmem:[#allocation3 + $0x142] sm:$0xff]  ;;  %v1159_v10 = vpop.permute.xlu0 %1158 }
 0x26c   :  { %v8362_v7 = vpack.c.bf16 %v4914_v9, %v4913_v1  ;;  %1227 = vst.msk [vmem:[#allocation4 + $0xe0] sm:$0xff] %vm1198_vm6, %v1159_v10  ;;  %v1161_v11 = vpop.permute.xlu1 %1160  ;;  %v4018_v14 = vld [vmem:[#allocation3 + $0x139] sm:$0xff]  ;;  %v4019_v13 = vld [vmem:[#allocation3 + $0x141] sm:$0xff] }
 0x26d   :  { %4999 = vst.msk [vmem:[#allocation5 + $0x130] sm:$0xff] %vm115_vm13, %v8360_v8  ;;  %4266 = vrot.lane.b32.xlu0 %v8204_v31, %s6648_s12  ;;  %v4070_v16 = vpack.c.bf16 %v4019_v13, %v4018_v14  ;;  %v4021_v56 = vld [vmem:[#allocation3 + $0x159] sm:$0xff]  ;;  %v4400_v18 = vld [vmem:[#allocation3 + $0x128] sm:$0xff] }
 0x26e   :  { %1228 = vst.msk [vmem:[#allocation4 + $0xe8] sm:$0xff] %vm1198_vm6, %v1161_v11  ;;  %3367 = vrot.lane.b32.xlu1 %v8325_v12, %s6648_s12  ;;  %v3121_v20 = vld [vmem:[#allocation3 + $0x138] sm:$0xff]  ;;  %v4071_v22 = vpack.c.bf16 %v4021_v56, %v4020_v17  ;;  %v3122_v23 = vld [vmem:[#allocation3 + $0x140] sm:$0xff] }
 0x26f   :  { %4998 = vst.msk [vmem:[#allocation5 + $0x118] sm:$0xff] %vm115_vm13, %v8362_v7  ;;  %v1416_v45 = vpop.permute.xlu0 %1415  ;;  %v3124_v24 = vld [vmem:[#allocation3 + $0x158] sm:$0xff]  ;;  %4102 = vst.msk [vmem:[#allocation5 + $0x128] sm:$0xff] %vm115_vm13, %v4070_v16  ;;  %v3172_v28 = vpack.c.bf16 %v3122_v23, %v3121_v20  ;;  %v4399_v52 = vld [vmem:[#allocation3 + $0x120] sm:$0xff] }
 0x270   :  { %1484 = vst.msk [vmem:[#allocation4 + $0xe0] sm:$0xff] %vm1455_vm7, %v1416_v45  ;;  %v1418_v21 = vpop.permute.xlu1 %1417  ;;  %v3173_v29 = vpack.c.bf16 %v3124_v24, %v3123_v27  ;;  %v4651_v12 = vld [vmem:[#allocation3 + $0xf1] sm:$0xff]  ;;  %v4453_v10 = vpack.c.bf16 %v4400_v18, %v4399_v52  ;;  %v4655_v13 = vld [vmem:[#allocation3 + $0x121] sm:$0xff]  ;;  %v4660_v18 = vld [vmem:[#allocation3 + $0x159] sm:$0xff] }
 0x271   :  { %1485 = vst.msk [vmem:[#allocation4 + $0xe8] sm:$0xff] %vm1455_vm7, %v1418_v21  ;;  %4523 = vrot.lane.b32.xlu0 %v8374_v15, %s6650_s10  ;;  %v4707_v34 = vpack.c.bf16 %v4652_v2, %v4651_v12  ;;  %v4709_v56 = vpack.c.bf16 %v4656_v54, %v4655_v13 }
 0x272   :  { %3624 = vrot.lane.b32.xlu1 %v8070_v4, %s6650_s10  ;;  %4103 = vst.msk [vmem:[#allocation5 + $0x140] sm:$0xff] %vm115_vm13, %v4071_v22  ;;  %3204 = vst.msk [vmem:[#allocation5 + $0x138] sm:$0xff] %vm115_vm13, %v3172_v28 }
 0x273   :  { %v1673_v32 = vpop.permute.xlu0 %1672  ;;  %3205 = vst.msk [vmem:[#allocation5 + $0x150] sm:$0xff] %vm115_vm13, %v3173_v29 }
 0x274   :  { %1741 = vst.msk [vmem:[#allocation4 + $0xe0] sm:$0xff] %vm1712_vm8, %v1673_v32  ;;  %v1675_v39 = vpop.permute.xlu1 %1674 }
 0x275   :  { %1742 = vst.msk [vmem:[#allocation4 + $0xe8] sm:$0xff] %vm1712_vm8, %v1675_v39  ;;  %4779 = vrot.lane.b32.xlu0 %v4707_v34, %s6651_s1  ;;  %v4402_v39 = vld [vmem:[#allocation3 + $0x140] sm:$0xff] }
 0x276   :  { %3881 = vrot.lane.b32.xlu1 %v8345_v61, %s6651_s1 }
 0x277   :  { %v1931_v4 = vpop.permute.xlu0 %1930 }
 0x278   :  { %1999 = vst.msk [vmem:[#allocation4 + $0xe0] sm:$0xff] %vm1970_vm9, %v1931_v4  ;;  %v1933_v37 = vpop.permute.xlu1 %1932 }
 0x279   :  { %2000 = vst.msk [vmem:[#allocation4 + $0xe8] sm:$0xff] %vm1970_vm9, %v1933_v37  ;;  %4268 = vrot.lane.b32.xlu0 %v8201_v44, %s6648_s12  ;;  %v4401_v37 = vld [vmem:[#allocation3 + $0x138] sm:$0xff] }
 0x27a   :  { %3369 = vrot.lane.b32.xlu1 %v4706_v43, %s6648_s12  ;;  %v8451_v42 = vpack.c.bf16 %v4402_v39, %v4401_v37  ;;  %v4635_v37 = vld [vmem:[#allocation3 + $0x31] sm:$0xff] }
 0x27b   :  { %v2188_v19 = vpop.permute.xlu0 %2187 }
 0x27c   :  { %2256 = vst.msk [vmem:[#allocation4 + $0xe0] sm:$0xff] %vm2227_vm10, %v2188_v19  ;;  %v2190_v46 = vpop.permute.xlu1 %2189  ;;  %v6446_v38 = vpop.f32.mrb[28].mxu0 }
 0x27d   :  { %2257 = vst.msk [vmem:[#allocation4 + $0xe8] sm:$0xff] %vm2227_vm10, %v2190_v46  ;;  %v2832_v49 = vadd.f32 %v8140_v50, %v6446_v38  ;;  %v2823_v40 = vpop.f32.mrb[29].mxu0  ;;  %4525 = vrot.lane.b32.xlu0 %v8396_v35, %s6650_s10  ;;  %v4657_v46 = vld [vmem:[#allocation3 + $0x139] sm:$0xff] }
 0x27e   :  { %v2824_v51 = vadd.f32 %v8140_v50, %v2823_v40  ;;  %v6447_v5 = vpop.f32.mrb[30].mxu0  ;;  %3626 = vrot.lane.b32.xlu1 %v8204_v31, %s6650_s10 }
 0x27f   :  { %v2996_v57 = vmax.f32 %v2832_v49, 0.0  ;;  %v2835_v59 = vadd.f32 %v8140_v50, %v6447_v5  ;;  %v2445_v61 = vpop.permute.xlu0 %2444  ;;  %v2826_v47 = vpop.f32.mrb[31].mxu0 }
 0x280   :  { %v2994_v41 = vmax.f32 %v2824_v51, 0.0  ;;  %2513 = vst.msk [vmem:[#allocation4 + $0xe0] sm:$0xff] %vm2484_vm11, %v2445_v61  ;;  %v2827_v55 = vadd.f32 %v8140_v50, %v2826_v47  ;;  %v2447_v3 = vpop.permute.xlu1 %2446  ;;  %v4403_v47 = vld [vmem:[#allocation3 + $0x150] sm:$0xff] }
 0x281   :  { %3061 = vst.msk [vmem:[#allocation3 + $0x181] sm:$0xff] %vm115_vm13, %v2996_v57  ;;  %v2997_v43 = vmax.f32 %v2835_v59, 0.0  ;;  %4781 = vrot.lane.b32.xlu0 %v8407_v63, %s6651_s1 }
 0x282   :  { %2514 = vst.msk [vmem:[#allocation4 + $0xe8] sm:$0xff] %vm2484_vm11, %v2447_v3  ;;  %v2995_v31 = vmax.f32 %v2827_v55, 0.0  ;;  %3883 = vrot.lane.b32.xlu1 %v8374_v15, %s6651_s1 }
 0x283   :  { %3059 = vst.msk [vmem:[#allocation3 + $0x169] sm:$0xff] %vm115_vm13, %v2994_v41  ;;  %3062 = vst.msk [vmem:[#allocation3 + $0x189] sm:$0xff] %vm115_vm13, %v2997_v43  ;;  %v649_v26 = vpop.permute.xlu0 %648 }
 0x284   :  { %3060 = vst.msk [vmem:[#allocation3 + $0x171] sm:$0xff] %vm115_vm13, %v2995_v31  ;;  %v651_v6 = vpop.permute.xlu1 %650 }
 0x285   :  { %715 = vst.msk [vmem:[#allocation4 + $0xf0] sm:$0xff] %vm684_vm4, %v649_v26  ;;  %716 = vst.msk [vmem:[#allocation4 + $0xf8] sm:$0xff] %vm684_vm4, %v651_v6  ;;  %4270 = vrot.lane.b32.xlu0 %v8294_v62, %s6648_s12  ;;  %vm6158_vm4 = vcmask 1041409  }
 0x286   :  { %3371 = vrot.lane.b32.xlu1 %v4707_v34, %s6648_s12 }
 0x287   :  { %v906_v1 = vpop.permute.xlu0 %905  ;;  %v2545_v9 = vld [vmem:[#allocation4 + $0xe0] sm:$0xff] }
 0x288   :  { %972 = vst.msk [vmem:[#allocation4 + $0xf0] sm:$0xff] %vm941_vm5, %v906_v1  ;;  %v908_v11 = vpop.permute.xlu1 %907  ;;  %6472 = vmatprep.mubr.msk.bf16.mxu0 %vm2576_vm12, %v2545_v9  ;;  %v4024_v23 = vld [vmem:[#allocation3 + $0x181] sm:$0xff] }
 0x289   :  { %v2546_v60 = vld [vmem:[#allocation4 + $0xe8] sm:$0xff]  ;;  %973 = vst.msk [vmem:[#allocation4 + $0xf8] sm:$0xff] %vm941_vm5, %v908_v11  ;;  %4527 = vrot.lane.b32.xlu0 %v4453_v10, %s6650_s10  ;;  %v3095_v1 = vld [vmem:[#allocation3] sm:$0xff] }
 0x28a   :  { %6473 = vmatmul.mubr.msk.bf16.gmra.mrb[56].mxu0 %vm2576_vm12, %v2546_v60  ;;  %v4919_v2 = vld [vmem:[#allocation3 + $0x182] sm:$0xff]  ;;  %v4920_v14 = vld [vmem:[#allocation3 + $0x18a] sm:$0xff]  ;;  %3628 = vrot.lane.b32.xlu1 %v8201_v44, %s6650_s10 }
 0x28b   :  { %v4969_v45 = vpack.c.bf16 %v4920_v14, %v4919_v2  ;;  %v4917_v15 = vld [vmem:[#allocation3 + $0x16a] sm:$0xff]  ;;  %v4918_v16 = vld [vmem:[#allocation3 + $0x172] sm:$0xff]  ;;  %v1163_v17 = vpop.permute.xlu0 %1162  ;;  %v3223_v2 = vld [vmem:[#allocation3 + $0x1] sm:$0xff] }
 0x28c   :  { %v8432_v20 = vpack.c.bf16 %v4918_v16, %v4917_v15  ;;  %1229 = vst.msk [vmem:[#allocation4 + $0xf0] sm:$0xff] %vm1198_vm6, %v1163_v17  ;;  %v1165_v21 = vpop.permute.xlu1 %1164  ;;  %v4022_v22 = vld [vmem:[#allocation3 + $0x169] sm:$0xff]  ;;  %v4023_v44 = vld [vmem:[#allocation3 + $0x171] sm:$0xff] }
 0x28d   :  { %5001 = vst.msk [vmem:[#allocation5 + $0x160] sm:$0xff] %vm115_vm13, %v4969_v45  ;;  %4783 = vrot.lane.b32.xlu0 %v4709_v56, %s6651_s1  ;;  %v4025_v27 = vld [vmem:[#allocation3 + $0x189] sm:$0xff]  ;;  %v4072_v28 = vpack.c.bf16 %v4023_v44, %v4022_v22  ;;  %v4122_v45 = vld [vmem:[#allocation3 + $0x1a] sm:$0xff] }
 0x28e   :  { %1230 = vst.msk [vmem:[#allocation4 + $0xf8] sm:$0xff] %vm1198_vm6, %v1165_v21  ;;  %3885 = vrot.lane.b32.xlu1 %v8396_v35, %s6651_s1  ;;  %v4073_v29 = vpack.c.bf16 %v4025_v27, %v4024_v23  ;;  %v3125_v12 = vld [vmem:[#allocation3 + $0x168] sm:$0xff]  ;;  %v3126_v32 = vld [vmem:[#allocation3 + $0x170] sm:$0xff]  ;;  %v4380_v27 = vld [vmem:[#allocation3 + $0x38] sm:$0xff]  ;;  %vm6241_vm6 = vcmask 9216  }
 0x28f   :  { %5000 = vst.msk [vmem:[#allocation5 + $0x148] sm:$0xff] %vm115_vm13, %v8432_v20  ;;  %v1420_v24 = vpop.permute.xlu0 %1419  ;;  %v3174_v4 = vpack.c.bf16 %v3126_v32, %v3125_v12  ;;  %4104 = vst.msk [vmem:[#allocation5 + $0x158] sm:$0xff] %vm115_vm13, %v4072_v28  ;;  %v4658_v35 = vld [vmem:[#allocation3 + $0x141] sm:$0xff]  ;;  %v3224_v14 = vld [vmem:[#allocation3 + $0x9] sm:$0xff] }
 0x290   :  { %1486 = vst.msk [vmem:[#allocation4 + $0xf0] sm:$0xff] %vm1455_vm7, %v1420_v24  ;;  %v1422_v34 = vpop.permute.xlu1 %1421  ;;  %v8459_v48 = vpack.c.bf16 %v4658_v35, %v4657_v46  ;;  %v3096_v9 = vld [vmem:[#allocation3 + $0x8] sm:$0xff] }
 0x291   :  { %1487 = vst.msk [vmem:[#allocation4 + $0xf8] sm:$0xff] %vm1455_vm7, %v1422_v34  ;;  %4272 = vrot.lane.b32.xlu0 %v8290_v58, %s6648_s12  ;;  %v3159_v11 = vpack.c.bf16 %v3096_v9, %v3095_v1  ;;  %v4123_v15 = vld [vmem:[#allocation3 + $0x22] sm:$0xff]  ;;  %v3481_v22 = vld [vmem:[#allocation3 + $0xa] sm:$0xff] }
 0x292   :  { %4105 = vst.msk [vmem:[#allocation5 + $0x170] sm:$0xff] %vm115_vm13, %v4073_v29  ;;  %3373 = vrot.lane.b32.xlu1 %v8407_v63, %s6648_s12  ;;  %3206 = vst.msk [vmem:[#allocation5 + $0x168] sm:$0xff] %vm115_vm13, %v3174_v4  ;;  %v3480_v21 = vld [vmem:[#allocation3 + $0x2] sm:$0xff]  ;;  %v4379_v29 = vld [vmem:[#allocation3 + $0x30] sm:$0xff] }
 0x293   :  { %v1677_v33 = vpop.permute.xlu0 %1676  ;;  %3191 = vst.msk [vmem:[#allocation5] sm:$0xff] %vm115_vm13, %v3159_v11  ;;  %v3544_v12 = vpack.c.bf16 %v3481_v22, %v3480_v21  ;;  %v8507_v39 = vpack.c.bf16 %v4380_v27, %v4379_v29 }
 0x294   :  { %1743 = vst.msk [vmem:[#allocation4 + $0xf0] sm:$0xff] %vm1712_vm8, %v1677_v33  ;;  %v1679_v19 = vpop.permute.xlu1 %1678  ;;  %v4636_v33 = vld [vmem:[#allocation3 + $0x39] sm:$0xff] }
 0x295   :  { %1744 = vst.msk [vmem:[#allocation4 + $0xf8] sm:$0xff] %vm1712_vm8, %v1679_v19  ;;  %4529 = vrot.lane.b32.xlu0 %v8451_v42, %s6650_s10 }
 0x296   :  { %3630 = vrot.lane.b32.xlu1 %v8294_v62, %s6650_s10  ;;  %v4404_v62 = vld [vmem:[#allocation3 + $0x158] sm:$0xff] }
 0x297   :  { %v1935_v38 = vpop.permute.xlu0 %1934  ;;  %v8474_v43 = vpack.c.bf16 %v4404_v62, %v4403_v47  ;;  %v8516_v62 = vpack.c.bf16 %v4636_v33, %v4635_v37  ;;  %v4638_v33 = vld [vmem:[#allocation3 + $0x51] sm:$0xff] }
 0x298   :  { %2001 = vst.msk [vmem:[#allocation4 + $0xf0] sm:$0xff] %vm1970_vm9, %v1935_v38  ;;  %v1937_v49 = vpop.permute.xlu1 %1936 }
 0x299   :  { %2002 = vst.msk [vmem:[#allocation4 + $0xf8] sm:$0xff] %vm1970_vm9, %v1937_v49  ;;  %4785 = vrot.lane.b32.xlu0 %v8459_v48, %s6651_s1 }
 0x29a   :  { %3887 = vrot.lane.b32.xlu1 %v4453_v10, %s6651_s1 }
 0x29b   :  { %v2192_v40 = vpop.permute.xlu0 %2191 }
 0x29c   :  { %2258 = vst.msk [vmem:[#allocation4 + $0xf0] sm:$0xff] %vm2227_vm10, %v2192_v40  ;;  %v2194_v51 = vpop.permute.xlu1 %2193  ;;  %v6450_v5 = vpop.f32.mrb[32].mxu0 }
 0x29d   :  { %2259 = vst.msk [vmem:[#allocation4 + $0xf8] sm:$0xff] %vm2227_vm10, %v2194_v51  ;;  %v2848_v53 = vadd.f32 %v8140_v50, %v6450_v5  ;;  %v2839_v57 = vpop.f32.mrb[33].mxu0  ;;  %4274 = vrot.lane.b32.xlu0 %v8362_v7, %s6648_s12 }
 0x29e   :  { %v2840_v59 = vadd.f32 %v8140_v50, %v2839_v57  ;;  %v6451_v61 = vpop.f32.mrb[34].mxu0  ;;  %3375 = vrot.lane.b32.xlu1 %v4709_v56, %s6648_s12  ;;  %v8496_v56 = vpack.c.bf16 %v4123_v15, %v4122_v45  ;;  %v8547_v45 = vld [vmem:[%s9486_s2] ss:$0 sm:$0xff] }
 0x29f   :  { %v3000_v63 = vmax.f32 %v2848_v53, 0.0  ;;  %v2851_v41 = vadd.f32 %v8140_v50, %v6451_v61  ;;  %v2449_v55 = vpop.permute.xlu0 %2448  ;;  %v2842_v3 = vpop.f32.mrb[35].mxu0  ;;  %v3737_v53 = vld [vmem:[#allocation3 + $0x18] sm:$0xff] }
 0x2a0   :  { %v2998_v31 = vmax.f32 %v2840_v59, 0.0  ;;  %2515 = vst.msk [vmem:[#allocation4 + $0xf0] sm:$0xff] %vm2484_vm11, %v2449_v55  ;;  %v2843_v26 = vadd.f32 %v8140_v50, %v2842_v3  ;;  %v2451_v6 = vpop.permute.xlu1 %2450  ;;  %v4659_v50 = vld [vmem:[#allocation3 + $0x151] sm:$0xff] }
 0x2a1   :  { %3065 = vst.msk [vmem:[#allocation3 + $0x1e1] sm:$0xff] %vm115_vm13, %v3000_v63  ;;  %v3001_v52 = vmax.f32 %v2851_v41, 0.0  ;;  %4531 = vrot.lane.b32.xlu0 %v8474_v43, %s6650_s10  ;;  %v8486_v54 = vpack.c.bf16 %v4660_v18, %v4659_v50  ;;  %v4406_v18 = vld [vmem:[#allocation3 + $0x170] sm:$0xff] }
 0x2a2   :  { %2516 = vst.msk [vmem:[#allocation4 + $0xf8] sm:$0xff] %vm2484_vm11, %v2451_v6  ;;  %v2999_v10 = vmax.f32 %v2843_v26, 0.0  ;;  %3632 = vrot.lane.b32.xlu1 %v8290_v58, %s6650_s10  ;;  %v3287_v58 = vpack.c.bf16 %v3224_v14, %v3223_v2  ;;  %v4662_v50 = vld [vmem:[#allocation3 + $0x171] sm:$0xff] }
 0x2a3   :  { %3063 = vst.msk [vmem:[#allocation3 + $0x1c9] sm:$0xff] %vm115_vm13, %v2998_v31  ;;  %3066 = vst.msk [vmem:[#allocation3 + $0x1e9] sm:$0xff] %vm115_vm13, %v3001_v52  ;;  %v4257_v60 = vpop.permute.xlu0 %4256  ;;  %v4405_v52 = vld [vmem:[#allocation3 + $0x168] sm:$0xff]  ;;  %v4124_v14 = vld [vmem:[#allocation3 + $0x32] sm:$0xff] }
 0x2a4   :  { %3064 = vst.msk [vmem:[#allocation3 + $0x1d1] sm:$0xff] %vm115_vm13, %v2999_v10  ;;  %v3358_v13 = vpop.permute.xlu1 %3357  ;;  %v8533_v9 = vpack.c.bf16 %v4406_v18, %v4405_v52 }
 0x2a5   :  { %4349 = vst.msk [vmem:[#allocation5 + $0x50] sm:$0xff] %vm3447_vm0, %v4257_v60  ;;  %3451 = vst.msk [vmem:[#allocation5 + $0x48] sm:$0xff] %vm3447_vm0, %v3358_v13  ;;  %4787 = vrot.lane.b32.xlu0 %v8486_v54, %s6651_s1  ;;  %v4125_v13 = vld [vmem:[#allocation3 + $0x3a] sm:$0xff] }
 0x2a6   :  { %3889 = vrot.lane.b32.xlu1 %v8451_v42, %s6651_s1  ;;  %v3738_v42 = vld [vmem:[#allocation3 + $0x20] sm:$0xff]  ;;  %v8557_v27 = vpack.c.bf16 %v4125_v13, %v4124_v14 }
 0x2a7   :  { %v4514_v16 = vpop.permute.xlu0 %4513  ;;  %v2547_v17 = vld [vmem:[#allocation4 + $0xf0] sm:$0xff]  ;;  %v3801_v41 = vpack.c.bf16 %v3738_v42, %v3737_v53 }
 0x2a8   :  { %4606 = vst.msk [vmem:[#allocation5 + $0x50] sm:$0xff] %vm3704_vm1, %v4514_v16  ;;  %6476 = vmatprep.mubr.msk.bf16.mxu0 %vm2576_vm12, %v2547_v17  ;;  %v3615_v44 = vpop.permute.xlu1 %3614  ;;  %v4028_v46 = vld [vmem:[#allocation3 + $0x1e1] sm:$0xff]  ;;  %v4637_v42 = vld [vmem:[#allocation3 + $0x49] sm:$0xff]  ;;  %v3508_v53 = vld [vmem:[#allocation3 + $0x152] sm:$0xff] }
 0x2a9   :  { %v2548_v23 = vld [vmem:[#allocation4 + $0xf8] sm:$0xff]  ;;  %3708 = vst.msk [vmem:[#allocation5 + $0x48] sm:$0xff] %vm3704_vm1, %v3615_v44  ;;  %4250 = vrot.lane.b32.xlu0 %v8496_v56, %s6648_s12  ;;  %v3131_v61 = vld [vmem:[#allocation3 + $0x1e0] sm:$0xff] }
 0x2aa   :  { %6477 = vmatmul.mubr.msk.bf16.gmra.mrb[60].mxu0 %vm2576_vm12, %v2548_v23  ;;  %v4923_v24 = vld [vmem:[#allocation3 + $0x1e2] sm:$0xff]  ;;  %v4924_v28 = vld [vmem:[#allocation3 + $0x1ea] sm:$0xff]  ;;  %3351 = vrot.lane.b32.xlu1 %v3287_v58, %s6648_s12 }
 0x2ab   :  { %v8505_v32 = vpack.c.bf16 %v4924_v28, %v4923_v24  ;;  %v4770_v34 = vpop.permute.xlu0 %4769  ;;  %v4026_v19 = vld [vmem:[#allocation3 + $0x1c9] sm:$0xff]  ;;  %v4027_v35 = vld [vmem:[#allocation3 + $0x1d1] sm:$0xff] }
 0x2ac   :  { %4862 = vst.msk [vmem:[#allocation5 + $0x50] sm:$0xff] %vm3961_vm2, %v4770_v34  ;;  %v3872_v4 = vpop.permute.xlu1 %3871  ;;  %v4074_v38 = vpack.c.bf16 %v4027_v35, %v4026_v19  ;;  %v4029_v49 = vld [vmem:[#allocation3 + $0x1e9] sm:$0xff] }
 0x2ad   :  { %5003 = vst.msk [vmem:[#allocation5 + $0x190] sm:$0xff] %vm115_vm13, %v8505_v32  ;;  %4507 = vrot.lane.b32.xlu0 %v8507_v39, %s6650_s10  ;;  %v3129_v40 = vld [vmem:[#allocation3 + $0x1c8] sm:$0xff]  ;;  %v3130_v51 = vld [vmem:[#allocation3 + $0x1d0] sm:$0xff]  ;;  %v4075_v57 = vpack.c.bf16 %v4029_v49, %v4028_v46 }
 0x2ae   :  { %3965 = vst.msk [vmem:[#allocation5 + $0x48] sm:$0xff] %vm3961_vm2, %v3872_v4  ;;  %3608 = vrot.lane.b32.xlu1 %v3544_v12, %s6650_s10  ;;  %v3176_v59 = vpack.c.bf16 %v3130_v51, %v3129_v40  ;;  %v3132_v47 = vld [vmem:[#allocation3 + $0x1e8] sm:$0xff] }
 0x2af   :  { %v4259_v5 = vpop.permute.xlu0 %4258  ;;  %4106 = vst.msk [vmem:[#allocation5 + $0x188] sm:$0xff] %vm115_vm13, %v4074_v38  ;;  %v3177_v55 = vpack.c.bf16 %v3132_v47, %v3131_v61  ;;  %4107 = vst.msk [vmem:[#allocation5 + $0x1a0] sm:$0xff] %vm115_vm13, %v4075_v57  ;;  %v4408_v47 = vld [vmem:[#allocation3 + $0x188] sm:$0xff] }
 0x2b0   :  { %4350 = vst.msk [vmem:[#allocation5 + $0x68] sm:$0xff] %vm3447_vm0, %v4259_v5  ;;  %v3360_v63 = vpop.permute.xlu1 %3359 }
 0x2b1   :  { %3452 = vst.msk [vmem:[#allocation5 + $0x60] sm:$0xff] %vm3447_vm0, %v3360_v63  ;;  %4763 = vrot.lane.b32.xlu0 %v8516_v62, %s6651_s1  ;;  %v3509_v63 = vld [vmem:[#allocation3 + $0x15a] sm:$0xff] }
 0x2b2   :  { %3208 = vst.msk [vmem:[#allocation5 + $0x198] sm:$0xff] %vm115_vm13, %v3176_v59  ;;  %3865 = vrot.lane.b32.xlu1 %v3801_v41, %s6651_s1  ;;  %3209 = vst.msk [vmem:[#allocation5 + $0x1b0] sm:$0xff] %vm115_vm13, %v3177_v55 }
 0x2b3   :  { %v4516_v3 = vpop.permute.xlu0 %4515  ;;  %v5029_v31 = vld [vmem:[#allocation5 + $0x50] sm:$0xff] }
 0x2b4   :  { %4607 = vst.msk [vmem:[#allocation5 + $0x68] sm:$0xff] %vm3704_vm1, %v4516_v3  ;;  %5418 = vmatprep.mubr.bf16.mxu1 %v5029_v31  ;;  %v3617_v26 = vpop.permute.xlu1 %3616 }
 0x2b5   :  { %v5028_v6 = vld [vmem:[#allocation5 + $0x48] sm:$0xff]  ;;  %3709 = vst.msk [vmem:[#allocation5 + $0x60] sm:$0xff] %vm3704_vm1, %v3617_v26  ;;  %4276 = vrot.lane.b32.xlu0 %v8360_v8, %s6648_s12 }
 0x2b6   :  { %5419 = vmatmul.mubr.bf16.vlgmr.msra.gmra.mrb[0].mxu1 %v5028_v6  ;;  %3377 = vrot.lane.b32.xlu1 %v8459_v48, %s6648_s12  ;;  %v4661_v8 = vld [vmem:[#allocation3 + $0x169] sm:$0xff] }
 0x2b7   :  { %v4772_v1 = vpop.permute.xlu0 %4771  ;;  %v8541_v60 = vpack.c.bf16 %v4662_v50, %v4661_v8 }
 0x2b8   :  { %4863 = vst.msk [vmem:[#allocation5 + $0x68] sm:$0xff] %vm3961_vm2, %v4772_v1  ;;  %v3874_v10 = vpop.permute.xlu1 %3873 }
 0x2b9   :  { %3966 = vst.msk [vmem:[#allocation5 + $0x60] sm:$0xff] %vm3961_vm2, %v3874_v10  ;;  %4533 = vrot.lane.b32.xlu0 %v8533_v9, %s6650_s10 }
 0x2ba   :  { %3634 = vrot.lane.b32.xlu1 %v8362_v7, %s6650_s10 }
 0x2bb   :  { %v4261_v11 = vpop.permute.xlu0 %4260 }
 0x2bc   :  { %4351 = vst.msk [vmem:[#allocation5 + $0x80] sm:$0xff] %vm3447_vm0, %v4261_v11  ;;  %v3362_v2 = vpop.permute.xlu1 %3361  ;;  %v3558_v11 = vpack.c.bf16 %v3509_v63, %v3508_v53  ;;  %v8636_v53 = vld [vmem:[%s9487_s3 + $0x80] sm:$0xff]  }
 0x2bd   :  { %v6454_v48 = vpop.f32.mrb[36].mxu0  ;;  %3453 = vst.msk [vmem:[#allocation5 + $0x78] sm:$0xff] %vm3447_vm0, %v3362_v2  ;;  %4789 = vrot.lane.b32.xlu0 %v8541_v60, %s6651_s1  ;;  %6480 = vmatprep.subr.bf16.mxu0 %v8636_v53 }
 0x2be   :  { %v2864_v15 = vadd.f32 %v8547_v45, %v6454_v48  ;;  %v2855_v7 = vpop.f32.mrb[37].mxu0  ;;  %3891 = vrot.lane.b32.xlu1 %v8474_v43, %s6651_s1  ;;  %v4664_v48 = vld [vmem:[#allocation3 + $0x189] sm:$0xff] }
 0x2bf   :  { %v2856_v58 = vadd.f32 %v8547_v45, %v2855_v7  ;;  %v6455_v16 = vpop.f32.mrb[38].mxu0  ;;  %v4518_v44 = vpop.permute.xlu0 %4517  ;;  %v5032_v23 = vld [vmem:[#allocation5 + $0x68] sm:$0xff] }
 0x2c0   :  { %v3004_v17 = vmax.f32 %v2864_v15, 0.0  ;;  %v2867_v21 = vadd.f32 %v8547_v45, %v6455_v16  ;;  %v2858_v22 = vpop.f32.mrb[39].mxu0  ;;  %4608 = vst.msk [vmem:[#allocation5 + $0x80] sm:$0xff] %vm3704_vm1, %v4518_v44  ;;  %v3619_v29 = vpop.permute.xlu1 %3618  ;;  %5426 = vmatprep.mubr.bf16.mxu1 %v5032_v23  ;;  %v5031_v12 = vld [vmem:[#allocation5 + $0x60] sm:$0xff]  ;;  %v4127_v16 = vld [vmem:[#allocation3 + $0x52] sm:$0xff] }
 0x2c1   :  { %v3002_v24 = vmax.f32 %v2856_v58, 0.0  ;;  %v2859_v28 = vadd.f32 %v8547_v45, %v2858_v22  ;;  %3710 = vst.msk [vmem:[#allocation5 + $0x78] sm:$0xff] %vm3704_vm1, %v3619_v29  ;;  %5427 = vmatmul.mubr.bf16.gmra.mrb[4].mxu1 %v5031_v12  ;;  %4252 = vrot.lane.b32.xlu0 %v8557_v27, %s6648_s12  ;;  %v4126_v58 = vld [vmem:[#allocation3 + $0x4a] sm:$0xff] }
 0x2c2   :  { %3069 = vst.msk [vmem:[#allocation3 + $0x211] sm:$0xff] %vm115_vm13, %v3004_v17  ;;  %v3005_v34 = vmax.f32 %v2867_v21, 0.0  ;;  %3353 = vrot.lane.b32.xlu1 %v7807_v25, %s6648_s12  ;;  %v4700_v25 = vpack.c.bf16 %v4638_v33, %v4637_v42  ;;  %v4188_v22 = vpack.c.bf16 %v4127_v16, %v4126_v58  ;;  %v4640_v29 = vld [vmem:[#allocation3 + $0x69] sm:$0xff]  ;;  %v3128_v58 = vld [vmem:[#allocation3 + $0x1b8] sm:$0xff] }
 0x2c3   :  { %3067 = vst.msk [vmem:[#allocation3 + $0x1f9] sm:$0xff] %vm115_vm13, %v3002_v24  ;;  %v3003_v43 = vmax.f32 %v2859_v28, 0.0  ;;  %v4774_v4 = vpop.permute.xlu0 %4773 }
 0x2c4   :  { %3070 = vst.msk [vmem:[#allocation3 + $0x219] sm:$0xff] %vm115_vm13, %v3005_v34  ;;  %v3876_v37 = vpop.permute.xlu1 %3875 }
 0x2c5   :  { %3068 = vst.msk [vmem:[#allocation3 + $0x201] sm:$0xff] %vm115_vm13, %v3003_v43  ;;  %4509 = vrot.lane.b32.xlu0 %v7892_v36, %s6650_s10 }
 0x2c6   :  { %4864 = vst.msk [vmem:[#allocation5 + $0x80] sm:$0xff] %vm3961_vm2, %v4774_v4  ;;  %3967 = vst.msk [vmem:[#allocation5 + $0x78] sm:$0xff] %vm3961_vm2, %v3876_v37  ;;  %3610 = vrot.lane.b32.xlu1 %v8496_v56, %s6650_s10 }
 0x2c7   :  { %v4263_v19 = vpop.permute.xlu0 %4262 }
 0x2c8   :  { %4352 = vst.msk [vmem:[#allocation5 + $0x98] sm:$0xff] %vm3447_vm0, %v4263_v19  ;;  %v3364_v35 = vpop.permute.xlu1 %3363 }
 0x2c9   :  { %3454 = vst.msk [vmem:[#allocation5 + $0x90] sm:$0xff] %vm3447_vm0, %v3364_v35  ;;  %4765 = vrot.lane.b32.xlu0 %v4700_v25, %s6651_s1  ;;  %v4032_v55 = vld [vmem:[#allocation3 + $0x211] sm:$0xff] }
 0x2ca   :  { %3867 = vrot.lane.b32.xlu1 %v8507_v39, %s6651_s1  ;;  %v4407_v39 = vld [vmem:[#allocation3 + $0x180] sm:$0xff]  ;;  %v3133_v26 = vld [vmem:[#allocation3 + $0x1f8] sm:$0xff]  ;;  %v3135_v50 = vld [vmem:[#allocation3 + $0x210] sm:$0xff] }
 0x2cb   :  { %v4927_v46 = vld [vmem:[#allocation3 + $0x212] sm:$0xff]  ;;  %v4928_v38 = vld [vmem:[#allocation3 + $0x21a] sm:$0xff]  ;;  %v4520_v56 = vpop.permute.xlu0 %4519  ;;  %v8595_v18 = vpack.c.bf16 %v4408_v47, %v4407_v39 }
 0x2cc   :  { %v8581_v49 = vpack.c.bf16 %v4928_v38, %v4927_v46  ;;  %v4925_v40 = vld [vmem:[#allocation3 + $0x1fa] sm:$0xff]  ;;  %v4926_v51 = vld [vmem:[#allocation3 + $0x202] sm:$0xff]  ;;  %4609 = vst.msk [vmem:[#allocation5 + $0x98] sm:$0xff] %vm3704_vm1, %v4520_v56  ;;  %v3621_v59 = vpop.permute.xlu1 %3620 }
 0x2cd   :  { %v5035_v5 = vld [vmem:[#allocation5 + $0x80] sm:$0xff]  ;;  %v8583_v57 = vpack.c.bf16 %v4926_v51, %v4925_v40  ;;  %v5034_v61 = vld [vmem:[#allocation5 + $0x78] sm:$0xff]  ;;  %3711 = vst.msk [vmem:[#allocation5 + $0x90] sm:$0xff] %vm3704_vm1, %v3621_v59  ;;  %4278 = vrot.lane.b32.xlu0 %v8432_v20, %s6648_s12  ;;  %v4153_v40 = vld [vmem:[#allocation3 + $0x18a] sm:$0xff] }
 0x2ce   :  { %5434 = vmatprep.mubr.bf16.mxu1 %v5035_v5  ;;  %5005 = vst.msk [vmem:[#allocation5 + $0x1c0] sm:$0xff] %vm115_vm13, %v8581_v49  ;;  %v4030_v41 = vld [vmem:[#allocation3 + $0x1f9] sm:$0xff]  ;;  %3379 = vrot.lane.b32.xlu1 %v8486_v54, %s6648_s12  ;;  %v4031_v3 = vld [vmem:[#allocation3 + $0x201] sm:$0xff] }
 0x2cf   :  { %5435 = vmatmul.mubr.bf16.gmra.mrb[8].mxu1 %v5034_v61  ;;  %5004 = vst.msk [vmem:[#allocation5 + $0x1a8] sm:$0xff] %vm115_vm13, %v8583_v57  ;;  %v4033_v31 = vld [vmem:[#allocation3 + $0x219] sm:$0xff]  ;;  %v4776_v6 = vpop.permute.xlu0 %4775  ;;  %v4076_v52 = vpack.c.bf16 %v4031_v3, %v4030_v41  ;;  %v4663_v54 = vld [vmem:[#allocation3 + $0x181] sm:$0xff]  ;;  %v3510_v41 = vld [vmem:[#allocation3 + $0x16a] sm:$0xff] }
 0x2d0   :  { %v4077_v1 = vpack.c.bf16 %v4033_v31, %v4032_v55  ;;  %v3134_v10 = vld [vmem:[#allocation3 + $0x200] sm:$0xff]  ;;  %v3136_v20 = vld [vmem:[#allocation3 + $0x218] sm:$0xff]  ;;  %4865 = vst.msk [vmem:[#allocation5 + $0x98] sm:$0xff] %vm3961_vm2, %v4776_v6  ;;  %v3878_v8 = vpop.permute.xlu1 %3877  ;;  %v4713_v15 = vpack.c.bf16 %v4664_v48, %v4663_v54  ;;  %v4154_v54 = vld [vmem:[#allocation3 + $0x1ca] sm:$0xff] }
 0x2d1   :  { %v3178_v2 = vpack.c.bf16 %v3134_v10, %v3133_v26  ;;  %v3179_v14 = vpack.c.bf16 %v3136_v20, %v3135_v50  ;;  %3968 = vst.msk [vmem:[#allocation5 + $0x90] sm:$0xff] %vm3961_vm2, %v3878_v8  ;;  %4535 = vrot.lane.b32.xlu0 %v8595_v18, %s6650_s10  ;;  %v4409_v56 = vld [vmem:[#allocation3 + $0x198] sm:$0xff]  ;;  %v4410_v5 = vld [vmem:[#allocation3 + $0x1a0] sm:$0xff] }
 0x2d2   :  { %4108 = vst.msk [vmem:[#allocation5 + $0x1b8] sm:$0xff] %vm115_vm13, %v4076_v52  ;;  %4109 = vst.msk [vmem:[#allocation5 + $0x1d0] sm:$0xff] %vm115_vm13, %v4077_v1  ;;  %3636 = vrot.lane.b32.xlu1 %v3558_v11, %s6650_s10  ;;  %v3511_v55 = vld [vmem:[#allocation3 + $0x172] sm:$0xff]  ;;  %v4666_v31 = vld [vmem:[#allocation3 + $0x1a1] sm:$0xff] }
 0x2d3   :  { %3210 = vst.msk [vmem:[#allocation5 + $0x1c8] sm:$0xff] %vm115_vm13, %v3178_v2  ;;  %3211 = vst.msk [vmem:[#allocation5 + $0x1e0] sm:$0xff] %vm115_vm13, %v3179_v14  ;;  %v4265_v13 = vpop.permute.xlu0 %4264  ;;  %v4665_v3 = vld [vmem:[#allocation3 + $0x199] sm:$0xff]  ;;  %v3559_v52 = vpack.c.bf16 %v3511_v55, %v3510_v41  ;;  %v3255_v10 = vld [vmem:[#allocation3 + $0x1b1] sm:$0xff] }
 0x2d4   :  { %4353 = vst.msk [vmem:[#allocation5 + $0xb0] sm:$0xff] %vm3447_vm0, %v4265_v13  ;;  %v3366_v7 = vpop.permute.xlu1 %3365  ;;  %v4714_v1 = vpack.c.bf16 %v4666_v31, %v4665_v3  ;;  %v3256_v50 = vld [vmem:[#allocation3 + $0x1b9] sm:$0xff]  ;;  %v3127_v11 = vld [vmem:[#allocation3 + $0x1b0] sm:$0xff] }
 0x2d5   :  { %3455 = vst.msk [vmem:[#allocation5 + $0xa8] sm:$0xff] %vm3447_vm0, %v3366_v7  ;;  %4791 = vrot.lane.b32.xlu0 %v4713_v15, %s6651_s1  ;;  %v4155_v7 = vld [vmem:[#allocation3 + $0x1d2] sm:$0xff]  ;;  %v3257_v3 = vld [vmem:[#allocation3 + $0x1c9] sm:$0xff] }
 0x2d6   :  { %3893 = vrot.lane.b32.xlu1 %v8533_v9, %s6651_s1 }
 0x2d7   :  { %v4522_v17 = vpop.permute.xlu0 %4521  ;;  %v5038_v21 = vld [vmem:[#allocation5 + $0x98] sm:$0xff] }
 0x2d8   :  { %4610 = vst.msk [vmem:[#allocation5 + $0xb0] sm:$0xff] %vm3704_vm1, %v4522_v17  ;;  %v3623_v44 = vpop.permute.xlu1 %3622  ;;  %5442 = vmatprep.mubr.bf16.mxu1 %v5038_v21  ;;  %v5037_v23 = vld [vmem:[#allocation5 + $0x90] sm:$0xff]  ;;  %v3175_v21 = vpack.c.bf16 %v3128_v58, %v3127_v11  ;;  %v4413_v11 = vld [vmem:[#allocation3 + $0x1f8] sm:$0xff] }
 0x2d9   :  { %3712 = vst.msk [vmem:[#allocation5 + $0xa8] sm:$0xff] %vm3704_vm1, %v3623_v44  ;;  %5443 = vmatmul.mubr.bf16.gmra.mrb[12].mxu1 %v5037_v23  ;;  %4254 = vrot.lane.b32.xlu0 %v4188_v22, %s6648_s12  ;;  %v3512_v17 = vld [vmem:[#allocation3 + $0x1b2] sm:$0xff] }
 0x2da   :  { %3355 = vrot.lane.b32.xlu1 %v8516_v62, %s6648_s12  ;;  %v4639_v62 = vld [vmem:[#allocation3 + $0x61] sm:$0xff]  ;;  %3207 = vst.msk [vmem:[#allocation5 + $0x180] sm:$0xff] %vm115_vm13, %v3175_v21 }
 0x2db   :  { %v4778_v24 = vpop.permute.xlu0 %4777  ;;  %v4701_v25 = vpack.c.bf16 %v4640_v29, %v4639_v62  ;;  %v8663_v62 = vpack.c.bf16 %v4155_v7, %v4154_v54 }
 0x2dc   :  { %4866 = vst.msk [vmem:[#allocation5 + $0xb0] sm:$0xff] %vm3961_vm2, %v4778_v24  ;;  %v3880_v28 = vpop.permute.xlu1 %3879  ;;  %v3303_v24 = vpack.c.bf16 %v3256_v50, %v3255_v10 }
 0x2dd   :  { %v6458_v9 = vpop.f32.mrb[40].mxu0  ;;  %3969 = vst.msk [vmem:[#allocation5 + $0xa8] sm:$0xff] %vm3961_vm2, %v3880_v28  ;;  %4511 = vrot.lane.b32.xlu0 %v7894_v30, %s6650_s10  ;;  %v4152_v30 = vld [vmem:[#allocation3 + $0x182] sm:$0xff] }
 0x2de   :  { %v2880_v12 = vadd.f32 %v8547_v45, %v6458_v9  ;;  %v2871_v34 = vpop.f32.mrb[41].mxu0  ;;  %3612 = vrot.lane.b32.xlu1 %v8557_v27, %s6650_s10  ;;  %v4201_v47 = vpack.c.bf16 %v4153_v40, %v4152_v30  ;;  %v3513_v9 = vld [vmem:[#allocation3 + $0x1ba] sm:$0xff] }
 0x2df   :  { %v2872_v43 = vadd.f32 %v8547_v45, %v2871_v34  ;;  %v6459_v4 = vpop.f32.mrb[42].mxu0  ;;  %v4267_v19 = vpop.permute.xlu0 %4266 }
 0x2e0   :  { %v3008_v37 = vmax.f32 %v2880_v12, 0.0  ;;  %v2883_v33 = vadd.f32 %v8547_v45, %v6459_v4  ;;  %v2874_v42 = vpop.f32.mrb[43].mxu0  ;;  %4354 = vst.msk [vmem:[#allocation5 + $0xc8] sm:$0xff] %vm3447_vm0, %v4267_v19  ;;  %v3368_v38 = vpop.permute.xlu1 %3367 }
 0x2e1   :  { %v3006_v35 = vmax.f32 %v2872_v43, 0.0  ;;  %v2875_v46 = vadd.f32 %v8547_v45, %v2874_v42  ;;  %3456 = vst.msk [vmem:[#allocation5 + $0xc0] sm:$0xff] %vm3447_vm0, %v3368_v38  ;;  %4767 = vrot.lane.b32.xlu0 %v4701_v25, %s6651_s1  ;;  %v4412_v25 = vld [vmem:[#allocation3 + $0x1e8] sm:$0xff]  ;;  %v3560_v38 = vpack.c.bf16 %v3513_v9, %v3512_v17 }
 0x2e2   :  { %3073 = vst.msk [vmem:[#allocation3 + $0x241] sm:$0xff] %vm115_vm13, %v3008_v37  ;;  %v3009_v51 = vmax.f32 %v2883_v33, 0.0  ;;  %3869 = vrot.lane.b32.xlu1 %v7892_v36, %s6651_s1  ;;  %v4458_v36 = vpack.c.bf16 %v4410_v5, %v4409_v56  ;;  %v3770_v56 = vld [vmem:[#allocation3 + $0x1d0] sm:$0xff]  ;;  %v4667_v5 = vld [vmem:[#allocation3 + $0x1e1] sm:$0xff] }
 0x2e3   :  { %3071 = vst.msk [vmem:[#allocation3 + $0x229] sm:$0xff] %vm115_vm13, %v3006_v35  ;;  %v3007_v27 = vmax.f32 %v2875_v46, 0.0  ;;  %v4524_v59 = vpop.permute.xlu0 %4523  ;;  %v5041_v61 = vld [vmem:[#allocation5 + $0xb0] sm:$0xff]  ;;  %v4411_v46 = vld [vmem:[#allocation3 + $0x1e0] sm:$0xff] }
 0x2e4   :  { %3074 = vst.msk [vmem:[#allocation3 + $0x249] sm:$0xff] %vm115_vm13, %v3009_v51  ;;  %v3625_v63 = vpop.permute.xlu1 %3624  ;;  %5450 = vmatprep.mubr.bf16.mxu1 %v5041_v61  ;;  %v5040_v39 = vld [vmem:[#allocation5 + $0xa8] sm:$0xff]  ;;  %v8675_v40 = vpack.c.bf16 %v4412_v25, %v4411_v46 }
 0x2e5   :  { %3072 = vst.msk [vmem:[#allocation3 + $0x231] sm:$0xff] %vm115_vm13, %v3007_v27  ;;  %5451 = vmatmul.mubr.bf16.gmra.mrb[16].mxu1 %v5040_v39  ;;  %4280 = vrot.lane.b32.xlu0 %v4201_v47, %s6648_s12  ;;  %v4668_v27 = vld [vmem:[#allocation3 + $0x1e9] sm:$0xff] }
 0x2e6   :  { %4611 = vst.msk [vmem:[#allocation5 + $0xc8] sm:$0xff] %vm3704_vm1, %v4524_v59  ;;  %3713 = vst.msk [vmem:[#allocation5 + $0xc0] sm:$0xff] %vm3704_vm1, %v3625_v63  ;;  %3381 = vrot.lane.b32.xlu1 %v8541_v60, %s6648_s12  ;;  %v8682_v61 = vpack.c.bf16 %v4668_v27, %v4667_v5  ;;  %v3769_v47 = vld [vmem:[#allocation3 + $0x1c8] sm:$0xff] }
 0x2e7   :  { %v4780_v26 = vpop.permute.xlu0 %4779  ;;  %v3817_v39 = vpack.c.bf16 %v3770_v56, %v3769_v47 }
 0x2e8   :  { %4867 = vst.msk [vmem:[#allocation5 + $0xc8] sm:$0xff] %vm3961_vm2, %v4780_v26  ;;  %v3882_v6 = vpop.permute.xlu1 %3881 }
 0x2e9   :  { %3970 = vst.msk [vmem:[#allocation5 + $0xc0] sm:$0xff] %vm3961_vm2, %v3882_v6  ;;  %4537 = vrot.lane.b32.xlu0 %v4458_v36, %s6650_s10  ;;  %v4036_v16 = vld [vmem:[#allocation3 + $0x241] sm:$0xff]  ;;  %v3258_v36 = vld [vmem:[#allocation3 + $0x1d1] sm:$0xff] }
 0x2ea   :  { %3638 = vrot.lane.b32.xlu1 %v3559_v52, %s6650_s10  ;;  %v4034_v22 = vld [vmem:[#allocation3 + $0x229] sm:$0xff]  ;;  %v3139_v33 = vld [vmem:[#allocation3 + $0x240] sm:$0xff]  ;;  %v3304_v52 = vpack.c.bf16 %v3258_v36, %v3257_v3 }
 0x2eb   :  { %v4931_v20 = vld [vmem:[#allocation3 + $0x242] sm:$0xff]  ;;  %v4932_v8 = vld [vmem:[#allocation3 + $0x24a] sm:$0xff]  ;;  %v4269_v14 = vpop.permute.xlu0 %4268 }
 0x2ec   :  { %v8650_v60 = vpack.c.bf16 %v4932_v8, %v4931_v20  ;;  %v4929_v48 = vld [vmem:[#allocation3 + $0x22a] sm:$0xff]  ;;  %v4930_v2 = vld [vmem:[#allocation3 + $0x232] sm:$0xff]  ;;  %4355 = vst.msk [vmem:[#allocation5 + $0xe0] sm:$0xff] %vm3447_vm0, %v4269_v14  ;;  %v3370_v15 = vpop.permute.xlu1 %3369 }
 0x2ed   :  { %v8652_v13 = vpack.c.bf16 %v4930_v2, %v4929_v48  ;;  %3457 = vst.msk [vmem:[#allocation5 + $0xd8] sm:$0xff] %vm3447_vm0, %v3370_v15  ;;  %4793 = vrot.lane.b32.xlu0 %v4714_v1, %s6651_s1  ;;  %v4035_v44 = vld [vmem:[#allocation3 + $0x231] sm:$0xff]  ;;  %v4037_v23 = vld [vmem:[#allocation3 + $0x249] sm:$0xff]  ;;  %v4414_v1 = vld [vmem:[#allocation3 + $0x200] sm:$0xff] }
 0x2ee   :  { %5007 = vst.msk [vmem:[#allocation5 + $0x1f0] sm:$0xff] %vm115_vm13, %v8650_v60  ;;  %3895 = vrot.lane.b32.xlu1 %v8595_v18, %s6651_s1  ;;  %v4078_v28 = vpack.c.bf16 %v4035_v44, %v4034_v22  ;;  %v4079_v29 = vpack.c.bf16 %v4037_v23, %v4036_v16  ;;  %v3137_v12 = vld [vmem:[#allocation3 + $0x228] sm:$0xff]  ;;  %v3138_v34 = vld [vmem:[#allocation3 + $0x230] sm:$0xff]  ;;  %v8697_v15 = vpack.c.bf16 %v4414_v1, %v4413_v11  ;;  %v4669_v22 = vld [vmem:[#allocation3 + $0x1f9] sm:$0xff] }
 0x2ef   :  { %5006 = vst.msk [vmem:[#allocation5 + $0x1d8] sm:$0xff] %vm115_vm13, %v8652_v13  ;;  %v4526_v43 = vpop.permute.xlu0 %4525  ;;  %v5044_v4 = vld [vmem:[#allocation5 + $0xc8] sm:$0xff]  ;;  %v3180_v37 = vpack.c.bf16 %v3138_v34, %v3137_v12  ;;  %v4416_v34 = vld [vmem:[#allocation3 + $0x218] sm:$0xff] }
 0x2f0   :  { %v3140_v42 = vld [vmem:[#allocation3 + $0x248] sm:$0xff]  ;;  %4612 = vst.msk [vmem:[#allocation5 + $0xe0] sm:$0xff] %vm3704_vm1, %v4526_v43  ;;  %v3627_v19 = vpop.permute.xlu1 %3626  ;;  %5458 = vmatprep.mubr.bf16.mxu1 %v5044_v4  ;;  %v5043_v18 = vld [vmem:[#allocation5 + $0xc0] sm:$0xff] }
 0x2f1   :  { %4110 = vst.msk [vmem:[#allocation5 + $0x1e8] sm:$0xff] %vm115_vm13, %v4078_v28  ;;  %4111 = vst.msk [vmem:[#allocation5 + $0x200] sm:$0xff] %vm115_vm13, %v4079_v29  ;;  %v3181_v35 = vpack.c.bf16 %v3140_v42, %v3139_v33  ;;  %5459 = vmatmul.mubr.bf16.gmra.mrb[20].mxu1 %v5043_v18  ;;  %4282 = vrot.lane.b32.xlu0 %v8663_v62, %s6648_s12  ;;  %v3516_v43 = vld [vmem:[#allocation3 + $0x1e2] sm:$0xff]  ;;  %v3517_v4 = vld [vmem:[#allocation3 + $0x1ea] sm:$0xff] }
 0x2f2   :  { %3714 = vst.msk [vmem:[#allocation5 + $0xd8] sm:$0xff] %vm3704_vm1, %v3627_v19  ;;  %3383 = vrot.lane.b32.xlu1 %v3303_v24, %s6648_s12  ;;  %v4415_v33 = vld [vmem:[#allocation3 + $0x210] sm:$0xff] }
 0x2f3   :  { %3212 = vst.msk [vmem:[#allocation5 + $0x1f8] sm:$0xff] %vm115_vm13, %v3180_v37  ;;  %3213 = vst.msk [vmem:[#allocation5 + $0x210] sm:$0xff] %vm115_vm13, %v3181_v35  ;;  %v4782_v30 = vpop.permute.xlu0 %4781  ;;  %v8726_v35 = vpack.c.bf16 %v4416_v34, %v4415_v33  ;;  %v3520_v33 = vld [vmem:[#allocation3 + $0x212] sm:$0xff] }
 0x2f4   :  { %4868 = vst.msk [vmem:[#allocation5 + $0xe0] sm:$0xff] %vm3961_vm2, %v4782_v30  ;;  %v3884_v51 = vpop.permute.xlu1 %3883  ;;  %v3562_v30 = vpack.c.bf16 %v3517_v4, %v3516_v43 }
 0x2f5   :  { %3971 = vst.msk [vmem:[#allocation5 + $0xd8] sm:$0xff] %vm3961_vm2, %v3884_v51  ;;  %4539 = vrot.lane.b32.xlu0 %v8675_v40, %s6650_s10  ;;  %v4672_v51 = vld [vmem:[#allocation3 + $0x219] sm:$0xff] }
 0x2f6   :  { %3640 = vrot.lane.b32.xlu1 %v3560_v38, %s6650_s10 }
 0x2f7   :  { %v4271_v59 = vpop.permute.xlu0 %4270 }
 0x2f8   :  { %4356 = vst.msk [vmem:[#allocation5 + $0xf8] sm:$0xff] %vm3447_vm0, %v4271_v59  ;;  %v3372_v63 = vpop.permute.xlu1 %3371 }
 0x2f9   :  { %3458 = vst.msk [vmem:[#allocation5 + $0xf0] sm:$0xff] %vm3447_vm0, %v3372_v63  ;;  %4795 = vrot.lane.b32.xlu0 %v8682_v61, %s6651_s1 }
 0x2fa   :  { %3897 = vrot.lane.b32.xlu1 %v3817_v39, %s6651_s1 }
 0x2fb   :  { %v4528_v41 = vpop.permute.xlu0 %4527  ;;  %v5047_v55 = vld [vmem:[#allocation5 + $0xe0] sm:$0xff] }
 0x2fc   :  { %4613 = vst.msk [vmem:[#allocation5 + $0xf8] sm:$0xff] %vm3704_vm1, %v4528_v41  ;;  %v3629_v26 = vpop.permute.xlu1 %3628  ;;  %5466 = vmatprep.mubr.bf16.mxu1 %v5047_v55  ;;  %v5046_v6 = vld [vmem:[#allocation5 + $0xd8] sm:$0xff] }
 0x2fd   :  { %v6462_v31 = vpop.f32.mrb[44].mxu0  ;;  %3715 = vst.msk [vmem:[#allocation5 + $0xf0] sm:$0xff] %vm3704_vm1, %v3629_v26  ;;  %5467 = vmatmul.mubr.bf16.gmra.mrb[24].mxu1 %v5046_v6  ;;  %4284 = vrot.lane.b32.xlu0 %v8505_v32, %s6648_s12  ;;  %v4670_v32 = vld [vmem:[#allocation3 + $0x201] sm:$0xff] }
 0x2fe   :  { %v2896_v10 = vadd.f32 %v8547_v45, %v6462_v31  ;;  %v2887_v50 = vpop.f32.mrb[45].mxu0  ;;  %3385 = vrot.lane.b32.xlu1 %v3304_v52, %s6648_s12  ;;  %v8709_v23 = vpack.c.bf16 %v4670_v32, %v4669_v22 }
 0x2ff   :  { %v2888_v20 = vadd.f32 %v8547_v45, %v2887_v50  ;;  %v6463_v8 = vpop.f32.mrb[46].mxu0  ;;  %v4784_v54 = vpop.permute.xlu0 %4783 }
 0x300   :  { %v3012_v48 = vmax.f32 %v2896_v10, 0.0  ;;  %v2899_v2 = vadd.f32 %v8547_v45, %v6463_v8  ;;  %v2890_v14 = vpop.f32.mrb[47].mxu0  ;;  %4869 = vst.msk [vmem:[#allocation5 + $0xf8] sm:$0xff] %vm3961_vm2, %v4784_v54  ;;  %v3886_v16 = vpop.permute.xlu1 %3885  ;;  %v4417_v8 = vld [vmem:[#allocation3 + $0x228] sm:$0xff]  ;;  %v4921_v54 = vld [vmem:[#allocation3 + $0x19a] sm:$0xff] }
 0x301   :  { %v3010_v7 = vmax.f32 %v2888_v20, 0.0  ;;  %v2891_v58 = vadd.f32 %v8547_v45, %v2890_v14  ;;  %3972 = vst.msk [vmem:[#allocation5 + $0xf0] sm:$0xff] %vm3961_vm2, %v3886_v16  ;;  %4541 = vrot.lane.b32.xlu0 %v8697_v15, %s6650_s10  ;;  %v4418_v20 = vld [vmem:[#allocation3 + $0x230] sm:$0xff] }
 0x302   :  { %3077 = vst.msk [vmem:[#allocation3 + $0x271] sm:$0xff] %vm115_vm13, %v3012_v48  ;;  %v3013_v17 = vmax.f32 %v2899_v2, 0.0  ;;  %3642 = vrot.lane.b32.xlu1 %v8663_v62, %s6650_s10  ;;  %v8757_v48 = vpack.c.bf16 %v4418_v20, %v4417_v8  ;;  %v4674_v14 = vld [vmem:[#allocation3 + $0x231] sm:$0xff] }
 0x303   :  { %3075 = vst.msk [vmem:[#allocation3 + $0x259] sm:$0xff] %vm115_vm13, %v3010_v7  ;;  %v3011_v21 = vmax.f32 %v2891_v58, 0.0  ;;  %v4273_v44 = vpop.permute.xlu0 %4272 }
 0x304   :  { %3078 = vst.msk [vmem:[#allocation3 + $0x279] sm:$0xff] %vm115_vm13, %v3013_v17  ;;  %v3374_v24 = vpop.permute.xlu1 %3373 }
 0x305   :  { %3076 = vst.msk [vmem:[#allocation3 + $0x261] sm:$0xff] %vm115_vm13, %v3011_v21  ;;  %4797 = vrot.lane.b32.xlu0 %v8709_v23, %s6651_s1 }
 0x306   :  { %4357 = vst.msk [vmem:[#allocation5 + $0x110] sm:$0xff] %vm3447_vm0, %v4273_v44  ;;  %3459 = vst.msk [vmem:[#allocation5 + $0x108] sm:$0xff] %vm3447_vm0, %v3374_v24  ;;  %3899 = vrot.lane.b32.xlu1 %v8675_v40, %s6651_s1  ;;  %v4671_v40 = vld [vmem:[#allocation3 + $0x211] sm:$0xff] }
 0x307   :  { %v4530_v9 = vpop.permute.xlu0 %4529  ;;  %v5050_v28 = vld [vmem:[#allocation5 + $0xf8] sm:$0xff]  ;;  %v8739_v3 = vpack.c.bf16 %v4672_v51, %v4671_v40  ;;  %v4676_v51 = vld [vmem:[#allocation3 + $0x249] sm:$0xff] }
 0x308   :  { %4614 = vst.msk [vmem:[#allocation5 + $0x110] sm:$0xff] %vm3704_vm1, %v4530_v9  ;;  %v3631_v29 = vpop.permute.xlu1 %3630  ;;  %5474 = vmatprep.mubr.bf16.mxu1 %v5050_v28  ;;  %v5049_v12 = vld [vmem:[#allocation5 + $0xf0] sm:$0xff] }
 0x309   :  { %3716 = vst.msk [vmem:[#allocation5 + $0x108] sm:$0xff] %vm3704_vm1, %v3631_v29  ;;  %5475 = vmatmul.mubr.bf16.gmra.mrb[28].mxu1 %v5049_v12  ;;  %4286 = vrot.lane.b32.xlu0 %v8583_v57, %s6648_s12  ;;  %v4040_v59 = vld [vmem:[#allocation3 + $0x271] sm:$0xff] }
 0x30a   :  { %3387 = vrot.lane.b32.xlu1 %v8682_v61, %s6648_s12  ;;  %v4038_v27 = vld [vmem:[#allocation3 + $0x259] sm:$0xff]  ;;  %v3143_v36 = vld [vmem:[#allocation3 + $0x270] sm:$0xff] }
 0x30b   :  { %v4935_v62 = vld [vmem:[#allocation3 + $0x272] sm:$0xff]  ;;  %v4936_v37 = vld [vmem:[#allocation3 + $0x27a] sm:$0xff]  ;;  %v4786_v25 = vpop.permute.xlu0 %4785 }
 0x30c   :  { %v8724_v42 = vpack.c.bf16 %v4936_v37, %v4935_v62  ;;  %v4933_v19 = vld [vmem:[#allocation3 + $0x25a] sm:$0xff]  ;;  %v4934_v18 = vld [vmem:[#allocation3 + $0x262] sm:$0xff]  ;;  %4870 = vst.msk [vmem:[#allocation5 + $0x110] sm:$0xff] %vm3961_vm2, %v4786_v25  ;;  %v3888_v38 = vpop.permute.xlu1 %3887 }
 0x30d   :  { %v8728_v46 = vpack.c.bf16 %v4934_v18, %v4933_v19  ;;  %v4039_v56 = vld [vmem:[#allocation3 + $0x261] sm:$0xff]  ;;  %3973 = vst.msk [vmem:[#allocation5 + $0x108] sm:$0xff] %vm3961_vm2, %v3888_v38  ;;  %4543 = vrot.lane.b32.xlu0 %v8726_v35, %s6650_s10  ;;  %v4041_v61 = vld [vmem:[#allocation3 + $0x279] sm:$0xff] }
 0x30e   :  { %5009 = vst.msk [vmem:[#allocation5 + $0x220] sm:$0xff] %vm115_vm13, %v8724_v42  ;;  %v4080_v5 = vpack.c.bf16 %v4039_v56, %v4038_v27  ;;  %v3141_v47 = vld [vmem:[#allocation3 + $0x258] sm:$0xff]  ;;  %3644 = vrot.lane.b32.xlu1 %v3562_v30, %s6650_s10  ;;  %v4081_v63 = vpack.c.bf16 %v4041_v61, %v4040_v59  ;;  %v3142_v39 = vld [vmem:[#allocation3 + $0x260] sm:$0xff]  ;;  %v4420_v62 = vld [vmem:[#allocation3 + $0x248] sm:$0xff] }
 0x30f   :  { %5008 = vst.msk [vmem:[#allocation5 + $0x208] sm:$0xff] %vm115_vm13, %v8728_v46  ;;  %v3144_v41 = vld [vmem:[#allocation3 + $0x278] sm:$0xff]  ;;  %v4275_v55 = vpop.permute.xlu0 %4274  ;;  %v3182_v31 = vpack.c.bf16 %v3142_v39, %v3141_v47  ;;  %v4419_v25 = vld [vmem:[#allocation3 + $0x240] sm:$0xff] }
 0x310   :  { %4112 = vst.msk [vmem:[#allocation5 + $0x218] sm:$0xff] %vm115_vm13, %v4080_v5  ;;  %v3183_v26 = vpack.c.bf16 %v3144_v41, %v3143_v36  ;;  %v3376_v6 = vpop.permute.xlu1 %3375  ;;  %4113 = vst.msk [vmem:[#allocation5 + $0x230] sm:$0xff] %vm115_vm13, %v4081_v63  ;;  %v3521_v19 = vld [vmem:[#allocation3 + $0x21a] sm:$0xff]  ;;  %v8787_v38 = vpack.c.bf16 %v4420_v62, %v4419_v25  ;;  %v6632_v63 = vld [vmem:[%s9487_s3 + $0x88] sm:$0xff]  }
 0x311   :  { %4358 = vst.msk [vmem:[#allocation5 + $0x128] sm:$0xff] %vm3447_vm0, %v4275_v55  ;;  %3460 = vst.msk [vmem:[#allocation5 + $0x120] sm:$0xff] %vm3447_vm0, %v3376_v6  ;;  %4799 = vrot.lane.b32.xlu0 %v8739_v3, %s6651_s1  ;;  %v3564_v40 = vpack.c.bf16 %v3521_v19, %v3520_v33  ;;  %v4675_v27 = vld [vmem:[#allocation3 + $0x241] sm:$0xff] }
 0x312   :  { %3214 = vst.msk [vmem:[#allocation5 + $0x228] sm:$0xff] %vm115_vm13, %v3182_v31  ;;  %3215 = vst.msk [vmem:[#allocation5 + $0x240] sm:$0xff] %vm115_vm13, %v3183_v26  ;;  %3901 = vrot.lane.b32.xlu1 %v8697_v15, %s6651_s1  ;;  %v4922_v15 = vld [vmem:[#allocation3 + $0x1a2] sm:$0xff]  ;;  %v8795_v5 = vpack.c.bf16 %v4676_v51, %v4675_v27  ;;  %v8860_v27 = vld [vmem:[%s9486_s2] ss:$0 sm:$0xff] }
 0x313   :  { %v4532_v52 = vpop.permute.xlu0 %4531  ;;  %v5053_v1 = vld [vmem:[#allocation5 + $0x110] sm:$0xff]  ;;  %v4970_v16 = vpack.c.bf16 %v4922_v15, %v4921_v54  ;;  %v4678_v15 = vld [vmem:[#allocation3 + $0x261] sm:$0xff] }
 0x314   :  { %4615 = vst.msk [vmem:[#allocation5 + $0x128] sm:$0xff] %vm3704_vm1, %v4532_v52  ;;  %v3633_v10 = vpop.permute.xlu1 %3632  ;;  %5482 = vmatprep.mubr.bf16.mxu1 %v5053_v1  ;;  %v5052_v50 = vld [vmem:[#allocation5 + $0x108] sm:$0xff]  ;;  %v4422_v52 = vld [vmem:[#allocation3 + $0x260] sm:$0xff]  ;;  %v4421_v1 = vld [vmem:[#allocation3 + $0x258] sm:$0xff] }
 0x315   :  { %3717 = vst.msk [vmem:[#allocation5 + $0x120] sm:$0xff] %vm3704_vm1, %v3633_v10  ;;  %5483 = vmatmul.mubr.bf16.gmra.mrb[32].mxu1 %v5052_v50  ;;  %4288 = vrot.lane.b32.xlu0 %v8581_v49, %s6648_s12  ;;  %v4673_v49 = vld [vmem:[#allocation3 + $0x229] sm:$0xff] }
 0x316   :  { %3389 = vrot.lane.b32.xlu1 %v8709_v23, %s6648_s12  ;;  %v8765_v58 = vpack.c.bf16 %v4674_v14, %v4673_v49  ;;  %5002 = vst.msk [vmem:[#allocation5 + $0x178] sm:$0xff] %vm115_vm13, %v4970_v16 }
 0x317   :  { %v4788_v11 = vpop.permute.xlu0 %4787 }
 0x318   :  { %4871 = vst.msk [vmem:[#allocation5 + $0x128] sm:$0xff] %vm3961_vm2, %v4788_v11  ;;  %v3890_v2 = vpop.permute.xlu1 %3889  ;;  %v8821_v11 = vpack.c.bf16 %v4422_v52, %v4421_v1 }
 0x319   :  { %3974 = vst.msk [vmem:[#allocation5 + $0x120] sm:$0xff] %vm3961_vm2, %v3890_v2  ;;  %4545 = vrot.lane.b32.xlu0 %v8757_v48, %s6650_s10 }
 0x31a   :  { %3646 = vrot.lane.b32.xlu1 %v8583_v57, %s6650_s10 }
 0x31b   :  { %v4251_v7 = vpop.permute.xlu0 %4250 }
 0x31c   :  { %4346 = vst.msk [vmem:[#allocation5 + $0x8] sm:$0xff] %vm3447_vm0, %v4251_v7  ;;  %v3352_v17 = vpop.permute.xlu1 %3351 }
 0x31d   :  { %v6466_v32 = vpop.f32.mrb[48].mxu0  ;;  %3448 = vst.msk [vmem:[#allocation5] sm:$0xff] %vm3447_vm0, %v3352_v17  ;;  %4801 = vrot.lane.b32.xlu0 %v8765_v58, %s6651_s1  ;;  %v4677_v17 = vld [vmem:[#allocation3 + $0x259] sm:$0xff] }
 0x31e   :  { %v2912_v21 = vadd.f32 %v8547_v45, %v6466_v32  ;;  %v2903_v22 = vpop.f32.mrb[49].mxu0  ;;  %3903 = vrot.lane.b32.xlu1 %v8726_v35, %s6651_s1 }
 0x31f   :  { %v2904_v57 = vadd.f32 %v8547_v45, %v2903_v22  ;;  %v6467_v44 = vpop.f32.mrb[50].mxu0  ;;  %v4508_v28 = vpop.permute.xlu0 %4507  ;;  %v5056_v29 = vld [vmem:[#allocation5 + $0x128] sm:$0xff]  ;;  %v4720_v22 = vpack.c.bf16 %v4678_v15, %v4677_v17 }
 0x320   :  { %v3016_v23 = vmax.f32 %v2912_v21, 0.0  ;;  %v2915_v24 = vadd.f32 %v8547_v45, %v6467_v44  ;;  %v2906_v9 = vpop.f32.mrb[51].mxu0  ;;  %4603 = vst.msk [vmem:[#allocation5 + $0x8] sm:$0xff] %vm3704_vm1, %v4508_v28  ;;  %v3609_v43 = vpop.permute.xlu1 %3608  ;;  %5490 = vmatprep.mubr.bf16.mxu1 %v5056_v29  ;;  %v5055_v4 = vld [vmem:[#allocation5 + $0x120] sm:$0xff]  ;;  %v4423_v28 = vld [vmem:[#allocation3 + $0x270] sm:$0xff] }
 0x321   :  { %v3014_v12 = vmax.f32 %v2904_v57, 0.0  ;;  %v2907_v34 = vadd.f32 %v8547_v45, %v2906_v9  ;;  %3705 = vst.msk [vmem:[#allocation5] sm:$0xff] %vm3704_vm1, %v3609_v43  ;;  %5491 = vmatmul.mubr.bf16.gmra.mrb[36].mxu1 %v5055_v4  ;;  %4290 = vrot.lane.b32.xlu0 %v8652_v13, %s6648_s12  ;;  %v4424_v9 = vld [vmem:[#allocation3 + $0x278] sm:$0xff] }
 0x322   :  { %3081 = vst.msk [vmem:[#allocation3 + $0x2a1] sm:$0xff] %vm115_vm13, %v3016_v23  ;;  %v3017_v37 = vmax.f32 %v2915_v24, 0.0  ;;  %3391 = vrot.lane.b32.xlu1 %v8739_v3, %s6648_s12  ;;  %v4680_v4 = vld [vmem:[#allocation3 + $0x279] sm:$0xff] }
 0x323   :  { %3079 = vst.msk [vmem:[#allocation3 + $0x289] sm:$0xff] %vm115_vm13, %v3014_v12  ;;  %v3015_v18 = vmax.f32 %v2907_v34, 0.0  ;;  %v4764_v35 = vpop.permute.xlu0 %4763  ;;  %v8844_v12 = vpack.c.bf16 %v4424_v9, %v4423_v28 }
 0x324   :  { %3082 = vst.msk [vmem:[#allocation3 + $0x2a9] sm:$0xff] %vm115_vm13, %v3017_v37  ;;  %v3866_v30 = vpop.permute.xlu1 %3865 }
 0x325   :  { %3080 = vst.msk [vmem:[#allocation3 + $0x291] sm:$0xff] %vm115_vm13, %v3015_v18  ;;  %4547 = vrot.lane.b32.xlu0 %v8787_v38, %s6650_s10  ;;  %v4679_v18 = vld [vmem:[#allocation3 + $0x271] sm:$0xff] }
 0x326   :  { %4859 = vst.msk [vmem:[#allocation5 + $0x8] sm:$0xff] %vm3961_vm2, %v4764_v35  ;;  %3962 = vst.msk [vmem:[#allocation5] sm:$0xff] %vm3961_vm2, %v3866_v30  ;;  %3648 = vrot.lane.b32.xlu1 %v3564_v40, %s6650_s10  ;;  %v8855_v40 = vpack.c.bf16 %v4680_v4, %v4679_v18 }
 0x327   :  { %v4277_v56 = vpop.permute.xlu0 %4276 }
 0x328   :  { %4359 = vst.msk [vmem:[#allocation5 + $0x140] sm:$0xff] %vm3447_vm0, %v4277_v56  ;;  %v3378_v59 = vpop.permute.xlu1 %3377 }
 0x329   :  { %3461 = vst.msk [vmem:[#allocation5 + $0x138] sm:$0xff] %vm3447_vm0, %v3378_v59  ;;  %4803 = vrot.lane.b32.xlu0 %v8795_v5, %s6651_s1  ;;  %v4044_v20 = vld [vmem:[#allocation3 + $0x2a1] sm:$0xff] }
 0x32a   :  { %3905 = vrot.lane.b32.xlu1 %v8757_v48, %s6651_s1  ;;  %v4042_v10 = vld [vmem:[#allocation3 + $0x289] sm:$0xff]  ;;  %v4427_v9 = vld [vmem:[#allocation3 + $0x2a0] sm:$0xff] }
 0x32b   :  { %v4939_v61 = vld [vmem:[#allocation3 + $0x2a2] sm:$0xff]  ;;  %v4940_v47 = vld [vmem:[#allocation3 + $0x2aa] sm:$0xff]  ;;  %v4534_v55 = vpop.permute.xlu0 %4533 }
 0x32c   :  { %v8806_v39 = vpack.c.bf16 %v4940_v47, %v4939_v61  ;;  %v4937_v36 = vld [vmem:[#allocation3 + $0x28a] sm:$0xff]  ;;  %v4938_v41 = vld [vmem:[#allocation3 + $0x292] sm:$0xff]  ;;  %4616 = vst.msk [vmem:[#allocation5 + $0x140] sm:$0xff] %vm3704_vm1, %v4534_v55  ;;  %v3635_v26 = vpop.permute.xlu1 %3634 }
 0x32d   :  { %v5020_v3 = vld [vmem:[#allocation5 + $0x8] sm:$0xff]  ;;  %v8808_v31 = vpack.c.bf16 %v4938_v41, %v4937_v36  ;;  %v5019_v6 = vld [vmem:[#allocation5] sm:$0xff]  ;;  %3718 = vst.msk [vmem:[#allocation5 + $0x138] sm:$0xff] %vm3704_vm1, %v3635_v26  ;;  %4292 = vrot.lane.b32.xlu0 %v8650_v60, %s6648_s12  ;;  %v4043_v50 = vld [vmem:[#allocation3 + $0x291] sm:$0xff] }
 0x32e   :  { %5394 = vmatprep.mubr.bf16.mxu0 %v5020_v3  ;;  %5011 = vst.msk [vmem:[#allocation5 + $0x250] sm:$0xff] %vm115_vm13, %v8806_v39  ;;  %3393 = vrot.lane.b32.xlu1 %v8765_v58, %s6648_s12  ;;  %v4082_v48 = vpack.c.bf16 %v4043_v50, %v4042_v10  ;;  %v4045_v2 = vld [vmem:[#allocation3 + $0x2a9] sm:$0xff]  ;;  %v3147_v58 = vld [vmem:[#allocation3 + $0x2a0] sm:$0xff] }
 0x32f   :  { %5395 = vmatmul.mubr.bf16.vlgmr.msra.gmra.mrb[64].mxu0 %v5019_v6  ;;  %5010 = vst.msk [vmem:[#allocation5 + $0x238] sm:$0xff] %vm115_vm13, %v8808_v31  ;;  %v4790_v8 = vpop.permute.xlu0 %4789  ;;  %v3145_v14 = vld [vmem:[#allocation3 + $0x288] sm:$0xff]  ;;  %v3146_v49 = vld [vmem:[#allocation3 + $0x290] sm:$0xff]  ;;  %v4083_v7 = vpack.c.bf16 %v4045_v2, %v4044_v20 }
 0x330   :  { %6481 = vmatpush3.bf16.msra.mxu0 %v8636_v53  ;;  %4872 = vst.msk [vmem:[#allocation5 + $0x140] sm:$0xff] %vm3961_vm2, %v4790_v8  ;;  %v3892_v54 = vpop.permute.xlu1 %3891  ;;  %v3184_v16 = vpack.c.bf16 %v3146_v49, %v3145_v14  ;;  %v3148_v32 = vld [vmem:[#allocation3 + $0x2a8] sm:$0xff]  ;;  %v4426_v36 = vld [vmem:[#allocation3 + $0x290] sm:$0xff] }
 0x331   :  { %6482 = vmatprep.subr.bf16.mxu0 %v6632_v63  ;;  %3975 = vst.msk [vmem:[#allocation5 + $0x138] sm:$0xff] %vm3961_vm2, %v3892_v54  ;;  %4549 = vrot.lane.b32.xlu0 %v8821_v11, %s6650_s10  ;;  %v3185_v53 = vpack.c.bf16 %v3148_v32, %v3147_v58  ;;  %v4425_v41 = vld [vmem:[#allocation3 + $0x288] sm:$0xff]  ;;  %v4682_v6 = vld [vmem:[#allocation3 + $0x291] sm:$0xff] }
 0x332   :  { %4114 = vst.msk [vmem:[#allocation5 + $0x248] sm:$0xff] %vm115_vm13, %v4082_v48  ;;  %3650 = vrot.lane.b32.xlu1 %v8652_v13, %s6650_s10  ;;  %4115 = vst.msk [vmem:[#allocation5 + $0x260] sm:$0xff] %vm115_vm13, %v4083_v7  ;;  %v8878_v3 = vpack.c.bf16 %v4426_v36, %v4425_v41  ;;  %v4681_v52 = vld [vmem:[#allocation3 + $0x289] sm:$0xff] }
 0x333   :  { %3216 = vst.msk [vmem:[#allocation5 + $0x258] sm:$0xff] %vm115_vm13, %v3184_v16  ;;  %v4253_v21 = vpop.permute.xlu0 %4252  ;;  %3217 = vst.msk [vmem:[#allocation5 + $0x270] sm:$0xff] %vm115_vm13, %v3185_v53  ;;  %v8888_v14 = vpack.c.bf16 %v4682_v6, %v4681_v52  ;;  %v5024_v52 = vld [vmem:[#allocation5 + $0x28] sm:$0xff] }
 0x334   :  { %6483 = vmatpush3.bf16.msra.mxu0 %v6632_v63  ;;  %4347 = vst.msk [vmem:[#allocation5 + $0x20] sm:$0xff] %vm3447_vm0, %v4253_v21  ;;  %v3354_v57 = vpop.permute.xlu1 %3353 }
 0x335   :  { %3449 = vst.msk [vmem:[#allocation5 + $0x18] sm:$0xff] %vm3447_vm0, %v3354_v57  ;;  %4805 = vrot.lane.b32.xlu0 %v4720_v22, %s6651_s1 }
 0x336   :  { %3907 = vrot.lane.b32.xlu1 %v8787_v38, %s6651_s1 }
 0x337   :  { %v4510_v13 = vpop.permute.xlu0 %4509  ;;  %v5059_v44 = vld [vmem:[#allocation5 + $0x140] sm:$0xff] }
 0x338   :  { %4604 = vst.msk [vmem:[#allocation5 + $0x20] sm:$0xff] %vm3704_vm1, %v4510_v13  ;;  %5498 = vmatprep.mubr.bf16.mxu1 %v5059_v44  ;;  %v3611_v23 = vpop.permute.xlu1 %3610  ;;  %v5058_v24 = vld [vmem:[#allocation5 + $0x138] sm:$0xff] }
 0x339   :  { %3706 = vst.msk [vmem:[#allocation5 + $0x18] sm:$0xff] %vm3704_vm1, %v3611_v23  ;;  %4294 = vrot.lane.b32.xlu0 %v8728_v46, %s6648_s12  ;;  %5499 = vmatmul.mubr.bf16.gmra.mrb[40].mxu1 %v5058_v24  ;;  %v4428_v24 = vld [vmem:[#allocation3 + $0x2a8] sm:$0xff] }
 0x33a   :  { %3395 = vrot.lane.b32.xlu1 %v8795_v5, %s6648_s12 }
 0x33b   :  { %v4766_v29 = vpop.permute.xlu0 %4765 }
 0x33c   :  { %4860 = vst.msk [vmem:[#allocation5 + $0x20] sm:$0xff] %vm3961_vm2, %v4766_v29  ;;  %v3868_v43 = vpop.permute.xlu1 %3867  ;;  %v4467_v29 = vpack.c.bf16 %v4428_v24, %v4427_v9 }
 0x33d   :  { %v6470_v34 = vpop.f32.mrb[52].mxu0  ;;  %3963 = vst.msk [vmem:[#allocation5 + $0x18] sm:$0xff] %vm3961_vm2, %v3868_v43  ;;  %4551 = vrot.lane.b32.xlu0 %v8844_v12, %s6650_s10  ;;  %v4683_v43 = vld [vmem:[#allocation3 + $0x2a1] sm:$0xff] }
 0x33e   :  { %v2928_v62 = vadd.f32 %v8547_v45, %v6470_v34  ;;  %v2919_v37 = vpop.f32.mrb[53].mxu0  ;;  %3652 = vrot.lane.b32.xlu1 %v8650_v60, %s6650_s10  ;;  %v4684_v34 = vld [vmem:[#allocation3 + $0x2a9] sm:$0xff] }
 0x33f   :  { %v2920_v33 = vadd.f32 %v8547_v45, %v2919_v37  ;;  %v6471_v19 = vpop.f32.mrb[54].mxu0  ;;  %v4279_v30 = vpop.permute.xlu0 %4278 }
 0x340   :  { %v3020_v25 = vmax.f32 %v2928_v62, 0.0  ;;  %v2931_v35 = vadd.f32 %v8547_v45, %v6471_v19  ;;  %v2922_v38 = vpop.f32.mrb[55].mxu0  ;;  %4360 = vst.msk [vmem:[#allocation5 + $0x158] sm:$0xff] %vm3447_vm0, %v4279_v30  ;;  %v3380_v5 = vpop.permute.xlu1 %3379  ;;  %v8923_v62 = vpack.c.bf16 %v4684_v34, %v4683_v43 }
 0x341   :  { %v3018_v51 = vmax.f32 %v2920_v33, 0.0  ;;  %v2923_v56 = vadd.f32 %v8860_v27, %v2922_v38  ;;  %3462 = vst.msk [vmem:[#allocation5 + $0x150] sm:$0xff] %vm3447_vm0, %v3380_v5  ;;  %4807 = vrot.lane.b32.xlu0 %v8855_v40, %s6651_s1 }
 0x342   :  { %3085 = vst.msk [vmem:[#allocation3 + $0x2d1] sm:$0xff] %vm115_vm13, %v3020_v25  ;;  %v3021_v60 = vmax.f32 %v2931_v35, 0.0  ;;  %3909 = vrot.lane.b32.xlu1 %v8821_v11, %s6651_s1 }
 0x343   :  { %3083 = vst.msk [vmem:[#allocation3 + $0x2b9] sm:$0xff] %vm115_vm13, %v3018_v51  ;;  %v3019_v45 = vmax.f32 %v2923_v56, 0.0  ;;  %v4536_v59 = vpop.permute.xlu0 %4535  ;;  %v5023_v61 = vld [vmem:[#allocation5 + $0x20] sm:$0xff] }
 0x344   :  { %3086 = vst.msk [vmem:[#allocation3 + $0x2d9] sm:$0xff] %vm115_vm13, %v3021_v60  ;;  %5402 = vmatprep.mubr.bf16.mxu0 %v5023_v61  ;;  %v3637_v47 = vpop.permute.xlu1 %3636  ;;  %v5022_v63 = vld [vmem:[#allocation5 + $0x18] sm:$0xff] }
 0x345   :  { %3084 = vst.msk [vmem:[#allocation3 + $0x2c1] sm:$0xff] %vm115_vm13, %v3019_v45  ;;  %4296 = vrot.lane.b32.xlu0 %v8724_v42, %s6648_s12  ;;  %5403 = vmatmul.mubr.bf16.gmra.mrb[68].mxu0 %v5022_v63 }
 0x346   :  { %4617 = vst.msk [vmem:[#allocation5 + $0x158] sm:$0xff] %vm3704_vm1, %v4536_v59  ;;  %3719 = vst.msk [vmem:[#allocation5 + $0x150] sm:$0xff] %vm3704_vm1, %v3637_v47  ;;  %3397 = vrot.lane.b32.xlu1 %v4720_v22, %s6648_s12 }
 0x347   :  { %v4792_v55 = vpop.permute.xlu0 %4791 }
 0x348   :  { %4873 = vst.msk [vmem:[#allocation5 + $0x158] sm:$0xff] %vm3961_vm2, %v4792_v55  ;;  %v3894_v26 = vpop.permute.xlu1 %3893 }
 0x349   :  { %3976 = vst.msk [vmem:[#allocation5 + $0x150] sm:$0xff] %vm3961_vm2, %v3894_v26  ;;  %4553 = vrot.lane.b32.xlu0 %v8878_v3, %s6650_s10  ;;  %v4687_v20 = vld [vmem:[#allocation3 + $0x2d1] sm:$0xff] }
 0x34a   :  { %3654 = vrot.lane.b32.xlu1 %v8728_v46, %s6650_s10  ;;  %v4685_v50 = vld [vmem:[#allocation3 + $0x2b9] sm:$0xff]  ;;  %v3151_v17 = vld [vmem:[#allocation3 + $0x2d0] sm:$0xff] }
 0x34b   :  { %v4943_v1 = vld [vmem:[#allocation3 + $0x2d2] sm:$0xff]  ;;  %v4944_v10 = vld [vmem:[#allocation3 + $0x2da] sm:$0xff]  ;;  %v4255_v2 = vpop.permute.xlu0 %4254 }
 0x34c   :  { %v8886_v8 = vpack.c.bf16 %v4944_v10, %v4943_v1  ;;  %v4941_v11 = vld [vmem:[#allocation3 + $0x2ba] sm:$0xff]  ;;  %v4942_v48 = vld [vmem:[#allocation3 + $0x2c2] sm:$0xff]  ;;  %4348 = vst.msk [vmem:[#allocation5 + $0x38] sm:$0xff] %vm3447_vm0, %v4255_v2  ;;  %v3356_v15 = vpop.permute.xlu1 %3355 }
 0x34d   :  { %v3149_v49 = vld [vmem:[#allocation3 + $0x2b8] sm:$0xff]  ;;  %v8890_v54 = vpack.c.bf16 %v4942_v48, %v4941_v11  ;;  %v4686_v7 = vld [vmem:[#allocation3 + $0x2c1] sm:$0xff]  ;;  %3450 = vst.msk [vmem:[#allocation5 + $0x30] sm:$0xff] %vm3447_vm0, %v3356_v15  ;;  %4809 = vrot.lane.b32.xlu0 %v8888_v14, %s6651_s1  ;;  %v4431_v48 = vld [vmem:[#allocation3 + $0x2d0] sm:$0xff] }
 0x34e   :  { %v4688_v16 = vld [vmem:[#allocation3 + $0x2d9] sm:$0xff]  ;;  %5013 = vst.msk [vmem:[#allocation5 + $0x280] sm:$0xff] %vm115_vm13, %v8886_v8  ;;  %v8898_v46 = vpack.c.bf16 %v4686_v7, %v4685_v50  ;;  %3911 = vrot.lane.b32.xlu1 %v8844_v12, %s6651_s1 }
 0x34f   :  { %v3150_v58 = vld [vmem:[#allocation3 + $0x2c0] sm:$0xff]  ;;  %v8900_v32 = vpack.c.bf16 %v4688_v16, %v4687_v20  ;;  %v3152_v21 = vld [vmem:[#allocation3 + $0x2d8] sm:$0xff]  ;;  %5012 = vst.msk [vmem:[#allocation5 + $0x268] sm:$0xff] %vm115_vm13, %v8890_v54  ;;  %v4512_v57 = vpop.permute.xlu0 %4511 }
 0x350   :  { %v3186_v53 = vpack.c.bf16 %v3150_v58, %v3149_v49  ;;  %v3187_v22 = vpack.c.bf16 %v3152_v21, %v3151_v17  ;;  %v5062_v13 = vld [vmem:[#allocation5 + $0x158] sm:$0xff]  ;;  %4116 = vst.msk [vmem:[#allocation5 + $0x278] sm:$0xff] %vm115_vm13, %v8898_v46  ;;  %v3613_v44 = vpop.permute.xlu1 %3612  ;;  %v5061_v23 = vld [vmem:[#allocation5 + $0x150] sm:$0xff]  ;;  %v4430_v35 = vld [vmem:[#allocation3 + $0x2c0] sm:$0xff] }
 0x351   :  { %4117 = vst.msk [vmem:[#allocation5 + $0x290] sm:$0xff] %vm115_vm13, %v8900_v32  ;;  %5506 = vmatprep.mubr.bf16.mxu1 %v5062_v13  ;;  %4298 = vrot.lane.b32.xlu0 %v8808_v31, %s6648_s12  ;;  %v4429_v5 = vld [vmem:[#allocation3 + $0x2b8] sm:$0xff]  ;;  %v5027_v1 = vld [vmem:[#allocation5 + $0x40] sm:$0xff] }
 0x352   :  { %3218 = vst.msk [vmem:[#allocation5 + $0x288] sm:$0xff] %vm115_vm13, %v3186_v53  ;;  %3219 = vst.msk [vmem:[#allocation5 + $0x2a0] sm:$0xff] %vm115_vm13, %v3187_v22  ;;  %5507 = vmatmul.mubr.bf16.gmra.mrb[44].mxu1 %v5061_v23  ;;  %3399 = vrot.lane.b32.xlu1 %v8855_v40, %s6648_s12  ;;  %v5021_v40 = vld [vmem:[#allocation5 + $0x10] sm:$0xff]  ;;  %v8941_v47 = vpack.c.bf16 %v4430_v35, %v4429_v5  ;;  %v4432_v11 = vld [vmem:[#allocation3 + $0x2d8] sm:$0xff] }
 0x353   :  { %4605 = vst.msk [vmem:[#allocation5 + $0x38] sm:$0xff] %vm3704_vm1, %v4512_v57  ;;  %3707 = vst.msk [vmem:[#allocation5 + $0x30] sm:$0xff] %vm3704_vm1, %v3613_v44  ;;  %v4768_v28 = vpop.permute.xlu0 %4767  ;;  %v5030_v15 = vld [vmem:[#allocation5 + $0x58] sm:$0xff]  ;;  %v8969_v57 = vpack.c.bf16 %v4432_v11, %v4431_v48  ;;  %v5039_v35 = vld [vmem:[#allocation5 + $0xa0] sm:$0xff] }
 0x354   :  { %4861 = vst.msk [vmem:[#allocation5 + $0x38] sm:$0xff] %vm3961_vm2, %v4768_v28  ;;  %v3870_v12 = vpop.permute.xlu1 %3869 }
 0x355   :  { %3964 = vst.msk [vmem:[#allocation5 + $0x30] sm:$0xff] %vm3961_vm2, %v3870_v12  ;;  %4555 = vrot.lane.b32.xlu0 %v4467_v29, %s6650_s10  ;;  %v5033_v12 = vld [vmem:[#allocation5 + $0x70] sm:$0xff] }
 0x356   :  { %3656 = vrot.lane.b32.xlu1 %v8724_v42, %s6650_s10 }
 0x357   :  { %v4281_v4 = vpop.permute.xlu0 %4280 }
 0x358   :  { %4361 = vst.msk [vmem:[#allocation5 + $0x170] sm:$0xff] %vm3447_vm0, %v4281_v4  ;;  %v3382_v37 = vpop.permute.xlu1 %3381 }
 0x359   :  { %3463 = vst.msk [vmem:[#allocation5 + $0x168] sm:$0xff] %vm3447_vm0, %v3382_v37  ;;  %4811 = vrot.lane.b32.xlu0 %v8923_v62, %s6651_s1 }
 0x35a   :  { %3913 = vrot.lane.b32.xlu1 %v8878_v3, %s6651_s1 }
 0x35b   :  { %v4538_v33 = vpop.permute.xlu0 %4537  ;;  %v5026_v19 = vld [vmem:[#allocation5 + $0x38] sm:$0xff] }
 0x35c   :  { %4618 = vst.msk [vmem:[#allocation5 + $0x170] sm:$0xff] %vm3704_vm1, %v4538_v33  ;;  %v3639_v18 = vpop.permute.xlu1 %3638  ;;  %5410 = vmatprep.mubr.bf16.mxu0 %v5026_v19  ;;  %v5025_v25 = vld [vmem:[#allocation5 + $0x30] sm:$0xff] }
 0x35d   :  { %v6474_v42 = vpop.f32.mrb[56].mxu0  ;;  %3720 = vst.msk [vmem:[#allocation5 + $0x168] sm:$0xff] %vm3704_vm1, %v3639_v18  ;;  %4300 = vrot.lane.b32.xlu0 %v8806_v39, %s6648_s12  ;;  %5411 = vmatmul.mubr.bf16.gmra.mrb[72].mxu0 %v5025_v25  ;;  %v5036_v25 = vld [vmem:[#allocation5 + $0x88] sm:$0xff] }
 0x35e   :  { %v2944_v38 = vadd.f32 %v8860_v27, %v6474_v42  ;;  %v2935_v30 = vpop.f32.mrb[57].mxu0  ;;  %3401 = vrot.lane.b32.xlu1 %v8888_v14, %s6648_s12  ;;  %6484 = vmatprep.mubr.msk.bf16.mxu0 %vm115_vm13, %v5021_v40 }
 0x35f   :  { %v2936_v51 = vadd.f32 %v8860_v27, %v2935_v30  ;;  %v6475_v56 = vpop.f32.mrb[58].mxu0  ;;  %v4794_v61 = vpop.permute.xlu0 %4793 }
 0x360   :  { %v3024_v60 = vmax.f32 %v2944_v38, 0.0  ;;  %v2947_v45 = vadd.f32 %v8860_v27, %v6475_v56  ;;  %v2938_v59 = vpop.f32.mrb[59].mxu0  ;;  %4874 = vst.msk [vmem:[#allocation5 + $0x170] sm:$0xff] %vm3961_vm2, %v4794_v61  ;;  %v3896_v41 = vpop.permute.xlu1 %3895 }
 0x361   :  { %v3022_v63 = vmax.f32 %v2936_v51, 0.0  ;;  %v2939_v36 = vadd.f32 %v8860_v27, %v2938_v59  ;;  %3977 = vst.msk [vmem:[#allocation5 + $0x168] sm:$0xff] %vm3961_vm2, %v3896_v41  ;;  %4557 = vrot.lane.b32.xlu0 %v8941_v47, %s6650_s10  ;;  %v5042_v59 = vld [vmem:[#allocation5 + $0xb8] sm:$0xff] }
 0x362   :  { %3089 = vst.msk [vmem:[#allocation3 + $0x301] sm:$0xff] %vm115_vm13, %v3024_v60  ;;  %v3025_v55 = vmax.f32 %v2947_v45, 0.0  ;;  %3658 = vrot.lane.b32.xlu1 %v8808_v31, %s6650_s10 }
 0x363   :  { %3087 = vst.msk [vmem:[#allocation3 + $0x2e9] sm:$0xff] %vm115_vm13, %v3022_v63  ;;  %v3023_v3 = vmax.f32 %v2939_v36, 0.0  ;;  %v4283_v26 = vpop.permute.xlu0 %4282 }
 0x364   :  { %3090 = vst.msk [vmem:[#allocation3 + $0x309] sm:$0xff] %vm115_vm13, %v3025_v55  ;;  %v3384_v6 = vpop.permute.xlu1 %3383 }
 0x365   :  { %3088 = vst.msk [vmem:[#allocation3 + $0x2f1] sm:$0xff] %vm115_vm13, %v3023_v3  ;;  %4813 = vrot.lane.b32.xlu0 %v8898_v46, %s6651_s1  ;;  %6485 = vmatmul.mubr.msk.bf16.vlgmr.msra.gmra.mrb[76].mxu0 %vm115_vm13, %v5024_v52 }
 0x366   :  { %4362 = vst.msk [vmem:[#allocation5 + $0x188] sm:$0xff] %vm3447_vm0, %v4283_v26  ;;  %3464 = vst.msk [vmem:[#allocation5 + $0x180] sm:$0xff] %vm3447_vm0, %v3384_v6  ;;  %3915 = vrot.lane.b32.xlu1 %v4467_v29, %s6651_s1  ;;  %6488 = vmatprep.mubr.msk.bf16.mxu0 %vm115_vm13, %v5027_v1 }
 0x367   :  { %v4540_v31 = vpop.permute.xlu0 %4539  ;;  %v5065_v10 = vld [vmem:[#allocation5 + $0x170] sm:$0xff] }
 0x368   :  { %4619 = vst.msk [vmem:[#allocation5 + $0x188] sm:$0xff] %vm3704_vm1, %v4540_v31  ;;  %5514 = vmatprep.mubr.bf16.mxu1 %v5065_v10  ;;  %v3641_v50 = vpop.permute.xlu1 %3640  ;;  %v5064_v20 = vld [vmem:[#allocation5 + $0x168] sm:$0xff] }
 0x369   :  { %3721 = vst.msk [vmem:[#allocation5 + $0x180] sm:$0xff] %vm3704_vm1, %v3641_v50  ;;  %4302 = vrot.lane.b32.xlu0 %v8890_v54, %s6648_s12  ;;  %5515 = vmatmul.mubr.bf16.gmra.mrb[48].mxu1 %v5064_v20  ;;  %v4435_v2 = vld [vmem:[#allocation3 + $0x300] sm:$0xff]  ;;  %v5048_v20 = vld [vmem:[#allocation5 + $0xe8] sm:$0xff] }
 0x36a   :  { %3403 = vrot.lane.b32.xlu1 %v8923_v62, %s6648_s12  ;;  %v4689_v7 = vld [vmem:[#allocation3 + $0x2e9] sm:$0xff]  ;;  %v4691_v58 = vld [vmem:[#allocation3 + $0x301] sm:$0xff] }
 0x36b   :  { %v4947_v14 = vld [vmem:[#allocation3 + $0x302] sm:$0xff]  ;;  %v4948_v49 = vld [vmem:[#allocation3 + $0x30a] sm:$0xff]  ;;  %v4796_v22 = vpop.permute.xlu0 %4795 }
 0x36c   :  { %v4436_v16 = vld [vmem:[#allocation3 + $0x308] sm:$0xff]  ;;  %v8967_v53 = vpack.c.bf16 %v4948_v49, %v4947_v14  ;;  %v4946_v21 = vld [vmem:[#allocation3 + $0x2f2] sm:$0xff]  ;;  %4875 = vst.msk [vmem:[#allocation5 + $0x188] sm:$0xff] %vm3961_vm2, %v4796_v22  ;;  %v3898_v24 = vpop.permute.xlu1 %3897 }
 0x36d   :  { %v4945_v17 = vld [vmem:[#allocation3 + $0x2ea] sm:$0xff]  ;;  %v8971_v13 = vpack.c.bf16 %v4436_v16, %v4435_v2  ;;  %3978 = vst.msk [vmem:[#allocation5 + $0x180] sm:$0xff] %vm3961_vm2, %v3898_v24  ;;  %4559 = vrot.lane.b32.xlu0 %v8969_v57, %s6650_s10  ;;  %6489 = vmatmul.mubr.msk.bf16.gmra.mrb[80].mxu0 %vm115_vm13, %v5030_v15 }
 0x36e   :  { %v3153_v44 = vld [vmem:[#allocation3 + $0x2e8] sm:$0xff]  ;;  %v8973_v23 = vpack.c.bf16 %v4946_v21, %v4945_v17  ;;  %v4690_v9 = vld [vmem:[#allocation3 + $0x2f1] sm:$0xff]  ;;  %5015 = vst.msk [vmem:[#allocation5 + $0x2b0] sm:$0xff] %vm115_vm13, %v8967_v53  ;;  %3660 = vrot.lane.b32.xlu1 %v8806_v39, %s6650_s10  ;;  %6492 = vmatprep.mubr.msk.bf16.mxu0 %vm115_vm13, %v5033_v12 }
 0x36f   :  { %v4692_v28 = vld [vmem:[#allocation3 + $0x309] sm:$0xff]  ;;  %v8982_v34 = vpack.c.bf16 %v4690_v9, %v4689_v7  ;;  %3221 = vst.msk [vmem:[#allocation5 + $0x2d0] sm:$0xff] %vm115_vm13, %v8971_v13  ;;  %v4285_v62 = vpop.permute.xlu0 %4284 }
 0x370   :  { %v3154_v29 = vld [vmem:[#allocation3 + $0x2f0] sm:$0xff]  ;;  %v8984_v43 = vpack.c.bf16 %v4692_v28, %v4691_v58  ;;  %5014 = vst.msk [vmem:[#allocation5 + $0x298] sm:$0xff] %vm115_vm13, %v8973_v23  ;;  %v3386_v37 = vpop.permute.xlu1 %3385  ;;  %v4433_v38 = vld [vmem:[#allocation3 + $0x2e8] sm:$0xff] }
 0x371   :  { %v3188_v4 = vpack.c.bf16 %v3154_v29, %v3153_v44  ;;  %4118 = vst.msk [vmem:[#allocation5 + $0x2a8] sm:$0xff] %vm115_vm13, %v8982_v34  ;;  %4815 = vrot.lane.b32.xlu0 %v8900_v32, %s6651_s1  ;;  %v4434_v18 = vld [vmem:[#allocation3 + $0x2f0] sm:$0xff] }
 0x372   :  { %4119 = vst.msk [vmem:[#allocation5 + $0x2c0] sm:$0xff] %vm115_vm13, %v8984_v43  ;;  %3917 = vrot.lane.b32.xlu1 %v8941_v47, %s6651_s1  ;;  %v4470_v40 = vpack.c.bf16 %v4434_v18, %v4433_v38 }
 0x373   :  { %3220 = vst.msk [vmem:[#allocation5 + $0x2b8] sm:$0xff] %vm115_vm13, %v3188_v4  ;;  %v4542_v39 = vpop.permute.xlu0 %4541  ;;  %v5068_v33 = vld [vmem:[#allocation5 + $0x188] sm:$0xff]  ;;  %v5054_v4 = vld [vmem:[#allocation5 + $0x118] sm:$0xff] }
 0x374   :  { %4363 = vst.msk [vmem:[#allocation5 + $0x1a0] sm:$0xff] %vm3447_vm0, %v4285_v62  ;;  %3465 = vst.msk [vmem:[#allocation5 + $0x198] sm:$0xff] %vm3447_vm0, %v3386_v37  ;;  %5522 = vmatprep.mubr.bf16.mxu1 %v5068_v33  ;;  %v3643_v19 = vpop.permute.xlu1 %3642  ;;  %v5067_v42 = vld [vmem:[#allocation5 + $0x180] sm:$0xff] }
 0x375   :  { %4620 = vst.msk [vmem:[#allocation5 + $0x1a0] sm:$0xff] %vm3704_vm1, %v4542_v39  ;;  %3722 = vst.msk [vmem:[#allocation5 + $0x198] sm:$0xff] %vm3704_vm1, %v3643_v19  ;;  %4304 = vrot.lane.b32.xlu0 %v8886_v8, %s6648_s12  ;;  %5523 = vmatmul.mubr.bf16.gmra.mrb[52].mxu1 %v5067_v42  ;;  %v5057_v19 = vld [vmem:[#allocation5 + $0x130] sm:$0xff] }
 0x376   :  { %6493 = vmatmul.mubr.msk.bf16.gmra.mrb[84].mxu0 %vm115_vm13, %v5036_v25  ;;  %3405 = vrot.lane.b32.xlu1 %v8898_v46, %s6648_s12 }
 0x377   :  { %6496 = vmatprep.mubr.msk.bf16.mxu0 %vm115_vm13, %v5039_v35  ;;  %v4798_v30 = vpop.permute.xlu0 %4797 }
 0x378   :  { %4876 = vst.msk [vmem:[#allocation5 + $0x1a0] sm:$0xff] %vm3961_vm2, %v4798_v30  ;;  %v3900_v51 = vpop.permute.xlu1 %3899 }
 0x379   :  { %3979 = vst.msk [vmem:[#allocation5 + $0x198] sm:$0xff] %vm3961_vm2, %v3900_v51  ;;  %4561 = vrot.lane.b32.xlu0 %v4470_v40, %s6650_s10 }
 0x37a   :  { %3662 = vrot.lane.b32.xlu1 %v8890_v54, %s6650_s10  ;;  %v5045_v54 = vld [vmem:[#allocation5 + $0xd0] sm:$0xff] }
 0x37b   :  { %v4287_v56 = vpop.permute.xlu0 %4286 }
 0x37c   :  { %4364 = vst.msk [vmem:[#allocation5 + $0x1b8] sm:$0xff] %vm3447_vm0, %v4287_v56  ;;  %v3388_v5 = vpop.permute.xlu1 %3387 }
 0x37d   :  { %v6478_v46 = vpop.f32.mrb[60].mxu0  ;;  %3466 = vst.msk [vmem:[#allocation5 + $0x1b0] sm:$0xff] %vm3447_vm0, %v3388_v5  ;;  %4817 = vrot.lane.b32.xlu0 %v8982_v34, %s6651_s1 }
 0x37e   :  { %v2960_v60 = vadd.f32 %v8860_v27, %v6478_v46  ;;  %v2951_v45 = vpop.f32.mrb[61].mxu0  ;;  %6497 = vmatmul.mubr.msk.bf16.gmra.mrb[88].mxu0 %vm115_vm13, %v5042_v59  ;;  %3919 = vrot.lane.b32.xlu1 %v8969_v57, %s6651_s1 }
 0x37f   :  { %v2952_v61 = vadd.f32 %v8860_v27, %v2951_v45  ;;  %v6479_v47 = vpop.f32.mrb[62].mxu0  ;;  %6500 = vmatprep.mubr.msk.bf16.mxu0 %vm115_vm13, %v5045_v54  ;;  %v4544_v55 = vpop.permute.xlu0 %4543  ;;  %v5071_v3 = vld [vmem:[#allocation5 + $0x1a0] sm:$0xff]  ;;  %v5066_v54 = vld [vmem:[#allocation5 + $0x178] sm:$0xff] }
 0x380   :  { %v3028_v63 = vmax.f32 %v2960_v60, 0.0  ;;  %v2963_v36 = vadd.f32 %v8860_v27, %v6479_v47  ;;  %v2954_v41 = vpop.f32.mrb[63].mxu0  ;;  %4621 = vst.msk [vmem:[#allocation5 + $0x1b8] sm:$0xff] %vm3704_vm1, %v4544_v55  ;;  %5530 = vmatprep.mubr.bf16.mxu1 %v5071_v3  ;;  %v3645_v52 = vpop.permute.xlu1 %3644  ;;  %v5070_v1 = vld [vmem:[#allocation5 + $0x198] sm:$0xff] }
 0x381   :  { %v3026_v26 = vmax.f32 %v2952_v61, 0.0  ;;  %v2955_v6 = vadd.f32 %v8860_v27, %v2954_v41  ;;  %3723 = vst.msk [vmem:[#allocation5 + $0x1b0] sm:$0xff] %vm3704_vm1, %v3645_v52  ;;  %4306 = vrot.lane.b32.xlu0 %v8973_v23, %s6648_s12  ;;  %5531 = vmatmul.mubr.bf16.gmra.mrb[56].mxu1 %v5070_v1 }
 0x382   :  { %3093 = vst.msk [vmem:[#allocation3 + $0x331] sm:$0xff] %vm115_vm13, %v3028_v63  ;;  %v3029_v31 = vmax.f32 %v2963_v36, 0.0  ;;  %3407 = vrot.lane.b32.xlu1 %v8900_v32, %s6648_s12  ;;  %v5051_v32 = vld [vmem:[#allocation5 + $0x100] sm:$0xff]  ;;  %v4953_v63 = vld [vmem:[#allocation3 + $0x34a] sm:$0xff]  ;;  %v4954_v36 = vld [vmem:[#allocation3 + $0x352] sm:$0xff] }
 0x383   :  { %3091 = vst.msk [vmem:[#allocation3 + $0x319] sm:$0xff] %vm115_vm13, %v3026_v26  ;;  %v3027_v10 = vmax.f32 %v2955_v6, 0.0  ;;  %v4800_v27 = vpop.permute.xlu0 %4799  ;;  %v4986_v55 = vpack.c.bf16 %v4954_v36, %v4953_v63  ;;  %v5096_v63 = vld [vmem:[#allocation5 + $0x268] sm:$0xff] }
 0x384   :  { %3094 = vst.msk [vmem:[#allocation3 + $0x339] sm:$0xff] %vm115_vm13, %v3029_v31  ;;  %v3902_v50 = vpop.permute.xlu1 %3901  ;;  %v4442_v31 = vld [vmem:[#allocation3 + $0x350] sm:$0xff] }
 0x385   :  { %3092 = vst.msk [vmem:[#allocation3 + $0x321] sm:$0xff] %vm115_vm13, %v3027_v10  ;;  %4563 = vrot.lane.b32.xlu0 %v8971_v13, %s6650_s10  ;;  %5018 = vst.msk [vmem:[#allocation5 + $0x2f8] sm:$0xff] %vm115_vm13, %v4986_v55 }
 0x386   :  { %4877 = vst.msk [vmem:[#allocation5 + $0x1b8] sm:$0xff] %vm3961_vm2, %v4800_v27  ;;  %3980 = vst.msk [vmem:[#allocation5 + $0x1b0] sm:$0xff] %vm3961_vm2, %v3902_v50  ;;  %6501 = vmatmul.mubr.msk.bf16.gmra.mrb[92].mxu0 %vm115_vm13, %v5048_v20  ;;  %3664 = vrot.lane.b32.xlu1 %v8886_v8, %s6650_s10 }
 0x387   :  { %6504 = vmatprep.mubr.msk.bf16.mxu0 %vm115_vm13, %v5051_v32  ;;  %v4289_v11 = vpop.permute.xlu0 %4288 }
 0x388   :  { %4365 = vst.msk [vmem:[#allocation5 + $0x1d0] sm:$0xff] %vm3447_vm0, %v4289_v11  ;;  %v3390_v2 = vpop.permute.xlu1 %3389  ;;  %v5072_v11 = vld [vmem:[#allocation5 + $0x1a8] sm:$0xff] }
 0x389   :  { %v9048_v48 = vpop.f32.mrb[0].mxu1  ;;  %3467 = vst.msk [vmem:[#allocation5 + $0x1c8] sm:$0xff] %vm3447_vm0, %v3390_v2  ;;  %4819 = vrot.lane.b32.xlu0 %v8984_v43, %s6651_s1  ;;  %v4695_v39 = vld [vmem:[#allocation3 + $0x331] sm:$0xff] }
 0x38a   :  { %v5422_v14 = vpop.f32.mrb[1].mxu1  ;;  %3921 = vrot.lane.b32.xlu1 %v4470_v40, %s6651_s1  ;;  %v4437_v8 = vld [vmem:[#allocation3 + $0x318] sm:$0xff]  ;;  %v5060_v40 = vld [vmem:[#allocation5 + $0x148] sm:$0xff] }
 0x38b   :  { %v4951_v49 = vld [vmem:[#allocation3 + $0x332] sm:$0xff]  ;;  %v4952_v15 = vld [vmem:[#allocation3 + $0x33a] sm:$0xff]  ;;  %v9053_v7 = vpop.f32.mrb[2].mxu1  ;;  %v4546_v57 = vpop.permute.xlu0 %4545 }
 0x38c   :  { %v4693_v16 = vld [vmem:[#allocation3 + $0x319] sm:$0xff]  ;;  %v9056_v58 = vpack.c.bf16 %v4952_v15, %v4951_v49  ;;  %v4950_v21 = vld [vmem:[#allocation3 + $0x322] sm:$0xff]  ;;  %v5425_v22 = vpop.f32.mrb[3].mxu1  ;;  %4622 = vst.msk [vmem:[#allocation5 + $0x1d0] sm:$0xff] %vm3704_vm1, %v4546_v57  ;;  %v3647_v9 = vpop.permute.xlu1 %3646  ;;  %v4698_v15 = vld [vmem:[#allocation3 + $0x351] sm:$0xff] }
 0x38d   :  { %v4949_v17 = vld [vmem:[#allocation3 + $0x31a] sm:$0xff]  ;;  %v5073_v28 = vld [vmem:[#allocation5 + $0x1b0] sm:$0xff]  ;;  %3724 = vst.msk [vmem:[#allocation5 + $0x1c8] sm:$0xff] %vm3704_vm1, %v3647_v9  ;;  %4308 = vrot.lane.b32.xlu0 %v8967_v53, %s6648_s12 }
 0x38e   :  { %v5074_v44 = vld [vmem:[#allocation5 + $0x1b8] sm:$0xff]  ;;  %v9058_v24 = vpack.c.bf16 %v4950_v21, %v4949_v17  ;;  %v4438_v29 = vld [vmem:[#allocation3 + $0x320] sm:$0xff]  ;;  %5017 = vst.msk [vmem:[#allocation5 + $0x2e0] sm:$0xff] %vm115_vm13, %v9056_v58  ;;  %6505 = vmatmul.mubr.msk.bf16.gmra.mrb[96].mxu0 %vm115_vm13, %v5054_v4  ;;  %3409 = vrot.lane.b32.xlu1 %v8982_v34, %s6648_s12  ;;  %v4697_v49 = vld [vmem:[#allocation3 + $0x349] sm:$0xff] }
 0x38f   :  { %5538 = vmatprep.mubr.bf16.mxu1 %v5074_v44  ;;  %v4694_v12 = vld [vmem:[#allocation3 + $0x321] sm:$0xff]  ;;  %v9066_v62 = vpack.c.bf16 %v4438_v29, %v4437_v8  ;;  %v4696_v33 = vld [vmem:[#allocation3 + $0x339] sm:$0xff]  ;;  %6508 = vmatprep.mubr.msk.bf16.mxu0 %vm115_vm13, %v5057_v19  ;;  %v4802_v18 = vpop.permute.xlu0 %4801 }
 0x390   :  { %5539 = vmatmul.mubr.bf16.gmra.mrb[60].mxu1 %v5073_v28  ;;  %v9068_v37 = vpack.c.bf16 %v4694_v12, %v4693_v16  ;;  %5016 = vst.msk [vmem:[#allocation5 + $0x2c8] sm:$0xff] %vm115_vm13, %v9058_v24  ;;  %v4729_v42 = vpack.c.bf16 %v4696_v33, %v4695_v39  ;;  %v3904_v25 = vpop.permute.xlu1 %3903  ;;  %v4440_v59 = vld [vmem:[#allocation3 + $0x338] sm:$0xff]  ;;  %v5075_v14 = vld [vmem:[#allocation5 + $0x1c0] sm:$0xff]  ;;  %v5081_v28 = vld [vmem:[#allocation5 + $0x1f0] sm:$0xff] }
 0x391   :  { %3222 = vst.msk [vmem:[#allocation5 + $0x2e8] sm:$0xff] %vm115_vm13, %v9066_v62  ;;  %4565 = vrot.lane.b32.xlu0 %v9066_v62, %s6650_s10  ;;  %v5078_v44 = vld [vmem:[#allocation5 + $0x1d8] sm:$0xff]  ;;  %v5084_v33 = vld [vmem:[#allocation5 + $0x208] sm:$0xff]  ;;  %v5087_v19 = vld [vmem:[#allocation5 + $0x220] sm:$0xff] }
 0x392   :  { %4120 = vst.msk [vmem:[#allocation5 + $0x2d8] sm:$0xff] %vm115_vm13, %v9068_v37  ;;  %4121 = vst.msk [vmem:[#allocation5 + $0x2f0] sm:$0xff] %vm115_vm13, %v4729_v42  ;;  %3666 = vrot.lane.b32.xlu1 %v8973_v23, %s6650_s10  ;;  %v5063_v23 = vld [vmem:[#allocation5 + $0x160] sm:$0xff] }
 0x393   :  { %4878 = vst.msk [vmem:[#allocation5 + $0x1d0] sm:$0xff] %vm3961_vm2, %v4802_v18  ;;  %3981 = vst.msk [vmem:[#allocation5 + $0x1c8] sm:$0xff] %vm3961_vm2, %v3904_v25  ;;  %v4291_v34 = vpop.permute.xlu0 %4290 }
 0x394   :  { %4366 = vst.msk [vmem:[#allocation5 + $0x1e8] sm:$0xff] %vm3447_vm0, %v4291_v34  ;;  %v9088_v35 = vpop.f32.mrb[4].mxu1  ;;  %v3392_v38 = vpop.permute.xlu1 %3391 }
 0x395   :  { %3468 = vst.msk [vmem:[#allocation5 + $0x1e0] sm:$0xff] %vm3447_vm0, %v3392_v38  ;;  %v5430_v30 = vpop.f32.mrb[5].mxu1  ;;  %4821 = vrot.lane.b32.xlu0 %v9068_v37, %s6651_s1 }
 0x396   :  { %6509 = vmatmul.mubr.msk.bf16.gmra.mrb[100].mxu0 %vm115_vm13, %v5060_v40  ;;  %v9094_v51 = vpop.f32.mrb[6].mxu1  ;;  %3923 = vrot.lane.b32.xlu1 %v8971_v13, %s6651_s1  ;;  %v4439_v13 = vld [vmem:[#allocation3 + $0x330] sm:$0xff] }
 0x397   :  { %6512 = vmatprep.mubr.msk.bf16.mxu0 %vm115_vm13, %v5063_v23  ;;  %v5433_v56 = vpop.f32.mrb[7].mxu1  ;;  %v4548_v46 = vpop.permute.xlu0 %4547  ;;  %v4473_v47 = vpack.c.bf16 %v4440_v59, %v4439_v13 }
 0x398   :  { %4623 = vst.msk [vmem:[#allocation5 + $0x1e8] sm:$0xff] %vm3704_vm1, %v4548_v46  ;;  %v3649_v60 = vpop.permute.xlu1 %3648 }
 0x399   :  { %3725 = vst.msk [vmem:[#allocation5 + $0x1e0] sm:$0xff] %vm3704_vm1, %v3649_v60  ;;  %4310 = vrot.lane.b32.xlu0 %v9058_v24, %s6648_s12  ;;  %v5093_v60 = vld [vmem:[#allocation5 + $0x250] sm:$0xff] }
 0x39a   :  { %v5077_v5 = vld [vmem:[#allocation5 + $0x1d0] sm:$0xff]  ;;  %v5076_v45 = vld [vmem:[#allocation5 + $0x1c8] sm:$0xff]  ;;  %3411 = vrot.lane.b32.xlu1 %v8984_v43, %s6648_s12 }
 0x39b   :  { %5546 = vmatprep.mubr.bf16.mxu1 %v5077_v5  ;;  %v4804_v61 = vpop.permute.xlu0 %4803  ;;  %v5069_v43 = vld [vmem:[#allocation5 + $0x190] sm:$0xff]  ;;  %v5090_v5 = vld [vmem:[#allocation5 + $0x238] sm:$0xff] }
 0x39c   :  { %5547 = vmatmul.mubr.bf16.gmra.mrb[64].mxu1 %v5076_v45  ;;  %4879 = vst.msk [vmem:[#allocation5 + $0x1e8] sm:$0xff] %vm3961_vm2, %v4804_v61  ;;  %v3906_v41 = vpop.permute.xlu1 %3905 }
 0x39d   :  { %3982 = vst.msk [vmem:[#allocation5 + $0x1e0] sm:$0xff] %vm3961_vm2, %v3906_v41  ;;  %4567 = vrot.lane.b32.xlu0 %v4473_v47, %s6650_s10  ;;  %v5099_v41 = vld [vmem:[#allocation5 + $0x280] sm:$0xff] }
 0x39e   :  { %6513 = vmatmul.mubr.msk.bf16.gmra.mrb[104].mxu0 %vm115_vm13, %v5066_v54  ;;  %3668 = vrot.lane.b32.xlu1 %v8967_v53, %s6650_s10  ;;  %v4441_v53 = vld [vmem:[#allocation3 + $0x348] sm:$0xff] }
 0x39f   :  { %6516 = vmatprep.mubr.msk.bf16.mxu0 %vm115_vm13, %v5069_v43  ;;  %v4293_v3 = vpop.permute.xlu0 %4292  ;;  %v4474_v2 = vpack.c.bf16 %v4442_v31, %v4441_v53 }
 0x3a0   :  { %4367 = vst.msk [vmem:[#allocation5 + $0x200] sm:$0xff] %vm3447_vm0, %v4293_v3  ;;  %v3394_v6 = vpop.permute.xlu1 %3393 }
 0x3a1   :  { %3469 = vst.msk [vmem:[#allocation5 + $0x1f8] sm:$0xff] %vm3447_vm0, %v3394_v6  ;;  %4823 = vrot.lane.b32.xlu0 %v4729_v42, %s6651_s1 }
 0x3a2   :  { %v9114_v26 = vpop.f32.mrb[8].mxu1  ;;  %3925 = vrot.lane.b32.xlu1 %v9066_v62, %s6651_s1 }
 0x3a3   :  { %v5438_v52 = vpop.f32.mrb[9].mxu1  ;;  %v4550_v27 = vpop.permute.xlu0 %4549  ;;  %v5080_v50 = vld [vmem:[#allocation5 + $0x1e8] sm:$0xff] }
 0x3a4   :  { %v9118_v1 = vpop.f32.mrb[10].mxu1  ;;  %4624 = vst.msk [vmem:[#allocation5 + $0x200] sm:$0xff] %vm3704_vm1, %v4550_v27  ;;  %5554 = vmatprep.mubr.bf16.mxu1 %v5080_v50  ;;  %v3651_v20 = vpop.permute.xlu1 %3650  ;;  %v5079_v32 = vld [vmem:[#allocation5 + $0x1e0] sm:$0xff]  ;;  %v5105_v27 = vld [vmem:[#allocation5 + $0x2b0] sm:$0xff] }
 0x3a5   :  { %v5441_v10 = vpop.f32.mrb[11].mxu1  ;;  %3726 = vst.msk [vmem:[#allocation5 + $0x1f8] sm:$0xff] %vm3704_vm1, %v3651_v20  ;;  %4312 = vrot.lane.b32.xlu0 %v9056_v58, %s6648_s12  ;;  %5555 = vmatmul.mubr.bf16.gmra.mrb[68].mxu1 %v5079_v32  ;;  %v4730_v58 = vpack.c.bf16 %v4698_v15, %v4697_v49 }
 0x3a6   :  { %6517 = vmatmul.mubr.msk.bf16.gmra.mrb[108].mxu0 %vm115_vm13, %v5072_v11  ;;  %3413 = vrot.lane.b32.xlu1 %v9068_v37, %s6648_s12  ;;  %v5102_v10 = vld [vmem:[#allocation5 + $0x298] sm:$0xff] }
 0x3a7   :  { %6520 = vmatprep.mubr.msk.bf16.mxu0 %vm115_vm13, %v5075_v14  ;;  %v4806_v8 = vpop.permute.xlu0 %4805 }
 0x3a8   :  { %4880 = vst.msk [vmem:[#allocation5 + $0x200] sm:$0xff] %vm3961_vm2, %v4806_v8  ;;  %v3908_v16 = vpop.permute.xlu1 %3907 }
 0x3a9   :  { %3983 = vst.msk [vmem:[#allocation5 + $0x1f8] sm:$0xff] %vm3961_vm2, %v3908_v16  ;;  %4569 = vrot.lane.b32.xlu0 %v4474_v2, %s6650_s10 }
 0x3aa   :  { %3670 = vrot.lane.b32.xlu1 %v9058_v24, %s6650_s10 }
 0x3ab   :  { %v4295_v17 = vpop.permute.xlu0 %4294 }
 0x3ac   :  { %4368 = vst.msk [vmem:[#allocation5 + $0x218] sm:$0xff] %vm3447_vm0, %v4295_v17  ;;  %v9136_v21 = vpop.f32.mrb[12].mxu1  ;;  %v3396_v22 = vpop.permute.xlu1 %3395  ;;  %v5111_v17 = vld [vmem:[#allocation5 + $0x2e0] sm:$0xff] }
 0x3ad   :  { %3470 = vst.msk [vmem:[#allocation5 + $0x210] sm:$0xff] %vm3447_vm0, %v3396_v22  ;;  %v5446_v57 = vpop.f32.mrb[13].mxu1  ;;  %4825 = vrot.lane.b32.xlu0 %v4730_v58, %s6651_s1  ;;  %v5108_v58 = vld [vmem:[#allocation5 + $0x2c8] sm:$0xff] }
 0x3ae   :  { %6521 = vmatmul.mubr.msk.bf16.gmra.mrb[112].mxu0 %vm115_vm13, %v5078_v44  ;;  %v9141_v9 = vpop.f32.mrb[14].mxu1  ;;  %3927 = vrot.lane.b32.xlu1 %v4473_v47, %s6651_s1 }
 0x3af   :  { %6524 = vmatprep.mubr.msk.bf16.mxu0 %vm115_vm13, %v5081_v28  ;;  %v5449_v24 = vpop.f32.mrb[15].mxu1  ;;  %v4552_v29 = vpop.permute.xlu0 %4551  ;;  %v5083_v12 = vld [vmem:[#allocation5 + $0x200] sm:$0xff]  ;;  %v5114_v28 = vld [vmem:[#allocation5 + $0x2f8] sm:$0xff] }
 0x3b0   :  { %4625 = vst.msk [vmem:[#allocation5 + $0x218] sm:$0xff] %vm3704_vm1, %v4552_v29  ;;  %5562 = vmatprep.mubr.bf16.mxu1 %v5083_v12  ;;  %v3653_v4 = vpop.permute.xlu1 %3652  ;;  %v5082_v62 = vld [vmem:[#allocation5 + $0x1f8] sm:$0xff] }
 0x3b1   :  { %3727 = vst.msk [vmem:[#allocation5 + $0x210] sm:$0xff] %vm3704_vm1, %v3653_v4  ;;  %5563 = vmatmul.mubr.bf16.gmra.mrb[72].mxu1 %v5082_v62 }
 0x3b3   :  { %v4808_v37 = vpop.permute.xlu0 %4807 }
 0x3b4   :  { %4881 = vst.msk [vmem:[#allocation5 + $0x218] sm:$0xff] %vm3961_vm2, %v4808_v37  ;;  %v3910_v39 = vpop.permute.xlu1 %3909 }
 0x3b5   :  { %3984 = vst.msk [vmem:[#allocation5 + $0x210] sm:$0xff] %vm3961_vm2, %v3910_v39 }
 0x3b6   :  { %6525 = vmatmul.mubr.msk.bf16.gmra.mrb[116].mxu0 %vm115_vm13, %v5084_v33 }
 0x3b7   :  { %6528 = vmatprep.mubr.msk.bf16.mxu0 %vm115_vm13, %v5087_v19  ;;  %v4297_v42 = vpop.permute.xlu0 %4296 }
 0x3b8   :  { %4369 = vst.msk [vmem:[#allocation5 + $0x230] sm:$0xff] %vm3447_vm0, %v4297_v42  ;;  %v9152_v18 = vpop.f32.mrb[16].mxu1  ;;  %v3398_v25 = vpop.permute.xlu1 %3397 }
 0x3b9   :  { %3471 = vst.msk [vmem:[#allocation5 + $0x228] sm:$0xff] %vm3447_vm0, %v3398_v25  ;;  %v5454_v34 = vpop.f32.mrb[17].mxu1 }
 0x3ba   :  { %v9155_v38 = vpop.f32.mrb[18].mxu1 }
 0x3bb   :  { %v5457_v30 = vpop.f32.mrb[19].mxu1  ;;  %v4554_v40 = vpop.permute.xlu0 %4553  ;;  %v5086_v23 = vld [vmem:[#allocation5 + $0x218] sm:$0xff] }
 0x3bc   :  { %4626 = vst.msk [vmem:[#allocation5 + $0x230] sm:$0xff] %vm3704_vm1, %v4554_v40  ;;  %5570 = vmatprep.mubr.bf16.mxu1 %v5086_v23  ;;  %v3655_v56 = vpop.permute.xlu1 %3654  ;;  %v5085_v46 = vld [vmem:[#allocation5 + $0x210] sm:$0xff] }
 0x3bd   :  { %3728 = vst.msk [vmem:[#allocation5 + $0x228] sm:$0xff] %vm3704_vm1, %v3655_v56  ;;  %5571 = vmatmul.mubr.bf16.gmra.mrb[76].mxu1 %v5085_v46 }
 0x3be   :  { %6529 = vmatmul.mubr.msk.bf16.gmra.mrb[120].mxu0 %vm115_vm13, %v5090_v5 }
 0x3bf   :  { %6532 = vmatprep.mubr.msk.bf16.mxu0 %vm115_vm13, %v5093_v60  ;;  %v4810_v45 = vpop.permute.xlu0 %4809 }
 0x3c0   :  { %4882 = vst.msk [vmem:[#allocation5 + $0x230] sm:$0xff] %vm3961_vm2, %v4810_v45  ;;  %v3912_v59 = vpop.permute.xlu1 %3911 }
 0x3c1   :  { %3985 = vst.msk [vmem:[#allocation5 + $0x228] sm:$0xff] %vm3961_vm2, %v3912_v59 }
 0x3c3   :  { %v4299_v13 = vpop.permute.xlu0 %4298 }
 0x3c4   :  { %4370 = vst.msk [vmem:[#allocation5 + $0x248] sm:$0xff] %vm3447_vm0, %v4299_v13  ;;  %v9164_v61 = vpop.f32.mrb[20].mxu1  ;;  %v3400_v47 = vpop.permute.xlu1 %3399 }
 0x3c5   :  { %3472 = vst.msk [vmem:[#allocation5 + $0x240] sm:$0xff] %vm3447_vm0, %v3400_v47  ;;  %v5462_v54 = vpop.f32.mrb[21].mxu1 }
 0x3c6   :  { %6533 = vmatmul.mubr.msk.bf16.gmra.mrb[124].mxu0 %vm115_vm13, %v5096_v63  ;;  %v9168_v36 = vpop.f32.mrb[22].mxu1 }
 0x3c7   :  { %6536 = vmatprep.mubr.msk.bf16.mxu0 %vm115_vm13, %v5099_v41  ;;  %v5465_v55 = vpop.f32.mrb[23].mxu1  ;;  %v4556_v43 = vpop.permute.xlu0 %4555  ;;  %v5089_v3 = vld [vmem:[#allocation5 + $0x230] sm:$0xff] }
 0x3c8   :  { %4627 = vst.msk [vmem:[#allocation5 + $0x248] sm:$0xff] %vm3704_vm1, %v4556_v43  ;;  %5578 = vmatprep.mubr.bf16.mxu1 %v5089_v3  ;;  %v3657_v6 = vpop.permute.xlu1 %3656  ;;  %v5088_v52 = vld [vmem:[#allocation5 + $0x228] sm:$0xff] }
 0x3c9   :  { %3729 = vst.msk [vmem:[#allocation5 + $0x240] sm:$0xff] %vm3704_vm1, %v3657_v6  ;;  %5579 = vmatmul.mubr.bf16.gmra.mrb[80].mxu1 %v5088_v52 }
 0x3cb   :  { %v4812_v53 = vpop.permute.xlu0 %4811 }
 0x3cc   :  { %4883 = vst.msk [vmem:[#allocation5 + $0x248] sm:$0xff] %vm3961_vm2, %v4812_v53  ;;  %v3914_v31 = vpop.permute.xlu1 %3913 }
 0x3cd   :  { %3986 = vst.msk [vmem:[#allocation5 + $0x240] sm:$0xff] %vm3961_vm2, %v3914_v31 }
 0x3ce   :  { %6537 = vmatmul.mubr.msk.bf16.gmra.mrb[128].mxu0 %vm115_vm13, %v5102_v10 }
 0x3cf   :  { %6540 = vmatprep.mubr.msk.bf16.mxu0 %vm115_vm13, %v5105_v27  ;;  %v4301_v50 = vpop.permute.xlu0 %4300 }
 0x3d0   :  { %4371 = vst.msk [vmem:[#allocation5 + $0x260] sm:$0xff] %vm3447_vm0, %v4301_v50  ;;  %v9178_v20 = vpop.f32.mrb[24].mxu1  ;;  %v3402_v32 = vpop.permute.xlu1 %3401 }
 0x3d1   :  { %3473 = vst.msk [vmem:[#allocation5 + $0x258] sm:$0xff] %vm3447_vm0, %v3402_v32  ;;  %v5470_v11 = vpop.f32.mrb[25].mxu1 }
 0x3d2   :  { %v9181_v2 = vpop.f32.mrb[26].mxu1 }
 0x3d3   :  { %v5473_v14 = vpop.f32.mrb[27].mxu1  ;;  %v4558_v49 = vpop.permute.xlu0 %4557  ;;  %v5092_v15 = vld [vmem:[#allocation5 + $0x248] sm:$0xff] }
 0x3d4   :  { %4628 = vst.msk [vmem:[#allocation5 + $0x260] sm:$0xff] %vm3704_vm1, %v4558_v49  ;;  %5586 = vmatprep.mubr.bf16.mxu1 %v5092_v15  ;;  %v3659_v8 = vpop.permute.xlu1 %3658  ;;  %v5091_v16 = vld [vmem:[#allocation5 + $0x240] sm:$0xff] }
 0x3d5   :  { %3730 = vst.msk [vmem:[#allocation5 + $0x258] sm:$0xff] %vm3704_vm1, %v3659_v8  ;;  %5587 = vmatmul.mubr.bf16.gmra.mrb[84].mxu1 %v5091_v16 }
 0x3d6   :  { %6541 = vmatmul.mubr.msk.bf16.gmra.mrb[132].mxu0 %vm115_vm13, %v5108_v58 }
 0x3d7   :  { %6544 = vmatprep.mubr.msk.bf16.mxu0 %vm115_vm13, %v5111_v17  ;;  %v4814_v22 = vpop.permute.xlu0 %4813 }
 0x3d8   :  { %4884 = vst.msk [vmem:[#allocation5 + $0x260] sm:$0xff] %vm3961_vm2, %v4814_v22  ;;  %v3916_v57 = vpop.permute.xlu1 %3915 }
 0x3d9   :  { %3987 = vst.msk [vmem:[#allocation5 + $0x258] sm:$0xff] %vm3961_vm2, %v3916_v57 }
 0x3db   :  { %v4303_v44 = vpop.permute.xlu0 %4302 }
 0x3dc   :  { %4372 = vst.msk [vmem:[#allocation5 + $0x278] sm:$0xff] %vm3447_vm0, %v4303_v44  ;;  %v9190_v24 = vpop.f32.mrb[28].mxu1  ;;  %v3404_v29 = vpop.permute.xlu1 %3403 }
 0x3dd   :  { %3474 = vst.msk [vmem:[#allocation5 + $0x270] sm:$0xff] %vm3447_vm0, %v3404_v29  ;;  %v5478_v12 = vpop.f32.mrb[29].mxu1 }
 0x3de   :  { %v9193_v4 = vpop.f32.mrb[30].mxu1  ;;  %6545 = vmatmul.mubr.msk.bf16.gmra.mrb[136].mxu0 %vm115_vm13, %v5114_v28 }
 0x3df   :  { %v5481_v62 = vpop.f32.mrb[31].mxu1  ;;  %v4560_v37 = vpop.permute.xlu0 %4559  ;;  %v5095_v39 = vld [vmem:[#allocation5 + $0x260] sm:$0xff]  ;;  %6556 = vmatprep.mubr.msk.f32.mxu0 %vm6653_vm3, %v6640_v0 }
 0x3e0   :  { %4629 = vst.msk [vmem:[#allocation5 + $0x278] sm:$0xff] %vm3704_vm1, %v4560_v37  ;;  %5594 = vmatprep.mubr.bf16.mxu1 %v5095_v39  ;;  %v3661_v33 = vpop.permute.xlu1 %3660  ;;  %v5094_v19 = vld [vmem:[#allocation5 + $0x258] sm:$0xff] }
 0x3e1   :  { %3731 = vst.msk [vmem:[#allocation5 + $0x270] sm:$0xff] %vm3704_vm1, %v3661_v33  ;;  %5595 = vmatmul.mubr.bf16.gmra.mrb[88].mxu1 %v5094_v19 }
 0x3e3   :  { %v4816_v42 = vpop.permute.xlu0 %4815 }
 0x3e4   :  { %4885 = vst.msk [vmem:[#allocation5 + $0x278] sm:$0xff] %vm3961_vm2, %v4816_v42  ;;  %v3918_v25 = vpop.permute.xlu1 %3917 }
 0x3e5   :  { %3988 = vst.msk [vmem:[#allocation5 + $0x270] sm:$0xff] %vm3961_vm2, %v3918_v25 }
 0x3e7   :  { %v4305_v34 = vpop.permute.xlu0 %4304 }
 0x3e8   :  { %4373 = vst.msk [vmem:[#allocation5 + $0x290] sm:$0xff] %vm3447_vm0, %v4305_v34  ;;  %v9201_v30 = vpop.f32.mrb[32].mxu1  ;;  %v3406_v40 = vpop.permute.xlu1 %3405 }
 0x3e9   :  { %3475 = vst.msk [vmem:[#allocation5 + $0x288] sm:$0xff] %vm3447_vm0, %v3406_v40  ;;  %v5486_v23 = vpop.f32.mrb[33].mxu1 }
 0x3ea   :  { %v9204_v56 = vpop.f32.mrb[34].mxu1 }
 0x3eb   :  { %v5489_v46 = vpop.f32.mrb[35].mxu1  ;;  %v4562_v5 = vpop.permute.xlu0 %4561  ;;  %v5098_v60 = vld [vmem:[#allocation5 + $0x278] sm:$0xff] }
 0x3ec   :  { %4630 = vst.msk [vmem:[#allocation5 + $0x290] sm:$0xff] %vm3704_vm1, %v4562_v5  ;;  %5602 = vmatprep.mubr.bf16.mxu1 %v5098_v60  ;;  %v3663_v45 = vpop.permute.xlu1 %3662  ;;  %v5097_v59 = vld [vmem:[#allocation5 + $0x270] sm:$0xff] }
 0x3ed   :  { %3732 = vst.msk [vmem:[#allocation5 + $0x288] sm:$0xff] %vm3704_vm1, %v3663_v45  ;;  %5603 = vmatmul.mubr.bf16.gmra.mrb[92].mxu1 %v5097_v59 }
 0x3ef   :  { %v4818_v13 = vpop.permute.xlu0 %4817 }
 0x3f0   :  { %4886 = vst.msk [vmem:[#allocation5 + $0x290] sm:$0xff] %vm3961_vm2, %v4818_v13  ;;  %v3920_v47 = vpop.permute.xlu1 %3919 }
 0x3f1   :  { %3989 = vst.msk [vmem:[#allocation5 + $0x288] sm:$0xff] %vm3961_vm2, %v3920_v47  ;;  %v6652_v47 = vmov 0.0|0.0  }
 0x3f2   :  { %6559 = vmatprep.subr.bf16.mxu0 %v6652_v47 }
 0x3f3   :  { %v4307_v54 = vpop.permute.xlu0 %4306 }
 0x3f4   :  { %4374 = vst.msk [vmem:[#allocation5 + $0x2a8] sm:$0xff] %vm3447_vm0, %v4307_v54  ;;  %v9211_v63 = vpop.f32.mrb[36].mxu1  ;;  %v3408_v41 = vpop.permute.xlu1 %3407  ;;  %v6145_v54 = vld [vmem:[%s9488_s5] sm:$0xff] }
 0x3f5   :  { %3476 = vst.msk [vmem:[#allocation5 + $0x2a0] sm:$0xff] %vm3447_vm0, %v3408_v41  ;;  %v5494_v55 = vpop.f32.mrb[37].mxu1  ;;  %v6146_v41 = vld [vmem:[%s9488_s5 + $0x8] sm:$0xff] }
 0x3f6   :  { %v9214_v43 = vpop.f32.mrb[38].mxu1 }
 0x3f7   :  { %v5497_v3 = vpop.f32.mrb[39].mxu1  ;;  %v4564_v6 = vpop.permute.xlu0 %4563  ;;  %v5101_v52 = vld [vmem:[#allocation5 + $0x290] sm:$0xff] }
 0x3f8   :  { %4631 = vst.msk [vmem:[#allocation5 + $0x2a8] sm:$0xff] %vm3704_vm1, %v4564_v6  ;;  %5610 = vmatprep.mubr.bf16.mxu1 %v5101_v52  ;;  %v3665_v53 = vpop.permute.xlu1 %3664  ;;  %v5100_v31 = vld [vmem:[#allocation5 + $0x288] sm:$0xff]  ;;  %v6560_v6 = vpack.c.bf16 %v6146_v41, %v6145_v54 }
 0x3f9   :  { %3733 = vst.msk [vmem:[#allocation5 + $0x2a0] sm:$0xff] %vm3704_vm1, %v3665_v53  ;;  %5611 = vmatmul.mubr.bf16.gmra.mrb[96].mxu1 %v5100_v31 }
 0x3fa   :  { %6561 = vmatpush3.bf16.msra.mxu0 %v6560_v6 }
 0x3fb   :  { %v4820_v10 = vpop.permute.xlu0 %4819  ;;  %6562 = vmatprep.subr.bf16.mxu0 %v6652_v47 }
 0x3fc   :  { %4887 = vst.msk [vmem:[#allocation5 + $0x2a8] sm:$0xff] %vm3961_vm2, %v4820_v10  ;;  %v3922_v27 = vpop.permute.xlu1 %3921 }
 0x3fd   :  { %3990 = vst.msk [vmem:[#allocation5 + $0x2a0] sm:$0xff] %vm3961_vm2, %v3922_v27 }
 0x3ff   :  { %v4309_v50 = vpop.permute.xlu0 %4308 }
 0x400   :  { %4375 = vst.msk [vmem:[#allocation5 + $0x2c0] sm:$0xff] %vm3447_vm0, %v4309_v50  ;;  %v3410_v11 = vpop.permute.xlu1 %3409 }
 0x401   :  { %3477 = vst.msk [vmem:[#allocation5 + $0x2b8] sm:$0xff] %vm3447_vm0, %v3410_v11 }
 0x402   :  { %v9221_v32 = vpop.f32.mrb[64].mxu0 }
 0x403   :  { %v5398_v14 = vpop.f32.mrb[65].mxu0  ;;  %v4566_v15 = vpop.permute.xlu0 %4565  ;;  %v5104_v16 = vld [vmem:[#allocation5 + $0x2a8] sm:$0xff] }
 0x404   :  { %v9224_v49 = vpop.f32.mrb[66].mxu0  ;;  %4632 = vst.msk [vmem:[#allocation5 + $0x2c0] sm:$0xff] %vm3704_vm1, %v4566_v15  ;;  %5618 = vmatprep.mubr.bf16.mxu1 %v5104_v16  ;;  %v3667_v58 = vpop.permute.xlu1 %3666  ;;  %v5103_v17 = vld [vmem:[#allocation5 + $0x2a0] sm:$0xff] }
 0x405   :  { %v5401_v8 = vpop.f32.mrb[67].mxu0  ;;  %3734 = vst.msk [vmem:[#allocation5 + $0x2b8] sm:$0xff] %vm3704_vm1, %v3667_v58  ;;  %5619 = vmatmul.mubr.bf16.gmra.mrb[100].mxu1 %v5103_v17  ;;  %v9259_v17 = vld [vmem:[%s9489_s4] ss:$0 sm:$0xff] }
 0x407   :  { %v4822_v22 = vpop.permute.xlu0 %4821 }
 0x408   :  { %4888 = vst.msk [vmem:[#allocation5 + $0x2c0] sm:$0xff] %vm3961_vm2, %v4822_v22  ;;  %v3924_v57 = vpop.permute.xlu1 %3923 }
 0x409   :  { %3991 = vst.msk [vmem:[#allocation5 + $0x2b8] sm:$0xff] %vm3961_vm2, %v3924_v57  ;;  %v5397_v57 = vadd.f32 %v9259_v17, %v9221_v32 }
 0x40b   :  { %v4311_v44 = vpop.permute.xlu0 %4310 }
 0x40c   :  { %4376 = vst.msk [vmem:[#allocation5 + $0x2d8] sm:$0xff] %vm3447_vm0, %v4311_v44  ;;  %v9231_v28 = vpop.f32.mrb[40].mxu1  ;;  %v3412_v29 = vpop.permute.xlu1 %3411 }
 0x40d   :  { %3478 = vst.msk [vmem:[#allocation5 + $0x2d0] sm:$0xff] %vm3447_vm0, %v3412_v29  ;;  %v5502_v12 = vpop.f32.mrb[41].mxu1 }
 0x40e   :  { %v9234_v62 = vpop.f32.mrb[42].mxu1 }
 0x40f   :  { %v4568_v37 = vpop.permute.xlu0 %4567  ;;  %v5505_v39 = vpop.f32.mrb[43].mxu1  ;;  %v5107_v33 = vld [vmem:[#allocation5 + $0x2c0] sm:$0xff] }
 0x410   :  { %4633 = vst.msk [vmem:[#allocation5 + $0x2d8] sm:$0xff] %vm3704_vm1, %v4568_v37  ;;  %5626 = vmatprep.mubr.bf16.mxu1 %v5107_v33  ;;  %v3669_v19 = vpop.permute.xlu1 %3668  ;;  %v5106_v42 = vld [vmem:[#allocation5 + $0x2b8] sm:$0xff]  ;;  %v5400_v39 = vadd.f32 %v9259_v17, %v9224_v49 }
 0x411   :  { %3735 = vst.msk [vmem:[#allocation5 + $0x2d0] sm:$0xff] %vm3704_vm1, %v3669_v19  ;;  %5627 = vmatmul.mubr.bf16.gmra.mrb[104].mxu1 %v5106_v42 }
 0x413   :  { %v4824_v25 = vpop.permute.xlu0 %4823 }
 0x414   :  { %4889 = vst.msk [vmem:[#allocation5 + $0x2d8] sm:$0xff] %vm3961_vm2, %v4824_v25  ;;  %v3926_v34 = vpop.permute.xlu1 %3925 }
 0x415   :  { %3992 = vst.msk [vmem:[#allocation5 + $0x2d0] sm:$0xff] %vm3961_vm2, %v3926_v34 }
 0x417   :  { %v4313_v40 = vpop.permute.xlu0 %4312 }
 0x418   :  { %4377 = vst.msk [vmem:[#allocation5 + $0x2f0] sm:$0xff] %vm3447_vm0, %v4313_v40  ;;  %v3414_v23 = vpop.permute.xlu1 %3413  ;;  %v5404_v46 = vpop.f32.mrb[68].mxu0 }
 0x419   :  { %3479 = vst.msk [vmem:[#allocation5 + $0x2e8] sm:$0xff] %vm3447_vm0, %v3414_v23  ;;  %v5406_v5 = vpop.f32.mrb[69].mxu0  ;;  %v5405_v22 = vadd.f32 %v9259_v17, %v5404_v46 }
 0x41a   :  { %v5407_v60 = vpop.f32.mrb[70].mxu0 }
 0x41b   :  { %v4570_v45 = vpop.permute.xlu0 %4569  ;;  %v5409_v59 = vpop.f32.mrb[71].mxu0  ;;  %v5110_v13 = vld [vmem:[#allocation5 + $0x2d8] sm:$0xff]  ;;  %v5408_v29 = vadd.f32 %v9259_v17, %v5407_v60  ;;  %v5421_v60 = vadd.f32 %v9259_v17, %v9048_v48 }
 0x41c   :  { %4634 = vst.msk [vmem:[#allocation5 + $0x2f0] sm:$0xff] %vm3704_vm1, %v4570_v45  ;;  %5634 = vmatprep.mubr.bf16.mxu1 %v5110_v13  ;;  %v3671_v55 = vpop.permute.xlu1 %3670  ;;  %v5109_v3 = vld [vmem:[#allocation5 + $0x2d0] sm:$0xff] }
 0x41d   :  { %3736 = vst.msk [vmem:[#allocation5 + $0x2e8] sm:$0xff] %vm3704_vm1, %v3671_v55  ;;  %5635 = vmatmul.mubr.bf16.gmra.mrb[108].mxu1 %v5109_v3  ;;  %v5424_v55 = vadd.f32 %v9259_v17, %v9053_v7 }
 0x41f   :  { %v4826_v52 = vpop.permute.xlu0 %4825 }
 0x420   :  { %4890 = vst.msk [vmem:[#allocation5 + $0x2f0] sm:$0xff] %vm3961_vm2, %v4826_v52  ;;  %v3928_v53 = vpop.permute.xlu1 %3927 }
 0x421   :  { %3993 = vst.msk [vmem:[#allocation5 + $0x2e8] sm:$0xff] %vm3961_vm2, %v3928_v53 }
 0x425   :  { %v9252_v31 = vpop.f32.mrb[44].mxu1 }
 0x426   :  { %v5510_v10 = vpop.f32.mrb[45].mxu1 }
 0x427   :  { %v9254_v27 = vpop.f32.mrb[46].mxu1  ;;  %v5113_v11 = vld [vmem:[#allocation5 + $0x2f0] sm:$0xff] }
 0x428   :  { %v5513_v50 = vpop.f32.mrb[47].mxu1  ;;  %5642 = vmatprep.mubr.bf16.mxu1 %v5113_v11  ;;  %v5112_v14 = vld [vmem:[#allocation5 + $0x2e8] sm:$0xff] }
 0x429   :  { %5643 = vmatmul.mubr.bf16.gmra.mrb[112].mxu1 %v5112_v14 }
 0x430   :  { %v5412_v15 = vpop.f32.mrb[72].mxu0 }
 0x431   :  { %v5414_v8 = vpop.f32.mrb[73].mxu0  ;;  %v5413_v13 = vadd.f32 %v9259_v17, %v5412_v15 }
 0x432   :  { %v5415_v16 = vpop.f32.mrb[74].mxu0 }
 0x433   :  { %v5417_v58 = vpop.f32.mrb[75].mxu0  ;;  %v5416_v53 = vadd.f32 %v9259_v17, %v5415_v16  ;;  %v5437_v16 = vadd.f32 %v9259_v17, %v9114_v26  ;;  %v5432_v26 = vadd.f32 %v9259_v17, %v9094_v51  ;;  %v5445_v51 = vadd.f32 %v9259_v17, %v9136_v21 }
 0x438   :  { %v6486_v44 = vpop.f32.mrb[76].mxu0 }
 0x439   :  { %v5694_v12 = vadd.f32 %v6486_v44, %v5405_v22  ;;  %v5685_v37 = vpop.f32.mrb[77].mxu0 }
 0x43a   :  { %v5686_v33 = vadd.f32 %v5685_v37, %v5397_v57  ;;  %v6487_v19 = vpop.f32.mrb[78].mxu0 }
 0x43b   :  { %v5697_v42 = vadd.f32 %v6487_v19, %v5408_v29  ;;  %v5688_v25 = vpop.f32.mrb[79].mxu0  ;;  %v5942_v5 = vmax.f32 %v5694_v12, 0.0  ;;  %v5429_v19 = vadd.f32 %v9259_v17, %v9088_v35 }
 0x43c   :  { %v5940_v34 = vmax.f32 %v5686_v33, 0.0  ;;  %v5689_v40 = vadd.f32 %v5688_v25, %v5400_v39  ;;  %v9267_v23 = vpop.f32.mrb[48].mxu1 }
 0x43d   :  { %v5518_v46 = vpop.f32.mrb[49].mxu1  ;;  %v5943_v47 = vmax.f32 %v5697_v42, 0.0  ;;  %v6007_v10 = vsel %vm115_vm13, %v5942_v5, 0.0 }
 0x43e   :  { %v5941_v45 = vmax.f32 %v5689_v40, 0.0  ;;  %v9269_v32 = vpop.f32.mrb[50].mxu1  ;;  %v6004_v49 = vsel %vm115_vm13, %v5940_v34, 0.0  ;;  %v5440_v40 = vadd.f32 %v9259_v17, %v9118_v1 }
 0x43f   :  { %v5521_v59 = vpop.f32.mrb[51].mxu1  ;;  %v6009_v8 = vsel %vm115_vm13, %v5943_v47, 0.0 }
 0x440   :  { %v6005_v54 = vsel %vm115_vm13, %v5941_v45, 0.0  ;;  %v6490_v41 = vpop.f32.mrb[80].mxu0 }
 0x441   :  { %v6006_v3 = vadd.f32 %v6005_v54, %v6004_v49  ;;  %v5710_v6 = vadd.f32 %v6490_v41, %v5421_v60  ;;  %v5701_v52 = vpop.f32.mrb[81].mxu0 }
 0x442   :  { %v5702_v48 = vadd.f32 %v5701_v52, %v5413_v13  ;;  %v6491_v50 = vpop.f32.mrb[82].mxu0 }
 0x443   :  { %v6008_v11 = vadd.f32 %v6007_v10, %v6006_v3  ;;  %v5713_v14 = vadd.f32 %v6491_v50, %v5424_v55  ;;  %v5704_v15 = vpop.f32.mrb[83].mxu0  ;;  %v5946_v44 = vmax.f32 %v5710_v6, 0.0  ;;  %v5453_v10 = vadd.f32 %v9259_v17, %v9152_v18 }
 0x444   :  { %v5944_v58 = vmax.f32 %v5702_v48, 0.0  ;;  %v5705_v22 = vadd.f32 %v5704_v15, %v5416_v53  ;;  %v5456_v15 = vadd.f32 %v9259_v17, %v9155_v38 }
 0x445   :  { %v6010_v57 = vadd.f32 %v6009_v8, %v6008_v11  ;;  %v5947_v37 = vmax.f32 %v5713_v14, 0.0  ;;  %v6015_v46 = vsel %vm115_vm13, %v5946_v44, 0.0 }
 0x446   :  { %v6011_v7 = vsel %vm115_vm13, %v5944_v58, 0.0  ;;  %v5945_v29 = vmax.f32 %v5705_v22, 0.0 }
 0x447   :  { %v6012_v12 = vadd.f32 %v6011_v7, %v6010_v57  ;;  %v6017_v35 = vsel %vm115_vm13, %v5947_v37, 0.0  ;;  %v5448_v57 = vadd.f32 %v9259_v17, %v9141_v9  ;;  %v6147_v9 = vld [vmem:[%s9488_s5 + $0x10] sm:$0xff] }
 0x448   :  { %v6013_v39 = vsel %vm115_vm13, %v5945_v29, 0.0  ;;  %v9285_v33 = vpop.f32.mrb[52].mxu1 }
 0x449   :  { %v6014_v42 = vadd.f32 %v6013_v39, %v6012_v12  ;;  %v6494_v25 = vpop.f32.mrb[84].mxu0  ;;  %v5526_v34 = vpop.f32.mrb[53].mxu1 }
 0x44a   :  { %v5726_v5 = vadd.f32 %v6494_v25, %v5437_v16  ;;  %v5717_v45 = vpop.f32.mrb[85].mxu0  ;;  %v9292_v60 = vpop.f32.mrb[54].mxu1  ;;  %v6148_v34 = vld [vmem:[%s9488_s5 + $0x18] sm:$0xff] }
 0x44b   :  { %v6016_v59 = vadd.f32 %v6015_v46, %v6014_v42  ;;  %v5718_v13 = vadd.f32 %v5717_v45, %v5429_v19  ;;  %v6495_v49 = vpop.f32.mrb[86].mxu0  ;;  %v5529_v47 = vpop.f32.mrb[55].mxu1 }
 0x44c   :  { %v5729_v54 = vadd.f32 %v6495_v49, %v5440_v40  ;;  %v5720_v41 = vpop.f32.mrb[87].mxu0  ;;  %v5950_v6 = vmax.f32 %v5726_v5, 0.0  ;;  %v5461_v49 = vadd.f32 %v9259_v17, %v9164_v61 }
 0x44d   :  { %v5948_v55 = vmax.f32 %v5718_v13, 0.0  ;;  %v6018_v3 = vadd.f32 %v6017_v35, %v6016_v59  ;;  %v5721_v1 = vadd.f32 %v5720_v41, %v5432_v26  ;;  %v6563_v26 = vpack.c.bf16 %v6148_v34, %v6147_v9 }
 0x44e   :  { %v5951_v50 = vmax.f32 %v5729_v54, 0.0  ;;  %v6023_v44 = vsel %vm115_vm13, %v5950_v6, 0.0  ;;  %v5469_v59 = vadd.f32 %v9259_v17, %v9178_v20  ;;  %v5472_v41 = vadd.f32 %v9259_v17, %v9181_v2 }
 0x44f   :  { %v6019_v52 = vsel %vm115_vm13, %v5948_v55, 0.0  ;;  %v5949_v53 = vmax.f32 %v5721_v1, 0.0  ;;  %6564 = vmatpush3.bf16.msra.mxu0 %v6563_v26  ;;  %v5464_v6 = vadd.f32 %v9259_v17, %v9168_v36 }
 0x450   :  { %v6020_v48 = vadd.f32 %v6019_v52, %v6018_v3  ;;  %v6025_v37 = vsel %vm115_vm13, %v5951_v50, 0.0 }
 0x451   :  { %v6021_v11 = vsel %vm115_vm13, %v5949_v53, 0.0  ;;  %v6498_v14 = vpop.f32.mrb[88].mxu0 }
 0x452   :  { %v6022_v8 = vadd.f32 %v6021_v11, %v6020_v48  ;;  %v5742_v58 = vadd.f32 %v6498_v14, %v5453_v10  ;;  %v5733_v22 = vpop.f32.mrb[89].mxu0 }
 0x453   :  { %v5734_v18 = vadd.f32 %v5733_v22, %v5445_v51  ;;  %v6499_v7 = vpop.f32.mrb[90].mxu0 }
 0x454   :  { %v6024_v29 = vadd.f32 %v6023_v44, %v6022_v8  ;;  %v5745_v12 = vadd.f32 %v6499_v7, %v5456_v15  ;;  %v5736_v21 = vpop.f32.mrb[91].mxu0  ;;  %v9308_v16 = vpop.f32.mrb[56].mxu1  ;;  %v5954_v40 = vmax.f32 %v5742_v58, 0.0  ;;  %v5485_v58 = vadd.f32 %v9259_v17, %v9201_v30 }
 0x455   :  { %v5952_v39 = vmax.f32 %v5734_v18, 0.0  ;;  %v5737_v19 = vadd.f32 %v5736_v21, %v5448_v57  ;;  %v5534_v38 = vpop.f32.mrb[57].mxu1  ;;  %v5477_v57 = vadd.f32 %v9259_v17, %v9190_v24  ;;  %v5480_v30 = vadd.f32 %v9259_v17, %v9193_v4 }
 0x456   :  { %v6026_v42 = vadd.f32 %v6025_v37, %v6024_v29  ;;  %v9311_v25 = vpop.f32.mrb[58].mxu1  ;;  %v5955_v47 = vmax.f32 %v5745_v12, 0.0  ;;  %v6031_v20 = vsel %vm115_vm13, %v5954_v40, 0.0  ;;  %v5488_v12 = vadd.f32 %v9259_v17, %v9204_v56 }
 0x457   :  { %v6027_v46 = vsel %vm115_vm13, %v5952_v39, 0.0  ;;  %v5953_v5 = vmax.f32 %v5737_v19, 0.0  ;;  %v5537_v45 = vpop.f32.mrb[59].mxu1  ;;  %v5501_v4 = vadd.f32 %v9259_v17, %v9231_v28 }
 0x458   :  { %v6028_v13 = vadd.f32 %v6027_v46, %v6026_v42  ;;  %v6033_v51 = vsel %vm115_vm13, %v5955_v47, 0.0 }
 0x459   :  { %v6029_v35 = vsel %vm115_vm13, %v5953_v5, 0.0  ;;  %v6502_v54 = vpop.f32.mrb[92].mxu0 }
 0x45a   :  { %v6030_v55 = vadd.f32 %v6029_v35, %v6028_v13  ;;  %v5758_v3 = vadd.f32 %v6502_v54, %v5469_v59  ;;  %v5749_v1 = vpop.f32.mrb[93].mxu0  ;;  %v5493_v35 = vadd.f32 %v9259_v17, %v9211_v63 }
 0x45b   :  { %v5750_v52 = vadd.f32 %v5749_v1, %v5461_v49  ;;  %v6503_v53 = vpop.f32.mrb[94].mxu0 }
 0x45c   :  { %v6032_v10 = vadd.f32 %v6031_v20, %v6030_v55  ;;  %v5761_v61 = vadd.f32 %v6503_v53, %v5472_v41  ;;  %v5752_v48 = vpop.f32.mrb[95].mxu0  ;;  %v5958_v15 = vmax.f32 %v5758_v3, 0.0  ;;  %v5504_v3 = vadd.f32 %v9259_v17, %v9234_v62 }
 0x45d   :  { %v5956_v50 = vmax.f32 %v5750_v52, 0.0  ;;  %v5753_v11 = vadd.f32 %v5752_v48, %v5464_v6  ;;  %v5496_v52 = vadd.f32 %v9259_v17, %v9214_v43 }
 0x45e   :  { %v6034_v14 = vadd.f32 %v6033_v51, %v6032_v10  ;;  %v5959_v44 = vmax.f32 %v5761_v61, 0.0  ;;  %v6039_v38 = vsel %vm115_vm13, %v5958_v15, 0.0 }
 0x45f   :  { %v6035_v2 = vsel %vm115_vm13, %v5956_v50, 0.0  ;;  %v5957_v8 = vmax.f32 %v5753_v11, 0.0 }
 0x460   :  { %v6036_v36 = vadd.f32 %v6035_v2, %v6034_v14  ;;  %v6041_v5 = vsel %vm115_vm13, %v5959_v44, 0.0 }
 0x461   :  { %v6037_v18 = vsel %vm115_vm13, %v5957_v8, 0.0  ;;  %v6506_v7 = vpop.f32.mrb[96].mxu0 }
 0x462   :  { %v6038_v21 = vadd.f32 %v6037_v18, %v6036_v36  ;;  %v5774_v37 = vadd.f32 %v6506_v7, %v5485_v58  ;;  %v5765_v39 = vpop.f32.mrb[97].mxu0  ;;  %v5509_v18 = vadd.f32 %v9259_v17, %v9252_v31 }
 0x463   :  { %v9334_v22 = vpop.f32.mrb[60].mxu1  ;;  %v5766_v42 = vadd.f32 %v5765_v39, %v5477_v57  ;;  %v6507_v24 = vpop.f32.mrb[98].mxu0  ;;  %v5517_v57 = vadd.f32 %v9259_v17, %v9267_v23 }
 0x464   :  { %v5542_v29 = vpop.f32.mrb[61].mxu1  ;;  %v6040_v34 = vadd.f32 %v6039_v38, %v6038_v21  ;;  %v5777_v40 = vadd.f32 %v6507_v24, %v5488_v12  ;;  %v5768_v46 = vpop.f32.mrb[99].mxu0  ;;  %v5962_v59 = vmax.f32 %v5774_v37, 0.0  ;;  %v5520_v21 = vadd.f32 %v9259_v17, %v9269_v32 }
 0x465   :  { %v9341_v19 = vpop.f32.mrb[62].mxu1  ;;  %v5960_v45 = vmax.f32 %v5766_v42, 0.0  ;;  %v5769_v56 = vadd.f32 %v5768_v46, %v5480_v30  ;;  %v5512_v38 = vadd.f32 %v9259_v17, %v9254_v27 }
 0x466   :  { %v5545_v9 = vpop.f32.mrb[63].mxu1  ;;  %v6042_v26 = vadd.f32 %v6041_v5, %v6040_v34  ;;  %v5963_v54 = vmax.f32 %v5777_v40, 0.0  ;;  %v6047_v53 = vsel %vm115_vm13, %v5962_v59, 0.0  ;;  %v5533_v59 = vadd.f32 %v9259_v17, %v9308_v16 }
 0x467   :  { %v6043_v13 = vsel %vm115_vm13, %v5960_v45, 0.0  ;;  %v5961_v49 = vmax.f32 %v5769_v56, 0.0  ;;  %v5528_v16 = vadd.f32 %v9259_v17, %v9292_v60  ;;  %v5541_v60 = vadd.f32 %v9259_v17, %v9334_v22 }
 0x468   :  { %v6044_v47 = vadd.f32 %v6043_v13, %v6042_v26  ;;  %v6049_v50 = vsel %vm115_vm13, %v5963_v54, 0.0 }
 0x469   :  { %v6045_v41 = vsel %vm115_vm13, %v5961_v49, 0.0  ;;  %v6510_v55 = vpop.f32.mrb[100].mxu0  ;;  %v5525_v49 = vadd.f32 %v9259_v17, %v9285_v33 }
 0x46a   :  { %v6046_v1 = vadd.f32 %v6045_v41, %v6044_v47  ;;  %v5790_v6 = vadd.f32 %v6510_v55, %v5501_v4  ;;  %v5781_v20 = vpop.f32.mrb[101].mxu0  ;;  %v5536_v41 = vadd.f32 %v9259_v17, %v9311_v25 }
 0x46b   :  { %v5782_v28 = vadd.f32 %v5781_v20, %v5493_v35  ;;  %v6511_v10 = vpop.f32.mrb[102].mxu0 }
 0x46c   :  { %v6048_v61 = vadd.f32 %v6047_v53, %v6046_v1  ;;  %v5793_v48 = vadd.f32 %v6511_v10, %v5504_v3  ;;  %v5784_v63 = vpop.f32.mrb[103].mxu0  ;;  %v5966_v8 = vmax.f32 %v5790_v6, 0.0 }
 0x46d   :  { %v5964_v11 = vmax.f32 %v5782_v28, 0.0  ;;  %v5785_v14 = vadd.f32 %v5784_v63, %v5496_v52 }
 0x46e   :  { %v6050_v62 = vadd.f32 %v6049_v50, %v6048_v61  ;;  %v5967_v7 = vmax.f32 %v5793_v48, 0.0  ;;  %v6055_v42 = vsel %vm115_vm13, %v5966_v8, 0.0 }
 0x46f   :  { %v5548_v51 = vpop.f32.mrb[64].mxu1  ;;  %v6051_v58 = vsel %vm115_vm13, %v5964_v11, 0.0  ;;  %v5965_v36 = vmax.f32 %v5785_v14, 0.0 }
 0x470   :  { %v5550_v15 = vpop.f32.mrb[65].mxu1  ;;  %v6052_v44 = vadd.f32 %v6051_v58, %v6050_v62  ;;  %v6057_v40 = vsel %vm115_vm13, %v5967_v7, 0.0  ;;  %v5544_v7 = vadd.f32 %v9259_v17, %v9341_v19 }
 0x471   :  { %v5551_v2 = vpop.f32.mrb[66].mxu1  ;;  %v6053_v29 = vsel %vm115_vm13, %v5965_v36, 0.0  ;;  %v6514_v12 = vpop.f32.mrb[104].mxu0  ;;  %v5549_v15 = vadd.f32 %v9259_v17, %v5548_v51 }
 0x472   :  { %v5553_v43 = vpop.f32.mrb[67].mxu1  ;;  %v6054_v37 = vadd.f32 %v6053_v29, %v6052_v44  ;;  %v5806_v39 = vadd.f32 %v6514_v12, %v5517_v57  ;;  %v5797_v30 = vpop.f32.mrb[105].mxu0 }
 0x473   :  { %v5798_v23 = vadd.f32 %v5797_v30, %v5509_v18  ;;  %v6515_v24 = vpop.f32.mrb[106].mxu0  ;;  %v5552_v43 = vadd.f32 %v9259_v17, %v5551_v2 }
 0x474   :  { %v6056_v9 = vadd.f32 %v6055_v42, %v6054_v37  ;;  %v5809_v34 = vadd.f32 %v6515_v24, %v5520_v21  ;;  %v5800_v31 = vpop.f32.mrb[107].mxu0  ;;  %v5970_v56 = vmax.f32 %v5806_v39, 0.0 }
 0x475   :  { %v5968_v46 = vmax.f32 %v5798_v23, 0.0  ;;  %v5801_v5 = vadd.f32 %v5800_v31, %v5512_v38 }
 0x476   :  { %v6058_v45 = vadd.f32 %v6057_v40, %v6056_v9  ;;  %v5971_v4 = vmax.f32 %v5809_v34, 0.0  ;;  %v6063_v20 = vsel %vm115_vm13, %v5970_v56, 0.0 }
 0x477   :  { %v6059_v32 = vsel %vm115_vm13, %v5968_v46, 0.0  ;;  %v5969_v26 = vmax.f32 %v5801_v5, 0.0 }
 0x478   :  { %v6060_v27 = vadd.f32 %v6059_v32, %v6058_v45  ;;  %v5556_v13 = vpop.f32.mrb[68].mxu1  ;;  %v6065_v48 = vsel %vm115_vm13, %v5971_v4, 0.0 }
 0x479   :  { %v6061_v47 = vsel %vm115_vm13, %v5969_v26, 0.0  ;;  %v6518_v35 = vpop.f32.mrb[108].mxu0  ;;  %v5558_v54 = vpop.f32.mrb[69].mxu1  ;;  %v5557_v5 = vadd.f32 %v9259_v17, %v5556_v13 }
 0x47a   :  { %v6062_v55 = vadd.f32 %v6061_v47, %v6060_v27  ;;  %v5822_v3 = vadd.f32 %v6518_v35, %v5533_v59  ;;  %v5813_v1 = vpop.f32.mrb[109].mxu0  ;;  %v5559_v6 = vpop.f32.mrb[70].mxu1 }
 0x47b   :  { %v5814_v52 = vadd.f32 %v5813_v1, %v5525_v49  ;;  %v6519_v53 = vpop.f32.mrb[110].mxu0  ;;  %v5561_v33 = vpop.f32.mrb[71].mxu1  ;;  %v5560_v4 = vadd.f32 %v9259_v17, %v5559_v6 }
 0x47c   :  { %v6064_v28 = vadd.f32 %v6063_v20, %v6062_v55  ;;  %v5825_v10 = vadd.f32 %v6519_v53, %v5536_v41  ;;  %v5816_v61 = vpop.f32.mrb[111].mxu0  ;;  %v5974_v11 = vmax.f32 %v5822_v3, 0.0 }
 0x47d   :  { %v5972_v63 = vmax.f32 %v5814_v52, 0.0  ;;  %v5817_v50 = vadd.f32 %v5816_v61, %v5528_v16 }
 0x47e   :  { %v9383_v25 = vadd.f32 %v6065_v48, %v6064_v28  ;;  %v5975_v8 = vmax.f32 %v5825_v10, 0.0  ;;  %v6076_v29 = vsel %vm115_vm13, %v5974_v11, 0.0 }
 0x47f   :  { %v5973_v14 = vmax.f32 %v5817_v50, 0.0  ;;  %v6073_v62 = vsel %vm115_vm13, %v5972_v63, 0.0 }
 0x480   :  { %v6078_v30 = vsel %vm115_vm13, %v5975_v8, 0.0 }
 0x481   :  { %v6074_v58 = vsel %vm115_vm13, %v5973_v14, 0.0  ;;  %v6522_v36 = vpop.f32.mrb[112].mxu0 }
 0x482   :  { %v6075_v57 = vadd.f32 %v6074_v58, %v6073_v62  ;;  %v5838_v44 = vadd.f32 %v6522_v36, %v5549_v15  ;;  %v5829_v18 = vpop.f32.mrb[113].mxu0 }
 0x483   :  { %v5830_v51 = vadd.f32 %v5829_v18, %v5541_v60  ;;  %v6523_v12 = vpop.f32.mrb[114].mxu0 }
 0x484   :  { %v6077_v21 = vadd.f32 %v6076_v29, %v6075_v57  ;;  %v5841_v22 = vadd.f32 %v6523_v12, %v5552_v43  ;;  %v5832_v37 = vpop.f32.mrb[115].mxu0  ;;  %v5564_v39 = vpop.f32.mrb[72].mxu1  ;;  %v5978_v9 = vmax.f32 %v5838_v44, 0.0 }
 0x485   :  { %v5976_v38 = vmax.f32 %v5830_v51, 0.0  ;;  %v5833_v42 = vadd.f32 %v5832_v37, %v5544_v7  ;;  %v5566_v23 = vpop.f32.mrb[73].mxu1  ;;  %v5565_v46 = vadd.f32 %v9259_v17, %v5564_v39 }
 0x486   :  { %v6079_v2 = vadd.f32 %v6078_v30, %v6077_v21  ;;  %v5567_v24 = vpop.f32.mrb[74].mxu1  ;;  %v5979_v45 = vmax.f32 %v5841_v22, 0.0  ;;  %v6084_v47 = vsel %vm115_vm13, %v5978_v9, 0.0 }
 0x487   :  { %v6080_v34 = vsel %vm115_vm13, %v5976_v38, 0.0  ;;  %v5977_v31 = vmax.f32 %v5833_v42, 0.0  ;;  %v5569_v19 = vpop.f32.mrb[75].mxu1  ;;  %v5568_v59 = vadd.f32 %v9259_v17, %v5567_v24 }
 0x488   :  { %v6081_v40 = vadd.f32 %v6080_v34, %v6079_v2  ;;  %v6086_v13 = vsel %vm115_vm13, %v5979_v45, 0.0 }
 0x489   :  { %v6082_v56 = vsel %vm115_vm13, %v5977_v31, 0.0  ;;  %v6526_v32 = vpop.f32.mrb[116].mxu0 }
 0x48a   :  { %v6083_v26 = vadd.f32 %v6082_v56, %v6081_v40  ;;  %v5854_v27 = vadd.f32 %v6526_v32, %v5565_v46  ;;  %v5845_v49 = vpop.f32.mrb[117].mxu0 }
 0x48b   :  { %v5846_v35 = vadd.f32 %v5845_v49, %v5557_v5  ;;  %v6527_v54 = vpop.f32.mrb[118].mxu0 }
 0x48c   :  { %v6085_v41 = vadd.f32 %v6084_v47, %v6083_v26  ;;  %v5857_v55 = vadd.f32 %v6527_v54, %v5568_v59  ;;  %v5848_v3 = vpop.f32.mrb[119].mxu0  ;;  %v5982_v52 = vmax.f32 %v5854_v27, 0.0 }
 0x48d   :  { %v5980_v1 = vmax.f32 %v5846_v35, 0.0  ;;  %v5849_v16 = vadd.f32 %v5848_v3, %v5560_v4 }
 0x48e   :  { %v6087_v20 = vadd.f32 %v6086_v13, %v6085_v41  ;;  %v5983_v61 = vmax.f32 %v5857_v55, 0.0  ;;  %v6092_v60 = vsel %vm115_vm13, %v5982_v52, 0.0 }
 0x48f   :  { %v6088_v53 = vsel %vm115_vm13, %v5980_v1, 0.0  ;;  %v5981_v33 = vmax.f32 %v5849_v16, 0.0 }
 0x490   :  { %v6089_v28 = vadd.f32 %v6088_v53, %v6087_v20  ;;  %v5572_v10 = vpop.f32.mrb[76].mxu1  ;;  %v6094_v44 = vsel %vm115_vm13, %v5983_v61, 0.0 }
 0x491   :  { %v6090_v6 = vsel %vm115_vm13, %v5981_v33, 0.0  ;;  %v5573_v48 = vadd.f32 %v9259_v17, %v5572_v10  ;;  %v6530_v63 = vpop.f32.mrb[120].mxu0  ;;  %v5574_v50 = vpop.f32.mrb[77].mxu1 }
 0x492   :  { %v6091_v11 = vadd.f32 %v6090_v6, %v6089_v28  ;;  %v5861_v14 = vpop.f32.mrb[121].mxu0  ;;  %v5575_v15 = vpop.f32.mrb[78].mxu1 }
 0x493   :  { %v5862_v62 = vadd.f32 %v5861_v14, %v5573_v48  ;;  %v5576_v8 = vadd.f32 %v9259_v17, %v5575_v15  ;;  %v6531_v58 = vpop.f32.mrb[122].mxu0  ;;  %v5577_v36 = vpop.f32.mrb[79].mxu1 }
 0x494   :  { %v6093_v43 = vadd.f32 %v6092_v60, %v6091_v11  ;;  %v5864_v57 = vpop.f32.mrb[123].mxu0 }
 0x495   :  { %v5984_v18 = vmax.f32 %v5862_v62, 0.0  ;;  %v5865_v7 = vadd.f32 %v5864_v57, %v5576_v8 }
 0x496   :  { %v6095_v29 = vadd.f32 %v6094_v44, %v6093_v43 }
 0x497   :  { %v6096_v51 = vsel %vm115_vm13, %v5984_v18, 0.0  ;;  %v5985_v12 = vmax.f32 %v5865_v7, 0.0 }
 0x498   :  { %v6097_v21 = vadd.f32 %v6096_v51, %v6095_v29 }
 0x499   :  { %v6098_v22 = vsel %vm115_vm13, %v5985_v12, 0.0  ;;  %v6534_v37 = vpop.f32.mrb[124].mxu0 }
 0x49a   :  { %v6099_v39 = vadd.f32 %v6098_v22, %v6097_v21  ;;  %v5877_v30 = vpop.f32.mrb[125].mxu0 }
 0x49b   :  { %v6535_v38 = vpop.f32.mrb[126].mxu0 }
 0x49c   :  { %v5880_v42 = vpop.f32.mrb[127].mxu0  ;;  %v5580_v23 = vpop.f32.mrb[80].mxu1 }
 0x49d   :  { %v5581_v2 = vadd.f32 %v9259_v17, %v5580_v23  ;;  %v5582_v24 = vpop.f32.mrb[81].mxu1 }
 0x49e   :  { %v5583_v9 = vpop.f32.mrb[82].mxu1 }
 0x49f   :  { %v5870_v34 = vadd.f32 %v6530_v63, %v5581_v2  ;;  %v5584_v0 = vadd.f32 %v9259_v17, %v5583_v9  ;;  %v5585_v31 = vpop.f32.mrb[83].mxu1 }
 0x4a1   :  { %v5986_v19 = vmax.f32 %v5870_v34, 0.0  ;;  %v5873_v40 = vadd.f32 %v6531_v58, %v5584_v0  ;;  %v9414_v46 = vpop.f32.mrb[128].mxu0 }
 0x4a2   :  { %v5893_v5 = vpop.f32.mrb[129].mxu0 }
 0x4a3   :  { %v6100_v45 = vsel %vm115_vm13, %v5986_v19, 0.0  ;;  %v5987_v56 = vmax.f32 %v5873_v40, 0.0  ;;  %v9417_v32 = vpop.f32.mrb[130].mxu0 }
 0x4a4   :  { %v6101_v26 = vadd.f32 %v6100_v45, %v6099_v39  ;;  %v5896_v59 = vpop.f32.mrb[131].mxu0 }
 0x4a5   :  { %v6102_v27 = vsel %vm115_vm13, %v5987_v56, 0.0 }
 0x4a6   :  { %v6103_v49 = vadd.f32 %v6102_v27, %v6101_v26 }
 0x4a8   :  { %v5588_v4 = vpop.f32.mrb[84].mxu1 }
 0x4a9   :  { %v5589_v47 = vadd.f32 %v9259_v17, %v5588_v4  ;;  %v9421_v35 = vpop.f32.mrb[132].mxu0  ;;  %v5590_v54 = vpop.f32.mrb[85].mxu1 }
 0x4aa   :  { %v9423_v41 = vpop.f32.mrb[133].mxu0  ;;  %v5591_v55 = vpop.f32.mrb[86].mxu1 }
 0x4ab   :  { %v5878_v3 = vadd.f32 %v5877_v30, %v5589_v47  ;;  %v5592_v13 = vadd.f32 %v9259_v17, %v5591_v55  ;;  %v9426_v1 = vpop.f32.mrb[134].mxu0  ;;  %v5593_v16 = vpop.f32.mrb[87].mxu1 }
 0x4ac   :  { %v5912_v20 = vpop.f32.mrb[135].mxu0 }
 0x4ad   :  { %v5988_v52 = vmax.f32 %v5878_v3, 0.0  ;;  %v5881_v53 = vadd.f32 %v5880_v42, %v5592_v13 }
 0x4af   :  { %v6104_v33 = vsel %vm115_vm13, %v5988_v52, 0.0  ;;  %v5989_v28 = vmax.f32 %v5881_v53, 0.0 }
 0x4b0   :  { %v6105_v10 = vadd.f32 %v6104_v33, %v6103_v49 }
 0x4b1   :  { %v6106_v61 = vsel %vm115_vm13, %v5989_v28, 0.0  ;;  %v9430_v6 = vpop.f32.mrb[136].mxu0 }
 0x4b2   :  { %v6107_v48 = vadd.f32 %v6106_v61, %v6105_v10  ;;  %v9432_v63 = vpop.f32.mrb[137].mxu0 }
 0x4b3   :  { %v9434_v50 = vpop.f32.mrb[138].mxu0 }
 0x4b4   :  { %v5596_v11 = vpop.f32.mrb[88].mxu1  ;;  %v9436_v14 = vpop.f32.mrb[139].mxu0 }
 0x4b5   :  { %v5597_v15 = vadd.f32 %v9259_v17, %v5596_v11  ;;  %v5598_v60 = vpop.f32.mrb[89].mxu1 }
 0x4b6   :  { %v5599_v62 = vpop.f32.mrb[90].mxu1 }
 0x4b7   :  { %v5886_v8 = vadd.f32 %v6534_v37, %v5597_v15  ;;  %v5600_v58 = vadd.f32 %v9259_v17, %v5599_v62  ;;  %v5601_v36 = vpop.f32.mrb[91].mxu1 }
 0x4b9   :  { %v5990_v43 = vmax.f32 %v5886_v8, 0.0  ;;  %v5889_v57 = vadd.f32 %v6535_v38, %v5600_v58 }
 0x4bb   :  { %v6108_v44 = vsel %vm115_vm13, %v5990_v43, 0.0  ;;  %v5991_v18 = vmax.f32 %v5889_v57, 0.0 }
 0x4bc   :  { %v6109_v7 = vadd.f32 %v6108_v44, %v6107_v48 }
 0x4bd   :  { %v6110_v29 = vsel %vm115_vm13, %v5991_v18, 0.0 }
 0x4be   :  { %v6111_v51 = vadd.f32 %v6110_v29, %v6109_v7 }
 0x4c0   :  { %v5604_v12 = vpop.f32.mrb[92].mxu1 }
 0x4c1   :  { %v5605_v21 = vadd.f32 %v9259_v17, %v5604_v12  ;;  %v5606_v22 = vpop.f32.mrb[93].mxu1 }
 0x4c2   :  { %v5607_v39 = vpop.f32.mrb[94].mxu1 }
 0x4c3   :  { %v5894_v30 = vadd.f32 %v5893_v5, %v5605_v21  ;;  %v5608_v37 = vadd.f32 %v9259_v17, %v5607_v39  ;;  %v5609_v42 = vpop.f32.mrb[95].mxu1 }
 0x4c5   :  { %v5992_v23 = vmax.f32 %v5894_v30, 0.0  ;;  %v5897_v2 = vadd.f32 %v5896_v59, %v5608_v37 }
 0x4c7   :  { %v6112_v38 = vsel %vm115_vm13, %v5992_v23, 0.0  ;;  %v5993_v24 = vmax.f32 %v5897_v2, 0.0 }
 0x4c8   :  { %v6113_v9 = vadd.f32 %v6112_v38, %v6111_v51 }
 0x4c9   :  { %v6114_v34 = vsel %vm115_vm13, %v5993_v24, 0.0 }
 0x4ca   :  { %v6115_v0 = vadd.f32 %v6114_v34, %v6113_v9  ;;  %v6067_v34 = vrot.slane %v9383_v25, 4 }
 0x4cc   :  { %v5612_v31 = vpop.f32.mrb[96].mxu1 }
 0x4cd   :  { %v5613_v19 = vadd.f32 %v9259_v17, %v5612_v31  ;;  %v5614_v40 = vpop.f32.mrb[97].mxu1 }
 0x4ce   :  { %v5615_v45 = vpop.f32.mrb[98].mxu1 }
 0x4cf   :  { %v5902_v56 = vadd.f32 %v9414_v46, %v5613_v19  ;;  %v5616_v5 = vadd.f32 %v9259_v17, %v5615_v45  ;;  %v5617_v26 = vpop.f32.mrb[99].mxu1 }
 0x4d1   :  { %v5994_v27 = vmax.f32 %v5902_v56, 0.0  ;;  %v5905_v59 = vadd.f32 %v9417_v32, %v5616_v5 }
 0x4d3   :  { %v6116_v49 = vsel %vm115_vm13, %v5994_v27, 0.0  ;;  %v5995_v4 = vmax.f32 %v5905_v59, 0.0 }
 0x4d4   :  { %v6117_v47 = vadd.f32 %v6116_v49, %v6115_v0 }
 0x4d5   :  { %v6118_v54 = vsel %vm115_vm13, %v5995_v4, 0.0 }
 0x4d6   :  { %v6119_v55 = vadd.f32 %v6118_v54, %v6117_v47 }
 0x4d8   :  { %v5620_v3 = vpop.f32.mrb[100].mxu1 }
 0x4d9   :  { %v5621_v13 = vadd.f32 %v9259_v17, %v5620_v3  ;;  %v5622_v16 = vpop.f32.mrb[101].mxu1 }
 0x4da   :  { %v5623_v52 = vpop.f32.mrb[102].mxu1 }
 0x4db   :  { %v5910_v46 = vadd.f32 %v9423_v41, %v5621_v13  ;;  %v5624_v53 = vadd.f32 %v9259_v17, %v5623_v52  ;;  %v5625_v33 = vpop.f32.mrb[103].mxu1 }
 0x4dd   :  { %v5996_v28 = vmax.f32 %v5910_v46, 0.0  ;;  %v5913_v10 = vadd.f32 %v5912_v20, %v5624_v53 }
 0x4df   :  { %v6120_v32 = vsel %vm115_vm13, %v5996_v28, 0.0  ;;  %v5997_v61 = vmax.f32 %v5913_v10, 0.0  ;;  %v6334_v28 = vld [vmem:[%s9490_s6] ss:$0 sm:$0xff] }
 0x4e0   :  { %v6121_v48 = vadd.f32 %v6120_v32, %v6119_v55 }
 0x4e1   :  { %v6122_v11 = vsel %vm115_vm13, %v5997_v61, 0.0 }
 0x4e2   :  { %v6123_v15 = vadd.f32 %v6122_v11, %v6121_v48 }
 0x4e4   :  { %v5628_v60 = vpop.f32.mrb[104].mxu1 }
 0x4e5   :  { %v5629_v62 = vadd.f32 %v9259_v17, %v5628_v60  ;;  %v5630_v8 = vpop.f32.mrb[105].mxu1 }
 0x4e6   :  { %v5631_v58 = vpop.f32.mrb[106].mxu1 }
 0x4e7   :  { %v5918_v36 = vadd.f32 %v9421_v35, %v5629_v62  ;;  %v5632_v41 = vadd.f32 %v9259_v17, %v5631_v58  ;;  %v5633_v43 = vpop.f32.mrb[107].mxu1  ;;  %v6237_v62 = vlaneseq }
 0x4e9   :  { %v5998_v57 = vmax.f32 %v5918_v36, 0.0  ;;  %v5921_v20 = vadd.f32 %v9426_v1, %v5632_v41  ;;  %v6238_v8 = vand.u32 127, %v6237_v62 }
 0x4eb   :  { %v6124_v44 = vsel %vm115_vm13, %v5998_v57, 0.0  ;;  %v5999_v18 = vmax.f32 %v5921_v20, 0.0  ;;  %vm6239_vm5 = vcmp.eq.s32.totalorder %v6238_v8, 0 }
 0x4ec   :  { %v6125_v7 = vadd.f32 %v6124_v44, %v6123_v15 }
 0x4ed   :  { %v6126_v29 = vsel %vm115_vm13, %v5999_v18, 0.0 }
 0x4ee   :  { %v6127_v51 = vadd.f32 %v6126_v29, %v6125_v7 }
 0x4f0   :  { %v5636_v12 = vpop.f32.mrb[108].mxu1 }
 0x4f1   :  { %v5637_v21 = vadd.f32 %v9259_v17, %v5636_v12  ;;  %v5638_v22 = vpop.f32.mrb[109].mxu1 }
 0x4f2   :  { %v5639_v39 = vpop.f32.mrb[110].mxu1 }
 0x4f3   :  { %v5640_v35 = vadd.f32 %v9259_v17, %v5639_v39  ;;  %v5926_v30 = vadd.f32 %v9432_v63, %v5637_v21  ;;  %v5641_v37 = vpop.f32.mrb[111].mxu1 }
 0x4f5   :  { %v6000_v42 = vmax.f32 %v5926_v30, 0.0  ;;  %v5929_v1 = vadd.f32 %v9436_v14, %v5640_v35  ;;  %v6068_v14 = vadd.f32 %v6067_v34, %v9383_v25 }
 0x4f7   :  { %v6128_v23 = vsel %vm115_vm13, %v6000_v42, 0.0  ;;  %v6001_v2 = vmax.f32 %v5929_v1, 0.0  ;;  %v6069_v49 = vrot.slane %v6068_v14, 2 }
 0x4f8   :  { %v6129_v38 = vadd.f32 %v6128_v23, %v6127_v51 }
 0x4f9   :  { %v6130_v24 = vsel %vm115_vm13, %v6001_v2, 0.0  ;;  %v6070_v55 = vadd.f32 %v6069_v49, %v6068_v14 }
 0x4fa   :  { %v6131_v9 = vadd.f32 %v6130_v24, %v6129_v38 }
 0x4fc   :  { %v5644_v0 = vpop.f32.mrb[112].mxu1 }
 0x4fd   :  { %v5645_v31 = vadd.f32 %v9259_v17, %v5644_v0  ;;  %v5646_v19 = vpop.f32.mrb[113].mxu1 }
 0x4fe   :  { %v5647_v40 = vpop.f32.mrb[114].mxu1 }
 0x4ff   :  { %v5934_v63 = vadd.f32 %v9430_v6, %v5645_v31  ;;  %v5648_v45 = vadd.f32 %v9259_v17, %v5647_v40  ;;  %v5649_v56 = vpop.f32.mrb[115].mxu1  ;;  %v6071_v6 = vrot.slane %v6070_v55, 1 }
 0x501   :  { %v6002_v5 = vmax.f32 %v5934_v63, 0.0  ;;  %v5937_v26 = vadd.f32 %v9434_v50, %v5648_v45  ;;  %v6072_v46 = vadd.f32 %v6071_v6, %v6070_v55 }
 0x503   :  { %v6132_v27 = vsel %vm115_vm13, %v6002_v5, 0.0  ;;  %v6003_v59 = vmax.f32 %v5937_v26, 0.0  ;;  %v6143_v50 = vmul.f32 0.00390625, %v6072_v46 }
 0x504   :  { %v6133_v4 = vadd.f32 %v6132_v27, %v6131_v9 }
 0x505   :  { %v6134_v47 = vsel %vm115_vm13, %v6003_v59, 0.0 }
 0x506   :  { %v6135_v54 = vadd.f32 %v6134_v47, %v6133_v4 }
 0x508   :  { %v6136_v3 = vrot.slane %v6135_v54, 4 }
 0x50a   :  { %v6137_v13 = vadd.f32 %v6136_v3, %v6135_v54 }
 0x50c   :  { %v6138_v16 = vrot.slane %v6137_v13, 2 }
 0x50e   :  { %v6139_v17 = vadd.f32 %v6138_v16, %v6137_v13 }
 0x510   :  { %v6140_v52 = vrot.slane %v6139_v17, 1 }
 0x512   :  { %v6141_v25 = vadd.f32 %v6140_v52, %v6139_v17 }
 0x514   :  { %v6144_v53 = vmul.f32 0.00390625, %v6141_v25 }
 0x516   :  { %v6159_v33 = vsel %vm6158_vm4, %v6144_v53, %v6143_v50 }
 0x517   :  { %6557 = vmatmul.mubr.msk.f32.vlgmr.msra.gmra.mrb[140].mxu0 %vm115_vm13, %v6159_v33 }
 0x5ea   :  { %v6228_v10 = vpop.f32.mrb[140].mxu0 }
 0x5eb   :  { %v6229_v32 = vadd.f32 %v6334_v28, %v6228_v10  ;;  %v6558_v61 = vpop.f32.mrb[141].mxu0 }
 0x5ed   :  { %v6232_v48 = vsub.f32 0.0, %v6229_v32 }
 0x5ef   :  { %v6233_v11 = vmul.f32 1.442695, %v6232_v48 }
 0x5f1   :  { %6633 = vpow2.f32 %v6233_v11 }
 0x5fb   :  { %v6634_v15 = vpop.eup %6633 }
 0x5fc   :  { %v6235_v60 = vadd.f32 1.0, %v6634_v15 }
 0x5fe   :  { %6635 = vrcp.f32 %v6235_v60 }
 0x608   :  { %v6636_v58 = vpop.eup %6635 }
 0x609   :  { %v6240_v36 = vsel %vm6239_vm5, %v6229_v32, %v6636_v58 }
 0x60a   :  { %6242 = vst.msk [vmem:[%s9491_s7] sm:$0x3] %vm6241_vm6, %v6240_v36 }

</bundles_post_ra>
